<compile_context>
chip_gen: v7x
topology: tpu7x:2x2x1
jax: 0.10.0
libtpu: 0.0.40
codegen_flags: <defaults>
</compile_context>

<pallas_src>
import functools

import jax
import jax.numpy as jnp
from jax import lax
from jax.experimental import pallas as pl
from jax.experimental.pallas import tpu as pltpu

_ARB1 = pltpu.CompilerParams(dimension_semantics=("arbitrary",))


# ----------------------------------------------------------------------------
# Pallas kernel 1: matmul + bias + activation (single tile, whole K)
# ----------------------------------------------------------------------------
def _mm_bias_act_kernel(a_ref, b_ref, bias_ref, o_ref, *, act):
    acc = jnp.dot(a_ref[...], b_ref[...], preferred_element_type=jnp.float32)
    acc = acc + bias_ref[...]
    if act == "relu":
        acc = jnp.maximum(acc, 0.0)
    elif act == "sigmoid":
        acc = jax.nn.sigmoid(acc)
    o_ref[...] = acc.astype(o_ref.dtype)


def pallas_matmul_bias_act(a, b, bias, act="none"):
    """C = act(A @ B + bias).  A:[M,K] (bf16), B:[K,N] (bf16), bias:[N] (f32)."""
    M, K = a.shape
    K2, N = b.shape
    assert K == K2
    bias2 = bias.reshape(1, N).astype(jnp.float32)
    return pl.pallas_call(
        functools.partial(_mm_bias_act_kernel, act=act),
        out_shape=jax.ShapeDtypeStruct((M, N), jnp.float32),
        grid=(1,),
        in_specs=[
            pl.BlockSpec((M, K), lambda i: (0, 0)),
            pl.BlockSpec((K, N), lambda i: (0, 0)),
            pl.BlockSpec((1, N), lambda i: (0, 0)),
        ],
        out_specs=pl.BlockSpec((M, N), lambda i: (0, 0)),
        compiler_params=_ARB1,
    )(a, b, bias2)


# ----------------------------------------------------------------------------
# Pallas kernel 2: matmul + train-mode BatchNorm (batch stats in-kernel) + ReLU
# ----------------------------------------------------------------------------
def _mm_bn_relu_kernel(a_ref, b_ref, g_ref, be_ref, o_ref, *, eps):
    acc = jnp.dot(a_ref[...], b_ref[...], preferred_element_type=jnp.float32)
    # Per-channel batch statistics over all M rows (M is exact -- no padded rows).
    mean = jnp.mean(acc, axis=0, keepdims=True)
    diff = acc - mean
    var = jnp.mean(diff * diff, axis=0, keepdims=True)      # biased, like torch train BN
    scaled = diff * (g_ref[...] * lax.rsqrt(var + eps)) + be_ref[...]
    o_ref[...] = jnp.maximum(scaled, 0.0).astype(o_ref.dtype)


def pallas_matmul_bn_relu(a, b, gamma, beta, eps=1e-5):
    """C = relu(batchnorm_train(A @ B)).  Conv bias omitted (cancelled by BN mean)."""
    M, K = a.shape
    K2, N = b.shape
    assert K == K2
    g = gamma.reshape(1, N).astype(jnp.float32)
    be = beta.reshape(1, N).astype(jnp.float32)
    return pl.pallas_call(
        functools.partial(_mm_bn_relu_kernel, eps=eps),
        out_shape=jax.ShapeDtypeStruct((M, N), jnp.float32),
        grid=(1,),
        in_specs=[
            pl.BlockSpec((M, K), lambda i: (0, 0)),
            pl.BlockSpec((K, N), lambda i: (0, 0)),
            pl.BlockSpec((1, N), lambda i: (0, 0)),
            pl.BlockSpec((1, N), lambda i: (0, 0)),
        ],
        out_specs=pl.BlockSpec((M, N), lambda i: (0, 0)),
        compiler_params=_ARB1,
    )(a, b, g, be)


# ----------------------------------------------------------------------------
# Pallas kernel 3: fused latent bottleneck
#   mu = flat@Wmu+bmu ; logvar = flat@Wlv+blv ; z = mu + eps*exp(0.5*logvar)
#   d  = z@Wd_z + emb_raw@Wd_e + bd   (== fc_decoder([z, emb_raw]))
# ----------------------------------------------------------------------------
def _latent_fused_kernel(flat_ref, wmu_ref, bmu_ref, wlv_ref, blv_ref,
                         eps_ref, emb_ref, wdz_ref, wde_ref, bd_ref,
                         mu_ref, lv_ref, d_ref):
    flat = flat_ref[...]
    mu = jnp.dot(flat, wmu_ref[...], preferred_element_type=jnp.float32) + bmu_ref[...]
    lv = jnp.dot(flat, wlv_ref[...], preferred_element_type=jnp.float32) + blv_ref[...]
    std = jnp.exp(0.5 * lv)
    z = mu + eps_ref[...] * std
    d = (jnp.dot(z.astype(wdz_ref.dtype), wdz_ref[...],
                 preferred_element_type=jnp.float32)
         + jnp.dot(emb_ref[...], wde_ref[...],
                   preferred_element_type=jnp.float32)
         + bd_ref[...])
    mu_ref[...] = mu
    lv_ref[...] = lv
    d_ref[...] = d


def pallas_latent_fused(flat, w_mu, b_mu, w_lv, b_lv, eps, emb, w_dz, w_de, b_d):
    B, K = flat.shape
    L = w_mu.shape[1]
    F = w_dz.shape[1]

    def full(shape):
        nd = len(shape)
        return pl.BlockSpec(shape, lambda i, _nd=nd: (0,) * _nd)

    return pl.pallas_call(
        _latent_fused_kernel,
        out_shape=(jax.ShapeDtypeStruct((B, L), jnp.float32),
                   jax.ShapeDtypeStruct((B, L), jnp.float32),
                   jax.ShapeDtypeStruct((B, F), jnp.float32)),
        grid=(1,),
        in_specs=[full((B, K)),
                  full((K, L)), full((1, L)),
                  full((K, L)), full((1, L)),
                  full((B, L)), full((B, L)),
                  full((L, F)), full((L, F)), full((1, F))],
        out_specs=(full((B, L)), full((B, L)), full((B, F))),
        compiler_params=_ARB1,
    )(flat,
      w_mu, b_mu.reshape(1, L).astype(jnp.float32),
      w_lv, b_lv.reshape(1, L).astype(jnp.float32),
      eps, emb,
      w_dz, w_de, b_d.reshape(1, F).astype(jnp.float32))


# ----------------------------------------------------------------------------
# Conv / ConvTranspose lowering (im2col glue in JAX, fused matmul in Pallas)
# ----------------------------------------------------------------------------
def _im2col(x, KH, KW, stride, pad):
    """x: [N,H,W,Cin] -> patches [N*Ho*Wo, KH*KW*Cin] (channels last = lane-dense)."""
    N, H, W, Cin = x.shape
    xp = jnp.pad(x, ((0, 0), (pad, pad), (pad, pad), (0, 0)))
    Ho = (H + 2 * pad - KH) // stride + 1
    Wo = (W + 2 * pad - KW) // stride + 1
    cols = []
    for kh in range(KH):
        for kw in range(KW):
            cols.append(xp[:, kh:kh + stride * Ho:stride,
                           kw:kw + stride * Wo:stride, :])
    patches = jnp.concatenate(cols, axis=-1).reshape(N * Ho * Wo, KH * KW * Cin)
    return patches, Ho, Wo
# TODO(synk): im2col could be folded into the kernel grid via Element index maps, but the
# stride-2 in-window sampling is not expressible with plain BlockSpecs; kept as XLA glue.


def conv_bn_relu(x, w_mat, gamma, beta, stride, pad, KH=4, KW=4):
    """Fused Conv2d (no bias) + BatchNorm2d(train) + ReLU.  x: NHWC, w_mat: [KH*KW*Cin,Cout] bf16."""
    N = x.shape[0]
    patches, Ho, Wo = _im2col(x.astype(jnp.bfloat16), KH, KW, stride, pad)
    out = pallas_matmul_bn_relu(patches, w_mat, gamma, beta)
    return out.reshape(N, Ho, Wo, -1)


def conv_bias_act(x, w_mat, bias, stride, pad, act, KH=4, KW=4):
    """Fused Conv2d + bias + activation (for the final decoder layer)."""
    N = x.shape[0]
    patches, Ho, Wo = _im2col(x.astype(jnp.bfloat16), KH, KW, stride, pad)
    out = pallas_matmul_bias_act(patches, w_mat, bias, act=act)
    return out.reshape(N, Ho, Wo, -1)


def _dilate(x, stride):
    """Insert (stride-1) zeros between spatial elements (ConvTranspose lowering)."""
    N, H, W, C = x.shape
    Hd, Wd = (H - 1) * stride + 1, (W - 1) * stride + 1
    return jnp.zeros((N, Hd, Wd, C), x.dtype).at[:, ::stride, ::stride, :].set(x)
# ConvTranspose2d(k=4, s=2, p=1) == dilate-by-2 then Conv2d(k=4, s=1, p=2) with a
# spatially-flipped, channel-swapped kernel (the flip/swap is baked into the weights once).


# ----------------------------------------------------------------------------
# Parameter init (torch layouts) and one-time conversion to matmul-ready bf16
# ----------------------------------------------------------------------------
def init_params(key, input_size=(3, 16, 16), num_classes=5, latent_size=32,
                label_embedding_size=32):
    c, h, w = input_size
    tot = c + label_embedding_size
    flatten_size = 256 * (h // 16) * (w // 16)
    ks = iter(jax.random.split(key, 64))
    sc = 0.05

    def nrm(shape):
        return (sc * jax.random.normal(next(ks), shape)).astype(jnp.float32)

    p = {}
    p["embed"] = nrm((num_classes, label_embedding_size))
    p["label_fc_w"] = nrm((label_embedding_size, label_embedding_size))   # [in, out]
    p["label_fc_b"] = jnp.zeros((label_embedding_size,), jnp.float32)

    enc_ch = [tot, 32, 64, 128, 256]
    for i in range(4):
        # conv biases omitted: exactly cancelled by the following train-mode BatchNorm
        p[f"enc_w{i}"] = nrm((enc_ch[i + 1], enc_ch[i], 4, 4))            # [Cout,Cin,4,4]
        p[f"enc_g{i}"] = jnp.ones((enc_ch[i + 1],), jnp.float32)
        p[f"enc_be{i}"] = jnp.zeros((enc_ch[i + 1],), jnp.float32)

    p["fc_mu_w"] = nrm((flatten_size, latent_size))
    p["fc_mu_b"] = jnp.zeros((latent_size,), jnp.float32)
    p["fc_logvar_w"] = nrm((flatten_size, latent_size))
    p["fc_logvar_b"] = jnp.zeros((latent_size,), jnp.float32)
    p["fc_dec_w"] = nrm((latent_size + label_embedding_size, flatten_size))
    p["fc_dec_b"] = jnp.zeros((flatten_size,), jnp.float32)

    dec_ch = [256, 128, 64, 32, c]
    for i in range(4):
        p[f"dec_w{i}"] = nrm((dec_ch[i], dec_ch[i + 1], 4, 4))            # [Cin,Cout,4,4]
        if i < 3:
            p[f"dec_g{i}"] = jnp.ones((dec_ch[i + 1],), jnp.float32)
            p[f"dec_be{i}"] = jnp.zeros((dec_ch[i + 1],), jnp.float32)
        else:
            p[f"dec_b{i}"] = jnp.zeros((dec_ch[i + 1],), jnp.float32)
    return p


def prepare_params(p):
    """Convert torch-layout weights to matmul-ready bf16 once (outside the jitted fwd)."""
    q = {"embed": p["embed"],
         "label_fc_w": p["label_fc_w"].astype(jnp.bfloat16),
         "label_fc_b": p["label_fc_b"]}

    for i in range(4):
        w = p[f"enc_w{i}"]                                   # [Cout, Cin, KH, KW]
        q[f"enc_w{i}"] = (jnp.transpose(w, (2, 3, 1, 0))
                          .reshape(-1, w.shape[0]).astype(jnp.bfloat16))
        q[f"enc_g{i}"] = p[f"enc_g{i}"]
        q[f"enc_be{i}"] = p[f"enc_be{i}"]

    L = p["fc_mu_w"].shape[1]
    q["fc_mu_w"] = p["fc_mu_w"].astype(jnp.bfloat16)
    q["fc_mu_b"] = p["fc_mu_b"]
    q["fc_logvar_w"] = p["fc_logvar_w"].astype(jnp.bfloat16)
    q["fc_logvar_b"] = p["fc_logvar_b"]
    # fc_decoder acting on [z, emb_raw]: split rows once so the kernel avoids a concat.
    q["fc_dec_z_w"] = p["fc_dec_w"][:L, :].astype(jnp.bfloat16)
    q["fc_dec_e_w"] = p["fc_dec_w"][L:, :].astype(jnp.bfloat16)
    q["fc_dec_b"] = p["fc_dec_b"]

    for i in range(4):
        w = p[f"dec_w{i}"]                                   # torch ConvT: [Cin, Cout, KH, KW]
        w_conv = jnp.transpose(jnp.flip(w, axis=(2, 3)), (1, 0, 2, 3))   # equiv fwd conv OIHW
        q[f"dec_w{i}"] = (jnp.transpose(w_conv, (2, 3, 1, 0))
                          .reshape(-1, w_conv.shape[0]).astype(jnp.bfloat16))
        if i < 3:
            q[f"dec_g{i}"] = p[f"dec_g{i}"]
            q[f"dec_be{i}"] = p[f"dec_be{i}"]
        else:
            q[f"dec_b{i}"] = p[f"dec_b{i}"]
    return q


# ----------------------------------------------------------------------------
# CVAE forward
# ----------------------------------------------------------------------------
def cvae_forward(params, x_nchw, labels, noise_key, latent_size=32):
    B, C, H, W = x_nchw.shape
    x = jnp.transpose(x_nchw, (0, 2, 3, 1)).astype(jnp.float32)          # NHWC

    # label embedding (gather) + label_fc with fused ReLU
    emb_raw = params["embed"][labels]                                     # [B, E] f32
    emb = pallas_matmul_bias_act(emb_raw.astype(jnp.bfloat16),
                                 params["label_fc_w"], params["label_fc_b"],
                                 act="relu")
    E = emb.shape[-1]
    emb_map = jnp.broadcast_to(emb[:, None, None, :], (B, H, W, E))
    h = jnp.concatenate([x, emb_map], axis=-1)                            # [B,H,W,C+E]

    # encoder: 4 x fused (conv s2 + BN(train) + ReLU)
    for i in range(4):
        h = conv_bn_relu(h, params[f"enc_w{i}"], params[f"enc_g{i}"],
                         params[f"enc_be{i}"], stride=2, pad=1)

    # flatten in torch NCHW order
    flat = jnp.transpose(h, (0, 3, 1, 2)).reshape(B, -1)

    # fused latent bottleneck: fc_mu + fc_logvar + reparameterize + fc_decoder
    eps = jax.random.normal(noise_key, (B, latent_size), jnp.float32)     # torch.randn_like
    mu, logvar, d = pallas_latent_fused(
        flat.astype(jnp.bfloat16),
        params["fc_mu_w"], params["fc_mu_b"],
        params["fc_logvar_w"], params["fc_logvar_b"],
        eps, emb_raw.astype(jnp.bfloat16),
        params["fc_dec_z_w"], params["fc_dec_e_w"], params["fc_dec_b"])

    h16, w16 = H // 16, W // 16
    h = jnp.transpose(d.reshape(B, 256, h16, w16), (0, 2, 3, 1))          # NHWC

    # decoder: 3 x fused (convT s2 + BN(train) + ReLU), final convT + bias + Sigmoid
    for i in range(3):
        h = conv_bn_relu(_dilate(h, 2), params[f"dec_w{i}"],
                         params[f"dec_g{i}"], params[f"dec_be{i}"],
                         stride=1, pad=2)
    h = conv_bias_act(_dilate(h, 2), params["dec_w3"], params["dec_b3"],
                      stride=1, pad=2, act="sigmoid")

    recon = jnp.transpose(h, (0, 3, 1, 2))                                # back to NCHW
    return recon, mu, logvar


if __name__ == "__main__":
    # small shapes: batch=2, channels=3, spatial=16, latent=32, label_emb=32
    input_size = (3, 16, 16)
    num_classes = 5
    latent_size = 32
    label_embedding_size = 32

    root = jax.random.PRNGKey(0)
    k_param, k_x, k_lbl, k_noise = jax.random.split(root, 4)

    raw = init_params(k_param, input_size, num_classes, latent_size,
                      label_embedding_size)
    params = prepare_params(raw)

    x = jax.random.normal(k_x, (2,) + input_size, jnp.float32)            # [2,3,16,16]
    labels = jax.random.randint(k_lbl, (2,), 0, num_classes, jnp.int32)

    fwd = jax.jit(functools.partial(cvae_forward, params,
                                    latent_size=latent_size))
    recon, mu, logvar = fwd(x, labels, k_noise)
    jax.block_until_ready((recon, mu, logvar))

    assert recon.shape == (2, 3, 16, 16)
    assert mu.shape == (2, latent_size)
    assert logvar.shape == (2, latent_size)
    assert bool(jnp.all(jnp.isfinite(recon)))
    assert bool(jnp.all((recon >= 0.0) & (recon <= 1.0)))
    print("KERNEL_OK")
</pallas_src>

<mosaic_0001>
module attributes {stable_mosaic.version = 11 : i64} {
  func.func @_mm_bias_act_kernel(%arg0: i32, %arg1: memref<2x32xbf16, #tpu.memory_space<vmem>>, %arg2: memref<32x32xbf16, #tpu.memory_space<vmem>>, %arg3: memref<1x32xf32, #tpu.memory_space<vmem>>, %arg4: memref<2x32xf32, #tpu.memory_space<vmem>>) attributes {dimension_semantics = [#tpu.dimension_semantics<arbitrary>], iteration_bounds = array<i64: 1>, scalar_prefetch = 0 : i64, scratch_operands = 0 : i64, tpu.core_type = #tpu.core_type<tc>, window_params = [{pipeline_mode = #tpu.pipeline_mode<synchronous>, transform_indices = @transform_0, window_bounds = array<i64: 2, 32>}, {pipeline_mode = #tpu.pipeline_mode<synchronous>, transform_indices = @transform_1, window_bounds = array<i64: 32, 32>}, {pipeline_mode = #tpu.pipeline_mode<synchronous>, transform_indices = @transform_2, window_bounds = array<i64: 1, 32>}, {pipeline_mode = #tpu.pipeline_mode<synchronous>, transform_indices = @transform_3, window_bounds = array<i64: 2, 32>}]} {
    %c0 = arith.constant 0 : index
    %c0_0 = arith.constant 0 : index
    %0 = vector.load %arg1[%c0, %c0_0] : memref<2x32xbf16, #tpu.memory_space<vmem>>, vector<2x32xbf16>
    %c0_1 = arith.constant 0 : index
    %c0_2 = arith.constant 0 : index
    %1 = vector.load %arg2[%c0_1, %c0_2] : memref<32x32xbf16, #tpu.memory_space<vmem>>, vector<32x32xbf16>
    %cst = arith.constant dense<0.000000e+00> : vector<2x32xf32>
    %2 = tpu.matmul %0, %1, %cst {dimension_numbers = #tpu.dot_dimension_numbers<[1], [0], [0], [1], [0, 0, 1, 1], [], []>} : vector<2x32xbf16>, vector<32x32xbf16>, vector<2x32xf32> -> vector<2x32xf32>
    %c0_3 = arith.constant 0 : index
    %c0_4 = arith.constant 0 : index
    %3 = vector.load %arg3[%c0_3, %c0_4] : memref<1x32xf32, #tpu.memory_space<vmem>>, vector<1x32xf32>
    %4 = vector.broadcast %3 : vector<1x32xf32> to vector<2x32xf32>
    %5 = arith.addf %2, %4 : vector<2x32xf32>
    %cst_5 = arith.constant 0.000000e+00 : f32
    %6 = vector.broadcast %cst_5 : f32 to vector<2x32xf32>
    %7 = arith.maximumf %5, %6 : vector<2x32xf32>
    %c0_6 = arith.constant 0 : index
    %c0_7 = arith.constant 0 : index
    %8 = vector.load %arg4[%c0_6, %c0_7] : memref<2x32xf32, #tpu.memory_space<vmem>>, vector<2x32xf32>
    tpu.vector_store %arg4[%c0_6, %c0_7], %7 {strides = array<i32>} : memref<2x32xf32, #tpu.memory_space<vmem>>, vector<2x32xf32>,
    return
  }
  func.func @transform_0(%arg0: i32) -> (i32, i32) {
    %c0_i32 = arith.constant 0 : i32
    %c0_i32_0 = arith.constant 0 : i32
    %c0_i32_1 = arith.constant 0 : i32
    return %c0_i32, %c0_i32_0 : i32, i32
  }
  func.func @transform_1(%arg0: i32) -> (i32, i32) {
    %c0_i32 = arith.constant 0 : i32
    %c0_i32_0 = arith.constant 0 : i32
    %c0_i32_1 = arith.constant 0 : i32
    return %c0_i32, %c0_i32_0 : i32, i32
  }
  func.func @transform_2(%arg0: i32) -> (i32, i32) {
    %c0_i32 = arith.constant 0 : i32
    %c0_i32_0 = arith.constant 0 : i32
    %c0_i32_1 = arith.constant 0 : i32
    return %c0_i32, %c0_i32_0 : i32, i32
  }
  func.func @transform_3(%arg0: i32) -> (i32, i32) {
    %c0_i32 = arith.constant 0 : i32
    %c0_i32_0 = arith.constant 0 : i32
    %c0_i32_1 = arith.constant 0 : i32
    return %c0_i32, %c0_i32_0 : i32, i32
  }
}

module attributes {stable_mosaic.version = 11 : i64} {
  func.func @_mm_bn_relu_kernel(%arg0: i32, %arg1: memref<128x560xbf16, #tpu.memory_space<vmem>>, %arg2: memref<560x32xbf16, #tpu.memory_space<vmem>>, %arg3: memref<1x32xf32, #tpu.memory_space<vmem>>, %arg4: memref<1x32xf32, #tpu.memory_space<vmem>>, %arg5: memref<128x32xf32, #tpu.memory_space<vmem>>) attributes {dimension_semantics = [#tpu.dimension_semantics<arbitrary>], iteration_bounds = array<i64: 1>, scalar_prefetch = 0 : i64, scratch_operands = 0 : i64, tpu.core_type = #tpu.core_type<tc>, window_params = [{pipeline_mode = #tpu.pipeline_mode<synchronous>, transform_indices = @transform_0, window_bounds = array<i64: 128, 560>}, {pipeline_mode = #tpu.pipeline_mode<synchronous>, transform_indices = @transform_1, window_bounds = array<i64: 560, 32>}, {pipeline_mode = #tpu.pipeline_mode<synchronous>, transform_indices = @transform_2, window_bounds = array<i64: 1, 32>}, {pipeline_mode = #tpu.pipeline_mode<synchronous>, transform_indices = @transform_3, window_bounds = array<i64: 1, 32>}, {pipeline_mode = #tpu.pipeline_mode<synchronous>, transform_indices = @transform_4, window_bounds = array<i64: 128, 32>}]} {
    %c0 = arith.constant 0 : index
    %c0_0 = arith.constant 0 : index
    %0 = vector.load %arg1[%c0, %c0_0] : memref<128x560xbf16, #tpu.memory_space<vmem>>, vector<128x560xbf16>
    %c0_1 = arith.constant 0 : index
    %c0_2 = arith.constant 0 : index
    %1 = vector.load %arg2[%c0_1, %c0_2] : memref<560x32xbf16, #tpu.memory_space<vmem>>, vector<560x32xbf16>
    %cst = arith.constant dense<0.000000e+00> : vector<128x32xf32>
    %2 = tpu.matmul %0, %1, %cst {dimension_numbers = #tpu.dot_dimension_numbers<[1], [0], [0], [1], [0, 0, 1, 1], [], []>} : vector<128x560xbf16>, vector<560x32xbf16>, vector<128x32xf32> -> vector<128x32xf32>
    %cst_3 = arith.constant dense<0.000000e+00> : vector<32xf32>
    %3 = vector.multi_reduction <add>, %2, %cst_3 [0] : vector<128x32xf32> to vector<32xf32>
    %4 = vector.shape_cast %3 : vector<32xf32> to vector<1x32xf32>
    %cst_4 = arith.constant 1.280000e+02 : f32
    %5 = vector.broadcast %cst_4 : f32 to vector<1x32xf32>
    %6 = arith.divf %4, %5 : vector<1x32xf32>
    %7 = vector.broadcast %6 : vector<1x32xf32> to vector<128x32xf32>
    %8 = arith.subf %2, %7 : vector<128x32xf32>
    %9 = arith.mulf %8, %8 : vector<128x32xf32>
    %cst_5 = arith.constant dense<0.000000e+00> : vector<32xf32>
    %10 = vector.multi_reduction <add>, %9, %cst_5 [0] : vector<128x32xf32> to vector<32xf32>
    %11 = vector.shape_cast %10 : vector<32xf32> to vector<1x32xf32>
    %cst_6 = arith.constant 1.280000e+02 : f32
    %12 = vector.broadcast %cst_6 : f32 to vector<1x32xf32>
    %13 = arith.divf %11, %12 : vector<1x32xf32>
    %c0_7 = arith.constant 0 : index
    %c0_8 = arith.constant 0 : index
    %14 = vector.load %arg3[%c0_7, %c0_8] : memref<1x32xf32, #tpu.memory_space<vmem>>, vector<1x32xf32>
    %cst_9 = arith.constant 9.99999974E-6 : f32
    %15 = vector.broadcast %cst_9 : f32 to vector<1x32xf32>
    %16 = arith.addf %13, %15 : vector<1x32xf32>
    %17 = math.rsqrt %16 : vector<1x32xf32>
    %18 = arith.mulf %14, %17 : vector<1x32xf32>
    %19 = vector.broadcast %18 : vector<1x32xf32> to vector<128x32xf32>
    %20 = arith.mulf %8, %19 : vector<128x32xf32>
    %c0_10 = arith.constant 0 : index
    %c0_11 = arith.constant 0 : index
    %21 = vector.load %arg4[%c0_10, %c0_11] : memref<1x32xf32, #tpu.memory_space<vmem>>, vector<1x32xf32>
    %22 = vector.broadcast %21 : vector<1x32xf32> to vector<128x32xf32>
    %23 = arith.addf %20, %22 : vector<128x32xf32>
    %cst_12 = arith.constant 0.000000e+00 : f32
    %24 = vector.broadcast %cst_12 : f32 to vector<128x32xf32>
    %25 = arith.maximumf %23, %24 : vector<128x32xf32>
    %c0_13 = arith.constant 0 : index
    %c0_14 = arith.constant 0 : index
    %26 = vector.load %arg5[%c0_13, %c0_14] : memref<128x32xf32, #tpu.memory_space<vmem>>, vector<128x32xf32>
    tpu.vector_store %arg5[%c0_13, %c0_14], %25 {strides = array<i32>} : memref<128x32xf32, #tpu.memory_space<vmem>>, vector<128x32xf32>,
    return
  }
  func.func @transform_0(%arg0: i32) -> (i32, i32) {
    %c0_i32 = arith.constant 0 : i32
    %c0_i32_0 = arith.constant 0 : i32
    %c0_i32_1 = arith.constant 0 : i32
    return %c0_i32, %c0_i32_0 : i32, i32
  }
  func.func @transform_1(%arg0: i32) -> (i32, i32) {
    %c0_i32 = arith.constant 0 : i32
    %c0_i32_0 = arith.constant 0 : i32
    %c0_i32_1 = arith.constant 0 : i32
    return %c0_i32, %c0_i32_0 : i32, i32
  }
  func.func @transform_2(%arg0: i32) -> (i32, i32) {
    %c0_i32 = arith.constant 0 : i32
    %c0_i32_0 = arith.constant 0 : i32
    %c0_i32_1 = arith.constant 0 : i32
    return %c0_i32, %c0_i32_0 : i32, i32
  }
  func.func @transform_3(%arg0: i32) -> (i32, i32) {
    %c0_i32 = arith.constant 0 : i32
    %c0_i32_0 = arith.constant 0 : i32
    %c0_i32_1 = arith.constant 0 : i32
    return %c0_i32, %c0_i32_0 : i32, i32
  }
  func.func @transform_4(%arg0: i32) -> (i32, i32) {
    %c0_i32 = arith.constant 0 : i32
    %c0_i32_0 = arith.constant 0 : i32
    %c0_i32_1 = arith.constant 0 : i32
    return %c0_i32, %c0_i32_0 : i32, i32
  }
}

module attributes {stable_mosaic.version = 11 : i64} {
  func.func @_mm_bn_relu_kernel(%arg0: i32, %arg1: memref<32x512xbf16, #tpu.memory_space<vmem>>, %arg2: memref<512x64xbf16, #tpu.memory_space<vmem>>, %arg3: memref<1x64xf32, #tpu.memory_space<vmem>>, %arg4: memref<1x64xf32, #tpu.memory_space<vmem>>, %arg5: memref<32x64xf32, #tpu.memory_space<vmem>>) attributes {dimension_semantics = [#tpu.dimension_semantics<arbitrary>], iteration_bounds = array<i64: 1>, scalar_prefetch = 0 : i64, scratch_operands = 0 : i64, tpu.core_type = #tpu.core_type<tc>, window_params = [{pipeline_mode = #tpu.pipeline_mode<synchronous>, transform_indices = @transform_0, window_bounds = array<i64: 32, 512>}, {pipeline_mode = #tpu.pipeline_mode<synchronous>, transform_indices = @transform_1, window_bounds = array<i64: 512, 64>}, {pipeline_mode = #tpu.pipeline_mode<synchronous>, transform_indices = @transform_2, window_bounds = array<i64: 1, 64>}, {pipeline_mode = #tpu.pipeline_mode<synchronous>, transform_indices = @transform_3, window_bounds = array<i64: 1, 64>}, {pipeline_mode = #tpu.pipeline_mode<synchronous>, transform_indices = @transform_4, window_bounds = array<i64: 32, 64>}]} {
    %c0 = arith.constant 0 : index
    %c0_0 = arith.constant 0 : index
    %0 = vector.load %arg1[%c0, %c0_0] : memref<32x512xbf16, #tpu.memory_space<vmem>>, vector<32x512xbf16>
    %c0_1 = arith.constant 0 : index
    %c0_2 = arith.constant 0 : index
    %1 = vector.load %arg2[%c0_1, %c0_2] : memref<512x64xbf16, #tpu.memory_space<vmem>>, vector<512x64xbf16>
    %cst = arith.constant dense<0.000000e+00> : vector<32x64xf32>
    %2 = tpu.matmul %0, %1, %cst {dimension_numbers = #tpu.dot_dimension_numbers<[1], [0], [0], [1], [0, 0, 1, 1], [], []>} : vector<32x512xbf16>, vector<512x64xbf16>, vector<32x64xf32> -> vector<32x64xf32>
    %cst_3 = arith.constant dense<0.000000e+00> : vector<64xf32>
    %3 = vector.multi_reduction <add>, %2, %cst_3 [0] : vector<32x64xf32> to vector<64xf32>
    %4 = vector.shape_cast %3 : vector<64xf32> to vector<1x64xf32>
    %cst_4 = arith.constant 3.200000e+01 : f32
    %5 = vector.broadcast %cst_4 : f32 to vector<1x64xf32>
    %6 = arith.divf %4, %5 : vector<1x64xf32>
    %7 = vector.broadcast %6 : vector<1x64xf32> to vector<32x64xf32>
    %8 = arith.subf %2, %7 : vector<32x64xf32>
    %9 = arith.mulf %8, %8 : vector<32x64xf32>
    %cst_5 = arith.constant dense<0.000000e+00> : vector<64xf32>
    %10 = vector.multi_reduction <add>, %9, %cst_5 [0] : vector<32x64xf32> to vector<64xf32>
    %11 = vector.shape_cast %10 : vector<64xf32> to vector<1x64xf32>
    %cst_6 = arith.constant 3.200000e+01 : f32
    %12 = vector.broadcast %cst_6 : f32 to vector<1x64xf32>
    %13 = arith.divf %11, %12 : vector<1x64xf32>
    %c0_7 = arith.constant 0 : index
    %c0_8 = arith.constant 0 : index
    %14 = vector.load %arg3[%c0_7, %c0_8] : memref<1x64xf32, #tpu.memory_space<vmem>>, vector<1x64xf32>
    %cst_9 = arith.constant 9.99999974E-6 : f32
    %15 = vector.broadcast %cst_9 : f32 to vector<1x64xf32>
    %16 = arith.addf %13, %15 : vector<1x64xf32>
    %17 = math.rsqrt %16 : vector<1x64xf32>
    %18 = arith.mulf %14, %17 : vector<1x64xf32>
    %19 = vector.broadcast %18 : vector<1x64xf32> to vector<32x64xf32>
    %20 = arith.mulf %8, %19 : vector<32x64xf32>
    %c0_10 = arith.constant 0 : index
    %c0_11 = arith.constant 0 : index
    %21 = vector.load %arg4[%c0_10, %c0_11] : memref<1x64xf32, #tpu.memory_space<vmem>>, vector<1x64xf32>
    %22 = vector.broadcast %21 : vector<1x64xf32> to vector<32x64xf32>
    %23 = arith.addf %20, %22 : vector<32x64xf32>
    %cst_12 = arith.constant 0.000000e+00 : f32
    %24 = vector.broadcast %cst_12 : f32 to vector<32x64xf32>
    %25 = arith.maximumf %23, %24 : vector<32x64xf32>
    %c0_13 = arith.constant 0 : index
    %c0_14 = arith.constant 0 : index
    %26 = vector.load %arg5[%c0_13, %c0_14] : memref<32x64xf32, #tpu.memory_space<vmem>>, vector<32x64xf32>
    tpu.vector_store %arg5[%c0_13, %c0_14], %25 {strides = array<i32>} : memref<32x64xf32, #tpu.memory_space<vmem>>, vector<32x64xf32>,
    return
  }
  func.func @transform_0(%arg0: i32) -> (i32, i32) {
    %c0_i32 = arith.constant 0 : i32
    %c0_i32_0 = arith.constant 0 : i32
    %c0_i32_1 = arith.constant 0 : i32
    return %c0_i32, %c0_i32_0 : i32, i32
  }
  func.func @transform_1(%arg0: i32) -> (i32, i32) {
    %c0_i32 = arith.constant 0 : i32
    %c0_i32_0 = arith.constant 0 : i32
    %c0_i32_1 = arith.constant 0 : i32
    return %c0_i32, %c0_i32_0 : i32, i32
  }
  func.func @transform_2(%arg0: i32) -> (i32, i32) {
    %c0_i32 = arith.constant 0 : i32
    %c0_i32_0 = arith.constant 0 : i32
    %c0_i32_1 = arith.constant 0 : i32
    return %c0_i32, %c0_i32_0 : i32, i32
  }
  func.func @transform_3(%arg0: i32) -> (i32, i32) {
    %c0_i32 = arith.constant 0 : i32
    %c0_i32_0 = arith.constant 0 : i32
    %c0_i32_1 = arith.constant 0 : i32
    return %c0_i32, %c0_i32_0 : i32, i32
  }
  func.func @transform_4(%arg0: i32) -> (i32, i32) {
    %c0_i32 = arith.constant 0 : i32
    %c0_i32_0 = arith.constant 0 : i32
    %c0_i32_1 = arith.constant 0 : i32
    return %c0_i32, %c0_i32_0 : i32, i32
  }
}

module attributes {stable_mosaic.version = 11 : i64} {
  func.func @_mm_bn_relu_kernel(%arg0: i32, %arg1: memref<8x1024xbf16, #tpu.memory_space<vmem>>, %arg2: memref<1024x128xbf16, #tpu.memory_space<vmem>>, %arg3: memref<1x128xf32, #tpu.memory_space<vmem>>, %arg4: memref<1x128xf32, #tpu.memory_space<vmem>>, %arg5: memref<8x128xf32, #tpu.memory_space<vmem>>) attributes {dimension_semantics = [#tpu.dimension_semantics<arbitrary>], iteration_bounds = array<i64: 1>, scalar_prefetch = 0 : i64, scratch_operands = 0 : i64, tpu.core_type = #tpu.core_type<tc>, window_params = [{pipeline_mode = #tpu.pipeline_mode<synchronous>, transform_indices = @transform_0, window_bounds = array<i64: 8, 1024>}, {pipeline_mode = #tpu.pipeline_mode<synchronous>, transform_indices = @transform_1, window_bounds = array<i64: 1024, 128>}, {pipeline_mode = #tpu.pipeline_mode<synchronous>, transform_indices = @transform_2, window_bounds = array<i64: 1, 128>}, {pipeline_mode = #tpu.pipeline_mode<synchronous>, transform_indices = @transform_3, window_bounds = array<i64: 1, 128>}, {pipeline_mode = #tpu.pipeline_mode<synchronous>, transform_indices = @transform_4, window_bounds = array<i64: 8, 128>}]} {
    %c0 = arith.constant 0 : index
    %c0_0 = arith.constant 0 : index
    %0 = vector.load %arg1[%c0, %c0_0] : memref<8x1024xbf16, #tpu.memory_space<vmem>>, vector<8x1024xbf16>
    %c0_1 = arith.constant 0 : index
    %c0_2 = arith.constant 0 : index
    %1 = vector.load %arg2[%c0_1, %c0_2] : memref<1024x128xbf16, #tpu.memory_space<vmem>>, vector<1024x128xbf16>
    %cst = arith.constant dense<0.000000e+00> : vector<8x128xf32>
    %2 = tpu.matmul %0, %1, %cst {dimension_numbers = #tpu.dot_dimension_numbers<[1], [0], [0], [1], [0, 0, 1, 1], [], []>} : vector<8x1024xbf16>, vector<1024x128xbf16>, vector<8x128xf32> -> vector<8x128xf32>
    %cst_3 = arith.constant dense<0.000000e+00> : vector<128xf32>
    %3 = vector.multi_reduction <add>, %2, %cst_3 [0] : vector<8x128xf32> to vector<128xf32>
    %4 = vector.shape_cast %3 : vector<128xf32> to vector<1x128xf32>
    %cst_4 = arith.constant 8.000000e+00 : f32
    %5 = vector.broadcast %cst_4 : f32 to vector<1x128xf32>
    %6 = arith.divf %4, %5 : vector<1x128xf32>
    %7 = vector.broadcast %6 : vector<1x128xf32> to vector<8x128xf32>
    %8 = arith.subf %2, %7 : vector<8x128xf32>
    %9 = arith.mulf %8, %8 : vector<8x128xf32>
    %cst_5 = arith.constant dense<0.000000e+00> : vector<128xf32>
    %10 = vector.multi_reduction <add>, %9, %cst_5 [0] : vector<8x128xf32> to vector<128xf32>
    %11 = vector.shape_cast %10 : vector<128xf32> to vector<1x128xf32>
    %cst_6 = arith.constant 8.000000e+00 : f32
    %12 = vector.broadcast %cst_6 : f32 to vector<1x128xf32>
    %13 = arith.divf %11, %12 : vector<1x128xf32>
    %c0_7 = arith.constant 0 : index
    %c0_8 = arith.constant 0 : index
    %14 = vector.load %arg3[%c0_7, %c0_8] : memref<1x128xf32, #tpu.memory_space<vmem>>, vector<1x128xf32>
    %cst_9 = arith.constant 9.99999974E-6 : f32
    %15 = vector.broadcast %cst_9 : f32 to vector<1x128xf32>
    %16 = arith.addf %13, %15 : vector<1x128xf32>
    %17 = math.rsqrt %16 : vector<1x128xf32>
    %18 = arith.mulf %14, %17 : vector<1x128xf32>
    %19 = vector.broadcast %18 : vector<1x128xf32> to vector<8x128xf32>
    %20 = arith.mulf %8, %19 : vector<8x128xf32>
    %c0_10 = arith.constant 0 : index
    %c0_11 = arith.constant 0 : index
    %21 = vector.load %arg4[%c0_10, %c0_11] : memref<1x128xf32, #tpu.memory_space<vmem>>, vector<1x128xf32>
    %22 = vector.broadcast %21 : vector<1x128xf32> to vector<8x128xf32>
    %23 = arith.addf %20, %22 : vector<8x128xf32>
    %cst_12 = arith.constant 0.000000e+00 : f32
    %24 = vector.broadcast %cst_12 : f32 to vector<8x128xf32>
    %25 = arith.maximumf %23, %24 : vector<8x128xf32>
    %c0_13 = arith.constant 0 : index
    %c0_14 = arith.constant 0 : index
    %26 = vector.load %arg5[%c0_13, %c0_14] : memref<8x128xf32, #tpu.memory_space<vmem>>, vector<8x128xf32>
    tpu.vector_store %arg5[%c0_13, %c0_14], %25 {strides = array<i32>} : memref<8x128xf32, #tpu.memory_space<vmem>>, vector<8x128xf32>,
    return
  }
  func.func @transform_0(%arg0: i32) -> (i32, i32) {
    %c0_i32 = arith.constant 0 : i32
    %c0_i32_0 = arith.constant 0 : i32
    %c0_i32_1 = arith.constant 0 : i32
    return %c0_i32, %c0_i32_0 : i32, i32
  }
  func.func @transform_1(%arg0: i32) -> (i32, i32) {
    %c0_i32 = arith.constant 0 : i32
    %c0_i32_0 = arith.constant 0 : i32
    %c0_i32_1 = arith.constant 0 : i32
    return %c0_i32, %c0_i32_0 : i32, i32
  }
  func.func @transform_2(%arg0: i32) -> (i32, i32) {
    %c0_i32 = arith.constant 0 : i32
    %c0_i32_0 = arith.constant 0 : i32
    %c0_i32_1 = arith.constant 0 : i32
    return %c0_i32, %c0_i32_0 : i32, i32
  }
  func.func @transform_3(%arg0: i32) -> (i32, i32) {
    %c0_i32 = arith.constant 0 : i32
    %c0_i32_0 = arith.constant 0 : i32
    %c0_i32_1 = arith.constant 0 : i32
    return %c0_i32, %c0_i32_0 : i32, i32
  }
  func.func @transform_4(%arg0: i32) -> (i32, i32) {
    %c0_i32 = arith.constant 0 : i32
    %c0_i32_0 = arith.constant 0 : i32
    %c0_i32_1 = arith.constant 0 : i32
    return %c0_i32, %c0_i32_0 : i32, i32
  }
}

module attributes {stable_mosaic.version = 11 : i64} {
  func.func @_mm_bn_relu_kernel(%arg0: i32, %arg1: memref<2x2048xbf16, #tpu.memory_space<vmem>>, %arg2: memref<2048x256xbf16, #tpu.memory_space<vmem>>, %arg3: memref<1x256xf32, #tpu.memory_space<vmem>>, %arg4: memref<1x256xf32, #tpu.memory_space<vmem>>, %arg5: memref<2x256xf32, #tpu.memory_space<vmem>>) attributes {dimension_semantics = [#tpu.dimension_semantics<arbitrary>], iteration_bounds = array<i64: 1>, scalar_prefetch = 0 : i64, scratch_operands = 0 : i64, tpu.core_type = #tpu.core_type<tc>, window_params = [{pipeline_mode = #tpu.pipeline_mode<synchronous>, transform_indices = @transform_0, window_bounds = array<i64: 2, 2048>}, {pipeline_mode = #tpu.pipeline_mode<synchronous>, transform_indices = @transform_1, window_bounds = array<i64: 2048, 256>}, {pipeline_mode = #tpu.pipeline_mode<synchronous>, transform_indices = @transform_2, window_bounds = array<i64: 1, 256>}, {pipeline_mode = #tpu.pipeline_mode<synchronous>, transform_indices = @transform_3, window_bounds = array<i64: 1, 256>}, {pipeline_mode = #tpu.pipeline_mode<synchronous>, transform_indices = @transform_4, window_bounds = array<i64: 2, 256>}]} {
    %c0 = arith.constant 0 : index
    %c0_0 = arith.constant 0 : index
    %0 = vector.load %arg1[%c0, %c0_0] : memref<2x2048xbf16, #tpu.memory_space<vmem>>, vector<2x2048xbf16>
    %c0_1 = arith.constant 0 : index
    %c0_2 = arith.constant 0 : index
    %1 = vector.load %arg2[%c0_1, %c0_2] : memref<2048x256xbf16, #tpu.memory_space<vmem>>, vector<2048x256xbf16>
    %cst = arith.constant dense<0.000000e+00> : vector<2x256xf32>
    %2 = tpu.matmul %0, %1, %cst {dimension_numbers = #tpu.dot_dimension_numbers<[1], [0], [0], [1], [0, 0, 1, 1], [], []>} : vector<2x2048xbf16>, vector<2048x256xbf16>, vector<2x256xf32> -> vector<2x256xf32>
    %cst_3 = arith.constant dense<0.000000e+00> : vector<256xf32>
    %3 = vector.multi_reduction <add>, %2, %cst_3 [0] : vector<2x256xf32> to vector<256xf32>
    %4 = vector.shape_cast %3 : vector<256xf32> to vector<1x256xf32>
    %cst_4 = arith.constant 2.000000e+00 : f32
    %5 = vector.broadcast %cst_4 : f32 to vector<1x256xf32>
    %6 = arith.divf %4, %5 : vector<1x256xf32>
    %7 = vector.broadcast %6 : vector<1x256xf32> to vector<2x256xf32>
    %8 = arith.subf %2, %7 : vector<2x256xf32>
    %9 = arith.mulf %8, %8 : vector<2x256xf32>
    %cst_5 = arith.constant dense<0.000000e+00> : vector<256xf32>
    %10 = vector.multi_reduction <add>, %9, %cst_5 [0] : vector<2x256xf32> to vector<256xf32>
    %11 = vector.shape_cast %10 : vector<256xf32> to vector<1x256xf32>
    %cst_6 = arith.constant 2.000000e+00 : f32
    %12 = vector.broadcast %cst_6 : f32 to vector<1x256xf32>
    %13 = arith.divf %11, %12 : vector<1x256xf32>
    %c0_7 = arith.constant 0 : index
    %c0_8 = arith.constant 0 : index
    %14 = vector.load %arg3[%c0_7, %c0_8] : memref<1x256xf32, #tpu.memory_space<vmem>>, vector<1x256xf32>
    %cst_9 = arith.constant 9.99999974E-6 : f32
    %15 = vector.broadcast %cst_9 : f32 to vector<1x256xf32>
    %16 = arith.addf %13, %15 : vector<1x256xf32>
    %17 = math.rsqrt %16 : vector<1x256xf32>
    %18 = arith.mulf %14, %17 : vector<1x256xf32>
    %19 = vector.broadcast %18 : vector<1x256xf32> to vector<2x256xf32>
    %20 = arith.mulf %8, %19 : vector<2x256xf32>
    %c0_10 = arith.constant 0 : index
    %c0_11 = arith.constant 0 : index
    %21 = vector.load %arg4[%c0_10, %c0_11] : memref<1x256xf32, #tpu.memory_space<vmem>>, vector<1x256xf32>
    %22 = vector.broadcast %21 : vector<1x256xf32> to vector<2x256xf32>
    %23 = arith.addf %20, %22 : vector<2x256xf32>
    %cst_12 = arith.constant 0.000000e+00 : f32
    %24 = vector.broadcast %cst_12 : f32 to vector<2x256xf32>
    %25 = arith.maximumf %23, %24 : vector<2x256xf32>
    %c0_13 = arith.constant 0 : index
    %c0_14 = arith.constant 0 : index
    %26 = vector.load %arg5[%c0_13, %c0_14] : memref<2x256xf32, #tpu.memory_space<vmem>>, vector<2x256xf32>
    tpu.vector_store %arg5[%c0_13, %c0_14], %25 {strides = array<i32>} : memref<2x256xf32, #tpu.memory_space<vmem>>, vector<2x256xf32>,
    return
  }
  func.func @transform_0(%arg0: i32) -> (i32, i32) {
    %c0_i32 = arith.constant 0 : i32
    %c0_i32_0 = arith.constant 0 : i32
    %c0_i32_1 = arith.constant 0 : i32
    return %c0_i32, %c0_i32_0 : i32, i32
  }
  func.func @transform_1(%arg0: i32) -> (i32, i32) {
    %c0_i32 = arith.constant 0 : i32
    %c0_i32_0 = arith.constant 0 : i32
    %c0_i32_1 = arith.constant 0 : i32
    return %c0_i32, %c0_i32_0 : i32, i32
  }
  func.func @transform_2(%arg0: i32) -> (i32, i32) {
    %c0_i32 = arith.constant 0 : i32
    %c0_i32_0 = arith.constant 0 : i32
    %c0_i32_1 = arith.constant 0 : i32
    return %c0_i32, %c0_i32_0 : i32, i32
  }
  func.func @transform_3(%arg0: i32) -> (i32, i32) {
    %c0_i32 = arith.constant 0 : i32
    %c0_i32_0 = arith.constant 0 : i32
    %c0_i32_1 = arith.constant 0 : i32
    return %c0_i32, %c0_i32_0 : i32, i32
  }
  func.func @transform_4(%arg0: i32) -> (i32, i32) {
    %c0_i32 = arith.constant 0 : i32
    %c0_i32_0 = arith.constant 0 : i32
    %c0_i32_1 = arith.constant 0 : i32
    return %c0_i32, %c0_i32_0 : i32, i32
  }
}

module attributes {stable_mosaic.version = 11 : i64} {
  func.func @_latent_fused_kernel(%arg0: i32, %arg1: memref<2x256xbf16, #tpu.memory_space<vmem>>, %arg2: memref<256x32xbf16, #tpu.memory_space<vmem>>, %arg3: memref<1x32xf32, #tpu.memory_space<vmem>>, %arg4: memref<256x32xbf16, #tpu.memory_space<vmem>>, %arg5: memref<1x32xf32, #tpu.memory_space<vmem>>, %arg6: memref<2x32xf32, #tpu.memory_space<vmem>>, %arg7: memref<2x32xbf16, #tpu.memory_space<vmem>>, %arg8: memref<32x256xbf16, #tpu.memory_space<vmem>>, %arg9: memref<32x256xbf16, #tpu.memory_space<vmem>>, %arg10: memref<1x256xf32, #tpu.memory_space<vmem>>, %arg11: memref<2x32xf32, #tpu.memory_space<vmem>>, %arg12: memref<2x32xf32, #tpu.memory_space<vmem>>, %arg13: memref<2x256xf32, #tpu.memory_space<vmem>>) attributes {dimension_semantics = [#tpu.dimension_semantics<arbitrary>], iteration_bounds = array<i64: 1>, scalar_prefetch = 0 : i64, scratch_operands = 0 : i64, tpu.core_type = #tpu.core_type<tc>, window_params = [{pipeline_mode = #tpu.pipeline_mode<synchronous>, transform_indices = @transform_0, window_bounds = array<i64: 2, 256>}, {pipeline_mode = #tpu.pipeline_mode<synchronous>, transform_indices = @transform_1, window_bounds = array<i64: 256, 32>}, {pipeline_mode = #tpu.pipeline_mode<synchronous>, transform_indices = @transform_2, window_bounds = array<i64: 1, 32>}, {pipeline_mode = #tpu.pipeline_mode<synchronous>, transform_indices = @transform_3, window_bounds = array<i64: 256, 32>}, {pipeline_mode = #tpu.pipeline_mode<synchronous>, transform_indices = @transform_4, window_bounds = array<i64: 1, 32>}, {pipeline_mode = #tpu.pipeline_mode<synchronous>, transform_indices = @transform_5, window_bounds = array<i64: 2, 32>}, {pipeline_mode = #tpu.pipeline_mode<synchronous>, transform_indices = @transform_6, window_bounds = array<i64: 2, 32>}, {pipeline_mode = #tpu.pipeline_mode<synchronous>, transform_indices = @transform_7, window_bounds = array<i64: 32, 256>}, {pipeline_mode = #tpu.pipeline_mode<synchronous>, transform_indices = @transform_8, window_bounds = array<i64: 32, 256>}, {pipeline_mode = #tpu.pipeline_mode<synchronous>, transform_indices = @transform_9, window_bounds = array<i64: 1, 256>}, {pipeline_mode = #tpu.pipeline_mode<synchronous>, transform_indices = @transform_10, window_bounds = array<i64: 2, 32>}, {pipeline_mode = #tpu.pipeline_mode<synchronous>, transform_indices = @transform_11, window_bounds = array<i64: 2, 32>}, {pipeline_mode = #tpu.pipeline_mode<synchronous>, transform_indices = @transform_12, window_bounds = array<i64: 2, 256>}]} {
    %c0 = arith.constant 0 : index
    %c0_0 = arith.constant 0 : index
    %0 = vector.load %arg1[%c0, %c0_0] : memref<2x256xbf16, #tpu.memory_space<vmem>>, vector<2x256xbf16>
    %c0_1 = arith.constant 0 : index
    %c0_2 = arith.constant 0 : index
    %1 = vector.load %arg2[%c0_1, %c0_2] : memref<256x32xbf16, #tpu.memory_space<vmem>>, vector<256x32xbf16>
    %cst = arith.constant dense<0.000000e+00> : vector<2x32xf32>
    %2 = tpu.matmul %0, %1, %cst {dimension_numbers = #tpu.dot_dimension_numbers<[1], [0], [0], [1], [0, 0, 1, 1], [], []>} : vector<2x256xbf16>, vector<256x32xbf16>, vector<2x32xf32> -> vector<2x32xf32>
    %c0_3 = arith.constant 0 : index
    %c0_4 = arith.constant 0 : index
    %3 = vector.load %arg3[%c0_3, %c0_4] : memref<1x32xf32, #tpu.memory_space<vmem>>, vector<1x32xf32>
    %4 = vector.broadcast %3 : vector<1x32xf32> to vector<2x32xf32>
    %5 = arith.addf %2, %4 : vector<2x32xf32>
    %c0_5 = arith.constant 0 : index
    %c0_6 = arith.constant 0 : index
    %6 = vector.load %arg4[%c0_5, %c0_6] : memref<256x32xbf16, #tpu.memory_space<vmem>>, vector<256x32xbf16>
    %cst_7 = arith.constant dense<0.000000e+00> : vector<2x32xf32>
    %7 = tpu.matmul %0, %6, %cst_7 {dimension_numbers = #tpu.dot_dimension_numbers<[1], [0], [0], [1], [0, 0, 1, 1], [], []>} : vector<2x256xbf16>, vector<256x32xbf16>, vector<2x32xf32> -> vector<2x32xf32>
    %c0_8 = arith.constant 0 : index
    %c0_9 = arith.constant 0 : index
    %8 = vector.load %arg5[%c0_8, %c0_9] : memref<1x32xf32, #tpu.memory_space<vmem>>, vector<1x32xf32>
    %9 = vector.broadcast %8 : vector<1x32xf32> to vector<2x32xf32>
    %10 = arith.addf %7, %9 : vector<2x32xf32>
    %cst_10 = arith.constant 5.000000e-01 : f32
    %11 = vector.broadcast %cst_10 : f32 to vector<2x32xf32>
    %12 = arith.mulf %11, %10 : vector<2x32xf32>
    %13 = math.exp %12 : vector<2x32xf32>
    %c0_11 = arith.constant 0 : index
    %c0_12 = arith.constant 0 : index
    %14 = vector.load %arg6[%c0_11, %c0_12] : memref<2x32xf32, #tpu.memory_space<vmem>>, vector<2x32xf32>
    %15 = arith.mulf %14, %13 : vector<2x32xf32>
    %16 = arith.addf %5, %15 : vector<2x32xf32>
    %17 = arith.truncf %16 : vector<2x32xf32> to vector<2x32xbf16>
    %c0_13 = arith.constant 0 : index
    %c0_14 = arith.constant 0 : index
    %18 = vector.load %arg8[%c0_13, %c0_14] : memref<32x256xbf16, #tpu.memory_space<vmem>>, vector<32x256xbf16>
    %cst_15 = arith.constant dense<0.000000e+00> : vector<2x256xf32>
    %19 = tpu.matmul %17, %18, %cst_15 {dimension_numbers = #tpu.dot_dimension_numbers<[1], [0], [0], [1], [0, 0, 1, 1], [], []>} : vector<2x32xbf16>, vector<32x256xbf16>, vector<2x256xf32> -> vector<2x256xf32>
    %c0_16 = arith.constant 0 : index
    %c0_17 = arith.constant 0 : index
    %20 = vector.load %arg7[%c0_16, %c0_17] : memref<2x32xbf16, #tpu.memory_space<vmem>>, vector<2x32xbf16>
    %c0_18 = arith.constant 0 : index
    %c0_19 = arith.constant 0 : index
    %21 = vector.load %arg9[%c0_18, %c0_19] : memref<32x256xbf16, #tpu.memory_space<vmem>>, vector<32x256xbf16>
    %cst_20 = arith.constant dense<0.000000e+00> : vector<2x256xf32>
    %22 = tpu.matmul %20, %21, %cst_20 {dimension_numbers = #tpu.dot_dimension_numbers<[1], [0], [0], [1], [0, 0, 1, 1], [], []>} : vector<2x32xbf16>, vector<32x256xbf16>, vector<2x256xf32> -> vector<2x256xf32>
    %23 = arith.addf %19, %22 : vector<2x256xf32>
    %c0_21 = arith.constant 0 : index
    %c0_22 = arith.constant 0 : index
    %24 = vector.load %arg10[%c0_21, %c0_22] : memref<1x256xf32, #tpu.memory_space<vmem>>, vector<1x256xf32>
    %25 = vector.broadcast %24 : vector<1x256xf32> to vector<2x256xf32>
    %26 = arith.addf %23, %25 : vector<2x256xf32>
    %c0_23 = arith.constant 0 : index
    %c0_24 = arith.constant 0 : index
    %27 = vector.load %arg11[%c0_23, %c0_24] : memref<2x32xf32, #tpu.memory_space<vmem>>, vector<2x32xf32>
    tpu.vector_store %arg11[%c0_23, %c0_24], %5 {strides = array<i32>} : memref<2x32xf32, #tpu.memory_space<vmem>>, vector<2x32xf32>,
    %c0_25 = arith.constant 0 : index
    %c0_26 = arith.constant 0 : index
    %28 = vector.load %arg12[%c0_25, %c0_26] : memref<2x32xf32, #tpu.memory_space<vmem>>, vector<2x32xf32>
    tpu.vector_store %arg12[%c0_25, %c0_26], %10 {strides = array<i32>} : memref<2x32xf32, #tpu.memory_space<vmem>>, vector<2x32xf32>,
    %c0_27 = arith.constant 0 : index
    %c0_28 = arith.constant 0 : index
    %29 = vector.load %arg13[%c0_27, %c0_28] : memref<2x256xf32, #tpu.memory_space<vmem>>, vector<2x256xf32>
    tpu.vector_store %arg13[%c0_27, %c0_28], %26 {strides = array<i32>} : memref<2x256xf32, #tpu.memory_space<vmem>>, vector<2x256xf32>,
    return
  }
  func.func @transform_0(%arg0: i32) -> (i32, i32) {
    %c0_i32 = arith.constant 0 : i32
    %c0_i32_0 = arith.constant 0 : i32
    %c0_i32_1 = arith.constant 0 : i32
    return %c0_i32, %c0_i32_0 : i32, i32
  }
  func.func @transform_1(%arg0: i32) -> (i32, i32) {
    %c0_i32 = arith.constant 0 : i32
    %c0_i32_0 = arith.constant 0 : i32
    %c0_i32_1 = arith.constant 0 : i32
    return %c0_i32, %c0_i32_0 : i32, i32
  }
  func.func @transform_2(%arg0: i32) -> (i32, i32) {
    %c0_i32 = arith.constant 0 : i32
    %c0_i32_0 = arith.constant 0 : i32
    %c0_i32_1 = arith.constant 0 : i32
    return %c0_i32, %c0_i32_0 : i32, i32
  }
  func.func @transform_3(%arg0: i32) -> (i32, i32) {
    %c0_i32 = arith.constant 0 : i32
    %c0_i32_0 = arith.constant 0 : i32
    %c0_i32_1 = arith.constant 0 : i32
    return %c0_i32, %c0_i32_0 : i32, i32
  }
  func.func @transform_4(%arg0: i32) -> (i32, i32) {
    %c0_i32 = arith.constant 0 : i32
    %c0_i32_0 = arith.constant 0 : i32
    %c0_i32_1 = arith.constant 0 : i32
    return %c0_i32, %c0_i32_0 : i32, i32
  }
  func.func @transform_5(%arg0: i32) -> (i32, i32) {
    %c0_i32 = arith.constant 0 : i32
    %c0_i32_0 = arith.constant 0 : i32
    %c0_i32_1 = arith.constant 0 : i32
    return %c0_i32, %c0_i32_0 : i32, i32
  }
  func.func @transform_6(%arg0: i32) -> (i32, i32) {
    %c0_i32 = arith.constant 0 : i32
    %c0_i32_0 = arith.constant 0 : i32
    %c0_i32_1 = arith.constant 0 : i32
    return %c0_i32, %c0_i32_0 : i32, i32
  }
  func.func @transform_7(%arg0: i32) -> (i32, i32) {
    %c0_i32 = arith.constant 0 : i32
    %c0_i32_0 = arith.constant 0 : i32
    %c0_i32_1 = arith.constant 0 : i32
    return %c0_i32, %c0_i32_0 : i32, i32
  }
  func.func @transform_8(%arg0: i32) -> (i32, i32) {
    %c0_i32 = arith.constant 0 : i32
    %c0_i32_0 = arith.constant 0 : i32
    %c0_i32_1 = arith.constant 0 : i32
    return %c0_i32, %c0_i32_0 : i32, i32
  }
  func.func @transform_9(%arg0: i32) -> (i32, i32) {
    %c0_i32 = arith.constant 0 : i32
    %c0_i32_0 = arith.constant 0 : i32
    %c0_i32_1 = arith.constant 0 : i32
    return %c0_i32, %c0_i32_0 : i32, i32
  }
  func.func @transform_10(%arg0: i32) -> (i32, i32) {
    %c0_i32 = arith.constant 0 : i32
    %c0_i32_0 = arith.constant 0 : i32
    %c0_i32_1 = arith.constant 0 : i32
    return %c0_i32, %c0_i32_0 : i32, i32
  }
  func.func @transform_11(%arg0: i32) -> (i32, i32) {
    %c0_i32 = arith.constant 0 : i32
    %c0_i32_0 = arith.constant 0 : i32
    %c0_i32_1 = arith.constant 0 : i32
    return %c0_i32, %c0_i32_0 : i32, i32
  }
  func.func @transform_12(%arg0: i32) -> (i32, i32) {
    %c0_i32 = arith.constant 0 : i32
    %c0_i32_0 = arith.constant 0 : i32
    %c0_i32_1 = arith.constant 0 : i32
    return %c0_i32, %c0_i32_0 : i32, i32
  }
}

module attributes {stable_mosaic.version = 11 : i64} {
  func.func @_mm_bn_relu_kernel(%arg0: i32, %arg1: memref<8x4096xbf16, #tpu.memory_space<vmem>>, %arg2: memref<4096x128xbf16, #tpu.memory_space<vmem>>, %arg3: memref<1x128xf32, #tpu.memory_space<vmem>>, %arg4: memref<1x128xf32, #tpu.memory_space<vmem>>, %arg5: memref<8x128xf32, #tpu.memory_space<vmem>>) attributes {dimension_semantics = [#tpu.dimension_semantics<arbitrary>], iteration_bounds = array<i64: 1>, scalar_prefetch = 0 : i64, scratch_operands = 0 : i64, tpu.core_type = #tpu.core_type<tc>, window_params = [{pipeline_mode = #tpu.pipeline_mode<synchronous>, transform_indices = @transform_0, window_bounds = array<i64: 8, 4096>}, {pipeline_mode = #tpu.pipeline_mode<synchronous>, transform_indices = @transform_1, window_bounds = array<i64: 4096, 128>}, {pipeline_mode = #tpu.pipeline_mode<synchronous>, transform_indices = @transform_2, window_bounds = array<i64: 1, 128>}, {pipeline_mode = #tpu.pipeline_mode<synchronous>, transform_indices = @transform_3, window_bounds = array<i64: 1, 128>}, {pipeline_mode = #tpu.pipeline_mode<synchronous>, transform_indices = @transform_4, window_bounds = array<i64: 8, 128>}]} {
    %c0 = arith.constant 0 : index
    %c0_0 = arith.constant 0 : index
    %0 = vector.load %arg1[%c0, %c0_0] : memref<8x4096xbf16, #tpu.memory_space<vmem>>, vector<8x4096xbf16>
    %c0_1 = arith.constant 0 : index
    %c0_2 = arith.constant 0 : index
    %1 = vector.load %arg2[%c0_1, %c0_2] : memref<4096x128xbf16, #tpu.memory_space<vmem>>, vector<4096x128xbf16>
    %cst = arith.constant dense<0.000000e+00> : vector<8x128xf32>
    %2 = tpu.matmul %0, %1, %cst {dimension_numbers = #tpu.dot_dimension_numbers<[1], [0], [0], [1], [0, 0, 1, 1], [], []>} : vector<8x4096xbf16>, vector<4096x128xbf16>, vector<8x128xf32> -> vector<8x128xf32>
    %cst_3 = arith.constant dense<0.000000e+00> : vector<128xf32>
    %3 = vector.multi_reduction <add>, %2, %cst_3 [0] : vector<8x128xf32> to vector<128xf32>
    %4 = vector.shape_cast %3 : vector<128xf32> to vector<1x128xf32>
    %cst_4 = arith.constant 8.000000e+00 : f32
    %5 = vector.broadcast %cst_4 : f32 to vector<1x128xf32>
    %6 = arith.divf %4, %5 : vector<1x128xf32>
    %7 = vector.broadcast %6 : vector<1x128xf32> to vector<8x128xf32>
    %8 = arith.subf %2, %7 : vector<8x128xf32>
    %9 = arith.mulf %8, %8 : vector<8x128xf32>
    %cst_5 = arith.constant dense<0.000000e+00> : vector<128xf32>
    %10 = vector.multi_reduction <add>, %9, %cst_5 [0] : vector<8x128xf32> to vector<128xf32>
    %11 = vector.shape_cast %10 : vector<128xf32> to vector<1x128xf32>
    %cst_6 = arith.constant 8.000000e+00 : f32
    %12 = vector.broadcast %cst_6 : f32 to vector<1x128xf32>
    %13 = arith.divf %11, %12 : vector<1x128xf32>
    %c0_7 = arith.constant 0 : index
    %c0_8 = arith.constant 0 : index
    %14 = vector.load %arg3[%c0_7, %c0_8] : memref<1x128xf32, #tpu.memory_space<vmem>>, vector<1x128xf32>
    %cst_9 = arith.constant 9.99999974E-6 : f32
    %15 = vector.broadcast %cst_9 : f32 to vector<1x128xf32>
    %16 = arith.addf %13, %15 : vector<1x128xf32>
    %17 = math.rsqrt %16 : vector<1x128xf32>
    %18 = arith.mulf %14, %17 : vector<1x128xf32>
    %19 = vector.broadcast %18 : vector<1x128xf32> to vector<8x128xf32>
    %20 = arith.mulf %8, %19 : vector<8x128xf32>
    %c0_10 = arith.constant 0 : index
    %c0_11 = arith.constant 0 : index
    %21 = vector.load %arg4[%c0_10, %c0_11] : memref<1x128xf32, #tpu.memory_space<vmem>>, vector<1x128xf32>
    %22 = vector.broadcast %21 : vector<1x128xf32> to vector<8x128xf32>
    %23 = arith.addf %20, %22 : vector<8x128xf32>
    %cst_12 = arith.constant 0.000000e+00 : f32
    %24 = vector.broadcast %cst_12 : f32 to vector<8x128xf32>
    %25 = arith.maximumf %23, %24 : vector<8x128xf32>
    %c0_13 = arith.constant 0 : index
    %c0_14 = arith.constant 0 : index
    %26 = vector.load %arg5[%c0_13, %c0_14] : memref<8x128xf32, #tpu.memory_space<vmem>>, vector<8x128xf32>
    tpu.vector_store %arg5[%c0_13, %c0_14], %25 {strides = array<i32>} : memref<8x128xf32, #tpu.memory_space<vmem>>, vector<8x128xf32>,
    return
  }
  func.func @transform_0(%arg0: i32) -> (i32, i32) {
    %c0_i32 = arith.constant 0 : i32
    %c0_i32_0 = arith.constant 0 : i32
    %c0_i32_1 = arith.constant 0 : i32
    return %c0_i32, %c0_i32_0 : i32, i32
  }
  func.func @transform_1(%arg0: i32) -> (i32, i32) {
    %c0_i32 = arith.constant 0 : i32
    %c0_i32_0 = arith.constant 0 : i32
    %c0_i32_1 = arith.constant 0 : i32
    return %c0_i32, %c0_i32_0 : i32, i32
  }
  func.func @transform_2(%arg0: i32) -> (i32, i32) {
    %c0_i32 = arith.constant 0 : i32
    %c0_i32_0 = arith.constant 0 : i32
    %c0_i32_1 = arith.constant 0 : i32
    return %c0_i32, %c0_i32_0 : i32, i32
  }
  func.func @transform_3(%arg0: i32) -> (i32, i32) {
    %c0_i32 = arith.constant 0 : i32
    %c0_i32_0 = arith.constant 0 : i32
    %c0_i32_1 = arith.constant 0 : i32
    return %c0_i32, %c0_i32_0 : i32, i32
  }
  func.func @transform_4(%arg0: i32) -> (i32, i32) {
    %c0_i32 = arith.constant 0 : i32
    %c0_i32_0 = arith.constant 0 : i32
    %c0_i32_1 = arith.constant 0 : i32
    return %c0_i32, %c0_i32_0 : i32, i32
  }
}

module attributes {stable_mosaic.version = 11 : i64} {
  func.func @_mm_bn_relu_kernel(%arg0: i32, %arg1: memref<32x2048xbf16, #tpu.memory_space<vmem>>, %arg2: memref<2048x64xbf16, #tpu.memory_space<vmem>>, %arg3: memref<1x64xf32, #tpu.memory_space<vmem>>, %arg4: memref<1x64xf32, #tpu.memory_space<vmem>>, %arg5: memref<32x64xf32, #tpu.memory_space<vmem>>) attributes {dimension_semantics = [#tpu.dimension_semantics<arbitrary>], iteration_bounds = array<i64: 1>, scalar_prefetch = 0 : i64, scratch_operands = 0 : i64, tpu.core_type = #tpu.core_type<tc>, window_params = [{pipeline_mode = #tpu.pipeline_mode<synchronous>, transform_indices = @transform_0, window_bounds = array<i64: 32, 2048>}, {pipeline_mode = #tpu.pipeline_mode<synchronous>, transform_indices = @transform_1, window_bounds = array<i64: 2048, 64>}, {pipeline_mode = #tpu.pipeline_mode<synchronous>, transform_indices = @transform_2, window_bounds = array<i64: 1, 64>}, {pipeline_mode = #tpu.pipeline_mode<synchronous>, transform_indices = @transform_3, window_bounds = array<i64: 1, 64>}, {pipeline_mode = #tpu.pipeline_mode<synchronous>, transform_indices = @transform_4, window_bounds = array<i64: 32, 64>}]} {
    %c0 = arith.constant 0 : index
    %c0_0 = arith.constant 0 : index
    %0 = vector.load %arg1[%c0, %c0_0] : memref<32x2048xbf16, #tpu.memory_space<vmem>>, vector<32x2048xbf16>
    %c0_1 = arith.constant 0 : index
    %c0_2 = arith.constant 0 : index
    %1 = vector.load %arg2[%c0_1, %c0_2] : memref<2048x64xbf16, #tpu.memory_space<vmem>>, vector<2048x64xbf16>
    %cst = arith.constant dense<0.000000e+00> : vector<32x64xf32>
    %2 = tpu.matmul %0, %1, %cst {dimension_numbers = #tpu.dot_dimension_numbers<[1], [0], [0], [1], [0, 0, 1, 1], [], []>} : vector<32x2048xbf16>, vector<2048x64xbf16>, vector<32x64xf32> -> vector<32x64xf32>
    %cst_3 = arith.constant dense<0.000000e+00> : vector<64xf32>
    %3 = vector.multi_reduction <add>, %2, %cst_3 [0] : vector<32x64xf32> to vector<64xf32>
    %4 = vector.shape_cast %3 : vector<64xf32> to vector<1x64xf32>
    %cst_4 = arith.constant 3.200000e+01 : f32
    %5 = vector.broadcast %cst_4 : f32 to vector<1x64xf32>
    %6 = arith.divf %4, %5 : vector<1x64xf32>
    %7 = vector.broadcast %6 : vector<1x64xf32> to vector<32x64xf32>
    %8 = arith.subf %2, %7 : vector<32x64xf32>
    %9 = arith.mulf %8, %8 : vector<32x64xf32>
    %cst_5 = arith.constant dense<0.000000e+00> : vector<64xf32>
    %10 = vector.multi_reduction <add>, %9, %cst_5 [0] : vector<32x64xf32> to vector<64xf32>
    %11 = vector.shape_cast %10 : vector<64xf32> to vector<1x64xf32>
    %cst_6 = arith.constant 3.200000e+01 : f32
    %12 = vector.broadcast %cst_6 : f32 to vector<1x64xf32>
    %13 = arith.divf %11, %12 : vector<1x64xf32>
    %c0_7 = arith.constant 0 : index
    %c0_8 = arith.constant 0 : index
    %14 = vector.load %arg3[%c0_7, %c0_8] : memref<1x64xf32, #tpu.memory_space<vmem>>, vector<1x64xf32>
    %cst_9 = arith.constant 9.99999974E-6 : f32
    %15 = vector.broadcast %cst_9 : f32 to vector<1x64xf32>
    %16 = arith.addf %13, %15 : vector<1x64xf32>
    %17 = math.rsqrt %16 : vector<1x64xf32>
    %18 = arith.mulf %14, %17 : vector<1x64xf32>
    %19 = vector.broadcast %18 : vector<1x64xf32> to vector<32x64xf32>
    %20 = arith.mulf %8, %19 : vector<32x64xf32>
    %c0_10 = arith.constant 0 : index
    %c0_11 = arith.constant 0 : index
    %21 = vector.load %arg4[%c0_10, %c0_11] : memref<1x64xf32, #tpu.memory_space<vmem>>, vector<1x64xf32>
    %22 = vector.broadcast %21 : vector<1x64xf32> to vector<32x64xf32>
    %23 = arith.addf %20, %22 : vector<32x64xf32>
    %cst_12 = arith.constant 0.000000e+00 : f32
    %24 = vector.broadcast %cst_12 : f32 to vector<32x64xf32>
    %25 = arith.maximumf %23, %24 : vector<32x64xf32>
    %c0_13 = arith.constant 0 : index
    %c0_14 = arith.constant 0 : index
    %26 = vector.load %arg5[%c0_13, %c0_14] : memref<32x64xf32, #tpu.memory_space<vmem>>, vector<32x64xf32>
    tpu.vector_store %arg5[%c0_13, %c0_14], %25 {strides = array<i32>} : memref<32x64xf32, #tpu.memory_space<vmem>>, vector<32x64xf32>,
    return
  }
  func.func @transform_0(%arg0: i32) -> (i32, i32) {
    %c0_i32 = arith.constant 0 : i32
    %c0_i32_0 = arith.constant 0 : i32
    %c0_i32_1 = arith.constant 0 : i32
    return %c0_i32, %c0_i32_0 : i32, i32
  }
  func.func @transform_1(%arg0: i32) -> (i32, i32) {
    %c0_i32 = arith.constant 0 : i32
    %c0_i32_0 = arith.constant 0 : i32
    %c0_i32_1 = arith.constant 0 : i32
    return %c0_i32, %c0_i32_0 : i32, i32
  }
  func.func @transform_2(%arg0: i32) -> (i32, i32) {
    %c0_i32 = arith.constant 0 : i32
    %c0_i32_0 = arith.constant 0 : i32
    %c0_i32_1 = arith.constant 0 : i32
    return %c0_i32, %c0_i32_0 : i32, i32
  }
  func.func @transform_3(%arg0: i32) -> (i32, i32) {
    %c0_i32 = arith.constant 0 : i32
    %c0_i32_0 = arith.constant 0 : i32
    %c0_i32_1 = arith.constant 0 : i32
    return %c0_i32, %c0_i32_0 : i32, i32
  }
  func.func @transform_4(%arg0: i32) -> (i32, i32) {
    %c0_i32 = arith.constant 0 : i32
    %c0_i32_0 = arith.constant 0 : i32
    %c0_i32_1 = arith.constant 0 : i32
    return %c0_i32, %c0_i32_0 : i32, i32
  }
}

module attributes {stable_mosaic.version = 11 : i64} {
  func.func @_mm_bn_relu_kernel(%arg0: i32, %arg1: memref<128x1024xbf16, #tpu.memory_space<vmem>>, %arg2: memref<1024x32xbf16, #tpu.memory_space<vmem>>, %arg3: memref<1x32xf32, #tpu.memory_space<vmem>>, %arg4: memref<1x32xf32, #tpu.memory_space<vmem>>, %arg5: memref<128x32xf32, #tpu.memory_space<vmem>>) attributes {dimension_semantics = [#tpu.dimension_semantics<arbitrary>], iteration_bounds = array<i64: 1>, scalar_prefetch = 0 : i64, scratch_operands = 0 : i64, tpu.core_type = #tpu.core_type<tc>, window_params = [{pipeline_mode = #tpu.pipeline_mode<synchronous>, transform_indices = @transform_0, window_bounds = array<i64: 128, 1024>}, {pipeline_mode = #tpu.pipeline_mode<synchronous>, transform_indices = @transform_1, window_bounds = array<i64: 1024, 32>}, {pipeline_mode = #tpu.pipeline_mode<synchronous>, transform_indices = @transform_2, window_bounds = array<i64: 1, 32>}, {pipeline_mode = #tpu.pipeline_mode<synchronous>, transform_indices = @transform_3, window_bounds = array<i64: 1, 32>}, {pipeline_mode = #tpu.pipeline_mode<synchronous>, transform_indices = @transform_4, window_bounds = array<i64: 128, 32>}]} {
    %c0 = arith.constant 0 : index
    %c0_0 = arith.constant 0 : index
    %0 = vector.load %arg1[%c0, %c0_0] : memref<128x1024xbf16, #tpu.memory_space<vmem>>, vector<128x1024xbf16>
    %c0_1 = arith.constant 0 : index
    %c0_2 = arith.constant 0 : index
    %1 = vector.load %arg2[%c0_1, %c0_2] : memref<1024x32xbf16, #tpu.memory_space<vmem>>, vector<1024x32xbf16>
    %cst = arith.constant dense<0.000000e+00> : vector<128x32xf32>
    %2 = tpu.matmul %0, %1, %cst {dimension_numbers = #tpu.dot_dimension_numbers<[1], [0], [0], [1], [0, 0, 1, 1], [], []>} : vector<128x1024xbf16>, vector<1024x32xbf16>, vector<128x32xf32> -> vector<128x32xf32>
    %cst_3 = arith.constant dense<0.000000e+00> : vector<32xf32>
    %3 = vector.multi_reduction <add>, %2, %cst_3 [0] : vector<128x32xf32> to vector<32xf32>
    %4 = vector.shape_cast %3 : vector<32xf32> to vector<1x32xf32>
    %cst_4 = arith.constant 1.280000e+02 : f32
    %5 = vector.broadcast %cst_4 : f32 to vector<1x32xf32>
    %6 = arith.divf %4, %5 : vector<1x32xf32>
    %7 = vector.broadcast %6 : vector<1x32xf32> to vector<128x32xf32>
    %8 = arith.subf %2, %7 : vector<128x32xf32>
    %9 = arith.mulf %8, %8 : vector<128x32xf32>
    %cst_5 = arith.constant dense<0.000000e+00> : vector<32xf32>
    %10 = vector.multi_reduction <add>, %9, %cst_5 [0] : vector<128x32xf32> to vector<32xf32>
    %11 = vector.shape_cast %10 : vector<32xf32> to vector<1x32xf32>
    %cst_6 = arith.constant 1.280000e+02 : f32
    %12 = vector.broadcast %cst_6 : f32 to vector<1x32xf32>
    %13 = arith.divf %11, %12 : vector<1x32xf32>
    %c0_7 = arith.constant 0 : index
    %c0_8 = arith.constant 0 : index
    %14 = vector.load %arg3[%c0_7, %c0_8] : memref<1x32xf32, #tpu.memory_space<vmem>>, vector<1x32xf32>
    %cst_9 = arith.constant 9.99999974E-6 : f32
    %15 = vector.broadcast %cst_9 : f32 to vector<1x32xf32>
    %16 = arith.addf %13, %15 : vector<1x32xf32>
    %17 = math.rsqrt %16 : vector<1x32xf32>
    %18 = arith.mulf %14, %17 : vector<1x32xf32>
    %19 = vector.broadcast %18 : vector<1x32xf32> to vector<128x32xf32>
    %20 = arith.mulf %8, %19 : vector<128x32xf32>
    %c0_10 = arith.constant 0 : index
    %c0_11 = arith.constant 0 : index
    %21 = vector.load %arg4[%c0_10, %c0_11] : memref<1x32xf32, #tpu.memory_space<vmem>>, vector<1x32xf32>
    %22 = vector.broadcast %21 : vector<1x32xf32> to vector<128x32xf32>
    %23 = arith.addf %20, %22 : vector<128x32xf32>
    %cst_12 = arith.constant 0.000000e+00 : f32
    %24 = vector.broadcast %cst_12 : f32 to vector<128x32xf32>
    %25 = arith.maximumf %23, %24 : vector<128x32xf32>
    %c0_13 = arith.constant 0 : index
    %c0_14 = arith.constant 0 : index
    %26 = vector.load %arg5[%c0_13, %c0_14] : memref<128x32xf32, #tpu.memory_space<vmem>>, vector<128x32xf32>
    tpu.vector_store %arg5[%c0_13, %c0_14], %25 {strides = array<i32>} : memref<128x32xf32, #tpu.memory_space<vmem>>, vector<128x32xf32>,
    return
  }
  func.func @transform_0(%arg0: i32) -> (i32, i32) {
    %c0_i32 = arith.constant 0 : i32
    %c0_i32_0 = arith.constant 0 : i32
    %c0_i32_1 = arith.constant 0 : i32
    return %c0_i32, %c0_i32_0 : i32, i32
  }
  func.func @transform_1(%arg0: i32) -> (i32, i32) {
    %c0_i32 = arith.constant 0 : i32
    %c0_i32_0 = arith.constant 0 : i32
    %c0_i32_1 = arith.constant 0 : i32
    return %c0_i32, %c0_i32_0 : i32, i32
  }
  func.func @transform_2(%arg0: i32) -> (i32, i32) {
    %c0_i32 = arith.constant 0 : i32
    %c0_i32_0 = arith.constant 0 : i32
    %c0_i32_1 = arith.constant 0 : i32
    return %c0_i32, %c0_i32_0 : i32, i32
  }
  func.func @transform_3(%arg0: i32) -> (i32, i32) {
    %c0_i32 = arith.constant 0 : i32
    %c0_i32_0 = arith.constant 0 : i32
    %c0_i32_1 = arith.constant 0 : i32
    return %c0_i32, %c0_i32_0 : i32, i32
  }
  func.func @transform_4(%arg0: i32) -> (i32, i32) {
    %c0_i32 = arith.constant 0 : i32
    %c0_i32_0 = arith.constant 0 : i32
    %c0_i32_1 = arith.constant 0 : i32
    return %c0_i32, %c0_i32_0 : i32, i32
  }
}

module attributes {stable_mosaic.version = 11 : i64} {
  func.func @_mm_bias_act_kernel(%arg0: i32, %arg1: memref<512x512xbf16, #tpu.memory_space<vmem>>, %arg2: memref<512x3xbf16, #tpu.memory_space<vmem>>, %arg3: memref<1x3xf32, #tpu.memory_space<vmem>>, %arg4: memref<512x3xf32, #tpu.memory_space<vmem>>) attributes {dimension_semantics = [#tpu.dimension_semantics<arbitrary>], iteration_bounds = array<i64: 1>, scalar_prefetch = 0 : i64, scratch_operands = 0 : i64, tpu.core_type = #tpu.core_type<tc>, window_params = [{pipeline_mode = #tpu.pipeline_mode<synchronous>, transform_indices = @transform_0, window_bounds = array<i64: 512, 512>}, {pipeline_mode = #tpu.pipeline_mode<synchronous>, transform_indices = @transform_1, window_bounds = array<i64: 512, 3>}, {pipeline_mode = #tpu.pipeline_mode<synchronous>, transform_indices = @transform_2, window_bounds = array<i64: 1, 3>}, {pipeline_mode = #tpu.pipeline_mode<synchronous>, transform_indices = @transform_3, window_bounds = array<i64: 512, 3>}]} {
    %c0 = arith.constant 0 : index
    %c0_0 = arith.constant 0 : index
    %0 = vector.load %arg1[%c0, %c0_0] : memref<512x512xbf16, #tpu.memory_space<vmem>>, vector<512x512xbf16>
    %c0_1 = arith.constant 0 : index
    %c0_2 = arith.constant 0 : index
    %1 = vector.load %arg2[%c0_1, %c0_2] : memref<512x3xbf16, #tpu.memory_space<vmem>>, vector<512x3xbf16>
    %cst = arith.constant dense<0.000000e+00> : vector<512x3xf32>
    %2 = tpu.matmul %0, %1, %cst {dimension_numbers = #tpu.dot_dimension_numbers<[1], [0], [0], [1], [0, 0, 1, 1], [], []>} : vector<512x512xbf16>, vector<512x3xbf16>, vector<512x3xf32> -> vector<512x3xf32>
    %c0_3 = arith.constant 0 : index
    %c0_4 = arith.constant 0 : index
    %3 = vector.load %arg3[%c0_3, %c0_4] : memref<1x3xf32, #tpu.memory_space<vmem>>, vector<1x3xf32>
    %4 = vector.broadcast %3 : vector<1x3xf32> to vector<512x3xf32>
    %5 = arith.addf %2, %4 : vector<512x3xf32>
    %6 = arith.negf %5 : vector<512x3xf32>
    %7 = math.exp %6 : vector<512x3xf32>
    %cst_5 = arith.constant 1.000000e+00 : f32
    %8 = vector.broadcast %cst_5 : f32 to vector<512x3xf32>
    %9 = arith.addf %8, %7 : vector<512x3xf32>
    %10 = arith.divf %8, %9 : vector<512x3xf32>
    %c0_6 = arith.constant 0 : index
    %c0_7 = arith.constant 0 : index
    %11 = vector.load %arg4[%c0_6, %c0_7] : memref<512x3xf32, #tpu.memory_space<vmem>>, vector<512x3xf32>
    tpu.vector_store %arg4[%c0_6, %c0_7], %10 {strides = array<i32>} : memref<512x3xf32, #tpu.memory_space<vmem>>, vector<512x3xf32>,
    return
  }
  func.func @transform_0(%arg0: i32) -> (i32, i32) {
    %c0_i32 = arith.constant 0 : i32
    %c0_i32_0 = arith.constant 0 : i32
    %c0_i32_1 = arith.constant 0 : i32
    return %c0_i32, %c0_i32_0 : i32, i32
  }
  func.func @transform_1(%arg0: i32) -> (i32, i32) {
    %c0_i32 = arith.constant 0 : i32
    %c0_i32_0 = arith.constant 0 : i32
    %c0_i32_1 = arith.constant 0 : i32
    return %c0_i32, %c0_i32_0 : i32, i32
  }
  func.func @transform_2(%arg0: i32) -> (i32, i32) {
    %c0_i32 = arith.constant 0 : i32
    %c0_i32_0 = arith.constant 0 : i32
    %c0_i32_1 = arith.constant 0 : i32
    return %c0_i32, %c0_i32_0 : i32, i32
  }
  func.func @transform_3(%arg0: i32) -> (i32, i32) {
    %c0_i32 = arith.constant 0 : i32
    %c0_i32_0 = arith.constant 0 : i32
    %c0_i32_1 = arith.constant 0 : i32
    return %c0_i32, %c0_i32_0 : i32, i32
  }
}

</mosaic_0001>

<bundles_post_ra>
// kernel: cvae_forward.10
= control target key start
LH: loop header
LB: loop body
LE: loop exit
PB: predicated region body
PF: predicated region fallthrough
CT: control target
= control target key end

     0   :  { %v109_v0 = vmov 0.0   ;;  %vm110_vm0 = vmmov 0   ;;  %vm39_vm1 = vcmask 261120   ;;  %vm84_vm2 = vcmask 254976   ;;  %s146_s1 = inlined_call_operand.vmem [shape: bf16[32,32], index: 1, kind: input, shape index: {}]   ;;  %s147_s0 = inlined_call_operand.vmem [shape: bf16[2,32], index: 0, kind: input, shape index: {}]   ;;  %s148_s2 = inlined_call_operand.vmem [shape: f32[1,32], index: 2, kind: input, shape index: {}]   ;;  %s149_s3 = inlined_call_operand.vmem [shape: f32[2,32], index: 3, kind: output, shape index: {}]  }
   0x1   :  { %97 = vmatprep.subr.bf16.mxu0 %v109_v0  ;;  %v107_v1 = vld [vmem:[%s146_s1] sm:$0xff]   ;;  %101 = vmatprep.mubr.msk.bf16.mxu0 %vm110_vm0, %v109_v0  ;;  %v108_v2 = vld [vmem:[%s146_s1 + $0x8] sm:$0xff]  }
   0x2   :  { %98 = vmatpush3.bf16.msra.mxu0 %v107_v1  ;;  %v15_v3 = vld [vmem:[%s147_s0] sm:$0x1] }
   0x3   :  { %99 = vmatprep.subr.bf16.mxu0 %v109_v0  ;;  %v90_v4 = vld [vmem:[%s148_s2] ss:$0 sm:$0xff] }
   0x6   :  { %100 = vmatpush3.bf16.msra.mxu0 %v108_v2 }
   0x9   :  { %102 = vmatmul.mubr.msk.bf16.vlgmr.msra.gmra.mrb[0].mxu0 %vm39_vm1, %v15_v3 }
  0xdc   :  { %v77_v5 = vpop.f32.mrb[0].mxu0 }
  0xdd   :  { %v78_v6 = vadd.f32 %v90_v4, %v77_v5  ;;  %v103_v7 = vpop.f32.mrb[1].mxu0 }
  0xde   :  { %v80_v8 = vpop.f32.mrb[2].mxu0 }
  0xdf   :  { %v83_v9 = vmax.f32 %v78_v6, 0.0  ;;  %v104_v10 = vpop.f32.mrb[3].mxu0 }
  0xe1   :  { %85 = vst.msk [vmem:[%s149_s3] sm:$0x3] %vm84_vm2, %v83_v9 }

// kernel: cvae_forward.11
= control target key start
LH: loop header
LB: loop body
LE: loop exit
PB: predicated region body
PF: predicated region fallthrough
CT: control target
= control target key end

     0   :  { %vm546_vm0 = vcmask 392192   ;;  %vm862_vm1 = vcmask 261120   ;;  %s1893_s1 = inlined_call_operand.vmem [shape: bf16[560,32], index: 1, kind: input, shape index: {}]   ;;  %s1894_s0 = inlined_call_operand.vmem [shape: bf16[128,560], index: 0, kind: input, shape index: {}]   ;;  %s1895_s2 = inlined_call_operand.vmem [shape: f32[1,32], index: 2, kind: input, shape index: {}]   ;;  %s1896_s3 = inlined_call_operand.vmem [shape: f32[1,32], index: 3, kind: input, shape index: {}]   ;;  %s1897_s4 = inlined_call_operand.vmem [shape: f32[128,32], index: 4, kind: output, shape index: {}]  }
   0x1   :  { %v1308_v0 = vld [vmem:[%s1893_s1 + $0x40] sm:$0xff]   ;;  %v1312_v4 = vld [vmem:[%s1893_s1 + $0x48] sm:$0xff]   ;;  %v1316_v8 = vld [vmem:[%s1893_s1 + $0x50] sm:$0xff]  }
   0x2   :  { %v1309_v1 = vld [vmem:[%s1893_s1 + $0xc0] sm:$0xff]   ;;  %1141 = vmatprep.subr.bf16.mxu0 %v1308_v0  ;;  %v1313_v5 = vld [vmem:[%s1893_s1 + $0xc8] sm:$0xff]   ;;  %v1317_v9 = vld [vmem:[%s1893_s1 + $0xd0] sm:$0xff]  }
   0x3   :  { %v1310_v2 = vld [vmem:[%s1893_s1] sm:$0xff]   ;;  %1205 = vmatprep.subr.bf16.mxu1 %v1309_v1  ;;  %v1314_v6 = vld [vmem:[%s1893_s1 + $0x8] sm:$0xff]   ;;  %v1318_v10 = vld [vmem:[%s1893_s1 + $0x10] sm:$0xff]  }
   0x4   :  { %v1311_v3 = vld [vmem:[%s1893_s1 + $0x80] sm:$0xff]   ;;  %1142 = vmatpush3.bf16.msra.mxu0 %v1310_v2  ;;  %v1315_v7 = vld [vmem:[%s1893_s1 + $0x88] sm:$0xff]   ;;  %v1319_v11 = vld [vmem:[%s1893_s1 + $0x90] sm:$0xff]  }
   0x5   :  { %1206 = vmatpush3.bf16.msra.mxu1 %v1311_v3  ;;  %1143 = vmatprep.subr.bf16.mxu0 %v1312_v4  ;;  %v1320_v12 = vld [vmem:[%s1893_s1 + $0x58] sm:$0xff]   ;;  %v1324_v16 = vld [vmem:[%s1893_s1 + $0x60] sm:$0xff]   ;;  %v1328_v20 = vld [vmem:[%s1893_s1 + $0x68] sm:$0xff]  }
   0x6   :  { %1207 = vmatprep.subr.bf16.mxu1 %v1313_v5  ;;  %v1321_v13 = vld [vmem:[%s1893_s1 + $0xd8] sm:$0xff]   ;;  %v1325_v17 = vld [vmem:[%s1893_s1 + $0xe0] sm:$0xff]   ;;  %v1329_v21 = vld [vmem:[%s1893_s1 + $0xe8] sm:$0xff]  }
   0x7   :  { %v1322_v14 = vld [vmem:[%s1893_s1 + $0x18] sm:$0xff]   ;;  %v1326_v18 = vld [vmem:[%s1893_s1 + $0x20] sm:$0xff]   ;;  %v1330_v22 = vld [vmem:[%s1893_s1 + $0x28] sm:$0xff]  }
   0x8   :  { %1144 = vmatpush3.bf16.msra.mxu0 %v1314_v6  ;;  %v1323_v15 = vld [vmem:[%s1893_s1 + $0x98] sm:$0xff]   ;;  %v1327_v19 = vld [vmem:[%s1893_s1 + $0xa0] sm:$0xff]   ;;  %v1331_v23 = vld [vmem:[%s1893_s1 + $0xa8] sm:$0xff]  }
   0x9   :  { %1208 = vmatpush3.bf16.msra.mxu1 %v1315_v7  ;;  %1145 = vmatprep.subr.bf16.mxu0 %v1316_v8  ;;  %v1332_v24 = vld [vmem:[%s1893_s1 + $0x70] sm:$0xff]   ;;  %v1336_v28 = vld [vmem:[%s1893_s1 + $0x78] sm:$0xff]   ;;  %v1345_v35 = vld [vmem:[%s1894_s0 + $0xc] ss:$20 sps:$4 sm:$0xff]  }
   0xa   :  { %1209 = vmatprep.subr.bf16.mxu1 %v1317_v9  ;;  %v1333_v25 = vld [vmem:[%s1893_s1 + $0xf0] sm:$0xff]   ;;  %v1337_v29 = vld [vmem:[%s1893_s1 + $0xf8] sm:$0xff]   ;;  %v1346_v36 = vld [vmem:[%s1893_s1 + $0x100] sm:$0xff]   ;;  %700 = vmatprep.mubr.bf16.mxu1 %v1345_v35 }
   0xb   :  { %v1334_v26 = vld [vmem:[%s1893_s1 + $0x30] sm:$0xff]   ;;  %v1338_v30 = vld [vmem:[%s1893_s1 + $0x38] sm:$0xff]   ;;  %v1347_v37 = vld [vmem:[%s1894_s0 + $0x2c] ss:$20 sps:$4 sm:$0xff]  }
   0xc   :  { %1146 = vmatpush3.bf16.msra.mxu0 %v1318_v10  ;;  %v1335_v27 = vld [vmem:[%s1893_s1 + $0xb0] sm:$0xff]   ;;  %v1339_v31 = vld [vmem:[%s1893_s1 + $0xb8] sm:$0xff]   ;;  %v1359_v42 = vld [vmem:[%s1893_s1 + $0x108] sm:$0xff]  }
   0xd   :  { %1210 = vmatpush3.bf16.msra.mxu1 %v1319_v11  ;;  %1147 = vmatprep.subr.bf16.mxu0 %v1320_v12  ;;  %v1340_v32 = vld [vmem:[%s1894_s0] ss:$20 sps:$4 sm:$0xff]   ;;  %v1342_v33 = vld [vmem:[%s1894_s0 + $0x4] ss:$20 sps:$4 sm:$0xff]   ;;  %v1343_v34 = vld [vmem:[%s1894_s0 + $0x8] ss:$20 sps:$4 sm:$0xff]  }
   0xe   :  { %1211 = vmatprep.subr.bf16.mxu1 %v1321_v13  ;;  %603 = vmatprep.mubr.bf16.mxu0 %v1342_v33  ;;  %v1349_v38 = vld [vmem:[%s1894_s0 + $0x34] ss:$20 sps:$4 sm:$0xff]   ;;  %v1352_v40 = vld [vmem:[%s1894_s0 + $0x30] ss:$20 sps:$4 sm:$0xff]   ;;  %v1358_v45 = vld [vmem:[%s1894_s0 + $0x58] ss:$20 sps:$4 sm:$0xff]  }
   0xf   :  { %v1351_v39 = vld [vmem:[%s1894_s0 + $0x28] ss:$20 sps:$4 sm:$0xff]   ;;  %v1357_v44 = vld [vmem:[%s1894_s0 + $0x50] ss:$20 sps:$4 sm:$0xff]   ;;  %v1364_v49 = vld [vmem:[%s1894_s0 + $0x78] ss:$20 sps:$4 sm:$0xff]  }
  0x10   :  { %1148 = vmatpush3.bf16.msra.mxu0 %v1322_v14  ;;  %v1353_v41 = vld [vmem:[%s1894_s0 + $0x54] ss:$20 sps:$4 sm:$0xff]   ;;  %v1355_v43 = vld [vmem:[%s1894_s0 + $0x5c] ss:$20 sps:$4 sm:$0xff]   ;;  %v1362_v47 = vld [vmem:[%s1894_s0 + $0x84] ss:$20 sps:$4 sm:$0xff]  }
  0x11   :  { %1212 = vmatpush3.bf16.msra.mxu1 %v1323_v15  ;;  %1149 = vmatprep.subr.bf16.mxu0 %v1324_v16  ;;  %v1360_v46 = vld [vmem:[%s1894_s0 + $0x7c] ss:$20 sps:$4 sm:$0xff]   ;;  %v1365_v50 = vld [vmem:[%s1894_s0 + $0x80] ss:$20 sps:$4 sm:$0xff]   ;;  %v1366_v51 = vld [vmem:[%s1894_s0 + $0xa4] ss:$20 sps:$4 sm:$0xff]  }
  0x12   :  { %1213 = vmatprep.subr.bf16.mxu1 %v1325_v17  ;;  %v1378_v48 = vld [vmem:[%s1893_s1 + $0x110] sm:$0xff]   ;;  %v1368_v52 = vld [vmem:[%s1894_s0 + $0xac] ss:$20 sps:$4 sm:$0xff]   ;;  %v1371_v54 = vld [vmem:[%s1894_s0 + $0xa8] ss:$20 sps:$4 sm:$0xff]  }
  0x13   :  { %v1370_v53 = vld [vmem:[%s1894_s0 + $0xa0] ss:$20 sps:$4 sm:$0xff]   ;;  %v1376_v57 = vld [vmem:[%s1894_s0 + $0xc8] ss:$20 sps:$4 sm:$0xff]   ;;  %v1377_v58 = vld [vmem:[%s1894_s0 + $0xd0] ss:$20 sps:$4 sm:$0xff]  }
  0x14   :  { %1150 = vmatpush3.bf16.msra.mxu0 %v1326_v18  ;;  %v1372_v55 = vld [vmem:[%s1894_s0 + $0xcc] ss:$20 sps:$4 sm:$0xff]   ;;  %v1374_v56 = vld [vmem:[%s1894_s0 + $0xd4] ss:$20 sps:$4 sm:$0xff]   ;;  %v1381_v60 = vld [vmem:[%s1894_s0 + $0xfc] ss:$20 sps:$4 sm:$0xff]  }
  0x15   :  { %1214 = vmatpush3.bf16.msra.mxu1 %v1327_v19  ;;  %1151 = vmatprep.subr.bf16.mxu0 %v1328_v20  ;;  %v1379_v59 = vld [vmem:[%s1894_s0 + $0xf4] ss:$20 sps:$4 sm:$0xff]   ;;  %v1383_v61 = vld [vmem:[%s1894_s0 + $0xf0] ss:$20 sps:$4 sm:$0xff]   ;;  %v1384_v62 = vld [vmem:[%s1894_s0 + $0xf8] ss:$20 sps:$4 sm:$0xff]  }
  0x16   :  { %1215 = vmatprep.subr.bf16.mxu1 %v1329_v21  ;;  %v1385_v63 = vld [vmem:[%s1894_s0 + $0x11c] ss:$20 sps:$4 sm:$0xff]   ;;  %v1387_v0 = vld [vmem:[%s1894_s0 + $0x124] ss:$20 sps:$4 sm:$0xff]   ;;  %v1390_v2 = vld [vmem:[%s1894_s0 + $0x120] ss:$20 sps:$4 sm:$0xff]  }
  0x17   :  { %v1389_v1 = vld [vmem:[%s1894_s0 + $0x118] ss:$20 sps:$4 sm:$0xff]   ;;  %v1391_v3 = vld [vmem:[%s1894_s0 + $0x10] ss:$20 sps:$4 sm:$0xff]   ;;  %v1395_v7 = vld [vmem:[%s1894_s0 + $0x60] ss:$20 sps:$4 sm:$0xff]  }
  0x18   :  { %1152 = vmatpush3.bf16.msra.mxu0 %v1330_v22  ;;  %v1392_v4 = vld [vmem:[%s1894_s0 + $0xb0] ss:$20 sps:$4 sm:$0xff]   ;;  %v1393_v5 = vld [vmem:[%s1894_s0 + $0x38] ss:$20 sps:$4 sm:$0xff]   ;;  %v1396_v8 = vld [vmem:[%s1894_s0 + $0x100] ss:$20 sps:$4 sm:$0xff]  }
  0x19   :  { %1216 = vmatpush3.bf16.msra.mxu1 %v1331_v23  ;;  %1153 = vmatprep.subr.bf16.mxu0 %v1332_v24  ;;  %v1394_v6 = vld [vmem:[%s1894_s0 + $0xd8] ss:$20 sps:$4 sm:$0xff]   ;;  %v1397_v9 = vld [vmem:[%s1894_s0 + $0x88] ss:$20 sps:$4 sm:$0xff]  }
  0x1a   :  { %1217 = vmatprep.subr.bf16.mxu1 %v1333_v25  ;;  %v1398_v10 = vld [vmem:[%s1894_s0 + $0x128] ss:$20 sps:$4 sm:$0xff]  }
  0x1c   :  { %1154 = vmatpush3.bf16.msra.mxu0 %v1334_v26 }
  0x1d   :  { %1218 = vmatpush3.bf16.msra.mxu1 %v1335_v27  ;;  %1155 = vmatprep.subr.bf16.mxu0 %v1336_v28 }
  0x1e   :  { %1219 = vmatprep.subr.bf16.mxu1 %v1337_v29 }
  0x20   :  { %1156 = vmatpush3.bf16.msra.mxu0 %v1338_v30 }
  0x21   :  { %1220 = vmatpush3.bf16.msra.mxu1 %v1339_v31  ;;  %1280 = vmatprep.subr.bf16.mxu0 %v1346_v36 }
  0x22   :  { %1302 = vmatprep.subr.bf16.mxu1 %v1346_v36 }
  0x23   :  { %604 = vmatmul.mubr.bf16.vlgmr.msra.gmra.mrb[0].mxu0 %v1340_v32 }
  0x24   :  { %701 = vmatmul.mubr.bf16.vlgmr.msra.gmra.mrb[0].mxu1 %v1343_v34  ;;  %1281 = vmatpush3.bf16.msra.mxu0 %v1346_v36 }
  0x25   :  { %611 = vmatprep.mubr.bf16.mxu0 %v1347_v37  ;;  %708 = vmatprep.mubr.bf16.mxu1 %v1349_v38 }
  0x26   :  { %1305 = vmatpush3.bf16.msra.mxu1 %v1346_v36  ;;  %1282 = vmatprep.subr.bf16.mxu0 %v1359_v42 }
  0x27   :  { %1303 = vmatprep.subr.bf16.mxu1 %v1359_v42 }
  0x28   :  { %1283 = vmatpush3.bf16.msra.mxu0 %v1359_v42 }
  0x29   :  { %1284 = vmatprep.subr.bf16.mxu0 %v1378_v48 }
  0x2a   :  { %1306 = vmatpush3.bf16.msra.mxu1 %v1359_v42 }
  0x2b   :  { %612 = vmatmul.mubr.bf16.gmra.mrb[4].mxu0 %v1351_v39  ;;  %1304 = vmatprep.subr.bf16.mxu1 %v1378_v48 }
  0x2c   :  { %709 = vmatmul.mubr.bf16.gmra.mrb[4].mxu1 %v1352_v40  ;;  %619 = vmatprep.mubr.bf16.mxu0 %v1353_v41 }
  0x2d   :  { %716 = vmatprep.mubr.bf16.mxu1 %v1355_v43  ;;  %1285 = vmatpush3.bf16.msra.mxu0 %v1378_v48 }
  0x2e   :  { %1307 = vmatpush3.bf16.msra.mxu1 %v1378_v48 }
  0x33   :  { %620 = vmatmul.mubr.bf16.gmra.mrb[8].mxu0 %v1357_v44 }
  0x34   :  { %717 = vmatmul.mubr.bf16.gmra.mrb[8].mxu1 %v1358_v45  ;;  %627 = vmatprep.mubr.bf16.mxu0 %v1360_v46 }
  0x35   :  { %724 = vmatprep.mubr.bf16.mxu1 %v1362_v47 }
  0x3b   :  { %628 = vmatmul.mubr.bf16.gmra.mrb[12].mxu0 %v1364_v49 }
  0x3c   :  { %725 = vmatmul.mubr.bf16.gmra.mrb[12].mxu1 %v1365_v50  ;;  %635 = vmatprep.mubr.bf16.mxu0 %v1366_v51 }
  0x3d   :  { %732 = vmatprep.mubr.bf16.mxu1 %v1368_v52 }
  0x43   :  { %636 = vmatmul.mubr.bf16.gmra.mrb[16].mxu0 %v1370_v53 }
  0x44   :  { %733 = vmatmul.mubr.bf16.gmra.mrb[16].mxu1 %v1371_v54  ;;  %643 = vmatprep.mubr.bf16.mxu0 %v1372_v55 }
  0x45   :  { %740 = vmatprep.mubr.bf16.mxu1 %v1374_v56 }
  0x4b   :  { %644 = vmatmul.mubr.bf16.gmra.mrb[20].mxu0 %v1376_v57 }
  0x4c   :  { %741 = vmatmul.mubr.bf16.gmra.mrb[20].mxu1 %v1377_v58  ;;  %651 = vmatprep.mubr.bf16.mxu0 %v1379_v59 }
  0x4d   :  { %748 = vmatprep.mubr.bf16.mxu1 %v1381_v60 }
  0x53   :  { %652 = vmatmul.mubr.bf16.gmra.mrb[24].mxu0 %v1383_v61 }
  0x54   :  { %749 = vmatmul.mubr.bf16.gmra.mrb[24].mxu1 %v1384_v62  ;;  %659 = vmatprep.mubr.bf16.mxu0 %v1385_v63 }
  0x55   :  { %756 = vmatprep.mubr.bf16.mxu1 %v1387_v0 }
  0x5b   :  { %660 = vmatmul.mubr.bf16.gmra.mrb[28].mxu0 %v1389_v1 }
  0x5c   :  { %757 = vmatmul.mubr.bf16.gmra.mrb[28].mxu1 %v1390_v2  ;;  %1286 = vmatprep.mubr.msk.bf16.mxu0 %vm546_vm0, %v1391_v3 }
  0x5d   :  { %1294 = vmatprep.mubr.msk.bf16.mxu1 %vm546_vm0, %v1392_v4 }
  0x63   :  { %1287 = vmatmul.mubr.msk.bf16.vlgmr.msra.gmra.mrb[32].mxu0 %vm546_vm0, %v1393_v5 }
  0x64   :  { %1295 = vmatmul.mubr.msk.bf16.vlgmr.msra.gmra.mrb[32].mxu1 %vm546_vm0, %v1394_v6  ;;  %1290 = vmatprep.mubr.msk.bf16.mxu0 %vm546_vm0, %v1395_v7 }
  0x65   :  { %1298 = vmatprep.mubr.msk.bf16.mxu1 %vm546_vm0, %v1396_v8 }
  0x6b   :  { %1291 = vmatmul.mubr.msk.bf16.gmra.mrb[36].mxu0 %vm546_vm0, %v1397_v9 }
  0x6c   :  { %1299 = vmatmul.mubr.msk.bf16.gmra.mrb[36].mxu1 %vm546_vm0, %v1398_v10 }
  0xf6   :  { %v1157_v11 = vpop.f32.mrb[0].mxu0 }
  0xf7   :  { %v1221_v12 = vpop.f32.mrb[0].mxu1  ;;  %v1158_v13 = vpop.f32.mrb[1].mxu0 }
  0xf8   :  { %v1159_v14 = vadd.f32 %v1158_v13, %v1157_v11  ;;  %v1222_v15 = vpop.f32.mrb[1].mxu1  ;;  %v1160_v16 = vpop.f32.mrb[2].mxu0 }
  0xf9   :  { %v1223_v17 = vadd.f32 %v1222_v15, %v1221_v12  ;;  %v1224_v18 = vpop.f32.mrb[2].mxu1  ;;  %v1161_v19 = vpop.f32.mrb[3].mxu0 }
  0xfa   :  { %v1162_v20 = vadd.f32 %v1161_v19, %v1160_v16  ;;  %v1225_v21 = vpop.f32.mrb[3].mxu1 }
  0xfb   :  { %v1226_v22 = vadd.f32 %v1225_v21, %v1224_v18  ;;  %v1659_v23 = vadd.f32 %v1223_v17, %v1159_v14 }
  0xfd   :  { %v1661_v24 = vadd.f32 %v1226_v22, %v1162_v20 }
  0xfe   :  { %v1163_v25 = vpop.f32.mrb[4].mxu0 }
  0xff   :  { %v1227_v26 = vpop.f32.mrb[4].mxu1  ;;  %v1164_v27 = vpop.f32.mrb[5].mxu0 }
 0x100   :  { %v1165_v28 = vadd.f32 %v1164_v27, %v1163_v25  ;;  %v1228_v29 = vpop.f32.mrb[5].mxu1  ;;  %v1166_v30 = vpop.f32.mrb[6].mxu0 }
 0x101   :  { %v1229_v31 = vadd.f32 %v1228_v29, %v1227_v26  ;;  %v1230_v32 = vpop.f32.mrb[6].mxu1  ;;  %v1167_v33 = vpop.f32.mrb[7].mxu0 }
 0x102   :  { %v1168_v34 = vadd.f32 %v1167_v33, %v1166_v30  ;;  %v1231_v35 = vpop.f32.mrb[7].mxu1 }
 0x103   :  { %v1232_v36 = vadd.f32 %v1231_v35, %v1230_v32  ;;  %v1663_v37 = vadd.f32 %v1229_v31, %v1165_v28 }
 0x105   :  { %v1665_v38 = vadd.f32 %v1232_v36, %v1168_v34 }
 0x106   :  { %v1169_v39 = vpop.f32.mrb[8].mxu0 }
 0x107   :  { %v1233_v40 = vpop.f32.mrb[8].mxu1  ;;  %v1170_v41 = vpop.f32.mrb[9].mxu0 }
 0x108   :  { %v1171_v42 = vadd.f32 %v1170_v41, %v1169_v39  ;;  %v1234_v43 = vpop.f32.mrb[9].mxu1  ;;  %v1172_v44 = vpop.f32.mrb[10].mxu0 }
 0x109   :  { %v1235_v45 = vadd.f32 %v1234_v43, %v1233_v40  ;;  %v1236_v46 = vpop.f32.mrb[10].mxu1  ;;  %v1173_v47 = vpop.f32.mrb[11].mxu0 }
 0x10a   :  { %v1174_v48 = vadd.f32 %v1173_v47, %v1172_v44  ;;  %v1237_v49 = vpop.f32.mrb[11].mxu1 }
 0x10b   :  { %v1238_v50 = vadd.f32 %v1237_v49, %v1236_v46  ;;  %v1667_v51 = vadd.f32 %v1235_v45, %v1171_v42 }
 0x10d   :  { %v1669_v52 = vadd.f32 %v1238_v50, %v1174_v48 }
 0x10e   :  { %v1175_v53 = vpop.f32.mrb[12].mxu0 }
 0x10f   :  { %v1239_v54 = vpop.f32.mrb[12].mxu1  ;;  %v1176_v55 = vpop.f32.mrb[13].mxu0 }
 0x110   :  { %v1177_v56 = vadd.f32 %v1176_v55, %v1175_v53  ;;  %v1240_v57 = vpop.f32.mrb[13].mxu1  ;;  %v1178_v58 = vpop.f32.mrb[14].mxu0 }
 0x111   :  { %v1241_v59 = vadd.f32 %v1240_v57, %v1239_v54  ;;  %v1242_v60 = vpop.f32.mrb[14].mxu1  ;;  %v1179_v61 = vpop.f32.mrb[15].mxu0 }
 0x112   :  { %v1180_v62 = vadd.f32 %v1179_v61, %v1178_v58  ;;  %v1243_v63 = vpop.f32.mrb[15].mxu1 }
 0x113   :  { %v1244_v0 = vadd.f32 %v1243_v63, %v1242_v60  ;;  %v1671_v1 = vadd.f32 %v1241_v59, %v1177_v56 }
 0x115   :  { %v1673_v2 = vadd.f32 %v1244_v0, %v1180_v62 }
 0x116   :  { %v1181_v3 = vpop.f32.mrb[16].mxu0 }
 0x117   :  { %v1245_v4 = vpop.f32.mrb[16].mxu1  ;;  %v1182_v5 = vpop.f32.mrb[17].mxu0 }
 0x118   :  { %v1183_v6 = vadd.f32 %v1182_v5, %v1181_v3  ;;  %v1246_v7 = vpop.f32.mrb[17].mxu1  ;;  %v1184_v8 = vpop.f32.mrb[18].mxu0 }
 0x119   :  { %v1247_v9 = vadd.f32 %v1246_v7, %v1245_v4  ;;  %v1248_v10 = vpop.f32.mrb[18].mxu1  ;;  %v1185_v11 = vpop.f32.mrb[19].mxu0 }
 0x11a   :  { %v1186_v12 = vadd.f32 %v1185_v11, %v1184_v8  ;;  %v1249_v13 = vpop.f32.mrb[19].mxu1 }
 0x11b   :  { %v1250_v14 = vadd.f32 %v1249_v13, %v1248_v10  ;;  %v735_v15 = vadd.f32 %v1247_v9, %v1183_v6 }
 0x11d   :  { %v738_v16 = vadd.f32 %v1250_v14, %v1186_v12 }
 0x11e   :  { %v1187_v17 = vpop.f32.mrb[20].mxu0 }
 0x11f   :  { %v1251_v18 = vpop.f32.mrb[20].mxu1  ;;  %v1188_v19 = vpop.f32.mrb[21].mxu0 }
 0x120   :  { %v1189_v20 = vadd.f32 %v1188_v19, %v1187_v17  ;;  %v1252_v21 = vpop.f32.mrb[21].mxu1  ;;  %v1190_v22 = vpop.f32.mrb[22].mxu0 }
 0x121   :  { %v1253_v25 = vadd.f32 %v1252_v21, %v1251_v18  ;;  %v1254_v26 = vpop.f32.mrb[22].mxu1  ;;  %v1191_v27 = vpop.f32.mrb[23].mxu0 }
 0x122   :  { %v1192_v28 = vadd.f32 %v1191_v27, %v1190_v22  ;;  %v1255_v29 = vpop.f32.mrb[23].mxu1 }
 0x123   :  { %v1256_v30 = vadd.f32 %v1255_v29, %v1254_v26  ;;  %v743_v31 = vadd.f32 %v1253_v25, %v1189_v20 }
 0x125   :  { %v746_v32 = vadd.f32 %v1256_v30, %v1192_v28 }
 0x126   :  { %v1193_v33 = vpop.f32.mrb[24].mxu0 }
 0x127   :  { %v1257_v34 = vpop.f32.mrb[24].mxu1  ;;  %v1194_v35 = vpop.f32.mrb[25].mxu0 }
 0x128   :  { %v1195_v36 = vadd.f32 %v1194_v35, %v1193_v33  ;;  %v1258_v39 = vpop.f32.mrb[25].mxu1  ;;  %v1196_v40 = vpop.f32.mrb[26].mxu0 }
 0x129   :  { %v1259_v41 = vadd.f32 %v1258_v39, %v1257_v34  ;;  %v1260_v42 = vpop.f32.mrb[26].mxu1  ;;  %v1197_v43 = vpop.f32.mrb[27].mxu0 }
 0x12a   :  { %v1198_v44 = vadd.f32 %v1197_v43, %v1196_v40  ;;  %v1261_v45 = vpop.f32.mrb[27].mxu1 }
 0x12b   :  { %v1262_v46 = vadd.f32 %v1261_v45, %v1260_v42  ;;  %v751_v47 = vadd.f32 %v1259_v41, %v1195_v36 }
 0x12d   :  { %v754_v48 = vadd.f32 %v1262_v46, %v1198_v44 }
 0x12e   :  { %v1199_v49 = vpop.f32.mrb[28].mxu0 }
 0x12f   :  { %v1263_v50 = vpop.f32.mrb[28].mxu1  ;;  %v1200_v53 = vpop.f32.mrb[29].mxu0 }
 0x130   :  { %v1201_v54 = vadd.f32 %v1200_v53, %v1199_v49  ;;  %v1264_v55 = vpop.f32.mrb[29].mxu1  ;;  %v1202_v56 = vpop.f32.mrb[30].mxu0 }
 0x131   :  { %v1265_v57 = vadd.f32 %v1264_v55, %v1263_v50  ;;  %v1266_v58 = vpop.f32.mrb[30].mxu1  ;;  %v1203_v59 = vpop.f32.mrb[31].mxu0 }
 0x132   :  { %v1204_v60 = vadd.f32 %v1203_v59, %v1202_v56  ;;  %v1267_v61 = vpop.f32.mrb[31].mxu1 }
 0x133   :  { %v1268_v62 = vadd.f32 %v1267_v61, %v1266_v58  ;;  %v759_v63 = vadd.f32 %v1265_v57, %v1201_v54 }
 0x135   :  { %v762_v0 = vadd.f32 %v1268_v62, %v1204_v60 }
 0x136   :  { %v1288_v3 = vpop.f32.mrb[32].mxu0 }
 0x137   :  { %v1676_v4 = vadd.f32 %v1288_v3, %v1663_v37  ;;  %v1296_v5 = vpop.f32.mrb[32].mxu1  ;;  %v799_v6 = vpop.f32.mrb[33].mxu0 }
 0x138   :  { %v1678_v7 = vadd.f32 %v1296_v5, %v743_v31  ;;  %v1681_v8 = vadd.f32 %v799_v6, %v1659_v23  ;;  %v831_v9 = vpop.f32.mrb[33].mxu1  ;;  %v1289_v10 = vpop.f32.mrb[34].mxu0 }
 0x139   :  { %v1683_v11 = vadd.f32 %v831_v9, %v735_v15  ;;  %v1686_v12 = vadd.f32 %v1289_v10, %v1665_v38  ;;  %v1297_v13 = vpop.f32.mrb[34].mxu1  ;;  %v802_v14 = vpop.f32.mrb[35].mxu0  ;;  %v866_v15 = vsel %vm862_vm1, %v1676_v4, 0.0 }
 0x13a   :  { %v1688_v17 = vadd.f32 %v1297_v13, %v746_v32  ;;  %v803_v37 = vadd.f32 %v802_v14, %v1661_v24  ;;  %v834_v18 = vpop.f32.mrb[35].mxu1  ;;  %v863_v23 = vsel %vm862_vm1, %v1681_v8, 0.0 }
 0x13b   :  { %v1691_v19 = vadd.f32 %v834_v18, %v738_v16  ;;  %v868_v24 = vsel %vm862_vm1, %v1686_v12, 0.0 }
 0x13c   :  { %v864_v20 = vsel %vm862_vm1, %v803_v37, 0.0  ;;  %v884_v54 = vsel %vm862_vm1, %v1688_v17, 0.0 }
 0x13d   :  { %v865_v21 = vadd.f32 %v864_v20, %v863_v23  ;;  %v880_v50 = vsel %vm862_vm1, %v1691_v19, 0.0 }
 0x13e   :  { %v1292_v38 = vpop.f32.mrb[36].mxu0 }
 0x13f   :  { %v867_v22 = vadd.f32 %v866_v15, %v865_v21  ;;  %v824_v25 = vadd.f32 %v1292_v38, %v1671_v1  ;;  %v1300_v26 = vpop.f32.mrb[36].mxu1  ;;  %v815_v27 = vpop.f32.mrb[37].mxu0 }
 0x140   :  { %v856_v16 = vadd.f32 %v1300_v26, %v759_v63  ;;  %v816_v28 = vadd.f32 %v815_v27, %v1667_v51  ;;  %v847_v29 = vpop.f32.mrb[37].mxu1  ;;  %v1293_v30 = vpop.f32.mrb[38].mxu0 }
 0x141   :  { %v869_v31 = vadd.f32 %v868_v24, %v867_v22  ;;  %v848_v32 = vadd.f32 %v847_v29, %v751_v47  ;;  %v827_v33 = vadd.f32 %v1293_v30, %v1673_v2  ;;  %v1301_v34 = vpop.f32.mrb[38].mxu1  ;;  %v818_v35 = vpop.f32.mrb[39].mxu0  ;;  %v874_v51 = vsel %vm862_vm1, %v824_v25, 0.0 }
 0x142   :  { %v870_v36 = vsel %vm862_vm1, %v816_v28, 0.0  ;;  %v859_v39 = vadd.f32 %v1301_v34, %v762_v0  ;;  %v819_v1 = vadd.f32 %v818_v35, %v1669_v52  ;;  %v850_v40 = vpop.f32.mrb[39].mxu1  ;;  %v878_v2 = vsel %vm862_vm1, %v1683_v11, 0.0 }
 0x143   :  { %v871_v41 = vadd.f32 %v870_v36, %v869_v31  ;;  %v851_v42 = vadd.f32 %v850_v40, %v754_v48  ;;  %v876_v46 = vsel %vm862_vm1, %v827_v33, 0.0  ;;  %v882_v48 = vsel %vm862_vm1, %v1678_v7, 0.0 }
 0x144   :  { %v872_v43 = vsel %vm862_vm1, %v819_v1, 0.0  ;;  %v886_v56 = vsel %vm862_vm1, %v848_v32, 0.0  ;;  %v890_v60 = vsel %vm862_vm1, %v856_v16, 0.0  ;;  %v892_v62 = vsel %vm862_vm1, %v859_v39, 0.0 }
 0x145   :  { %v873_v44 = vadd.f32 %v872_v43, %v871_v41  ;;  %v888_v58 = vsel %vm862_vm1, %v851_v42, 0.0 }
 0x147   :  { %v875_v45 = vadd.f32 %v874_v51, %v873_v44 }
 0x149   :  { %v877_v47 = vadd.f32 %v876_v46, %v875_v45 }
 0x14b   :  { %v879_v49 = vadd.f32 %v878_v2, %v877_v47 }
 0x14d   :  { %v881_v52 = vadd.f32 %v880_v50, %v879_v49 }
 0x14f   :  { %v883_v53 = vadd.f32 %v882_v48, %v881_v52 }
 0x151   :  { %v885_v55 = vadd.f32 %v884_v54, %v883_v53 }
 0x153   :  { %v887_v57 = vadd.f32 %v886_v56, %v885_v55 }
 0x155   :  { %v889_v59 = vadd.f32 %v888_v58, %v887_v57 }
 0x157   :  { %v891_v61 = vadd.f32 %v890_v60, %v889_v59 }
 0x159   :  { %v893_v63 = vadd.f32 %v892_v62, %v891_v61 }
 0x15b   :  { %v894_v0 = vrot.slane %v893_v63, 4 }
 0x15d   :  { %v895_v3 = vadd.f32 %v894_v0, %v893_v63 }
 0x15f   :  { %v896_v5 = vrot.slane %v895_v3, 2 }
 0x161   :  { %v897_v6 = vadd.f32 %v896_v5, %v895_v3 }
 0x163   :  { %v898_v9 = vrot.slane %v897_v6, 1 }
 0x165   :  { %v899_v10 = vadd.f32 %v898_v9, %v897_v6 }
 0x167   :  { %v901_v13 = vmul.f32 0.0078125, %v899_v10 }
 0x169   :  { %v1721_v14 = vsub.f32 %v1681_v8, %v901_v13  ;;  %v1723_v18 = vsub.f32 %v803_v37, %v901_v13  ;;  %v1726_v23 = vsub.f32 %v1676_v4, %v901_v13  ;;  %v1729_v20 = vsub.f32 %v1686_v12, %v901_v13 }
 0x16a   :  { %v1731_v21 = vsub.f32 %v816_v28, %v901_v13  ;;  %v1733_v15 = vsub.f32 %v819_v1, %v901_v13  ;;  %v1735_v38 = vsub.f32 %v824_v25, %v901_v13  ;;  %v1737_v22 = vsub.f32 %v827_v33, %v901_v13 }
 0x16b   :  { %v1740_v26 = vsub.f32 %v1683_v11, %v901_v13  ;;  %v1743_v8 = vsub.f32 %v1691_v19, %v901_v13  ;;  %v1746_v4 = vsub.f32 %v1678_v7, %v901_v13  ;;  %v1749_v12 = vsub.f32 %v1688_v17, %v901_v13 }
 0x16c   :  { %v1751_v37 = vsub.f32 %v848_v32, %v901_v13  ;;  %v1753_v27 = vsub.f32 %v851_v42, %v901_v13  ;;  %v1755_v25 = vsub.f32 %v856_v16, %v901_v13  ;;  %v1757_v24 = vsub.f32 %v859_v39, %v901_v13 }
 0x16d   :  { %v918_v11 = vmul.f32 %v1721_v14, %v1721_v14  ;;  %v919_v19 = vmul.f32 %v1723_v18, %v1723_v18  ;;  %v920_v7 = vmul.f32 %v1726_v23, %v1726_v23  ;;  %v921_v17 = vmul.f32 %v1729_v20, %v1729_v20 }
 0x16e   :  { %v922_v30 = vmul.f32 %v1731_v21, %v1731_v21  ;;  %v923_v33 = vmul.f32 %v1733_v15, %v1733_v15  ;;  %v924_v36 = vmul.f32 %v1735_v38, %v1735_v38  ;;  %v925_v40 = vmul.f32 %v1737_v22, %v1737_v22 }
 0x16f   :  { %v934_v28 = vsel %vm862_vm1, %v918_v11, 0.0  ;;  %v935_v29 = vsel %vm862_vm1, %v919_v19, 0.0  ;;  %v937_v31 = vsel %vm862_vm1, %v920_v7, 0.0  ;;  %v939_v34 = vsel %vm862_vm1, %v921_v17, 0.0 }
 0x170   :  { %v936_v16 = vadd.f32 %v935_v29, %v934_v28  ;;  %v941_v39 = vsel %vm862_vm1, %v922_v30, 0.0  ;;  %v943_v41 = vsel %vm862_vm1, %v923_v33, 0.0  ;;  %v926_v43 = vmul.f32 %v1740_v26, %v1740_v26 }
 0x171   :  { %v945_v44 = vsel %vm862_vm1, %v924_v36, 0.0  ;;  %v927_v45 = vmul.f32 %v1743_v8, %v1743_v8  ;;  %v947_v46 = vsel %vm862_vm1, %v925_v40, 0.0  ;;  %v928_v2 = vmul.f32 %v1746_v4, %v1746_v4 }
 0x172   :  { %v938_v32 = vadd.f32 %v937_v31, %v936_v16  ;;  %v949_v49 = vsel %vm862_vm1, %v926_v43, 0.0  ;;  %v929_v52 = vmul.f32 %v1749_v12, %v1749_v12  ;;  %v930_v54 = vmul.f32 %v1751_v37, %v1751_v37 }
 0x173   :  { %v951_v48 = vsel %vm862_vm1, %v927_v45, 0.0  ;;  %v953_v55 = vsel %vm862_vm1, %v928_v2, 0.0  ;;  %v931_v57 = vmul.f32 %v1753_v27, %v1753_v27  ;;  %v932_v60 = vmul.f32 %v1755_v25, %v1755_v25  ;;  %v1140_v45 = vld [vmem:[%s1896_s3] ss:$0 sm:$0xff] }
 0x174   :  { %v940_v35 = vadd.f32 %v939_v34, %v938_v32  ;;  %v955_v58 = vsel %vm862_vm1, %v929_v52, 0.0  ;;  %v957_v61 = vsel %vm862_vm1, %v930_v54, 0.0  ;;  %v933_v63 = vmul.f32 %v1757_v24, %v1757_v24  ;;  %v972_v32 = vld [vmem:[%s1895_s2] sm:$0x1] }
 0x175   :  { %v959_v0 = vsel %vm862_vm1, %v931_v57, 0.0  ;;  %v961_v5 = vsel %vm862_vm1, %v932_v60, 0.0  ;;  %v977_v30 = vlaneseq }
 0x176   :  { %v942_v1 = vadd.f32 %v941_v39, %v940_v35  ;;  %v963_v9 = vsel %vm862_vm1, %v933_v63, 0.0 }
 0x177   :  { %v978_v31 = vshrl.u32 %v977_v30, 7 }
 0x178   :  { %v944_v42 = vadd.f32 %v943_v41, %v942_v1 }
 0x179   :  { %v979_v33 = vsub.s32 0, %v978_v31 }
 0x17a   :  { %v946_v51 = vadd.f32 %v945_v44, %v944_v42 }
 0x17c   :  { %v948_v47 = vadd.f32 %v947_v46, %v946_v51 }
 0x17e   :  { %v950_v50 = vadd.f32 %v949_v49, %v948_v47 }
 0x180   :  { %v952_v53 = vadd.f32 %v951_v48, %v950_v50 }
 0x182   :  { %v954_v56 = vadd.f32 %v953_v55, %v952_v53 }
 0x184   :  { %v956_v59 = vadd.f32 %v955_v58, %v954_v56 }
 0x186   :  { %v958_v62 = vadd.f32 %v957_v61, %v956_v59 }
 0x188   :  { %v960_v3 = vadd.f32 %v959_v0, %v958_v62 }
 0x18a   :  { %v962_v6 = vadd.f32 %v961_v5, %v960_v3 }
 0x18c   :  { %v964_v10 = vadd.f32 %v963_v9, %v962_v6 }
 0x18e   :  { %v965_v13 = vrot.slane %v964_v10, 4 }
 0x190   :  { %v966_v11 = vadd.f32 %v965_v13, %v964_v10 }
 0x192   :  { %v967_v19 = vrot.slane %v966_v11, 2 }
 0x194   :  { %v968_v7 = vadd.f32 %v967_v19, %v966_v11 }
 0x196   :  { %v969_v17 = vrot.slane %v968_v7, 1 }
 0x198   :  { %v970_v28 = vadd.f32 %v969_v17, %v968_v7 }
 0x19a   :  { %v971_v29 = vmul.f32 0.0078125, %v970_v28 }
 0x19c   :  { %v973_v16 = vadd.f32 1e-05, %v971_v29 }
 0x19e   :  { %1399 = vrsqrt.f32 %v973_v16 }
 0x1a8   :  { %v1400_v34 = vpop.eup %1399 }
 0x1a9   :  { %v975_v35 = vmul.f32 %v1400_v34, %v972_v32 }
 0x1ab   :  { %v980_v36 = vrot.slane %v975_v35, %v979_v33 }
 0x1ad   :  { %v982_v39 = vmul.f32 %v980_v36, %v1721_v14  ;;  %v983_v1 = vmul.f32 %v980_v36, %v1723_v18  ;;  %v984_v40 = vmul.f32 %v980_v36, %v1726_v23  ;;  %v985_v41 = vmul.f32 %v980_v36, %v1729_v20 }
 0x1ae   :  { %v986_v42 = vmul.f32 %v980_v36, %v1731_v21  ;;  %v987_v43 = vmul.f32 %v980_v36, %v1733_v15  ;;  %v988_v44 = vmul.f32 %v980_v36, %v1735_v38  ;;  %v989_v51 = vmul.f32 %v980_v36, %v1737_v22 }
 0x1af   :  { %v990_v14 = vmul.f32 %v980_v36, %v1740_v26  ;;  %v991_v18 = vmul.f32 %v980_v36, %v1743_v8  ;;  %v992_v23 = vmul.f32 %v980_v36, %v1746_v4  ;;  %v993_v20 = vmul.f32 %v980_v36, %v1749_v12 }
 0x1b0   :  { %v994_v21 = vmul.f32 %v980_v36, %v1751_v37  ;;  %v995_v15 = vmul.f32 %v980_v36, %v1753_v27  ;;  %v996_v38 = vmul.f32 %v980_v36, %v1755_v25  ;;  %v997_v22 = vmul.f32 %v980_v36, %v1757_v24 }
 0x1b1   :  { %v1005_v46 = vadd.f32 %v1140_v45, %v982_v39  ;;  %v1006_v47 = vadd.f32 %v1140_v45, %v983_v1  ;;  %v1007_v2 = vadd.f32 %v1140_v45, %v984_v40  ;;  %v1008_v49 = vadd.f32 %v1140_v45, %v985_v41 }
 0x1b2   :  { %v1009_v50 = vadd.f32 %v1140_v45, %v986_v42  ;;  %v1010_v26 = vadd.f32 %v1140_v45, %v987_v43  ;;  %v1011_v52 = vadd.f32 %v1140_v45, %v988_v44  ;;  %v1012_v8 = vadd.f32 %v1140_v45, %v989_v51 }
 0x1b3   :  { %v1013_v48 = vadd.f32 %v1140_v45, %v990_v14  ;;  %v1014_v4 = vadd.f32 %v1140_v45, %v991_v18  ;;  %v1015_v53 = vadd.f32 %v1140_v45, %v992_v23  ;;  %v1016_v12 = vadd.f32 %v1140_v45, %v993_v20 }
 0x1b4   :  { %v1017_v54 = vadd.f32 %v1140_v45, %v994_v21  ;;  %v1018_v37 = vadd.f32 %v1140_v45, %v995_v15  ;;  %v1019_v55 = vadd.f32 %v1140_v45, %v996_v38  ;;  %v1020_v27 = vadd.f32 %v1140_v45, %v997_v22 }
 0x1b5   :  { %v1021_v56 = vmax.f32 %v1005_v46, 0.0  ;;  %v1022_v25 = vmax.f32 %v1006_v47, 0.0  ;;  %v1023_v57 = vmax.f32 %v1007_v2, 0.0  ;;  %v1024_v24 = vmax.f32 %v1008_v49, 0.0 }
 0x1b6   :  { %v1025_v58 = vmax.f32 %v1009_v50, 0.0  ;;  %v1026_v59 = vmax.f32 %v1010_v26, 0.0  ;;  %v1027_v60 = vmax.f32 %v1011_v52, 0.0  ;;  %v1028_v61 = vmax.f32 %v1012_v8, 0.0 }
 0x1b7   :  { %v1029_v62 = vmax.f32 %v1013_v48, 0.0  ;;  %v1030_v63 = vmax.f32 %v1014_v4, 0.0  ;;  %v1031_v0 = vmax.f32 %v1015_v53, 0.0  ;;  %v1032_v3 = vmax.f32 %v1016_v12, 0.0  ;;  %1037 = vst.msk [vmem:[%s1897_s4] sm:$0xff] %vm862_vm1, %v1021_v56  ;;  %1038 = vst.msk [vmem:[%s1897_s4 + $0x8] sm:$0xff] %vm862_vm1, %v1022_v25 }
 0x1b8   :  { %1039 = vst.msk [vmem:[%s1897_s4 + $0x10] sm:$0xff] %vm862_vm1, %v1023_v57  ;;  %1040 = vst.msk [vmem:[%s1897_s4 + $0x18] sm:$0xff] %vm862_vm1, %v1024_v24  ;;  %v1033_v5 = vmax.f32 %v1017_v54, 0.0  ;;  %v1034_v6 = vmax.f32 %v1018_v37, 0.0  ;;  %v1035_v9 = vmax.f32 %v1019_v55, 0.0  ;;  %v1036_v10 = vmax.f32 %v1020_v27, 0.0 }
 0x1b9   :  { %1041 = vst.msk [vmem:[%s1897_s4 + $0x20] sm:$0xff] %vm862_vm1, %v1025_v58  ;;  %1042 = vst.msk [vmem:[%s1897_s4 + $0x28] sm:$0xff] %vm862_vm1, %v1026_v59 }
 0x1ba   :  { %1043 = vst.msk [vmem:[%s1897_s4 + $0x30] sm:$0xff] %vm862_vm1, %v1027_v60  ;;  %1044 = vst.msk [vmem:[%s1897_s4 + $0x38] sm:$0xff] %vm862_vm1, %v1028_v61 }
 0x1bb   :  { %1045 = vst.msk [vmem:[%s1897_s4 + $0x40] sm:$0xff] %vm862_vm1, %v1029_v62  ;;  %1046 = vst.msk [vmem:[%s1897_s4 + $0x48] sm:$0xff] %vm862_vm1, %v1030_v63 }
 0x1bc   :  { %1047 = vst.msk [vmem:[%s1897_s4 + $0x50] sm:$0xff] %vm862_vm1, %v1031_v0  ;;  %1048 = vst.msk [vmem:[%s1897_s4 + $0x58] sm:$0xff] %vm862_vm1, %v1032_v3 }
 0x1bd   :  { %1049 = vst.msk [vmem:[%s1897_s4 + $0x60] sm:$0xff] %vm862_vm1, %v1033_v5  ;;  %1050 = vst.msk [vmem:[%s1897_s4 + $0x68] sm:$0xff] %vm862_vm1, %v1034_v6 }
 0x1be   :  { %1051 = vst.msk [vmem:[%s1897_s4 + $0x70] sm:$0xff] %vm862_vm1, %v1035_v9  ;;  %1052 = vst.msk [vmem:[%s1897_s4 + $0x78] sm:$0xff] %vm862_vm1, %v1036_v10 }

// kernel: cvae_forward.12
= control target key start
LH: loop header
LB: loop body
LE: loop exit
PB: predicated region body
PF: predicated region fallthrough
CT: control target
= control target key end

     0   :  { %vm420_vm0 = vcmask 523264   ;;  %s813_s1 = inlined_call_operand.vmem [shape: bf16[512,64], index: 1, kind: input, shape index: {}]   ;;  %s814_s0 = inlined_call_operand.vmem [shape: bf16[32,512], index: 0, kind: input, shape index: {}]   ;;  %s815_s2 = inlined_call_operand.vmem [shape: f32[1,64], index: 2, kind: input, shape index: {}]   ;;  %s816_s3 = inlined_call_operand.vmem [shape: f32[1,64], index: 3, kind: input, shape index: {}]   ;;  %s817_s4 = inlined_call_operand.vmem [shape: f32[32,64], index: 4, kind: output, shape index: {}]  }
   0x1   :  { %v592_v0 = vld [vmem:[%s813_s1 + $0x40] sm:$0xff]   ;;  %v596_v4 = vld [vmem:[%s813_s1 + $0x48] sm:$0xff]   ;;  %v600_v8 = vld [vmem:[%s813_s1 + $0x50] sm:$0xff]  }
   0x2   :  { %v593_v1 = vld [vmem:[%s813_s1 + $0xc0] sm:$0xff]   ;;  %536 = vmatprep.subr.bf16.mxu0 %v592_v0  ;;  %v597_v5 = vld [vmem:[%s813_s1 + $0xc8] sm:$0xff]   ;;  %v601_v9 = vld [vmem:[%s813_s1 + $0xd0] sm:$0xff]  }
   0x3   :  { %v594_v2 = vld [vmem:[%s813_s1] sm:$0xff]   ;;  %564 = vmatprep.subr.bf16.mxu1 %v593_v1  ;;  %v598_v6 = vld [vmem:[%s813_s1 + $0x8] sm:$0xff]   ;;  %v602_v10 = vld [vmem:[%s813_s1 + $0x10] sm:$0xff]  }
   0x4   :  { %v595_v3 = vld [vmem:[%s813_s1 + $0x80] sm:$0xff]   ;;  %537 = vmatpush3.bf16.msra.mxu0 %v594_v2  ;;  %v599_v7 = vld [vmem:[%s813_s1 + $0x88] sm:$0xff]   ;;  %v603_v11 = vld [vmem:[%s813_s1 + $0x90] sm:$0xff]  }
   0x5   :  { %565 = vmatpush3.bf16.msra.mxu1 %v595_v3  ;;  %538 = vmatprep.subr.bf16.mxu0 %v596_v4  ;;  %v604_v12 = vld [vmem:[%s813_s1 + $0x58] sm:$0xff]   ;;  %v608_v16 = vld [vmem:[%s813_s1 + $0x60] sm:$0xff]   ;;  %v612_v20 = vld [vmem:[%s813_s1 + $0x68] sm:$0xff]  }
   0x6   :  { %566 = vmatprep.subr.bf16.mxu1 %v597_v5  ;;  %v605_v13 = vld [vmem:[%s813_s1 + $0xd8] sm:$0xff]   ;;  %v609_v17 = vld [vmem:[%s813_s1 + $0xe0] sm:$0xff]   ;;  %v613_v21 = vld [vmem:[%s813_s1 + $0xe8] sm:$0xff]  }
   0x7   :  { %v606_v14 = vld [vmem:[%s813_s1 + $0x18] sm:$0xff]   ;;  %v610_v18 = vld [vmem:[%s813_s1 + $0x20] sm:$0xff]   ;;  %v614_v22 = vld [vmem:[%s813_s1 + $0x28] sm:$0xff]  }
   0x8   :  { %539 = vmatpush3.bf16.msra.mxu0 %v598_v6  ;;  %v607_v15 = vld [vmem:[%s813_s1 + $0x98] sm:$0xff]   ;;  %v611_v19 = vld [vmem:[%s813_s1 + $0xa0] sm:$0xff]   ;;  %v615_v23 = vld [vmem:[%s813_s1 + $0xa8] sm:$0xff]  }
   0x9   :  { %567 = vmatpush3.bf16.msra.mxu1 %v599_v7  ;;  %540 = vmatprep.subr.bf16.mxu0 %v600_v8  ;;  %v616_v24 = vld [vmem:[%s813_s1 + $0x70] sm:$0xff]   ;;  %v620_v28 = vld [vmem:[%s813_s1 + $0x78] sm:$0xff]  }
   0xa   :  { %568 = vmatprep.subr.bf16.mxu1 %v601_v9  ;;  %v617_v25 = vld [vmem:[%s813_s1 + $0xf0] sm:$0xff]   ;;  %v621_v29 = vld [vmem:[%s813_s1 + $0xf8] sm:$0xff]  }
   0xb   :  { %v618_v26 = vld [vmem:[%s813_s1 + $0x30] sm:$0xff]   ;;  %v622_v30 = vld [vmem:[%s813_s1 + $0x38] sm:$0xff]  }
   0xc   :  { %541 = vmatpush3.bf16.msra.mxu0 %v602_v10  ;;  %v619_v27 = vld [vmem:[%s813_s1 + $0xb0] sm:$0xff]   ;;  %v623_v31 = vld [vmem:[%s813_s1 + $0xb8] sm:$0xff]  }
   0xd   :  { %569 = vmatpush3.bf16.msra.mxu1 %v603_v11  ;;  %542 = vmatprep.subr.bf16.mxu0 %v604_v12  ;;  %v624_v32 = vld [vmem:[%s814_s0] ss:$16 sps:$4 sm:$0xff]   ;;  %v626_v33 = vld [vmem:[%s814_s0 + $0x4] ss:$16 sps:$4 sm:$0xff]   ;;  %v627_v34 = vld [vmem:[%s814_s0 + $0x8] ss:$16 sps:$4 sm:$0xff]  }
   0xe   :  { %570 = vmatprep.subr.bf16.mxu1 %v605_v13  ;;  %v629_v35 = vld [vmem:[%s814_s0 + $0xc] ss:$16 sps:$4 sm:$0xff]   ;;  %354 = vmatprep.mubr.bf16.mxu0 %v626_v33  ;;  %v630_v36 = vld [vmem:[%s814_s0 + $0x24] ss:$16 sps:$4 sm:$0xff]   ;;  %v634_v38 = vld [vmem:[%s814_s0 + $0x20] ss:$16 sps:$4 sm:$0xff]  }
   0xf   :  { %403 = vmatprep.mubr.bf16.mxu1 %v629_v35  ;;  %v632_v37 = vld [vmem:[%s814_s0 + $0x2c] ss:$16 sps:$4 sm:$0xff]   ;;  %v635_v39 = vld [vmem:[%s814_s0 + $0x28] ss:$16 sps:$4 sm:$0xff]  }
  0x10   :  { %543 = vmatpush3.bf16.msra.mxu0 %v606_v14 }
  0x11   :  { %571 = vmatpush3.bf16.msra.mxu1 %v607_v15  ;;  %544 = vmatprep.subr.bf16.mxu0 %v608_v16 }
  0x12   :  { %572 = vmatprep.subr.bf16.mxu1 %v609_v17 }
  0x14   :  { %545 = vmatpush3.bf16.msra.mxu0 %v610_v18 }
  0x15   :  { %573 = vmatpush3.bf16.msra.mxu1 %v611_v19  ;;  %546 = vmatprep.subr.bf16.mxu0 %v612_v20 }
  0x16   :  { %574 = vmatprep.subr.bf16.mxu1 %v613_v21 }
  0x18   :  { %547 = vmatpush3.bf16.msra.mxu0 %v614_v22 }
  0x19   :  { %575 = vmatpush3.bf16.msra.mxu1 %v615_v23  ;;  %548 = vmatprep.subr.bf16.mxu0 %v616_v24 }
  0x1a   :  { %576 = vmatprep.subr.bf16.mxu1 %v617_v25 }
  0x1c   :  { %549 = vmatpush3.bf16.msra.mxu0 %v618_v26 }
  0x1d   :  { %577 = vmatpush3.bf16.msra.mxu1 %v619_v27  ;;  %550 = vmatprep.subr.bf16.mxu0 %v620_v28 }
  0x1e   :  { %578 = vmatprep.subr.bf16.mxu1 %v621_v29 }
  0x20   :  { %551 = vmatpush3.bf16.msra.mxu0 %v622_v30 }
  0x21   :  { %579 = vmatpush3.bf16.msra.mxu1 %v623_v31 }
  0x23   :  { %355 = vmatmul.mubr.bf16.vlgmr.msra.gmra.mrb[0].mxu0 %v624_v32 }
  0x24   :  { %404 = vmatmul.mubr.bf16.vlgmr.msra.gmra.mrb[0].mxu1 %v627_v34  ;;  %362 = vmatprep.mubr.bf16.mxu0 %v630_v36 }
  0x25   :  { %411 = vmatprep.mubr.bf16.mxu1 %v632_v37 }
  0x2b   :  { %363 = vmatmul.mubr.bf16.gmra.mrb[4].mxu0 %v634_v38 }
  0x2c   :  { %412 = vmatmul.mubr.bf16.gmra.mrb[4].mxu1 %v635_v39 }
  0xf6   :  { %v552_v40 = vpop.f32.mrb[0].mxu0 }
  0xf7   :  { %v580_v41 = vpop.f32.mrb[0].mxu1  ;;  %v553_v42 = vpop.f32.mrb[1].mxu0 }
  0xf8   :  { %v554_v43 = vadd.f32 %v553_v42, %v552_v40  ;;  %v581_v44 = vpop.f32.mrb[1].mxu1  ;;  %v555_v45 = vpop.f32.mrb[2].mxu0 }
  0xf9   :  { %v582_v46 = vadd.f32 %v581_v44, %v580_v41  ;;  %v583_v47 = vpop.f32.mrb[2].mxu1  ;;  %v556_v48 = vpop.f32.mrb[3].mxu0  ;;  %v463_v41 = vlaneseq }
  0xfa   :  { %v557_v49 = vadd.f32 %v556_v48, %v555_v45  ;;  %v584_v50 = vpop.f32.mrb[3].mxu1  ;;  %v535_v48 = vld [vmem:[%s816_s3] ss:$0 sm:$0xff] }
  0xfb   :  { %v406_v51 = vadd.f32 %v582_v46, %v554_v43  ;;  %v585_v52 = vadd.f32 %v584_v50, %v583_v47  ;;  %v464_v42 = vshrl.u32 %v463_v41, 7  ;;  %v458_v43 = vld [vmem:[%s815_s2] sm:$0x1] }
  0xfd   :  { %v409_v53 = vadd.f32 %v585_v52, %v557_v49  ;;  %v421_v55 = vsel %vm420_vm0, %v406_v51, 0.0  ;;  %v465_v44 = vsub.s32 0, %v464_v42 }
  0xfe   :  { %v558_v54 = vpop.f32.mrb[4].mxu0 }
  0xff   :  { %v422_v56 = vsel %vm420_vm0, %v409_v53, 0.0  ;;  %v586_v57 = vpop.f32.mrb[4].mxu1  ;;  %v559_v58 = vpop.f32.mrb[5].mxu0 }
 0x100   :  { %v423_v59 = vadd.f32 %v422_v56, %v421_v55  ;;  %v560_v60 = vadd.f32 %v559_v58, %v558_v54  ;;  %v587_v61 = vpop.f32.mrb[5].mxu1  ;;  %v561_v62 = vpop.f32.mrb[6].mxu0 }
 0x101   :  { %v588_v63 = vadd.f32 %v587_v61, %v586_v57  ;;  %v589_v0 = vpop.f32.mrb[6].mxu1  ;;  %v562_v1 = vpop.f32.mrb[7].mxu0 }
 0x102   :  { %v563_v2 = vadd.f32 %v562_v1, %v561_v62  ;;  %v590_v3 = vpop.f32.mrb[7].mxu1 }
 0x103   :  { %v414_v4 = vadd.f32 %v588_v63, %v560_v60  ;;  %v591_v5 = vadd.f32 %v590_v3, %v589_v0 }
 0x105   :  { %v424_v6 = vsel %vm420_vm0, %v414_v4, 0.0  ;;  %v417_v7 = vadd.f32 %v591_v5, %v563_v2 }
 0x106   :  { %v425_v8 = vadd.f32 %v424_v6, %v423_v59 }
 0x107   :  { %v426_v9 = vsel %vm420_vm0, %v417_v7, 0.0 }
 0x108   :  { %v427_v10 = vadd.f32 %v426_v9, %v425_v8 }
 0x10a   :  { %v428_v11 = vrot.slane %v427_v10, 4 }
 0x10c   :  { %v429_v12 = vadd.f32 %v428_v11, %v427_v10 }
 0x10e   :  { %v430_v13 = vrot.slane %v429_v12, 2 }
 0x110   :  { %v431_v14 = vadd.f32 %v430_v13, %v429_v12 }
 0x112   :  { %v432_v15 = vrot.slane %v431_v14, 1 }
 0x114   :  { %v433_v16 = vadd.f32 %v432_v15, %v431_v14 }
 0x116   :  { %v435_v17 = vmul.f32 0.03125, %v433_v16 }
 0x118   :  { %v436_v18 = vsub.f32 %v406_v51, %v435_v17  ;;  %v437_v19 = vsub.f32 %v409_v53, %v435_v17  ;;  %v438_v20 = vsub.f32 %v414_v4, %v435_v17  ;;  %v439_v21 = vsub.f32 %v417_v7, %v435_v17 }
 0x11a   :  { %v440_v22 = vmul.f32 %v436_v18, %v436_v18  ;;  %v441_v23 = vmul.f32 %v437_v19, %v437_v19  ;;  %v442_v24 = vmul.f32 %v438_v20, %v438_v20  ;;  %v443_v25 = vmul.f32 %v439_v21, %v439_v21 }
 0x11c   :  { %v444_v26 = vsel %vm420_vm0, %v440_v22, 0.0  ;;  %v445_v27 = vsel %vm420_vm0, %v441_v23, 0.0  ;;  %v447_v29 = vsel %vm420_vm0, %v442_v24, 0.0  ;;  %v449_v31 = vsel %vm420_vm0, %v443_v25, 0.0 }
 0x11d   :  { %v446_v28 = vadd.f32 %v445_v27, %v444_v26 }
 0x11f   :  { %v448_v30 = vadd.f32 %v447_v29, %v446_v28 }
 0x121   :  { %v450_v32 = vadd.f32 %v449_v31, %v448_v30 }
 0x123   :  { %v451_v33 = vrot.slane %v450_v32, 4 }
 0x125   :  { %v452_v34 = vadd.f32 %v451_v33, %v450_v32 }
 0x127   :  { %v453_v35 = vrot.slane %v452_v34, 2 }
 0x129   :  { %v454_v36 = vadd.f32 %v453_v35, %v452_v34 }
 0x12b   :  { %v455_v37 = vrot.slane %v454_v36, 1 }
 0x12d   :  { %v456_v38 = vadd.f32 %v455_v37, %v454_v36 }
 0x12f   :  { %v457_v39 = vmul.f32 0.03125, %v456_v38 }
 0x131   :  { %v459_v40 = vadd.f32 1e-05, %v457_v39 }
 0x133   :  { %636 = vrsqrt.f32 %v459_v40 }
 0x13d   :  { %v637_v45 = vpop.eup %636 }
 0x13e   :  { %v461_v46 = vmul.f32 %v637_v45, %v458_v43 }
 0x140   :  { %v466_v47 = vrot.slane %v461_v46, %v465_v44 }
 0x142   :  { %v468_v49 = vmul.f32 %v466_v47, %v436_v18  ;;  %v469_v50 = vmul.f32 %v466_v47, %v437_v19  ;;  %v470_v51 = vmul.f32 %v466_v47, %v438_v20  ;;  %v471_v52 = vmul.f32 %v466_v47, %v439_v21 }
 0x144   :  { %v479_v53 = vadd.f32 %v535_v48, %v468_v49  ;;  %v480_v54 = vadd.f32 %v535_v48, %v469_v50  ;;  %v481_v55 = vadd.f32 %v535_v48, %v470_v51  ;;  %v482_v56 = vadd.f32 %v535_v48, %v471_v52 }
 0x146   :  { %v483_v57 = vmax.f32 %v479_v53, 0.0  ;;  %v484_v58 = vmax.f32 %v480_v54, 0.0  ;;  %v485_v59 = vmax.f32 %v481_v55, 0.0  ;;  %v486_v60 = vmax.f32 %v482_v56, 0.0 }
 0x148   :  { %487 = vst.msk [vmem:[%s817_s4] sm:$0xff] %vm420_vm0, %v483_v57  ;;  %488 = vst.msk [vmem:[%s817_s4 + $0x8] sm:$0xff] %vm420_vm0, %v484_v58 }
 0x149   :  { %489 = vst.msk [vmem:[%s817_s4 + $0x10] sm:$0xff] %vm420_vm0, %v485_v59  ;;  %490 = vst.msk [vmem:[%s817_s4 + $0x18] sm:$0xff] %vm420_vm0, %v486_v60 }

// kernel: cvae_forward.13
= control target key start
LH: loop header
LB: loop body
LE: loop exit
PB: predicated region body
PF: predicated region fallthrough
CT: control target
= control target key end

     0   :  { %s1237_s1 = inlined_call_operand.vmem [shape: bf16[1024,128], index: 1, kind: input, shape index: {}]   ;;  %s1238_s0 = inlined_call_operand.vmem [shape: bf16[8,1024], index: 0, kind: input, shape index: {}]   ;;  %s1239_s2 = inlined_call_operand.vmem [shape: f32[1,128], index: 2, kind: input, shape index: {}]   ;;  %s1240_s3 = inlined_call_operand.vmem [shape: f32[1,128], index: 3, kind: input, shape index: {}]   ;;  %s1241_s4 = inlined_call_operand.vmem [shape: f32[8,128], index: 4, kind: output, shape index: {}]  }
   0x1   :  { %v925_v0 = vld [vmem:[%s1237_s1 + $0x40] sm:$0xff]   ;;  %v929_v4 = vld [vmem:[%s1237_s1 + $0x48] sm:$0xff]   ;;  %v933_v8 = vld [vmem:[%s1237_s1 + $0x50] sm:$0xff]  }
   0x2   :  { %v926_v1 = vld [vmem:[%s1237_s1 + $0xc0] sm:$0xff]   ;;  %837 = vmatprep.subr.bf16.mxu0 %v925_v0  ;;  %v930_v5 = vld [vmem:[%s1237_s1 + $0xc8] sm:$0xff]   ;;  %v934_v9 = vld [vmem:[%s1237_s1 + $0xd0] sm:$0xff]  }
   0x3   :  { %v927_v2 = vld [vmem:[%s1237_s1] sm:$0xff]   ;;  %859 = vmatprep.subr.bf16.mxu1 %v926_v1  ;;  %v931_v6 = vld [vmem:[%s1237_s1 + $0x8] sm:$0xff]   ;;  %v935_v10 = vld [vmem:[%s1237_s1 + $0x10] sm:$0xff]  }
   0x4   :  { %v928_v3 = vld [vmem:[%s1237_s1 + $0x80] sm:$0xff]   ;;  %838 = vmatpush3.bf16.msra.mxu0 %v927_v2  ;;  %v932_v7 = vld [vmem:[%s1237_s1 + $0x88] sm:$0xff]   ;;  %v936_v11 = vld [vmem:[%s1237_s1 + $0x90] sm:$0xff]  }
   0x5   :  { %860 = vmatpush3.bf16.msra.mxu1 %v928_v3  ;;  %839 = vmatprep.subr.bf16.mxu0 %v929_v4  ;;  %v937_v12 = vld [vmem:[%s1237_s1 + $0x58] sm:$0xff]   ;;  %v941_v16 = vld [vmem:[%s1237_s1 + $0x60] sm:$0xff]   ;;  %v945_v20 = vld [vmem:[%s1237_s1 + $0x68] sm:$0xff]  }
   0x6   :  { %861 = vmatprep.subr.bf16.mxu1 %v930_v5  ;;  %v938_v13 = vld [vmem:[%s1237_s1 + $0xd8] sm:$0xff]   ;;  %v942_v17 = vld [vmem:[%s1237_s1 + $0xe0] sm:$0xff]   ;;  %v946_v21 = vld [vmem:[%s1237_s1 + $0xe8] sm:$0xff]  }
   0x7   :  { %v939_v14 = vld [vmem:[%s1237_s1 + $0x18] sm:$0xff]   ;;  %v943_v18 = vld [vmem:[%s1237_s1 + $0x20] sm:$0xff]   ;;  %v947_v22 = vld [vmem:[%s1237_s1 + $0x28] sm:$0xff]  }
   0x8   :  { %840 = vmatpush3.bf16.msra.mxu0 %v931_v6  ;;  %v940_v15 = vld [vmem:[%s1237_s1 + $0x98] sm:$0xff]   ;;  %v944_v19 = vld [vmem:[%s1237_s1 + $0xa0] sm:$0xff]   ;;  %v948_v23 = vld [vmem:[%s1237_s1 + $0xa8] sm:$0xff]  }
   0x9   :  { %862 = vmatpush3.bf16.msra.mxu1 %v932_v7  ;;  %841 = vmatprep.subr.bf16.mxu0 %v933_v8  ;;  %v949_v24 = vld [vmem:[%s1237_s1 + $0x70] sm:$0xff]   ;;  %v953_v28 = vld [vmem:[%s1237_s1 + $0x78] sm:$0xff]   ;;  %v18_v32 = vld [vmem:[%s1238_s0] sm:$0xff] }
   0xa   :  { %863 = vmatprep.subr.bf16.mxu1 %v934_v9  ;;  %v950_v25 = vld [vmem:[%s1237_s1 + $0xf0] sm:$0xff]   ;;  %v954_v29 = vld [vmem:[%s1237_s1 + $0xf8] sm:$0xff]   ;;  %v19_v33 = vld [vmem:[%s1238_s0 + $0x8] sm:$0xff]  ;;  %v764_v34 = vcombine.low %v18_v32, %v18_v32  ;;  %v765_v35 = vcombine.high %v18_v32, %v18_v32 }
   0xb   :  { %v951_v26 = vld [vmem:[%s1237_s1 + $0x30] sm:$0xff]   ;;  %v955_v30 = vld [vmem:[%s1237_s1 + $0x38] sm:$0xff]   ;;  %v766_v36 = vcombine.low %v19_v33, %v19_v33  ;;  %v767_v37 = vcombine.high %v19_v33, %v19_v33  ;;  %v961_v38 = vld [vmem:[%s1237_s1 + $0x140] sm:$0xff]  }
   0xc   :  { %842 = vmatpush3.bf16.msra.mxu0 %v935_v10  ;;  %v952_v27 = vld [vmem:[%s1237_s1 + $0xb0] sm:$0xff]   ;;  %v956_v31 = vld [vmem:[%s1237_s1 + $0xb8] sm:$0xff]   ;;  %v962_v39 = vld [vmem:[%s1237_s1 + $0x1c0] sm:$0xff]   ;;  %594 = vmatprep.mubr.bf16.mxu0 %v765_v35 }
   0xd   :  { %864 = vmatpush3.bf16.msra.mxu1 %v936_v11  ;;  %843 = vmatprep.subr.bf16.mxu0 %v937_v12  ;;  %v963_v40 = vld [vmem:[%s1237_s1 + $0x100] sm:$0xff]   ;;  %v965_v42 = vld [vmem:[%s1237_s1 + $0x148] sm:$0xff]   ;;  %v969_v46 = vld [vmem:[%s1237_s1 + $0x150] sm:$0xff]  }
   0xe   :  { %865 = vmatprep.subr.bf16.mxu1 %v938_v13  ;;  %634 = vmatprep.mubr.bf16.mxu1 %v767_v37  ;;  %v964_v41 = vld [vmem:[%s1237_s1 + $0x180] sm:$0xff]   ;;  %v966_v43 = vld [vmem:[%s1237_s1 + $0x1c8] sm:$0xff]   ;;  %v970_v47 = vld [vmem:[%s1237_s1 + $0x1d0] sm:$0xff]  }
   0xf   :  { %v967_v44 = vld [vmem:[%s1237_s1 + $0x108] sm:$0xff]   ;;  %v971_v48 = vld [vmem:[%s1237_s1 + $0x110] sm:$0xff]   ;;  %v973_v50 = vld [vmem:[%s1237_s1 + $0x158] sm:$0xff]  }
  0x10   :  { %844 = vmatpush3.bf16.msra.mxu0 %v939_v14  ;;  %v968_v45 = vld [vmem:[%s1237_s1 + $0x188] sm:$0xff]   ;;  %v972_v49 = vld [vmem:[%s1237_s1 + $0x190] sm:$0xff]   ;;  %v974_v51 = vld [vmem:[%s1237_s1 + $0x1d8] sm:$0xff]  }
  0x11   :  { %866 = vmatpush3.bf16.msra.mxu1 %v940_v15  ;;  %845 = vmatprep.subr.bf16.mxu0 %v941_v16  ;;  %v975_v52 = vld [vmem:[%s1237_s1 + $0x118] sm:$0xff]   ;;  %v977_v54 = vld [vmem:[%s1237_s1 + $0x160] sm:$0xff]   ;;  %v981_v58 = vld [vmem:[%s1237_s1 + $0x168] sm:$0xff]  }
  0x12   :  { %867 = vmatprep.subr.bf16.mxu1 %v942_v17  ;;  %v976_v53 = vld [vmem:[%s1237_s1 + $0x198] sm:$0xff]   ;;  %v978_v55 = vld [vmem:[%s1237_s1 + $0x1e0] sm:$0xff]   ;;  %v982_v59 = vld [vmem:[%s1237_s1 + $0x1e8] sm:$0xff]  }
  0x13   :  { %v979_v56 = vld [vmem:[%s1237_s1 + $0x120] sm:$0xff]   ;;  %v983_v60 = vld [vmem:[%s1237_s1 + $0x128] sm:$0xff]   ;;  %v985_v62 = vld [vmem:[%s1237_s1 + $0x170] sm:$0xff]  }
  0x14   :  { %846 = vmatpush3.bf16.msra.mxu0 %v943_v18  ;;  %v980_v57 = vld [vmem:[%s1237_s1 + $0x1a0] sm:$0xff]   ;;  %v984_v61 = vld [vmem:[%s1237_s1 + $0x1a8] sm:$0xff]   ;;  %v986_v63 = vld [vmem:[%s1237_s1 + $0x1f0] sm:$0xff]  }
  0x15   :  { %868 = vmatpush3.bf16.msra.mxu1 %v944_v19  ;;  %847 = vmatprep.subr.bf16.mxu0 %v945_v20  ;;  %v987_v0 = vld [vmem:[%s1237_s1 + $0x130] sm:$0xff]   ;;  %v989_v2 = vld [vmem:[%s1237_s1 + $0x178] sm:$0xff]  }
  0x16   :  { %869 = vmatprep.subr.bf16.mxu1 %v946_v21  ;;  %v988_v1 = vld [vmem:[%s1237_s1 + $0x1b0] sm:$0xff]   ;;  %v990_v3 = vld [vmem:[%s1237_s1 + $0x1f8] sm:$0xff]  }
  0x17   :  { %v991_v4 = vld [vmem:[%s1237_s1 + $0x138] sm:$0xff]   ;;  %v20_v6 = vld [vmem:[%s1238_s0 + $0x10] sm:$0xff] }
  0x18   :  { %848 = vmatpush3.bf16.msra.mxu0 %v947_v22  ;;  %v992_v5 = vld [vmem:[%s1237_s1 + $0x1b8] sm:$0xff]   ;;  %v768_v7 = vcombine.low %v20_v6, %v20_v6  ;;  %v769_v8 = vcombine.high %v20_v6, %v20_v6 }
  0x19   :  { %870 = vmatpush3.bf16.msra.mxu1 %v948_v23  ;;  %849 = vmatprep.subr.bf16.mxu0 %v949_v24  ;;  %v21_v9 = vld [vmem:[%s1238_s0 + $0x18] sm:$0xff] }
  0x1a   :  { %871 = vmatprep.subr.bf16.mxu1 %v950_v25  ;;  %v770_v10 = vcombine.low %v21_v9, %v21_v9  ;;  %v771_v11 = vcombine.high %v21_v9, %v21_v9 }
  0x1c   :  { %850 = vmatpush3.bf16.msra.mxu0 %v951_v26 }
  0x1d   :  { %872 = vmatpush3.bf16.msra.mxu1 %v952_v27  ;;  %851 = vmatprep.subr.bf16.mxu0 %v953_v28 }
  0x1e   :  { %873 = vmatprep.subr.bf16.mxu1 %v954_v29 }
  0x20   :  { %852 = vmatpush3.bf16.msra.mxu0 %v955_v30 }
  0x21   :  { %874 = vmatpush3.bf16.msra.mxu1 %v956_v31  ;;  %881 = vmatprep.subr.bf16.mxu0 %v961_v38 }
  0x22   :  { %903 = vmatprep.subr.bf16.mxu1 %v962_v39 }
  0x23   :  { %595 = vmatmul.mubr.bf16.vlgmr.msra.gmra.mrb[0].mxu0 %v764_v34 }
  0x24   :  { %635 = vmatmul.mubr.bf16.vlgmr.msra.gmra.mrb[0].mxu1 %v766_v36  ;;  %882 = vmatpush3.bf16.msra.mxu0 %v963_v40 }
  0x25   :  { %904 = vmatpush3.bf16.msra.mxu1 %v964_v41  ;;  %883 = vmatprep.subr.bf16.mxu0 %v965_v42 }
  0x26   :  { %905 = vmatprep.subr.bf16.mxu1 %v966_v43  ;;  %674 = vmatprep.mubr.bf16.mxu0 %v769_v8 }
  0x27   :  { %714 = vmatprep.mubr.bf16.mxu1 %v771_v11 }
  0x28   :  { %884 = vmatpush3.bf16.msra.mxu0 %v967_v44 }
  0x29   :  { %906 = vmatpush3.bf16.msra.mxu1 %v968_v45  ;;  %885 = vmatprep.subr.bf16.mxu0 %v969_v46 }
  0x2a   :  { %907 = vmatprep.subr.bf16.mxu1 %v970_v47 }
  0x2c   :  { %886 = vmatpush3.bf16.msra.mxu0 %v971_v48 }
  0x2d   :  { %908 = vmatpush3.bf16.msra.mxu1 %v972_v49  ;;  %887 = vmatprep.subr.bf16.mxu0 %v973_v50 }
  0x2e   :  { %909 = vmatprep.subr.bf16.mxu1 %v974_v51 }
  0x30   :  { %888 = vmatpush3.bf16.msra.mxu0 %v975_v52  ;;  %v744_v52 = vlaneseq }
  0x31   :  { %910 = vmatpush3.bf16.msra.mxu1 %v976_v53  ;;  %889 = vmatprep.subr.bf16.mxu0 %v977_v54  ;;  %v739_v54 = vld [vmem:[%s1239_s2] sm:$0x1] }
  0x32   :  { %911 = vmatprep.subr.bf16.mxu1 %v978_v55  ;;  %v745_v53 = vshrl.u32 %v744_v52, 7 }
  0x34   :  { %890 = vmatpush3.bf16.msra.mxu0 %v979_v56  ;;  %v746_v55 = vsub.s32 0, %v745_v53 }
  0x35   :  { %912 = vmatpush3.bf16.msra.mxu1 %v980_v57  ;;  %891 = vmatprep.subr.bf16.mxu0 %v981_v58 }
  0x36   :  { %913 = vmatprep.subr.bf16.mxu1 %v982_v59  ;;  %v836_v59 = vld [vmem:[%s1240_s3] ss:$0 sm:$0xff] }
  0x38   :  { %892 = vmatpush3.bf16.msra.mxu0 %v983_v60 }
  0x39   :  { %914 = vmatpush3.bf16.msra.mxu1 %v984_v61  ;;  %893 = vmatprep.subr.bf16.mxu0 %v985_v62 }
  0x3a   :  { %915 = vmatprep.subr.bf16.mxu1 %v986_v63 }
  0x3c   :  { %894 = vmatpush3.bf16.msra.mxu0 %v987_v0 }
  0x3d   :  { %916 = vmatpush3.bf16.msra.mxu1 %v988_v1  ;;  %895 = vmatprep.subr.bf16.mxu0 %v989_v2 }
  0x3e   :  { %917 = vmatprep.subr.bf16.mxu1 %v990_v3 }
  0x40   :  { %896 = vmatpush3.bf16.msra.mxu0 %v991_v4 }
  0x41   :  { %918 = vmatpush3.bf16.msra.mxu1 %v992_v5 }
  0x43   :  { %675 = vmatmul.mubr.bf16.vlgmr.msra.gmra.mrb[4].mxu0 %v768_v7 }
  0x44   :  { %715 = vmatmul.mubr.bf16.vlgmr.msra.gmra.mrb[4].mxu1 %v770_v10 }
  0xf6   :  { %v853_v12 = vpop.f32.mrb[0].mxu0 }
  0xf7   :  { %v875_v13 = vpop.f32.mrb[0].mxu1  ;;  %v854_v14 = vpop.f32.mrb[1].mxu0 }
  0xf8   :  { %v876_v15 = vpop.f32.mrb[1].mxu1  ;;  %v855_v16 = vadd.f32 %v854_v14, %v853_v12  ;;  %v856_v18 = vpop.f32.mrb[2].mxu0 }
  0xf9   :  { %v877_v17 = vadd.f32 %v876_v15, %v875_v13  ;;  %v878_v19 = vpop.f32.mrb[2].mxu1  ;;  %v857_v20 = vpop.f32.mrb[3].mxu0 }
  0xfa   :  { %v879_v21 = vpop.f32.mrb[3].mxu1 }
  0xfb   :  { %v637_v22 = vadd.f32 %v877_v17, %v855_v16 }
 0x116   :  { %v897_v23 = vpop.f32.mrb[4].mxu0 }
 0x117   :  { %v919_v24 = vpop.f32.mrb[4].mxu1  ;;  %v898_v25 = vpop.f32.mrb[5].mxu0 }
 0x118   :  { %v920_v26 = vpop.f32.mrb[5].mxu1  ;;  %v899_v27 = vadd.f32 %v898_v25, %v897_v23  ;;  %v900_v29 = vpop.f32.mrb[6].mxu0 }
 0x119   :  { %v921_v28 = vadd.f32 %v920_v26, %v919_v24  ;;  %v922_v30 = vpop.f32.mrb[6].mxu1  ;;  %v901_v31 = vpop.f32.mrb[7].mxu0 }
 0x11a   :  { %v923_v32 = vpop.f32.mrb[7].mxu1  ;;  %v677_v33 = vadd.f32 %v899_v27, %v637_v22 }
 0x11c   :  { %v717_v34 = vadd.f32 %v921_v28, %v677_v33 }
 0x11e   :  { %v722_v35 = vrot.slane %v717_v34, 4 }
 0x120   :  { %v723_v36 = vadd.f32 %v722_v35, %v717_v34 }
 0x122   :  { %v724_v37 = vrot.slane %v723_v36, 2 }
 0x124   :  { %v725_v38 = vadd.f32 %v724_v37, %v723_v36 }
 0x126   :  { %v726_v39 = vrot.slane %v725_v38, 1 }
 0x128   :  { %v727_v40 = vadd.f32 %v726_v39, %v725_v38 }
 0x12a   :  { %v729_v41 = vmul.f32 0.125, %v727_v40 }
 0x12c   :  { %v730_v42 = vsub.f32 %v717_v34, %v729_v41 }
 0x12e   :  { %v731_v43 = vmul.f32 %v730_v42, %v730_v42 }
 0x130   :  { %v732_v44 = vrot.slane %v731_v43, 4 }
 0x132   :  { %v733_v45 = vadd.f32 %v732_v44, %v731_v43 }
 0x134   :  { %v734_v46 = vrot.slane %v733_v45, 2 }
 0x136   :  { %v735_v47 = vadd.f32 %v734_v46, %v733_v45 }
 0x138   :  { %v736_v48 = vrot.slane %v735_v47, 1 }
 0x13a   :  { %v737_v49 = vadd.f32 %v736_v48, %v735_v47 }
 0x13c   :  { %v738_v50 = vmul.f32 0.125, %v737_v49 }
 0x13e   :  { %v740_v51 = vadd.f32 1e-05, %v738_v50 }
 0x140   :  { %997 = vrsqrt.f32 %v740_v51 }
 0x14a   :  { %v998_v56 = vpop.eup %997 }
 0x14b   :  { %v742_v57 = vmul.f32 %v998_v56, %v739_v54 }
 0x14d   :  { %v747_v58 = vrot.slane %v742_v57, %v746_v55 }
 0x14f   :  { %v749_v60 = vmul.f32 %v747_v58, %v730_v42 }
 0x151   :  { %v757_v61 = vadd.f32 %v836_v59, %v749_v60 }
 0x153   :  { %v758_v62 = vmax.f32 %v757_v61, 0.0 }
 0x155   :  { %759 = vst [vmem:[%s1241_s4] sm:$0xff] %v758_v62 }

// kernel: cvae_forward.15
= control target key start
LH: loop header
LB: loop body
LE: loop exit
PB: predicated region body
PF: predicated region fallthrough
CT: control target
= control target key end

     0   :  { %18 = vsyncpa [#allocation3], 0  ;;  %v93_v23 = vlaneseq  ;;  %v811_v28 = vmov 1966171168   ;;  %s1052_s0 = inlined_call_operand.vmem [shape: bf16[2,256], index: 0, kind: input, shape index: {}]   ;;  %s1053_s1 = inlined_call_operand.vmem [shape: bf16[256,32], index: 1, kind: input, shape index: {}]   ;;  %s1054_s2 = inlined_call_operand.vmem [shape: f32[1,32], index: 2, kind: input, shape index: {}, may-alias: {2,4}]   ;;  %s1055_s3 = inlined_call_operand.vmem [shape: bf16[256,32], index: 3, kind: input, shape index: {}]   ;;  %s1056_s4 = inlined_call_operand.vmem [shape: f32[1,32], index: 4, kind: input, shape index: {}, may-alias: {2,4}]   ;;  %s1057_s5 = inlined_call_operand.vmem [shape: f32[2,32], index: 5, kind: input, shape index: {}]   ;;  %s1058_s6 = inlined_call_operand.vmem [shape: bf16[2,32], index: 6, kind: input, shape index: {}]   ;;  %s1059_s7 = inlined_call_operand.vmem [shape: bf16[32,256], index: 7, kind: input, shape index: {}]   ;;  %s1060_s8 = inlined_call_operand.vmem [shape: bf16[32,256], index: 8, kind: input, shape index: {}]   ;;  %s1061_s9 = inlined_call_operand.vmem [shape: f32[1,256], index: 9, kind: input, shape index: {}]   ;;  %s1062_s10 = inlined_call_operand.hbm [shape: f32[2,32], index: 10, kind: output, shape index: {0}]   ;;  %s1063_s11 = inlined_call_operand.hbm [shape: f32[2,32], index: 11, kind: output, shape index: {1}]   ;;  %s1064_s12 = inlined_call_operand.vmem [shape: f32[2,256], index: 12, kind: output, shape index: {2}]  }
   0x1   :  { %v717_v0 = vld [vmem:[%s1055_s3 + $0x40] sm:$0xff]   ;;  %v719_v2 = vld [vmem:[%s1055_s3 + $0x48] sm:$0xff]   ;;  %v721_v4 = vld [vmem:[%s1055_s3 + $0x50] sm:$0xff]   ;;  %v91_v29 = vunpack.c.l.s4 %v811_v28 }
   0x2   :  { %v718_v1 = vld [vmem:[%s1055_s3] sm:$0xff]   ;;  %691 = vmatprep.subr.bf16.mxu1 %v717_v0  ;;  %v720_v3 = vld [vmem:[%s1055_s3 + $0x8] sm:$0xff]   ;;  %v722_v5 = vld [vmem:[%s1055_s3 + $0x10] sm:$0xff]   ;;  %v961_v30 = vshrl.u32 %v93_v23, 7 }
   0x3   :  { %692 = vmatpush3.bf16.msra.mxu1 %v718_v1  ;;  %v723_v6 = vld [vmem:[%s1055_s3 + $0x58] sm:$0xff]   ;;  %v725_v7 = vld [vmem:[%s1053_s1 + $0x40] sm:$0xff]   ;;  %v729_v11 = vld [vmem:[%s1053_s1 + $0x48] sm:$0xff]   ;;  %v92_v34 = vunpack.c.0.s8 %v91_v29 }
   0x4   :  { %693 = vmatprep.subr.bf16.mxu1 %v719_v2  ;;  %v726_v8 = vld [vmem:[%s1053_s1] sm:$0xff]   ;;  %v724_v9 = vld [vmem:[%s1055_s3 + $0x18] sm:$0xff]   ;;  %669 = vmatprep.subr.bf16.mxu0 %v725_v7  ;;  %v730_v12 = vld [vmem:[%s1053_s1 + $0x8] sm:$0xff]  }
   0x5   :  { %670 = vmatpush3.bf16.msra.mxu0 %v726_v8  ;;  %v727_v10 = vld [vmem:[%s1055_s3 + $0x60] sm:$0xff]   ;;  %v731_v14 = vld [vmem:[%s1055_s3 + $0x68] sm:$0xff]   ;;  %v733_v15 = vld [vmem:[%s1053_s1 + $0x50] sm:$0xff]   ;;  %v95_v36 = vsub.s32 %v92_v34, %v961_v30 }
   0x6   :  { %v728_v13 = vld [vmem:[%s1055_s3 + $0x20] sm:$0xff]   ;;  %671 = vmatprep.subr.bf16.mxu0 %v729_v11  ;;  %v734_v16 = vld [vmem:[%s1053_s1 + $0x10] sm:$0xff]   ;;  %v732_v17 = vld [vmem:[%s1055_s3 + $0x28] sm:$0xff]  }
   0x7   :  { %694 = vmatpush3.bf16.msra.mxu1 %v720_v3  ;;  %v735_v18 = vld [vmem:[%s1055_s3 + $0x70] sm:$0xff]   ;;  %v737_v19 = vld [vmem:[%s1053_s1 + $0x58] sm:$0xff]   ;;  %v741_v24 = vld [vmem:[%s1053_s1 + $0x60] sm:$0xff]  }
   0x8   :  { %695 = vmatprep.subr.bf16.mxu1 %v721_v4  ;;  %v738_v20 = vld [vmem:[%s1053_s1 + $0x18] sm:$0xff]   ;;  %v736_v21 = vld [vmem:[%s1055_s3 + $0x30] sm:$0xff]   ;;  %v742_v26 = vld [vmem:[%s1053_s1 + $0x20] sm:$0xff]  }
   0x9   :  { %672 = vmatpush3.bf16.msra.mxu0 %v730_v12  ;;  %v739_v22 = vld [vmem:[%s1055_s3 + $0x78] sm:$0xff]   ;;  %v624_v27 = vld.sshfl [vmem:[%s1052_s0] sm:$0x11 pattern:$0x75316420]  ;;  %v743_v31 = vld [vmem:[%s1053_s1 + $0x68] sm:$0xff]  }
   0xa   :  { %673 = vmatprep.subr.bf16.mxu0 %v733_v15  ;;  %v740_v25 = vld [vmem:[%s1055_s3 + $0x38] sm:$0xff]   ;;  %v744_v32 = vld [vmem:[%s1053_s1 + $0x28] sm:$0xff]   ;;  %v89_v33 = vcombine.high %v624_v27, %v624_v27  ;;  %v745_v35 = vld [vmem:[%s1053_s1 + $0x70] sm:$0xff]   ;;  %v96_v40 = vrot.slane %v624_v27, %v95_v36 }
   0xb   :  { %696 = vmatpush3.bf16.msra.mxu1 %v722_v5  ;;  %v746_v37 = vld [vmem:[%s1053_s1 + $0x30] sm:$0xff]   ;;  %v747_v38 = vld [vmem:[%s1053_s1 + $0x78] sm:$0xff]  }
   0xc   :  { %697 = vmatprep.subr.bf16.mxu1 %v723_v6  ;;  %v103_v39 = vrot.slane %v89_v33, %v95_v36  ;;  %v748_v41 = vld [vmem:[%s1053_s1 + $0x38] sm:$0xff]  }
   0xd   :  { %674 = vmatpush3.bf16.msra.mxu0 %v734_v16 }
   0xe   :  { %675 = vmatprep.subr.bf16.mxu0 %v737_v19  ;;  %409 = vmatprep.mubr.bf16.mxu1 %v103_v39 }
   0xf   :  { %698 = vmatpush3.bf16.msra.mxu1 %v724_v9 }
  0x10   :  { %699 = vmatprep.subr.bf16.mxu1 %v727_v10 }
  0x11   :  { %676 = vmatpush3.bf16.msra.mxu0 %v738_v20 }
  0x12   :  { %677 = vmatprep.subr.bf16.mxu0 %v741_v24 }
  0x13   :  { %700 = vmatpush3.bf16.msra.mxu1 %v728_v13 }
  0x14   :  { %701 = vmatprep.subr.bf16.mxu1 %v731_v14 }
  0x15   :  { %678 = vmatpush3.bf16.msra.mxu0 %v742_v26 }
  0x16   :  { %679 = vmatprep.subr.bf16.mxu0 %v743_v31 }
  0x17   :  { %702 = vmatpush3.bf16.msra.mxu1 %v732_v17 }
  0x18   :  { %703 = vmatprep.subr.bf16.mxu1 %v735_v18 }
  0x19   :  { %680 = vmatpush3.bf16.msra.mxu0 %v744_v32 }
  0x1a   :  { %681 = vmatprep.subr.bf16.mxu0 %v745_v35 }
  0x1b   :  { %704 = vmatpush3.bf16.msra.mxu1 %v736_v21 }
  0x1c   :  { %705 = vmatprep.subr.bf16.mxu1 %v739_v22 }
  0x1d   :  { %682 = vmatpush3.bf16.msra.mxu0 %v746_v37 }
  0x1f   :  { %706 = vmatpush3.bf16.msra.mxu1 %v740_v25 }
  0x20   :  { %19 = vsyncpa [#allocation5], 0  ;;  %683 = vmatprep.subr.bf16.mxu0 %v747_v38  ;;  %234 = vmatprep.mubr.bf16.mxu0 %v103_v39  ;;  %v751_v42 = vld [vmem:[%s1060_s8 + $0x4] ss:$8 sps:$4 sm:$0xff]   ;;  %v749_v43 = vld [vmem:[%s1060_s8] ss:$8 sps:$4 sm:$0xff]  }
  0x21   :  { %684 = vmatpush3.bf16.msra.mxu0 %v748_v41  ;;  %v754_v44 = vld [vmem:[%s1059_s7 + $0x4] ss:$8 sps:$4 sm:$0xff]   ;;  %v752_v45 = vld [vmem:[%s1059_s7] ss:$8 sps:$4 sm:$0xff]   ;;  %v757_v46 = vld [vmem:[%s1060_s8 + $0x14] ss:$8 sps:$4 sm:$0xff]  }
  0x22   :  { %410 = vmatmul.mubr.bf16.vlgmr.msra.gmra.mrb[0].mxu1 %v96_v40  ;;  %457 = vmatprep.subr.bf16.mxu0 %v751_v42  ;;  %v755_v47 = vld [vmem:[%s1060_s8 + $0x10] ss:$8 sps:$4 sm:$0xff]   ;;  %v760_v48 = vld [vmem:[%s1059_s7 + $0x14] ss:$8 sps:$4 sm:$0xff]   ;;  %v812_v50 = vmov 0   ;;  %vm453_vm0 = vcmask 261120  }
  0x23   :  { %521 = vmatprep.subr.bf16.mxu1 %v754_v44  ;;  %v758_v49 = vld [vmem:[%s1059_s7 + $0x10] ss:$8 sps:$4 sm:$0xff]   ;;  %v428_v51 = vld [vmem:[%s1058_s6] sm:$0x1]  ;;  %553 = vmatprep.mubr.bf16.mxu1 %v812_v50  ;;  %vm576_vm1 = vcmask 254976   ;;  %s814_s13 = smov [#allocation4]  }
  0x24   :  { %235 = vmatmul.mubr.bf16.vlgmr.msra.gmra.mrb[0].mxu0 %v96_v40  ;;  %522 = vmatpush1.bf16.msra.mxu1 %v752_v45  ;;  %v641_v53 = vld [vmem:[%s1056_s4] ss:$0 sm:$0xff]  ;;  %s607_s14 = sshll.u32 %s814_s13, 4  ;;  %s608_s14 = int_to_ptr.vmem [resolvable:$true] %s607_s14 }
  0x25   :  { %458 = vmatpush1.bf16.msra.mxu0 %v749_v43  ;;  %523 = vmatprep.subr.bf16.mxu1 %v760_v48  ;;  %v623_v61 = vld [vmem:[%s1054_s2] ss:$0 sm:$0xff]  ;;  %s813_s2 = smov [#allocation2]  }
  0x26   :  { %459 = vmatprep.subr.bf16.mxu0 %v757_v46  ;;  %489 = vmatprep.mubr.bf16.mxu0 %v812_v50  ;;  %v420_v4 = vld [vmem:[%s1057_s5] sm:$0x3]  ;;  %s597_s30 = sshll.u32 %s813_s2, 4  ;;  %s598_s30 = int_to_ptr.vmem [resolvable:$true] %s597_s30 }
  0x27   :  { %s763_s15 = scalar_lea.vmem %s598_s30, 32  ;;  %p768_p1 = scmp.lt.s32.totalorder %s598_s30, %s598_s30 }
  0x28   :  { %524 = vmatpush1.bf16.msra.mxu1 %v758_v49  ;;  %p764_p0 = scmp.ne.s32.totalorder %s598_s30, %s763_s15  ;;  %p769_p2 = scmp.lt.s32.totalorder %s763_s15, %s763_s15 }
  0x29   :  { %460 = vmatpush1.bf16.msra.mxu0 %v755_v47 }
  0x2a   :  { %p770_p3 = por %p769_p2, %p768_p1 }
  0x2c   :  { %662 = vmatmul.mubr.msk.bf16.vlgmr.msra.gmra.mrb[4].mxu0 %vm453_vm0, %v428_v51  ;;  %p771_p4 = pnand %p770_p3, %p764_p0 }
  0xf5   :  { %v707_v52 = vpop.f32.mrb[0].mxu1 }
  0xf6   :  { %v708_v54 = vpop.f32.mrb[1].mxu1 }
  0xf7   :  { %v709_v55 = vadd.f32 %v708_v54, %v707_v52  ;;  %v710_v56 = vpop.f32.mrb[2].mxu1  ;;  %v685_v60 = vpop.f32.mrb[0].mxu0 }
  0xf8   :  { %v711_v57 = vpop.f32.mrb[3].mxu1  ;;  %v686_v62 = vpop.f32.mrb[1].mxu0 }
  0xf9   :  { %v412_v58 = vadd.f32 %v709_v55, %v641_v53  ;;  %v687_v0 = vadd.f32 %v686_v62, %v685_v60  ;;  %v688_v1 = vpop.f32.mrb[2].mxu0 }
  0xfa   :  { %v689_v2 = vpop.f32.mrb[3].mxu0 }
  0xfb   :  { %v417_v59 = vmul.f32 0.5, %v412_v58  ;;  %578 = vst.msk [vmem:[#allocation4] sm:$0x3] %vm576_vm1, %v412_v58  ;;  %v237_v3 = vadd.f32 %v687_v0, %v623_v61 }
  0xfd   :  { %v418_v63 = vmul.f32 1.442695, %v417_v59  ;;  %577 = vst.msk [vmem:[#allocation2] sm:$0x3] %vm576_vm1, %v237_v3 }
  0xff   :  { %761 = vpow2.f32 %v418_v63  ;;  %v491_v9 = vpop.f32.mrb[4].mxu0 }
 0x100   :  { %v493_v10 = vpop.f32.mrb[5].mxu0 }
 0x101   :  { %v495_v11 = vpop.f32.mrb[6].mxu0 }
 0x102   :  { %v496_v12 = vpop.f32.mrb[7].mxu0 }
 0x109   :  { %v762_v5 = vpop.eup %761 }
 0x10a   :  { %v421_v6 = vmul.f32 %v762_v5, %v420_v4 }
 0x10c   :  { %v422_v7 = vadd.f32 %v421_v6, %v237_v3 }
 0x10e   :  { %v423_v8 = vpack.c.bf16 %v422_v7, %v422_v7 }
 0x110   :  { %667 = vmatmul.mubr.msk.bf16.vlgmr.msra.gmra.mrb[4].mxu1 %vm453_vm0, %v423_v8 }
 0x111   :  { %774 = shalt.err (!%p771_p4)
}
 0x112   :  { %s775_s17 = scalar_lea.hbm %s1062_s10, 32 }
 0x113   :  { %p776_p5 = scmp.ne.s32.totalorder %s1062_s10, %s775_s17  ;;  %p779_p6 = scmp.lt.u32.totalorder %s775_s17, %s1062_s10 }
 0x115   :  { %p781_p7 = pnand %p779_p6, %p776_p5 }
 0x117   :  { %784 = shalt.err (!%p781_p7)
}
 0x118   :  { %600 = dma.vmem_to_hbm [thread:$0]  %s598_s30, 32, %s1062_s10, [#allocation3]  }
 0x119   :  { %s785_s3 = scalar_lea.vmem %s608_s14, 32  ;;  %p790_p9 = scmp.lt.s32.totalorder %s608_s14, %s608_s14 }
 0x11a   :  { %p786_p8 = scmp.ne.s32.totalorder %s608_s14, %s785_s3  ;;  %p791_p10 = scmp.lt.s32.totalorder %s785_s3, %s785_s3 }
 0x11c   :  { %p792_p11 = por %p791_p10, %p790_p9 }
 0x11e   :  { %p793_p12 = pnand %p792_p11, %p786_p8 }
 0x120   :  { %796 = shalt.err (!%p793_p12)
}
 0x121   :  { %s797_s0 = scalar_lea.hbm %s1063_s11, 32 }
 0x122   :  { %p798_p13 = scmp.ne.s32.totalorder %s1063_s11, %s797_s0  ;;  %p801_p0 = scmp.lt.u32.totalorder %s797_s0, %s1063_s11 }
 0x124   :  { %p803_p1 = pnand %p801_p0, %p798_p13 }
 0x126   :  { %806 = shalt.err (!%p803_p1)
}
 0x127   :  { %610 = dma.vmem_to_hbm [thread:$0]  %s608_s14, 32, %s1063_s11, [#allocation5]   ;;  %v566_v13 = vsub.s32 0, %v961_v30  ;;  %v562_v14 = vld [vmem:[%s1061_s9] sm:$0x3]  ;;  %v570_v15 = vsub.s32 1, %v961_v30 }
 0x129   :  { %v567_v16 = vrot.slane %v562_v14, %v566_v13  ;;  %v571_v18 = vrot.slane %v562_v14, %v570_v15 }
 0x1e3   :  { %v555_v17 = vpop.f32.mrb[4].mxu1 }
 0x1e4   :  { %v556_v19 = vadd.f32 %v555_v17, %v491_v9  ;;  %v557_v20 = vpop.f32.mrb[5].mxu1 }
 0x1e5   :  { %v558_v21 = vadd.f32 %v557_v20, %v493_v10  ;;  %v559_v22 = vpop.f32.mrb[6].mxu1 }
 0x1e6   :  { %v574_v23 = vadd.f32 %v567_v16, %v556_v19  ;;  %v560_v24 = vpop.f32.mrb[7].mxu1 }
 0x1e7   :  { %v575_v25 = vadd.f32 %v571_v18, %v558_v21 }
 0x1e9   :  { %v581_v26 = vcombine.low %v574_v23, %v575_v25 }
 0x1eb   :  { %668 = vst.sshfl [vmem:[%s1064_s12] sm:$0x33 pattern:$0x76325410] %v581_v26 }
 0x1ec   :  { %807 = dma.done.wait [#allocation3], 32  }
 0x1ed   :  { %808 = vsyncadd [#allocation3], 4294967264 }
 0x1ee   :  { %809 = dma.done.wait [#allocation5], 32  }
 0x1ef   :  { %810 = vsyncadd [#allocation5], 4294967264 }
 0x1f0   :  { %621 = vsyncpa [#allocation3], 1 }
 0x1f1   :  { %622 = vsyncpa [#allocation5], 1 }

// kernel: cvae_forward.14
= control target key start
LH: loop header
LB: loop body
LE: loop exit
PB: predicated region body
PF: predicated region fallthrough
CT: control target
= control target key end

     0   :  { %v2780_v36 = vmov 1966171168   ;;  %v281_v38 = vlaneseq  ;;  %vm1999_vm0 = vcmask 1041408   ;;  %s3664_s1 = inlined_call_operand.vmem [shape: bf16[2048,256], index: 1, kind: input, shape index: {}]   ;;  %s3665_s0 = inlined_call_operand.vmem [shape: bf16[2,2048], index: 0, kind: input, shape index: {}]   ;;  %s3666_s2 = inlined_call_operand.vmem [shape: f32[1,256], index: 2, kind: input, shape index: {}]   ;;  %s3667_s3 = inlined_call_operand.vmem [shape: f32[1,256], index: 3, kind: input, shape index: {}]   ;;  %s3668_s4 = inlined_call_operand.vmem [shape: f32[2,256], index: 4, kind: output, shape index: {}]  }
   0x1   :  { %v2390_v0 = vld [vmem:[%s3664_s1 + $0x4] ss:$8 sps:$4 sm:$0xff]   ;;  %v2394_v2 = vld [vmem:[%s3664_s1] ss:$8 sps:$4 sm:$0xff]   ;;  %v2396_v4 = vld [vmem:[%s3664_s1 + $0x14] ss:$8 sps:$4 sm:$0xff]   ;;  %v279_v37 = vunpack.c.l.s4 %v2780_v36 }
   0x2   :  { %v2392_v1 = vld [vmem:[%s3664_s1 + $0x404] ss:$8 sps:$4 sm:$0xff]   ;;  %1671 = vmatprep.subr.bf16.mxu1 %v2390_v0  ;;  %v2395_v3 = vld [vmem:[%s3664_s1 + $0x400] ss:$8 sps:$4 sm:$0xff]   ;;  %v2398_v5 = vld [vmem:[%s3664_s1 + $0x414] ss:$8 sps:$4 sm:$0xff]  }
   0x3   :  { %1835 = vmatprep.subr.bf16.mxu0 %v2392_v1  ;;  %1672 = vmatpush1.bf16.msra.mxu1 %v2394_v2  ;;  %v2400_v6 = vld [vmem:[%s3664_s1 + $0x10] ss:$8 sps:$4 sm:$0xff]   ;;  %v2402_v8 = vld [vmem:[%s3664_s1 + $0x24] ss:$8 sps:$4 sm:$0xff]   ;;  %v2406_v10 = vld [vmem:[%s3664_s1 + $0x20] ss:$8 sps:$4 sm:$0xff]   ;;  %v280_v42 = vunpack.c.0.s8 %v279_v37 }
   0x4   :  { %1836 = vmatpush1.bf16.msra.mxu0 %v2395_v3  ;;  %1673 = vmatprep.subr.bf16.mxu1 %v2396_v4  ;;  %v2401_v7 = vld [vmem:[%s3664_s1 + $0x410] ss:$8 sps:$4 sm:$0xff]   ;;  %v2404_v9 = vld [vmem:[%s3664_s1 + $0x424] ss:$8 sps:$4 sm:$0xff]   ;;  %v2407_v11 = vld [vmem:[%s3664_s1 + $0x420] ss:$8 sps:$4 sm:$0xff]  }
   0x5   :  { %1837 = vmatprep.subr.bf16.mxu0 %v2398_v5  ;;  %v2408_v12 = vld [vmem:[%s3664_s1 + $0x34] ss:$8 sps:$4 sm:$0xff]   ;;  %v2412_v14 = vld [vmem:[%s3664_s1 + $0x30] ss:$8 sps:$4 sm:$0xff]   ;;  %v2414_v16 = vld [vmem:[%s3664_s1 + $0x44] ss:$8 sps:$4 sm:$0xff]  }
   0x6   :  { %v2410_v13 = vld [vmem:[%s3664_s1 + $0x434] ss:$8 sps:$4 sm:$0xff]   ;;  %v2413_v15 = vld [vmem:[%s3664_s1 + $0x430] ss:$8 sps:$4 sm:$0xff]   ;;  %v2416_v17 = vld [vmem:[%s3664_s1 + $0x444] ss:$8 sps:$4 sm:$0xff]  }
   0x7   :  { %1674 = vmatpush1.bf16.msra.mxu1 %v2400_v6  ;;  %v2418_v18 = vld [vmem:[%s3664_s1 + $0x40] ss:$8 sps:$4 sm:$0xff]   ;;  %v2420_v20 = vld [vmem:[%s3664_s1 + $0x54] ss:$8 sps:$4 sm:$0xff]   ;;  %v2424_v22 = vld [vmem:[%s3664_s1 + $0x50] ss:$8 sps:$4 sm:$0xff]  }
   0x8   :  { %1838 = vmatpush1.bf16.msra.mxu0 %v2401_v7  ;;  %1675 = vmatprep.subr.bf16.mxu1 %v2402_v8  ;;  %v2419_v19 = vld [vmem:[%s3664_s1 + $0x440] ss:$8 sps:$4 sm:$0xff]   ;;  %v2422_v21 = vld [vmem:[%s3664_s1 + $0x454] ss:$8 sps:$4 sm:$0xff]   ;;  %v2425_v23 = vld [vmem:[%s3664_s1 + $0x450] ss:$8 sps:$4 sm:$0xff]  }
   0x9   :  { %1839 = vmatprep.subr.bf16.mxu0 %v2404_v9  ;;  %v2426_v24 = vld [vmem:[%s3664_s1 + $0x64] ss:$8 sps:$4 sm:$0xff]   ;;  %v2430_v26 = vld [vmem:[%s3664_s1 + $0x60] ss:$8 sps:$4 sm:$0xff]   ;;  %v2432_v28 = vld [vmem:[%s3664_s1 + $0x74] ss:$8 sps:$4 sm:$0xff]  }
   0xa   :  { %v2428_v25 = vld [vmem:[%s3664_s1 + $0x464] ss:$8 sps:$4 sm:$0xff]   ;;  %v2431_v27 = vld [vmem:[%s3664_s1 + $0x460] ss:$8 sps:$4 sm:$0xff]   ;;  %v2434_v29 = vld [vmem:[%s3664_s1 + $0x474] ss:$8 sps:$4 sm:$0xff]  }
   0xb   :  { %1676 = vmatpush1.bf16.msra.mxu1 %v2406_v10  ;;  %v2436_v30 = vld [vmem:[%s3664_s1 + $0x70] ss:$8 sps:$4 sm:$0xff]   ;;  %v2438_v32 = vld [vmem:[%s3664_s1 + $0x84] ss:$8 sps:$4 sm:$0xff]   ;;  %v2442_v34 = vld [vmem:[%s3664_s1 + $0x80] ss:$8 sps:$4 sm:$0xff]  }
   0xc   :  { %1840 = vmatpush1.bf16.msra.mxu0 %v2407_v11  ;;  %1677 = vmatprep.subr.bf16.mxu1 %v2408_v12  ;;  %v2437_v31 = vld [vmem:[%s3664_s1 + $0x470] ss:$8 sps:$4 sm:$0xff]   ;;  %v2440_v33 = vld [vmem:[%s3664_s1 + $0x484] ss:$8 sps:$4 sm:$0xff]   ;;  %v2443_v35 = vld [vmem:[%s3664_s1 + $0x480] ss:$8 sps:$4 sm:$0xff]  }
   0xd   :  { %1841 = vmatprep.subr.bf16.mxu0 %v2410_v13  ;;  %v2444_v39 = vld [vmem:[%s3664_s1 + $0x94] ss:$8 sps:$4 sm:$0xff]   ;;  %v2448_v41 = vld [vmem:[%s3664_s1 + $0x90] ss:$8 sps:$4 sm:$0xff]   ;;  %v2923_v43 = vshrl.u32 %v281_v38, 7  ;;  %v2952_v52 = vld [vmem:[%s3665_s0] sm:$0xff] }
   0xe   :  { %v2446_v40 = vld [vmem:[%s3664_s1 + $0x494] ss:$8 sps:$4 sm:$0xff]   ;;  %v2449_v44 = vld [vmem:[%s3664_s1 + $0x490] ss:$8 sps:$4 sm:$0xff]   ;;  %v2450_v45 = vld [vmem:[%s3664_s1 + $0xa4] ss:$8 sps:$4 sm:$0xff]  }
   0xf   :  { %1678 = vmatpush1.bf16.msra.mxu1 %v2412_v14  ;;  %v2452_v46 = vld [vmem:[%s3664_s1 + $0x4a4] ss:$8 sps:$4 sm:$0xff]   ;;  %v2454_v47 = vld [vmem:[%s3664_s1 + $0xa0] ss:$8 sps:$4 sm:$0xff]   ;;  %v2941_v49 = vsub.s32 %v280_v42, %v2923_v43  ;;  %v2456_v50 = vld [vmem:[%s3664_s1 + $0xb4] ss:$8 sps:$4 sm:$0xff]  }
  0x10   :  { %1842 = vmatpush1.bf16.msra.mxu0 %v2413_v15  ;;  %1679 = vmatprep.subr.bf16.mxu1 %v2414_v16  ;;  %v2455_v48 = vld [vmem:[%s3664_s1 + $0x4a0] ss:$8 sps:$4 sm:$0xff]   ;;  %v2458_v51 = vld [vmem:[%s3664_s1 + $0x4b4] ss:$8 sps:$4 sm:$0xff]   ;;  %v2460_v53 = vld [vmem:[%s3664_s1 + $0xb0] ss:$8 sps:$4 sm:$0xff]  }
  0x11   :  { %1843 = vmatprep.subr.bf16.mxu0 %v2416_v17  ;;  %v284_v54 = vrot.slane %v2952_v52, %v2941_v49  ;;  %v2461_v55 = vld [vmem:[%s3664_s1 + $0x4b0] ss:$8 sps:$4 sm:$0xff]   ;;  %v2965_v56 = vld [vmem:[%s3665_s0 + $0x8] sm:$0xff]  ;;  %v2468_v1 = vld [vmem:[%s3664_s1 + $0xd4] ss:$8 sps:$4 sm:$0xff]  }
  0x12   :  { %v2462_v57 = vld [vmem:[%s3664_s1 + $0xc4] ss:$8 sps:$4 sm:$0xff]   ;;  %v333_v60 = vrot.slane %v2965_v56, %v2941_v49  ;;  %v2466_v63 = vld [vmem:[%s3664_s1 + $0xc0] ss:$8 sps:$4 sm:$0xff]   ;;  %v2470_v2 = vld [vmem:[%s3664_s1 + $0x4d4] ss:$8 sps:$4 sm:$0xff]  }
  0x13   :  { %1680 = vmatpush1.bf16.msra.mxu1 %v2418_v18  ;;  %v2464_v58 = vld [vmem:[%s3664_s1 + $0x4c4] ss:$8 sps:$4 sm:$0xff]   ;;  %v292_v59 = vcombine.high %v284_v54, %v284_v54  ;;  %v2467_v0 = vld [vmem:[%s3664_s1 + $0x4c0] ss:$8 sps:$4 sm:$0xff]   ;;  %v2472_v4 = vld [vmem:[%s3664_s1 + $0xd0] ss:$8 sps:$4 sm:$0xff]   ;;  %v3026_v16 = vrot.slane %v284_v54, %v2941_v49 }
  0x14   :  { %1844 = vmatpush1.bf16.msra.mxu0 %v2419_v19  ;;  %1681 = vmatprep.subr.bf16.mxu1 %v2420_v20  ;;  %v341_v62 = vcombine.high %v333_v60, %v333_v60  ;;  %v2473_v5 = vld [vmem:[%s3664_s1 + $0x4d0] ss:$8 sps:$4 sm:$0xff]   ;;  %v2474_v6 = vld [vmem:[%s3664_s1 + $0xe4] ss:$8 sps:$4 sm:$0xff]   ;;  %v2478_v8 = vld [vmem:[%s3664_s1 + $0xe0] ss:$8 sps:$4 sm:$0xff]   ;;  %v3029_v17 = vrot.slane %v333_v60, %v2941_v49 }
  0x15   :  { %1845 = vmatprep.subr.bf16.mxu0 %v2422_v21  ;;  %v314_v61 = vrot.slane %v292_v59, %v2941_v49  ;;  %v2476_v7 = vld [vmem:[%s3664_s1 + $0x4e4] ss:$8 sps:$4 sm:$0xff]   ;;  %v2479_v9 = vld [vmem:[%s3664_s1 + $0x4e0] ss:$8 sps:$4 sm:$0xff]   ;;  %v2480_v10 = vld [vmem:[%s3664_s1 + $0xf4] ss:$8 sps:$4 sm:$0xff]  }
  0x16   :  { %v363_v3 = vrot.slane %v341_v62, %v2941_v49  ;;  %v2482_v11 = vld [vmem:[%s3664_s1 + $0x4f4] ss:$8 sps:$4 sm:$0xff]   ;;  %v2484_v12 = vld [vmem:[%s3664_s1 + $0xf0] ss:$8 sps:$4 sm:$0xff]   ;;  %v2489_v14 = vld [vmem:[%s3664_s1 + $0x104] ss:$8 sps:$4 sm:$0xff]  }
  0x17   :  { %1682 = vmatpush1.bf16.msra.mxu1 %v2424_v22  ;;  %1703 = vmatprep.mubr.bf16.mxu1 %v314_v61  ;;  %v2485_v13 = vld [vmem:[%s3664_s1 + $0x4f0] ss:$8 sps:$4 sm:$0xff]   ;;  %v2493_v15 = vld [vmem:[%s3664_s1 + $0x504] ss:$8 sps:$4 sm:$0xff]   ;;  %v2487_v18 = vld [vmem:[%s3664_s1 + $0x100] ss:$8 sps:$4 sm:$0xff]   ;;  %v324_v22 = vcombine.high %v314_v61, %v314_v61 }
  0x18   :  { %1846 = vmatpush1.bf16.msra.mxu0 %v2425_v23  ;;  %1683 = vmatprep.subr.bf16.mxu1 %v2426_v24  ;;  %v2491_v19 = vld [vmem:[%s3664_s1 + $0x500] ss:$8 sps:$4 sm:$0xff]   ;;  %v2496_v20 = vld [vmem:[%s3664_s1 + $0x114] ss:$8 sps:$4 sm:$0xff]   ;;  %v373_v23 = vcombine.high %v363_v3, %v363_v3  ;;  %v2494_v24 = vld [vmem:[%s3664_s1 + $0x110] ss:$8 sps:$4 sm:$0xff]  }
  0x19   :  { %1847 = vmatprep.subr.bf16.mxu0 %v2428_v25  ;;  %1867 = vmatprep.mubr.bf16.mxu0 %v363_v3  ;;  %v2499_v21 = vld [vmem:[%s3664_s1 + $0x514] ss:$8 sps:$4 sm:$0xff]   ;;  %v2497_v25 = vld [vmem:[%s3664_s1 + $0x510] ss:$8 sps:$4 sm:$0xff]   ;;  %v2512_v36 = vld [vmem:[%s3664_s1 + $0x140] ss:$8 sps:$4 sm:$0xff]  }
  0x1a   :  { %v2515_v37 = vld [vmem:[%s3664_s1 + $0x540] ss:$8 sps:$4 sm:$0xff]   ;;  %v2520_v38 = vld [vmem:[%s3664_s1 + $0x154] ss:$8 sps:$4 sm:$0xff]   ;;  %v2526_v42 = vld [vmem:[%s3664_s1 + $0x164] ss:$8 sps:$4 sm:$0xff]  }
  0x1b   :  { %1684 = vmatpush1.bf16.msra.mxu1 %v2430_v26  ;;  %v2502_v26 = vld [vmem:[%s3664_s1 + $0x124] ss:$8 sps:$4 sm:$0xff]   ;;  %v2547_v59 = vld [vmem:[%s3664_s1 + $0x594] ss:$8 sps:$4 sm:$0xff]   ;;  %v2542_v60 = vld [vmem:[%s3664_s1 + $0x190] ss:$8 sps:$4 sm:$0xff]  }
  0x1c   :  { %1848 = vmatpush1.bf16.msra.mxu0 %v2431_v27  ;;  %1685 = vmatprep.subr.bf16.mxu1 %v2432_v28  ;;  %v2505_v27 = vld [vmem:[%s3664_s1 + $0x524] ss:$8 sps:$4 sm:$0xff]   ;;  %v2500_v28 = vld [vmem:[%s3664_s1 + $0x120] ss:$8 sps:$4 sm:$0xff]   ;;  %v2545_v61 = vld [vmem:[%s3664_s1 + $0x590] ss:$8 sps:$4 sm:$0xff]  }
  0x1d   :  { %1849 = vmatprep.subr.bf16.mxu0 %v2434_v29  ;;  %v2503_v29 = vld [vmem:[%s3664_s1 + $0x520] ss:$8 sps:$4 sm:$0xff]   ;;  %v2541_v54 = vld [vmem:[%s3664_s1 + $0x584] ss:$8 sps:$4 sm:$0xff]   ;;  %v2559_v3 = vld [vmem:[%s3664_s1 + $0x5b4] ss:$8 sps:$4 sm:$0xff]  }
  0x1e   :  { %v2550_v62 = vld [vmem:[%s3664_s1 + $0x1a4] ss:$8 sps:$4 sm:$0xff]  }
  0x1f   :  { %1686 = vmatpush1.bf16.msra.mxu1 %v2436_v30  ;;  %v2508_v30 = vld [vmem:[%s3664_s1 + $0x134] ss:$8 sps:$4 sm:$0xff]  }
  0x20   :  { %1850 = vmatpush1.bf16.msra.mxu0 %v2437_v31  ;;  %1687 = vmatprep.subr.bf16.mxu1 %v2438_v32  ;;  %v2511_v31 = vld [vmem:[%s3664_s1 + $0x534] ss:$8 sps:$4 sm:$0xff]   ;;  %v2506_v32 = vld [vmem:[%s3664_s1 + $0x130] ss:$8 sps:$4 sm:$0xff]  }
  0x21   :  { %1851 = vmatprep.subr.bf16.mxu0 %v2440_v33  ;;  %v2509_v33 = vld [vmem:[%s3664_s1 + $0x530] ss:$8 sps:$4 sm:$0xff]  }
  0x23   :  { %1688 = vmatpush1.bf16.msra.mxu1 %v2442_v34  ;;  %v2514_v34 = vld [vmem:[%s3664_s1 + $0x144] ss:$8 sps:$4 sm:$0xff]  }
  0x24   :  { %1852 = vmatpush1.bf16.msra.mxu0 %v2443_v35  ;;  %1689 = vmatprep.subr.bf16.mxu1 %v2444_v39  ;;  %v2517_v35 = vld [vmem:[%s3664_s1 + $0x544] ss:$8 sps:$4 sm:$0xff]   ;;  %v2523_v39 = vld [vmem:[%s3664_s1 + $0x554] ss:$8 sps:$4 sm:$0xff]  }
  0x25   :  { %1853 = vmatprep.subr.bf16.mxu0 %v2446_v40  ;;  %v2518_v40 = vld [vmem:[%s3664_s1 + $0x150] ss:$8 sps:$4 sm:$0xff]  }
  0x27   :  { %1690 = vmatpush1.bf16.msra.mxu1 %v2448_v41  ;;  %v2521_v41 = vld [vmem:[%s3664_s1 + $0x550] ss:$8 sps:$4 sm:$0xff]  }
  0x28   :  { %1854 = vmatpush1.bf16.msra.mxu0 %v2449_v44  ;;  %1691 = vmatprep.subr.bf16.mxu1 %v2450_v45  ;;  %v2529_v44 = vld [vmem:[%s3664_s1 + $0x564] ss:$8 sps:$4 sm:$0xff]   ;;  %v2524_v45 = vld [vmem:[%s3664_s1 + $0x160] ss:$8 sps:$4 sm:$0xff]  }
  0x29   :  { %1855 = vmatprep.subr.bf16.mxu0 %v2452_v46  ;;  %v2527_v46 = vld [vmem:[%s3664_s1 + $0x560] ss:$8 sps:$4 sm:$0xff]  }
  0x2b   :  { %1692 = vmatpush1.bf16.msra.mxu1 %v2454_v47  ;;  %v2532_v47 = vld [vmem:[%s3664_s1 + $0x174] ss:$8 sps:$4 sm:$0xff]  }
  0x2c   :  { %1856 = vmatpush1.bf16.msra.mxu0 %v2455_v48  ;;  %1693 = vmatprep.subr.bf16.mxu1 %v2456_v50  ;;  %v2535_v48 = vld [vmem:[%s3664_s1 + $0x574] ss:$8 sps:$4 sm:$0xff]   ;;  %v2530_v50 = vld [vmem:[%s3664_s1 + $0x170] ss:$8 sps:$4 sm:$0xff]  }
  0x2d   :  { %1857 = vmatprep.subr.bf16.mxu0 %v2458_v51  ;;  %v2533_v51 = vld [vmem:[%s3664_s1 + $0x570] ss:$8 sps:$4 sm:$0xff]  }
  0x2f   :  { %1694 = vmatpush1.bf16.msra.mxu1 %v2460_v53  ;;  %v2538_v53 = vld [vmem:[%s3664_s1 + $0x184] ss:$8 sps:$4 sm:$0xff]  }
  0x30   :  { %1858 = vmatpush1.bf16.msra.mxu0 %v2461_v55  ;;  %1695 = vmatprep.subr.bf16.mxu1 %v2462_v57  ;;  %v2536_v55 = vld [vmem:[%s3664_s1 + $0x180] ss:$8 sps:$4 sm:$0xff]  }
  0x31   :  { %1859 = vmatprep.subr.bf16.mxu0 %v2464_v58  ;;  %v2539_v57 = vld [vmem:[%s3664_s1 + $0x580] ss:$8 sps:$4 sm:$0xff]   ;;  %v2544_v58 = vld [vmem:[%s3664_s1 + $0x194] ss:$8 sps:$4 sm:$0xff]  }
  0x33   :  { %1696 = vmatpush1.bf16.msra.mxu1 %v2466_v63  ;;  %v2553_v63 = vld [vmem:[%s3664_s1 + $0x5a4] ss:$8 sps:$4 sm:$0xff]  }
  0x34   :  { %1860 = vmatpush1.bf16.msra.mxu0 %v2467_v0  ;;  %1697 = vmatprep.subr.bf16.mxu1 %v2468_v1  ;;  %v2548_v0 = vld [vmem:[%s3664_s1 + $0x1a0] ss:$8 sps:$4 sm:$0xff]  }
  0x35   :  { %1861 = vmatprep.subr.bf16.mxu0 %v2470_v2  ;;  %v2551_v1 = vld [vmem:[%s3664_s1 + $0x5a0] ss:$8 sps:$4 sm:$0xff]   ;;  %v2556_v2 = vld [vmem:[%s3664_s1 + $0x1b4] ss:$8 sps:$4 sm:$0xff]  }
  0x37   :  { %1698 = vmatpush1.bf16.msra.mxu1 %v2472_v4  ;;  %v2554_v4 = vld [vmem:[%s3664_s1 + $0x1b0] ss:$8 sps:$4 sm:$0xff]  }
  0x38   :  { %1862 = vmatpush1.bf16.msra.mxu0 %v2473_v5  ;;  %1699 = vmatprep.subr.bf16.mxu1 %v2474_v6  ;;  %v2557_v5 = vld [vmem:[%s3664_s1 + $0x5b0] ss:$8 sps:$4 sm:$0xff]   ;;  %v2562_v6 = vld [vmem:[%s3664_s1 + $0x1c4] ss:$8 sps:$4 sm:$0xff]  }
  0x39   :  { %1863 = vmatprep.subr.bf16.mxu0 %v2476_v7  ;;  %v2565_v7 = vld [vmem:[%s3664_s1 + $0x5c4] ss:$8 sps:$4 sm:$0xff]  }
  0x3b   :  { %1700 = vmatpush1.bf16.msra.mxu1 %v2478_v8  ;;  %v2560_v8 = vld [vmem:[%s3664_s1 + $0x1c0] ss:$8 sps:$4 sm:$0xff]  }
  0x3c   :  { %1864 = vmatpush1.bf16.msra.mxu0 %v2479_v9  ;;  %1701 = vmatprep.subr.bf16.mxu1 %v2480_v10  ;;  %v2563_v9 = vld [vmem:[%s3664_s1 + $0x5c0] ss:$8 sps:$4 sm:$0xff]   ;;  %v2568_v10 = vld [vmem:[%s3664_s1 + $0x1d4] ss:$8 sps:$4 sm:$0xff]  }
  0x3d   :  { %1865 = vmatprep.subr.bf16.mxu0 %v2482_v11  ;;  %v2571_v11 = vld [vmem:[%s3664_s1 + $0x5d4] ss:$8 sps:$4 sm:$0xff]  }
  0x3f   :  { %1702 = vmatpush1.bf16.msra.mxu1 %v2484_v12  ;;  %v2566_v12 = vld [vmem:[%s3664_s1 + $0x1d0] ss:$8 sps:$4 sm:$0xff]  }
  0x40   :  { %1866 = vmatpush1.bf16.msra.mxu0 %v2485_v13  ;;  %1712 = vmatprep.subr.bf16.mxu1 %v2489_v14  ;;  %v2569_v13 = vld [vmem:[%s3664_s1 + $0x5d0] ss:$8 sps:$4 sm:$0xff]   ;;  %v2574_v14 = vld [vmem:[%s3664_s1 + $0x1e4] ss:$8 sps:$4 sm:$0xff]  }
  0x41   :  { %1876 = vmatprep.subr.bf16.mxu0 %v2493_v15  ;;  %v2577_v15 = vld [vmem:[%s3664_s1 + $0x5e4] ss:$8 sps:$4 sm:$0xff]  }
  0x42   :  { %1704 = vmatmul.mubr.bf16.vlgmr.msra.gmra.mrb[0].mxu1 %v3026_v16 }
  0x43   :  { %1868 = vmatmul.mubr.bf16.vlgmr.msra.gmra.mrb[0].mxu0 %v3029_v17  ;;  %1713 = vmatpush1.bf16.msra.mxu1 %v2487_v18  ;;  %v277_v18 = vcombine.high %v2952_v52, %v2952_v52  ;;  %v2583_v52 = vld [vmem:[%s3664_s1 + $0x5f4] ss:$8 sps:$4 sm:$0xff]  }
  0x44   :  { %1877 = vmatpush1.bf16.msra.mxu0 %v2491_v19  ;;  %1714 = vmatprep.subr.bf16.mxu1 %v2496_v20  ;;  %v326_v19 = vcombine.high %v2965_v56, %v2965_v56  ;;  %v2572_v20 = vld [vmem:[%s3664_s1 + $0x1e0] ss:$8 sps:$4 sm:$0xff]  }
  0x45   :  { %1878 = vmatprep.subr.bf16.mxu0 %v2499_v21  ;;  %1744 = vmatprep.mubr.bf16.mxu1 %v324_v22  ;;  %v2575_v21 = vld [vmem:[%s3664_s1 + $0x5e0] ss:$8 sps:$4 sm:$0xff]   ;;  %v2580_v22 = vld [vmem:[%s3664_s1 + $0x1f4] ss:$8 sps:$4 sm:$0xff]   ;;  %v3218_v56 = vrot.slane %v277_v18, %v2941_v49  ;;  %v2650_v18 = vld [vmem:[%s3664_s1 + $0x2b0] ss:$8 sps:$4 sm:$0xff]  }
  0x46   :  { %1908 = vmatprep.mubr.bf16.mxu0 %v373_v23  ;;  %v3221_v23 = vrot.slane %v326_v19, %v2941_v49  ;;  %v2653_v19 = vld [vmem:[%s3664_s1 + $0x6b0] ss:$8 sps:$4 sm:$0xff]  }
  0x47   :  { %1715 = vmatpush1.bf16.msra.mxu1 %v2494_v24  ;;  %v2578_v24 = vld [vmem:[%s3664_s1 + $0x1f0] ss:$8 sps:$4 sm:$0xff]  }
  0x48   :  { %1879 = vmatpush1.bf16.msra.mxu0 %v2497_v25  ;;  %1716 = vmatprep.subr.bf16.mxu1 %v2502_v26  ;;  %v2581_v25 = vld [vmem:[%s3664_s1 + $0x5f0] ss:$8 sps:$4 sm:$0xff]   ;;  %v2586_v26 = vld [vmem:[%s3664_s1 + $0x204] ss:$8 sps:$4 sm:$0xff]  }
  0x49   :  { %1880 = vmatprep.subr.bf16.mxu0 %v2505_v27  ;;  %v2589_v27 = vld [vmem:[%s3664_s1 + $0x604] ss:$8 sps:$4 sm:$0xff]  }
  0x4b   :  { %1717 = vmatpush1.bf16.msra.mxu1 %v2500_v28  ;;  %v293_v28 = vcombine.high %v3218_v56, %v3218_v56 }
  0x4c   :  { %1881 = vmatpush1.bf16.msra.mxu0 %v2503_v29  ;;  %1718 = vmatprep.subr.bf16.mxu1 %v2508_v30  ;;  %v342_v29 = vcombine.high %v3221_v23, %v3221_v23  ;;  %v322_v30 = vcombine.high %v3026_v16, %v3026_v16  ;;  %v2595_v16 = vld [vmem:[%s3664_s1 + $0x614] ss:$8 sps:$4 sm:$0xff]  }
  0x4d   :  { %1882 = vmatprep.subr.bf16.mxu0 %v2511_v31  ;;  %v371_v31 = vcombine.high %v3029_v17, %v3029_v17  ;;  %v3256_v17 = vrot.slane %v293_v28, %v2941_v49  ;;  %v2670_v28 = vld [vmem:[%s3664_s1 + $0x2e4] ss:$8 sps:$4 sm:$0xff]  }
  0x4f   :  { %1719 = vmatpush1.bf16.msra.mxu1 %v2506_v32  ;;  %v2584_v32 = vld [vmem:[%s3664_s1 + $0x200] ss:$8 sps:$4 sm:$0xff]  }
  0x50   :  { %1883 = vmatpush1.bf16.msra.mxu0 %v2509_v33  ;;  %1720 = vmatprep.subr.bf16.mxu1 %v2514_v34  ;;  %v2587_v33 = vld [vmem:[%s3664_s1 + $0x600] ss:$8 sps:$4 sm:$0xff]   ;;  %v2592_v34 = vld [vmem:[%s3664_s1 + $0x214] ss:$8 sps:$4 sm:$0xff]  }
  0x51   :  { %1884 = vmatprep.subr.bf16.mxu0 %v2517_v35  ;;  %v3259_v35 = vrot.slane %v342_v29, %v2941_v49  ;;  %v2673_v29 = vld [vmem:[%s3664_s1 + $0x6e4] ss:$8 sps:$4 sm:$0xff]  }
  0x53   :  { %1721 = vmatpush1.bf16.msra.mxu1 %v2512_v36  ;;  %v2590_v36 = vld [vmem:[%s3664_s1 + $0x210] ss:$8 sps:$4 sm:$0xff]  }
  0x54   :  { %1885 = vmatpush1.bf16.msra.mxu0 %v2515_v37  ;;  %1722 = vmatprep.subr.bf16.mxu1 %v2520_v38  ;;  %v2593_v37 = vld [vmem:[%s3664_s1 + $0x610] ss:$8 sps:$4 sm:$0xff]   ;;  %v2598_v38 = vld [vmem:[%s3664_s1 + $0x224] ss:$8 sps:$4 sm:$0xff]  }
  0x55   :  { %1886 = vmatprep.subr.bf16.mxu0 %v2523_v39  ;;  %v2601_v39 = vld [vmem:[%s3664_s1 + $0x624] ss:$8 sps:$4 sm:$0xff]  }
  0x57   :  { %1723 = vmatpush1.bf16.msra.mxu1 %v2518_v40  ;;  %v2596_v40 = vld [vmem:[%s3664_s1 + $0x220] ss:$8 sps:$4 sm:$0xff]  }
  0x58   :  { %1887 = vmatpush1.bf16.msra.mxu0 %v2521_v41  ;;  %1724 = vmatprep.subr.bf16.mxu1 %v2526_v42  ;;  %v2599_v41 = vld [vmem:[%s3664_s1 + $0x620] ss:$8 sps:$4 sm:$0xff]   ;;  %v2604_v42 = vld [vmem:[%s3664_s1 + $0x234] ss:$8 sps:$4 sm:$0xff]  }
  0x59   :  { %1888 = vmatprep.subr.bf16.mxu0 %v2529_v44  ;;  %v2607_v44 = vld [vmem:[%s3664_s1 + $0x634] ss:$8 sps:$4 sm:$0xff]  }
  0x5b   :  { %1725 = vmatpush1.bf16.msra.mxu1 %v2524_v45  ;;  %v2602_v45 = vld [vmem:[%s3664_s1 + $0x230] ss:$8 sps:$4 sm:$0xff]  }
  0x5c   :  { %1889 = vmatpush1.bf16.msra.mxu0 %v2527_v46  ;;  %1726 = vmatprep.subr.bf16.mxu1 %v2532_v47  ;;  %v2605_v46 = vld [vmem:[%s3664_s1 + $0x630] ss:$8 sps:$4 sm:$0xff]   ;;  %v2610_v47 = vld [vmem:[%s3664_s1 + $0x244] ss:$8 sps:$4 sm:$0xff]  }
  0x5d   :  { %1890 = vmatprep.subr.bf16.mxu0 %v2535_v48  ;;  %v2613_v48 = vld [vmem:[%s3664_s1 + $0x644] ss:$8 sps:$4 sm:$0xff]  }
  0x5f   :  { %1727 = vmatpush1.bf16.msra.mxu1 %v2530_v50  ;;  %v2608_v50 = vld [vmem:[%s3664_s1 + $0x240] ss:$8 sps:$4 sm:$0xff]  }
  0x60   :  { %1891 = vmatpush1.bf16.msra.mxu0 %v2533_v51  ;;  %1728 = vmatprep.subr.bf16.mxu1 %v2538_v53  ;;  %v2611_v51 = vld [vmem:[%s3664_s1 + $0x640] ss:$8 sps:$4 sm:$0xff]   ;;  %v2616_v53 = vld [vmem:[%s3664_s1 + $0x254] ss:$8 sps:$4 sm:$0xff]  }
  0x61   :  { %1892 = vmatprep.subr.bf16.mxu0 %v2541_v54  ;;  %v2619_v54 = vld [vmem:[%s3664_s1 + $0x654] ss:$8 sps:$4 sm:$0xff]  }
  0x63   :  { %1729 = vmatpush1.bf16.msra.mxu1 %v2536_v55  ;;  %v2614_v55 = vld [vmem:[%s3664_s1 + $0x250] ss:$8 sps:$4 sm:$0xff]  }
  0x64   :  { %1893 = vmatpush1.bf16.msra.mxu0 %v2539_v57  ;;  %1730 = vmatprep.subr.bf16.mxu1 %v2544_v58  ;;  %v2617_v57 = vld [vmem:[%s3664_s1 + $0x650] ss:$8 sps:$4 sm:$0xff]   ;;  %v2622_v58 = vld [vmem:[%s3664_s1 + $0x264] ss:$8 sps:$4 sm:$0xff]  }
  0x65   :  { %1894 = vmatprep.subr.bf16.mxu0 %v2547_v59  ;;  %v2625_v59 = vld [vmem:[%s3664_s1 + $0x664] ss:$8 sps:$4 sm:$0xff]  }
  0x67   :  { %1731 = vmatpush1.bf16.msra.mxu1 %v2542_v60  ;;  %v2620_v60 = vld [vmem:[%s3664_s1 + $0x260] ss:$8 sps:$4 sm:$0xff]  }
  0x68   :  { %1895 = vmatpush1.bf16.msra.mxu0 %v2545_v61  ;;  %1732 = vmatprep.subr.bf16.mxu1 %v2550_v62  ;;  %v2623_v61 = vld [vmem:[%s3664_s1 + $0x660] ss:$8 sps:$4 sm:$0xff]   ;;  %v2628_v62 = vld [vmem:[%s3664_s1 + $0x274] ss:$8 sps:$4 sm:$0xff]  }
  0x69   :  { %1896 = vmatprep.subr.bf16.mxu0 %v2553_v63  ;;  %v2631_v63 = vld [vmem:[%s3664_s1 + $0x674] ss:$8 sps:$4 sm:$0xff]  }
  0x6b   :  { %1733 = vmatpush1.bf16.msra.mxu1 %v2548_v0  ;;  %v2626_v0 = vld [vmem:[%s3664_s1 + $0x270] ss:$8 sps:$4 sm:$0xff]  }
  0x6c   :  { %1897 = vmatpush1.bf16.msra.mxu0 %v2551_v1  ;;  %1734 = vmatprep.subr.bf16.mxu1 %v2556_v2  ;;  %v2629_v1 = vld [vmem:[%s3664_s1 + $0x670] ss:$8 sps:$4 sm:$0xff]   ;;  %v2634_v2 = vld [vmem:[%s3664_s1 + $0x284] ss:$8 sps:$4 sm:$0xff]  }
  0x6d   :  { %1898 = vmatprep.subr.bf16.mxu0 %v2559_v3  ;;  %v2637_v3 = vld [vmem:[%s3664_s1 + $0x684] ss:$8 sps:$4 sm:$0xff]  }
  0x6f   :  { %1735 = vmatpush1.bf16.msra.mxu1 %v2554_v4  ;;  %v2632_v4 = vld [vmem:[%s3664_s1 + $0x280] ss:$8 sps:$4 sm:$0xff]  }
  0x70   :  { %1899 = vmatpush1.bf16.msra.mxu0 %v2557_v5  ;;  %1736 = vmatprep.subr.bf16.mxu1 %v2562_v6  ;;  %v2635_v5 = vld [vmem:[%s3664_s1 + $0x680] ss:$8 sps:$4 sm:$0xff]   ;;  %v2640_v6 = vld [vmem:[%s3664_s1 + $0x294] ss:$8 sps:$4 sm:$0xff]  }
  0x71   :  { %1900 = vmatprep.subr.bf16.mxu0 %v2565_v7  ;;  %v2643_v7 = vld [vmem:[%s3664_s1 + $0x694] ss:$8 sps:$4 sm:$0xff]  }
  0x73   :  { %1737 = vmatpush1.bf16.msra.mxu1 %v2560_v8  ;;  %v2638_v8 = vld [vmem:[%s3664_s1 + $0x290] ss:$8 sps:$4 sm:$0xff]  }
  0x74   :  { %1901 = vmatpush1.bf16.msra.mxu0 %v2563_v9  ;;  %1738 = vmatprep.subr.bf16.mxu1 %v2568_v10  ;;  %v2641_v9 = vld [vmem:[%s3664_s1 + $0x690] ss:$8 sps:$4 sm:$0xff]   ;;  %v2646_v10 = vld [vmem:[%s3664_s1 + $0x2a4] ss:$8 sps:$4 sm:$0xff]  }
  0x75   :  { %1902 = vmatprep.subr.bf16.mxu0 %v2571_v11  ;;  %v2649_v11 = vld [vmem:[%s3664_s1 + $0x6a4] ss:$8 sps:$4 sm:$0xff]  }
  0x77   :  { %1739 = vmatpush1.bf16.msra.mxu1 %v2566_v12  ;;  %v2644_v12 = vld [vmem:[%s3664_s1 + $0x2a0] ss:$8 sps:$4 sm:$0xff]  }
  0x78   :  { %1903 = vmatpush1.bf16.msra.mxu0 %v2569_v13  ;;  %1740 = vmatprep.subr.bf16.mxu1 %v2574_v14  ;;  %v2647_v13 = vld [vmem:[%s3664_s1 + $0x6a0] ss:$8 sps:$4 sm:$0xff]   ;;  %v2652_v14 = vld [vmem:[%s3664_s1 + $0x2b4] ss:$8 sps:$4 sm:$0xff]  }
  0x79   :  { %1904 = vmatprep.subr.bf16.mxu0 %v2577_v15  ;;  %v2655_v15 = vld [vmem:[%s3664_s1 + $0x6b4] ss:$8 sps:$4 sm:$0xff]  }
  0x7b   :  { %1741 = vmatpush1.bf16.msra.mxu1 %v2572_v20  ;;  %v2658_v20 = vld [vmem:[%s3664_s1 + $0x2c4] ss:$8 sps:$4 sm:$0xff]  }
  0x7c   :  { %1905 = vmatpush1.bf16.msra.mxu0 %v2575_v21  ;;  %1742 = vmatprep.subr.bf16.mxu1 %v2580_v22  ;;  %v2661_v21 = vld [vmem:[%s3664_s1 + $0x6c4] ss:$8 sps:$4 sm:$0xff]   ;;  %v2656_v22 = vld [vmem:[%s3664_s1 + $0x2c0] ss:$8 sps:$4 sm:$0xff]  }
  0x7d   :  { %1906 = vmatprep.subr.bf16.mxu0 %v2583_v52  ;;  %v2659_v52 = vld [vmem:[%s3664_s1 + $0x6c0] ss:$8 sps:$4 sm:$0xff]  }
  0x7f   :  { %1743 = vmatpush1.bf16.msra.mxu1 %v2578_v24  ;;  %v2664_v24 = vld [vmem:[%s3664_s1 + $0x2d4] ss:$8 sps:$4 sm:$0xff]  }
  0x80   :  { %1907 = vmatpush1.bf16.msra.mxu0 %v2581_v25  ;;  %1753 = vmatprep.subr.bf16.mxu1 %v2586_v26  ;;  %v2667_v25 = vld [vmem:[%s3664_s1 + $0x6d4] ss:$8 sps:$4 sm:$0xff]   ;;  %v2662_v26 = vld [vmem:[%s3664_s1 + $0x2d0] ss:$8 sps:$4 sm:$0xff]  }
  0x81   :  { %1917 = vmatprep.subr.bf16.mxu0 %v2589_v27  ;;  %v2665_v27 = vld [vmem:[%s3664_s1 + $0x6d0] ss:$8 sps:$4 sm:$0xff]  }
  0x82   :  { %1745 = vmatmul.mubr.bf16.vlgmr.msra.gmra.mrb[0].mxu1 %v322_v30  ;;  %v2668_v30 = vld [vmem:[%s3664_s1 + $0x2e0] ss:$8 sps:$4 sm:$0xff]  }
  0x83   :  { %1909 = vmatmul.mubr.bf16.vlgmr.msra.gmra.mrb[0].mxu0 %v371_v31  ;;  %1754 = vmatpush1.bf16.msra.mxu1 %v2584_v32  ;;  %v2671_v31 = vld [vmem:[%s3664_s1 + $0x6e0] ss:$8 sps:$4 sm:$0xff]   ;;  %v2676_v32 = vld [vmem:[%s3664_s1 + $0x2f4] ss:$8 sps:$4 sm:$0xff]  }
  0x84   :  { %1918 = vmatpush1.bf16.msra.mxu0 %v2587_v33  ;;  %1755 = vmatprep.subr.bf16.mxu1 %v2592_v34  ;;  %v2679_v33 = vld [vmem:[%s3664_s1 + $0x6f4] ss:$8 sps:$4 sm:$0xff]   ;;  %v2674_v34 = vld [vmem:[%s3664_s1 + $0x2f0] ss:$8 sps:$4 sm:$0xff]  }
  0x85   :  { %1919 = vmatprep.subr.bf16.mxu0 %v2595_v16  ;;  %1785 = vmatprep.mubr.bf16.mxu1 %v3256_v17  ;;  %v2677_v16 = vld [vmem:[%s3664_s1 + $0x6f0] ss:$8 sps:$4 sm:$0xff]  }
  0x86   :  { %1949 = vmatprep.mubr.bf16.mxu0 %v3259_v35 }
  0x87   :  { %1756 = vmatpush1.bf16.msra.mxu1 %v2590_v36  ;;  %v2682_v36 = vld [vmem:[%s3664_s1 + $0x304] ss:$8 sps:$4 sm:$0xff]  }
  0x88   :  { %1920 = vmatpush1.bf16.msra.mxu0 %v2593_v37  ;;  %1757 = vmatprep.subr.bf16.mxu1 %v2598_v38  ;;  %v2685_v37 = vld [vmem:[%s3664_s1 + $0x704] ss:$8 sps:$4 sm:$0xff]   ;;  %v3445_v38 = vrot.slane %v3218_v56, %v2941_v49  ;;  %v2688_v56 = vld [vmem:[%s3664_s1 + $0x314] ss:$8 sps:$4 sm:$0xff]  }
  0x89   :  { %1921 = vmatprep.subr.bf16.mxu0 %v2601_v39  ;;  %v3449_v39 = vrot.slane %v3221_v23, %v2941_v49  ;;  %v2691_v23 = vld [vmem:[%s3664_s1 + $0x714] ss:$8 sps:$4 sm:$0xff]  }
  0x8b   :  { %1758 = vmatpush1.bf16.msra.mxu1 %v2596_v40  ;;  %v2680_v40 = vld [vmem:[%s3664_s1 + $0x300] ss:$8 sps:$4 sm:$0xff]  }
  0x8c   :  { %1922 = vmatpush1.bf16.msra.mxu0 %v2599_v41  ;;  %1759 = vmatprep.subr.bf16.mxu1 %v2604_v42  ;;  %v2683_v41 = vld [vmem:[%s3664_s1 + $0x700] ss:$8 sps:$4 sm:$0xff]   ;;  %v325_v42 = vcombine.high %v3256_v17, %v3256_v17  ;;  %v2694_v17 = vld [vmem:[%s3664_s1 + $0x324] ss:$8 sps:$4 sm:$0xff]  }
  0x8d   :  { %1923 = vmatprep.subr.bf16.mxu0 %v2607_v44  ;;  %v374_v44 = vcombine.high %v3259_v35, %v3259_v35  ;;  %v2697_v35 = vld [vmem:[%s3664_s1 + $0x724] ss:$8 sps:$4 sm:$0xff]  }
  0x8f   :  { %1760 = vmatpush1.bf16.msra.mxu1 %v2602_v45  ;;  %v2686_v45 = vld [vmem:[%s3664_s1 + $0x310] ss:$8 sps:$4 sm:$0xff]  }
  0x90   :  { %1924 = vmatpush1.bf16.msra.mxu0 %v2605_v46  ;;  %1761 = vmatprep.subr.bf16.mxu1 %v2610_v47  ;;  %v2689_v46 = vld [vmem:[%s3664_s1 + $0x710] ss:$8 sps:$4 sm:$0xff]   ;;  %v2692_v47 = vld [vmem:[%s3664_s1 + $0x320] ss:$8 sps:$4 sm:$0xff]  }
  0x91   :  { %1925 = vmatprep.subr.bf16.mxu0 %v2613_v48  ;;  %v2695_v48 = vld [vmem:[%s3664_s1 + $0x720] ss:$8 sps:$4 sm:$0xff]  }
  0x93   :  { %1762 = vmatpush1.bf16.msra.mxu1 %v2608_v50  ;;  %v2700_v50 = vld [vmem:[%s3664_s1 + $0x334] ss:$8 sps:$4 sm:$0xff]  }
  0x94   :  { %1926 = vmatpush1.bf16.msra.mxu0 %v2611_v51  ;;  %1763 = vmatprep.subr.bf16.mxu1 %v2616_v53  ;;  %v2703_v51 = vld [vmem:[%s3664_s1 + $0x734] ss:$8 sps:$4 sm:$0xff]   ;;  %v2698_v53 = vld [vmem:[%s3664_s1 + $0x330] ss:$8 sps:$4 sm:$0xff]  }
  0x95   :  { %1927 = vmatprep.subr.bf16.mxu0 %v2619_v54  ;;  %v2701_v54 = vld [vmem:[%s3664_s1 + $0x730] ss:$8 sps:$4 sm:$0xff]  }
  0x97   :  { %1764 = vmatpush1.bf16.msra.mxu1 %v2614_v55  ;;  %v2706_v55 = vld [vmem:[%s3664_s1 + $0x344] ss:$8 sps:$4 sm:$0xff]  }
  0x98   :  { %1928 = vmatpush1.bf16.msra.mxu0 %v2617_v57  ;;  %1765 = vmatprep.subr.bf16.mxu1 %v2622_v58  ;;  %v2709_v57 = vld [vmem:[%s3664_s1 + $0x744] ss:$8 sps:$4 sm:$0xff]   ;;  %v2704_v58 = vld [vmem:[%s3664_s1 + $0x340] ss:$8 sps:$4 sm:$0xff]  }
  0x99   :  { %1929 = vmatprep.subr.bf16.mxu0 %v2625_v59  ;;  %v2707_v59 = vld [vmem:[%s3664_s1 + $0x740] ss:$8 sps:$4 sm:$0xff]  }
  0x9b   :  { %1766 = vmatpush1.bf16.msra.mxu1 %v2620_v60  ;;  %v2712_v60 = vld [vmem:[%s3664_s1 + $0x354] ss:$8 sps:$4 sm:$0xff]  }
  0x9c   :  { %1930 = vmatpush1.bf16.msra.mxu0 %v2623_v61  ;;  %1767 = vmatprep.subr.bf16.mxu1 %v2628_v62  ;;  %v2715_v61 = vld [vmem:[%s3664_s1 + $0x754] ss:$8 sps:$4 sm:$0xff]   ;;  %v2710_v62 = vld [vmem:[%s3664_s1 + $0x350] ss:$8 sps:$4 sm:$0xff]  }
  0x9d   :  { %1931 = vmatprep.subr.bf16.mxu0 %v2631_v63  ;;  %v2713_v63 = vld [vmem:[%s3664_s1 + $0x750] ss:$8 sps:$4 sm:$0xff]  }
  0x9f   :  { %1768 = vmatpush1.bf16.msra.mxu1 %v2626_v0  ;;  %v2718_v0 = vld [vmem:[%s3664_s1 + $0x364] ss:$8 sps:$4 sm:$0xff]  }
  0xa0   :  { %1932 = vmatpush1.bf16.msra.mxu0 %v2629_v1  ;;  %1769 = vmatprep.subr.bf16.mxu1 %v2634_v2  ;;  %v2721_v1 = vld [vmem:[%s3664_s1 + $0x764] ss:$8 sps:$4 sm:$0xff]   ;;  %v2716_v2 = vld [vmem:[%s3664_s1 + $0x360] ss:$8 sps:$4 sm:$0xff]  }
  0xa1   :  { %1933 = vmatprep.subr.bf16.mxu0 %v2637_v3  ;;  %v2719_v3 = vld [vmem:[%s3664_s1 + $0x760] ss:$8 sps:$4 sm:$0xff]  }
  0xa3   :  { %1770 = vmatpush1.bf16.msra.mxu1 %v2632_v4  ;;  %v2724_v4 = vld [vmem:[%s3664_s1 + $0x374] ss:$8 sps:$4 sm:$0xff]  }
  0xa4   :  { %1934 = vmatpush1.bf16.msra.mxu0 %v2635_v5  ;;  %1771 = vmatprep.subr.bf16.mxu1 %v2640_v6  ;;  %v2727_v5 = vld [vmem:[%s3664_s1 + $0x774] ss:$8 sps:$4 sm:$0xff]   ;;  %v2722_v6 = vld [vmem:[%s3664_s1 + $0x370] ss:$8 sps:$4 sm:$0xff]  }
  0xa5   :  { %1935 = vmatprep.subr.bf16.mxu0 %v2643_v7  ;;  %v2725_v7 = vld [vmem:[%s3664_s1 + $0x770] ss:$8 sps:$4 sm:$0xff]  }
  0xa7   :  { %1772 = vmatpush1.bf16.msra.mxu1 %v2638_v8  ;;  %v2730_v8 = vld [vmem:[%s3664_s1 + $0x384] ss:$8 sps:$4 sm:$0xff]  }
  0xa8   :  { %1936 = vmatpush1.bf16.msra.mxu0 %v2641_v9  ;;  %1773 = vmatprep.subr.bf16.mxu1 %v2646_v10  ;;  %v2733_v9 = vld [vmem:[%s3664_s1 + $0x784] ss:$8 sps:$4 sm:$0xff]   ;;  %v2728_v10 = vld [vmem:[%s3664_s1 + $0x380] ss:$8 sps:$4 sm:$0xff]  }
  0xa9   :  { %1937 = vmatprep.subr.bf16.mxu0 %v2649_v11  ;;  %v2731_v11 = vld [vmem:[%s3664_s1 + $0x780] ss:$8 sps:$4 sm:$0xff]  }
  0xab   :  { %1774 = vmatpush1.bf16.msra.mxu1 %v2644_v12  ;;  %v2736_v12 = vld [vmem:[%s3664_s1 + $0x394] ss:$8 sps:$4 sm:$0xff]  }
  0xac   :  { %1938 = vmatpush1.bf16.msra.mxu0 %v2647_v13  ;;  %1775 = vmatprep.subr.bf16.mxu1 %v2652_v14  ;;  %v2739_v13 = vld [vmem:[%s3664_s1 + $0x794] ss:$8 sps:$4 sm:$0xff]   ;;  %v2734_v14 = vld [vmem:[%s3664_s1 + $0x390] ss:$8 sps:$4 sm:$0xff]  }
  0xad   :  { %1939 = vmatprep.subr.bf16.mxu0 %v2655_v15  ;;  %v2737_v15 = vld [vmem:[%s3664_s1 + $0x790] ss:$8 sps:$4 sm:$0xff]  }
  0xaf   :  { %1776 = vmatpush1.bf16.msra.mxu1 %v2650_v18  ;;  %v2742_v18 = vld [vmem:[%s3664_s1 + $0x3a4] ss:$8 sps:$4 sm:$0xff]  }
  0xb0   :  { %1940 = vmatpush1.bf16.msra.mxu0 %v2653_v19  ;;  %1777 = vmatprep.subr.bf16.mxu1 %v2658_v20  ;;  %v2745_v19 = vld [vmem:[%s3664_s1 + $0x7a4] ss:$8 sps:$4 sm:$0xff]   ;;  %v2740_v20 = vld [vmem:[%s3664_s1 + $0x3a0] ss:$8 sps:$4 sm:$0xff]  }
  0xb1   :  { %1941 = vmatprep.subr.bf16.mxu0 %v2661_v21  ;;  %v2743_v21 = vld [vmem:[%s3664_s1 + $0x7a0] ss:$8 sps:$4 sm:$0xff]  }
  0xb3   :  { %1778 = vmatpush1.bf16.msra.mxu1 %v2656_v22  ;;  %v2748_v22 = vld [vmem:[%s3664_s1 + $0x3b4] ss:$8 sps:$4 sm:$0xff]  }
  0xb4   :  { %1942 = vmatpush1.bf16.msra.mxu0 %v2659_v52  ;;  %1779 = vmatprep.subr.bf16.mxu1 %v2664_v24  ;;  %v2751_v52 = vld [vmem:[%s3664_s1 + $0x7b4] ss:$8 sps:$4 sm:$0xff]   ;;  %v2746_v24 = vld [vmem:[%s3664_s1 + $0x3b0] ss:$8 sps:$4 sm:$0xff]  }
  0xb5   :  { %1943 = vmatprep.subr.bf16.mxu0 %v2667_v25  ;;  %v2749_v25 = vld [vmem:[%s3664_s1 + $0x7b0] ss:$8 sps:$4 sm:$0xff]  }
  0xb7   :  { %1780 = vmatpush1.bf16.msra.mxu1 %v2662_v26  ;;  %v2754_v26 = vld [vmem:[%s3664_s1 + $0x3c4] ss:$8 sps:$4 sm:$0xff]  }
  0xb8   :  { %1944 = vmatpush1.bf16.msra.mxu0 %v2665_v27  ;;  %1781 = vmatprep.subr.bf16.mxu1 %v2670_v28  ;;  %v2757_v27 = vld [vmem:[%s3664_s1 + $0x7c4] ss:$8 sps:$4 sm:$0xff]   ;;  %v2752_v28 = vld [vmem:[%s3664_s1 + $0x3c0] ss:$8 sps:$4 sm:$0xff]  }
  0xb9   :  { %1945 = vmatprep.subr.bf16.mxu0 %v2673_v29  ;;  %v2755_v29 = vld [vmem:[%s3664_s1 + $0x7c0] ss:$8 sps:$4 sm:$0xff]  }
  0xbb   :  { %1782 = vmatpush1.bf16.msra.mxu1 %v2668_v30  ;;  %v2760_v30 = vld [vmem:[%s3664_s1 + $0x3d4] ss:$8 sps:$4 sm:$0xff]  }
  0xbc   :  { %1946 = vmatpush1.bf16.msra.mxu0 %v2671_v31  ;;  %1783 = vmatprep.subr.bf16.mxu1 %v2676_v32  ;;  %v2763_v31 = vld [vmem:[%s3664_s1 + $0x7d4] ss:$8 sps:$4 sm:$0xff]   ;;  %v2758_v32 = vld [vmem:[%s3664_s1 + $0x3d0] ss:$8 sps:$4 sm:$0xff]  }
  0xbd   :  { %1947 = vmatprep.subr.bf16.mxu0 %v2679_v33  ;;  %v2761_v33 = vld [vmem:[%s3664_s1 + $0x7d0] ss:$8 sps:$4 sm:$0xff]  }
  0xbf   :  { %1784 = vmatpush1.bf16.msra.mxu1 %v2674_v34  ;;  %v2766_v34 = vld [vmem:[%s3664_s1 + $0x3e4] ss:$8 sps:$4 sm:$0xff]  }
  0xc0   :  { %1948 = vmatpush1.bf16.msra.mxu0 %v2677_v16  ;;  %1794 = vmatprep.subr.bf16.mxu1 %v2682_v36  ;;  %v2769_v16 = vld [vmem:[%s3664_s1 + $0x7e4] ss:$8 sps:$4 sm:$0xff]   ;;  %v2764_v36 = vld [vmem:[%s3664_s1 + $0x3e0] ss:$8 sps:$4 sm:$0xff]  }
  0xc1   :  { %1958 = vmatprep.subr.bf16.mxu0 %v2685_v37  ;;  %v2767_v37 = vld [vmem:[%s3664_s1 + $0x7e0] ss:$8 sps:$4 sm:$0xff]  }
  0xc2   :  { %1786 = vmatmul.mubr.bf16.vlgmr.msra.gmra.mrb[0].mxu1 %v3445_v38 }
  0xc3   :  { %1950 = vmatmul.mubr.bf16.vlgmr.msra.gmra.mrb[0].mxu0 %v3449_v39  ;;  %1795 = vmatpush1.bf16.msra.mxu1 %v2680_v40  ;;  %v2772_v40 = vld [vmem:[%s3664_s1 + $0x3f4] ss:$8 sps:$4 sm:$0xff]  }
  0xc4   :  { %1959 = vmatpush1.bf16.msra.mxu0 %v2683_v41  ;;  %1796 = vmatprep.subr.bf16.mxu1 %v2688_v56  ;;  %v2775_v41 = vld [vmem:[%s3664_s1 + $0x7f4] ss:$8 sps:$4 sm:$0xff]   ;;  %v2770_v56 = vld [vmem:[%s3664_s1 + $0x3f0] ss:$8 sps:$4 sm:$0xff]  }
  0xc5   :  { %1960 = vmatprep.subr.bf16.mxu0 %v2691_v23  ;;  %1826 = vmatprep.mubr.bf16.mxu1 %v325_v42  ;;  %v2773_v23 = vld [vmem:[%s3664_s1 + $0x7f0] ss:$8 sps:$4 sm:$0xff]   ;;  %v323_v42 = vcombine.high %v3445_v38, %v3445_v38 }
  0xc6   :  { %1990 = vmatprep.mubr.bf16.mxu0 %v374_v44  ;;  %v372_v44 = vcombine.high %v3449_v39, %v3449_v39 }
  0xc7   :  { %1797 = vmatpush1.bf16.msra.mxu1 %v2686_v45 }
  0xc8   :  { %1961 = vmatpush1.bf16.msra.mxu0 %v2689_v46  ;;  %1798 = vmatprep.subr.bf16.mxu1 %v2694_v17 }
  0xc9   :  { %1962 = vmatprep.subr.bf16.mxu0 %v2697_v35 }
  0xcb   :  { %1799 = vmatpush1.bf16.msra.mxu1 %v2692_v47 }
  0xcc   :  { %1963 = vmatpush1.bf16.msra.mxu0 %v2695_v48  ;;  %1800 = vmatprep.subr.bf16.mxu1 %v2700_v50 }
  0xcd   :  { %1964 = vmatprep.subr.bf16.mxu0 %v2703_v51 }
  0xcf   :  { %1801 = vmatpush1.bf16.msra.mxu1 %v2698_v53 }
  0xd0   :  { %1965 = vmatpush1.bf16.msra.mxu0 %v2701_v54  ;;  %1802 = vmatprep.subr.bf16.mxu1 %v2706_v55 }
  0xd1   :  { %1966 = vmatprep.subr.bf16.mxu0 %v2709_v57 }
  0xd3   :  { %1803 = vmatpush1.bf16.msra.mxu1 %v2704_v58 }
  0xd4   :  { %1967 = vmatpush1.bf16.msra.mxu0 %v2707_v59  ;;  %1804 = vmatprep.subr.bf16.mxu1 %v2712_v60 }
  0xd5   :  { %1968 = vmatprep.subr.bf16.mxu0 %v2715_v61 }
  0xd7   :  { %1805 = vmatpush1.bf16.msra.mxu1 %v2710_v62 }
  0xd8   :  { %1969 = vmatpush1.bf16.msra.mxu0 %v2713_v63  ;;  %1806 = vmatprep.subr.bf16.mxu1 %v2718_v0 }
  0xd9   :  { %1970 = vmatprep.subr.bf16.mxu0 %v2721_v1 }
  0xdb   :  { %1807 = vmatpush1.bf16.msra.mxu1 %v2716_v2 }
  0xdc   :  { %1971 = vmatpush1.bf16.msra.mxu0 %v2719_v3  ;;  %1808 = vmatprep.subr.bf16.mxu1 %v2724_v4 }
  0xdd   :  { %1972 = vmatprep.subr.bf16.mxu0 %v2727_v5 }
  0xdf   :  { %1809 = vmatpush1.bf16.msra.mxu1 %v2722_v6 }
  0xe0   :  { %1973 = vmatpush1.bf16.msra.mxu0 %v2725_v7  ;;  %1810 = vmatprep.subr.bf16.mxu1 %v2730_v8 }
  0xe1   :  { %1974 = vmatprep.subr.bf16.mxu0 %v2733_v9 }
  0xe3   :  { %1811 = vmatpush1.bf16.msra.mxu1 %v2728_v10 }
  0xe4   :  { %1975 = vmatpush1.bf16.msra.mxu0 %v2731_v11  ;;  %1812 = vmatprep.subr.bf16.mxu1 %v2736_v12 }
  0xe5   :  { %1976 = vmatprep.subr.bf16.mxu0 %v2739_v13 }
  0xe7   :  { %1813 = vmatpush1.bf16.msra.mxu1 %v2734_v14 }
  0xe8   :  { %1977 = vmatpush1.bf16.msra.mxu0 %v2737_v15  ;;  %1814 = vmatprep.subr.bf16.mxu1 %v2742_v18 }
  0xe9   :  { %1978 = vmatprep.subr.bf16.mxu0 %v2745_v19 }
  0xeb   :  { %1815 = vmatpush1.bf16.msra.mxu1 %v2740_v20 }
  0xec   :  { %1979 = vmatpush1.bf16.msra.mxu0 %v2743_v21  ;;  %1816 = vmatprep.subr.bf16.mxu1 %v2748_v22 }
  0xed   :  { %1980 = vmatprep.subr.bf16.mxu0 %v2751_v52 }
  0xef   :  { %1817 = vmatpush1.bf16.msra.mxu1 %v2746_v24 }
  0xf0   :  { %1981 = vmatpush1.bf16.msra.mxu0 %v2749_v25  ;;  %1818 = vmatprep.subr.bf16.mxu1 %v2754_v26 }
  0xf1   :  { %1982 = vmatprep.subr.bf16.mxu0 %v2757_v27 }
  0xf3   :  { %1819 = vmatpush1.bf16.msra.mxu1 %v2752_v28 }
  0xf4   :  { %1983 = vmatpush1.bf16.msra.mxu0 %v2755_v29  ;;  %1820 = vmatprep.subr.bf16.mxu1 %v2760_v30 }
  0xf5   :  { %1984 = vmatprep.subr.bf16.mxu0 %v2763_v31 }
  0xf7   :  { %1821 = vmatpush1.bf16.msra.mxu1 %v2758_v32 }
  0xf8   :  { %1985 = vmatpush1.bf16.msra.mxu0 %v2761_v33  ;;  %1822 = vmatprep.subr.bf16.mxu1 %v2766_v34  ;;  %v2037_v34 = vld [vmem:[%s3666_s2] sm:$0x3] }
  0xf9   :  { %1986 = vmatprep.subr.bf16.mxu0 %v2769_v16 }
  0xfb   :  { %1823 = vmatpush1.bf16.msra.mxu1 %v2764_v36  ;;  %v2064_v36 = vsub.s32 0, %v2923_v43 }
  0xfc   :  { %1987 = vmatpush1.bf16.msra.mxu0 %v2767_v37  ;;  %1824 = vmatprep.subr.bf16.mxu1 %v2772_v40  ;;  %v2068_v37 = vsub.s32 1, %v2923_v43  ;;  %v2074_v40 = vld [vmem:[%s3667_s3] sm:$0x3] }
  0xfd   :  { %1988 = vmatprep.subr.bf16.mxu0 %v2775_v41 }
  0xff   :  { %1825 = vmatpush1.bf16.msra.mxu1 %v2770_v56 }
 0x100   :  { %1989 = vmatpush1.bf16.msra.mxu0 %v2773_v23 }
 0x102   :  { %1827 = vmatmul.mubr.bf16.vlgmr.msra.gmra.mrb[0].mxu1 %v323_v42  ;;  %v2079_v42 = vrot.slane %v2074_v40, %v2064_v36 }
 0x103   :  { %1991 = vmatmul.mubr.bf16.vlgmr.msra.gmra.mrb[0].mxu0 %v372_v44  ;;  %v2083_v44 = vrot.slane %v2074_v40, %v2068_v37 }
 0x1d5   :  { %v1828_v45 = vpop.f32.mrb[0].mxu1 }
 0x1d6   :  { %v1992_v46 = vpop.f32.mrb[0].mxu0  ;;  %v1830_v35 = vpop.f32.mrb[1].mxu1 }
 0x1d7   :  { %v2363_v17 = vadd.f32 %v1992_v46, %v1828_v45  ;;  %v1994_v47 = vpop.f32.mrb[1].mxu0  ;;  %v1832_v50 = vpop.f32.mrb[2].mxu1 }
 0x1d8   :  { %v2364_v48 = vadd.f32 %v1994_v47, %v1830_v35  ;;  %v1996_v51 = vpop.f32.mrb[2].mxu0  ;;  %v1833_v54 = vpop.f32.mrb[3].mxu1 }
 0x1d9   :  { %v2000_v53 = vsel %vm1999_vm0, %v2363_v17, 0.0  ;;  %v1997_v38 = vpop.f32.mrb[3].mxu0 }
 0x1da   :  { %v2001_v55 = vrot.slane %v2000_v53, 4  ;;  %v2007_v39 = vsel %vm1999_vm0, %v2364_v48, 0.0 }
 0x1db   :  { %v2008_v57 = vrot.slane %v2007_v39, 4 }
 0x1dc   :  { %v2002_v58 = vadd.f32 %v2001_v55, %v2000_v53 }
 0x1dd   :  { %v2009_v59 = vadd.f32 %v2008_v57, %v2007_v39 }
 0x1de   :  { %v2003_v60 = vrot.slane %v2002_v58, 2 }
 0x1df   :  { %v2010_v61 = vrot.slane %v2009_v59, 2 }
 0x1e0   :  { %v2004_v62 = vadd.f32 %v2003_v60, %v2002_v58 }
 0x1e1   :  { %v2011_v63 = vadd.f32 %v2010_v61, %v2009_v59 }
 0x1e2   :  { %v2005_v0 = vrot.slane %v2004_v62, 1 }
 0x1e3   :  { %v2012_v1 = vrot.slane %v2011_v63, 1 }
 0x1e4   :  { %v2006_v2 = vadd.f32 %v2005_v0, %v2004_v62 }
 0x1e5   :  { %v2013_v3 = vadd.f32 %v2012_v1, %v2011_v63 }
 0x1e6   :  { %v2015_v4 = vmul.f32 0.5, %v2006_v2 }
 0x1e7   :  { %v2016_v5 = vmul.f32 0.5, %v2013_v3 }
 0x1e8   :  { %v2017_v6 = vsub.f32 %v2363_v17, %v2015_v4 }
 0x1e9   :  { %v2018_v7 = vsub.f32 %v2364_v48, %v2016_v5 }
 0x1ea   :  { %v2019_v8 = vmul.f32 %v2017_v6, %v2017_v6 }
 0x1eb   :  { %v2020_v9 = vmul.f32 %v2018_v7, %v2018_v7 }
 0x1ec   :  { %v2021_v10 = vsel %vm1999_vm0, %v2019_v8, 0.0 }
 0x1ed   :  { %v2022_v11 = vrot.slane %v2021_v10, 4  ;;  %v2028_v12 = vsel %vm1999_vm0, %v2020_v9, 0.0 }
 0x1ee   :  { %v2029_v13 = vrot.slane %v2028_v12, 4 }
 0x1ef   :  { %v2023_v14 = vadd.f32 %v2022_v11, %v2021_v10 }
 0x1f0   :  { %v2030_v15 = vadd.f32 %v2029_v13, %v2028_v12 }
 0x1f1   :  { %v2024_v18 = vrot.slane %v2023_v14, 2 }
 0x1f2   :  { %v2031_v19 = vrot.slane %v2030_v15, 2 }
 0x1f3   :  { %v2025_v20 = vadd.f32 %v2024_v18, %v2023_v14 }
 0x1f4   :  { %v2032_v21 = vadd.f32 %v2031_v19, %v2030_v15 }
 0x1f5   :  { %v2026_v22 = vrot.slane %v2025_v20, 1 }
 0x1f6   :  { %v2033_v52 = vrot.slane %v2032_v21, 1 }
 0x1f7   :  { %v2027_v24 = vadd.f32 %v2026_v22, %v2025_v20 }
 0x1f8   :  { %v2034_v25 = vadd.f32 %v2033_v52, %v2032_v21 }
 0x1f9   :  { %v2035_v26 = vmul.f32 0.5, %v2027_v24 }
 0x1fa   :  { %v2036_v27 = vmul.f32 0.5, %v2034_v25 }
 0x1fb   :  { %v2038_v28 = vadd.f32 1e-05, %v2035_v26 }
 0x1fc   :  { %v2039_v29 = vadd.f32 1e-05, %v2036_v27 }
 0x1fd   :  { %2776 = vrsqrt.f32 %v2038_v28 }
 0x1fe   :  { %2778 = vrsqrt.f32 %v2039_v29 }
 0x207   :  { %v2777_v30 = vpop.eup %2776 }
 0x208   :  { %v2779_v31 = vpop.eup %2778 }
 0x209   :  { %v2044_v32 = vcombine.low %v2777_v30, %v2779_v31 }
 0x20b   :  { %v2051_v33 = vrot.slane %v2044_v32, %v2941_v49 }
 0x20d   :  { %v2058_v16 = vrot.slane %v2051_v33, %v2941_v49 }
 0x20f   :  { %v2060_v41 = vmul.f32 %v2058_v16, %v2037_v34 }
 0x211   :  { %v2065_v56 = vrot.slane %v2060_v41, %v2064_v36  ;;  %v2069_v23 = vrot.slane %v2060_v41, %v2068_v37 }
 0x213   :  { %v2072_v45 = vmul.f32 %v2065_v56, %v2017_v6  ;;  %v2073_v46 = vmul.f32 %v2069_v23, %v2018_v7 }
 0x215   :  { %v2086_v17 = vadd.f32 %v2079_v42, %v2072_v45  ;;  %v2087_v35 = vadd.f32 %v2083_v44, %v2073_v46 }
 0x217   :  { %v2088_v47 = vmax.f32 %v2086_v17, 0.0  ;;  %v2089_v48 = vmax.f32 %v2087_v35, 0.0 }
 0x219   :  { %v2092_v49 = vcombine.low %v2088_v47, %v2089_v48 }
 0x21b   :  { %2362 = vst.sshfl [vmem:[%s3668_s4] sm:$0x33 pattern:$0x76325410] %v2092_v49 }

// kernel: cvae_forward.16
= control target key start
LH: loop header
LB: loop body
LE: loop exit
PB: predicated region body
PF: predicated region fallthrough
CT: control target
= control target key end

     0   :  { %s4657_s1 = inlined_call_operand.vmem [shape: bf16[4096,128], index: 1, kind: input, shape index: {}]   ;;  %s4658_s0 = inlined_call_operand.vmem [shape: bf16[8,4096], index: 0, kind: input, shape index: {}]   ;;  %s4659_s2 = inlined_call_operand.vmem [shape: f32[1,128], index: 2, kind: input, shape index: {}]   ;;  %s4660_s3 = inlined_call_operand.vmem [shape: f32[1,128], index: 3, kind: input, shape index: {}]   ;;  %s4661_s4 = inlined_call_operand.vmem [shape: f32[8,128], index: 4, kind: output, shape index: {}]  }
   0x1   :  { %v3517_v0 = vld [vmem:[%s4657_s1 + $0x40] sm:$0xff]   ;;  %v3521_v4 = vld [vmem:[%s4657_s1 + $0x48] sm:$0xff]   ;;  %v3525_v8 = vld [vmem:[%s4657_s1 + $0x50] sm:$0xff]  }
   0x2   :  { %v3518_v1 = vld [vmem:[%s4657_s1 + $0xc0] sm:$0xff]   ;;  %3165 = vmatprep.subr.bf16.mxu0 %v3517_v0  ;;  %v3522_v5 = vld [vmem:[%s4657_s1 + $0xc8] sm:$0xff]   ;;  %v3526_v9 = vld [vmem:[%s4657_s1 + $0xd0] sm:$0xff]  }
   0x3   :  { %v3519_v2 = vld [vmem:[%s4657_s1] sm:$0xff]   ;;  %3187 = vmatprep.subr.bf16.mxu1 %v3518_v1  ;;  %v3523_v6 = vld [vmem:[%s4657_s1 + $0x8] sm:$0xff]   ;;  %v3527_v10 = vld [vmem:[%s4657_s1 + $0x10] sm:$0xff]  }
   0x4   :  { %v3520_v3 = vld [vmem:[%s4657_s1 + $0x80] sm:$0xff]   ;;  %3166 = vmatpush3.bf16.msra.mxu0 %v3519_v2  ;;  %v3524_v7 = vld [vmem:[%s4657_s1 + $0x88] sm:$0xff]   ;;  %v3528_v11 = vld [vmem:[%s4657_s1 + $0x90] sm:$0xff]  }
   0x5   :  { %3188 = vmatpush3.bf16.msra.mxu1 %v3520_v3  ;;  %3167 = vmatprep.subr.bf16.mxu0 %v3521_v4  ;;  %v3529_v12 = vld [vmem:[%s4657_s1 + $0x58] sm:$0xff]   ;;  %v3533_v16 = vld [vmem:[%s4657_s1 + $0x60] sm:$0xff]   ;;  %v3537_v20 = vld [vmem:[%s4657_s1 + $0x68] sm:$0xff]  }
   0x6   :  { %3189 = vmatprep.subr.bf16.mxu1 %v3522_v5  ;;  %v3530_v13 = vld [vmem:[%s4657_s1 + $0xd8] sm:$0xff]   ;;  %v3534_v17 = vld [vmem:[%s4657_s1 + $0xe0] sm:$0xff]   ;;  %v3538_v21 = vld [vmem:[%s4657_s1 + $0xe8] sm:$0xff]  }
   0x7   :  { %v3531_v14 = vld [vmem:[%s4657_s1 + $0x18] sm:$0xff]   ;;  %v3535_v18 = vld [vmem:[%s4657_s1 + $0x20] sm:$0xff]   ;;  %v3539_v22 = vld [vmem:[%s4657_s1 + $0x28] sm:$0xff]  }
   0x8   :  { %3168 = vmatpush3.bf16.msra.mxu0 %v3523_v6  ;;  %v3532_v15 = vld [vmem:[%s4657_s1 + $0x98] sm:$0xff]   ;;  %v3536_v19 = vld [vmem:[%s4657_s1 + $0xa0] sm:$0xff]   ;;  %v3540_v23 = vld [vmem:[%s4657_s1 + $0xa8] sm:$0xff]  }
   0x9   :  { %3190 = vmatpush3.bf16.msra.mxu1 %v3524_v7  ;;  %3169 = vmatprep.subr.bf16.mxu0 %v3525_v8  ;;  %v3541_v24 = vld [vmem:[%s4657_s1 + $0x70] sm:$0xff]   ;;  %v3545_v28 = vld [vmem:[%s4657_s1 + $0x78] sm:$0xff]   ;;  %v18_v32 = vld [vmem:[%s4658_s0] sm:$0xff] }
   0xa   :  { %3191 = vmatprep.subr.bf16.mxu1 %v3526_v9  ;;  %v3542_v25 = vld [vmem:[%s4657_s1 + $0xf0] sm:$0xff]   ;;  %v3546_v29 = vld [vmem:[%s4657_s1 + $0xf8] sm:$0xff]   ;;  %v19_v33 = vld [vmem:[%s4658_s0 + $0x8] sm:$0xff]  ;;  %v2876_v34 = vcombine.low %v18_v32, %v18_v32  ;;  %v2877_v35 = vcombine.high %v18_v32, %v18_v32 }
   0xb   :  { %v3543_v26 = vld [vmem:[%s4657_s1 + $0x30] sm:$0xff]   ;;  %v3547_v30 = vld [vmem:[%s4657_s1 + $0x38] sm:$0xff]   ;;  %v2878_v36 = vcombine.low %v19_v33, %v19_v33  ;;  %v2879_v37 = vcombine.high %v19_v33, %v19_v33  ;;  %v3553_v38 = vld [vmem:[%s4657_s1 + $0x140] sm:$0xff]  }
   0xc   :  { %3170 = vmatpush3.bf16.msra.mxu0 %v3527_v10  ;;  %v3544_v27 = vld [vmem:[%s4657_s1 + $0xb0] sm:$0xff]   ;;  %v3548_v31 = vld [vmem:[%s4657_s1 + $0xb8] sm:$0xff]   ;;  %v3554_v39 = vld [vmem:[%s4657_s1 + $0x1c0] sm:$0xff]   ;;  %2226 = vmatprep.mubr.bf16.mxu0 %v2877_v35 }
   0xd   :  { %3192 = vmatpush3.bf16.msra.mxu1 %v3528_v11  ;;  %3171 = vmatprep.subr.bf16.mxu0 %v3529_v12  ;;  %v3555_v40 = vld [vmem:[%s4657_s1 + $0x100] sm:$0xff]   ;;  %v3557_v42 = vld [vmem:[%s4657_s1 + $0x148] sm:$0xff]   ;;  %v3561_v46 = vld [vmem:[%s4657_s1 + $0x150] sm:$0xff]  }
   0xe   :  { %3193 = vmatprep.subr.bf16.mxu1 %v3530_v13  ;;  %2266 = vmatprep.mubr.bf16.mxu1 %v2879_v37  ;;  %v3556_v41 = vld [vmem:[%s4657_s1 + $0x180] sm:$0xff]   ;;  %v3558_v43 = vld [vmem:[%s4657_s1 + $0x1c8] sm:$0xff]   ;;  %v3562_v47 = vld [vmem:[%s4657_s1 + $0x1d0] sm:$0xff]  }
   0xf   :  { %v3559_v44 = vld [vmem:[%s4657_s1 + $0x108] sm:$0xff]   ;;  %v3563_v48 = vld [vmem:[%s4657_s1 + $0x110] sm:$0xff]   ;;  %v3565_v50 = vld [vmem:[%s4657_s1 + $0x158] sm:$0xff]  }
  0x10   :  { %3172 = vmatpush3.bf16.msra.mxu0 %v3531_v14  ;;  %v3560_v45 = vld [vmem:[%s4657_s1 + $0x188] sm:$0xff]   ;;  %v3564_v49 = vld [vmem:[%s4657_s1 + $0x190] sm:$0xff]   ;;  %v3566_v51 = vld [vmem:[%s4657_s1 + $0x1d8] sm:$0xff]  }
  0x11   :  { %3194 = vmatpush3.bf16.msra.mxu1 %v3532_v15  ;;  %3173 = vmatprep.subr.bf16.mxu0 %v3533_v16  ;;  %v3567_v52 = vld [vmem:[%s4657_s1 + $0x118] sm:$0xff]   ;;  %v3569_v54 = vld [vmem:[%s4657_s1 + $0x160] sm:$0xff]   ;;  %v3573_v58 = vld [vmem:[%s4657_s1 + $0x168] sm:$0xff]  }
  0x12   :  { %3195 = vmatprep.subr.bf16.mxu1 %v3534_v17  ;;  %v3568_v53 = vld [vmem:[%s4657_s1 + $0x198] sm:$0xff]   ;;  %v3570_v55 = vld [vmem:[%s4657_s1 + $0x1e0] sm:$0xff]   ;;  %v3574_v59 = vld [vmem:[%s4657_s1 + $0x1e8] sm:$0xff]  }
  0x13   :  { %v3571_v56 = vld [vmem:[%s4657_s1 + $0x120] sm:$0xff]   ;;  %v3575_v60 = vld [vmem:[%s4657_s1 + $0x128] sm:$0xff]   ;;  %v3577_v62 = vld [vmem:[%s4657_s1 + $0x170] sm:$0xff]  }
  0x14   :  { %3174 = vmatpush3.bf16.msra.mxu0 %v3535_v18  ;;  %v3572_v57 = vld [vmem:[%s4657_s1 + $0x1a0] sm:$0xff]   ;;  %v3576_v61 = vld [vmem:[%s4657_s1 + $0x1a8] sm:$0xff]   ;;  %v3578_v63 = vld [vmem:[%s4657_s1 + $0x1f0] sm:$0xff]  }
  0x15   :  { %3196 = vmatpush3.bf16.msra.mxu1 %v3536_v19  ;;  %3175 = vmatprep.subr.bf16.mxu0 %v3537_v20  ;;  %v3579_v0 = vld [vmem:[%s4657_s1 + $0x130] sm:$0xff]   ;;  %v3581_v2 = vld [vmem:[%s4657_s1 + $0x178] sm:$0xff]   ;;  %v3589_v12 = vld [vmem:[%s4657_s1 + $0x240] sm:$0xff]  }
  0x16   :  { %3197 = vmatprep.subr.bf16.mxu1 %v3538_v21  ;;  %v3580_v1 = vld [vmem:[%s4657_s1 + $0x1b0] sm:$0xff]   ;;  %v3582_v3 = vld [vmem:[%s4657_s1 + $0x1f8] sm:$0xff]   ;;  %v3590_v13 = vld [vmem:[%s4657_s1 + $0x2c0] sm:$0xff]  }
  0x17   :  { %v3583_v4 = vld [vmem:[%s4657_s1 + $0x138] sm:$0xff]   ;;  %v20_v6 = vld [vmem:[%s4658_s0 + $0x10] sm:$0xff]  ;;  %v3591_v14 = vld [vmem:[%s4657_s1 + $0x200] sm:$0xff]  }
  0x18   :  { %3176 = vmatpush3.bf16.msra.mxu0 %v3539_v22  ;;  %v3584_v5 = vld [vmem:[%s4657_s1 + $0x1b8] sm:$0xff]   ;;  %v2880_v7 = vcombine.low %v20_v6, %v20_v6  ;;  %v2881_v8 = vcombine.high %v20_v6, %v20_v6  ;;  %v3592_v15 = vld [vmem:[%s4657_s1 + $0x280] sm:$0xff]   ;;  %v3593_v16 = vld [vmem:[%s4657_s1 + $0x248] sm:$0xff]  }
  0x19   :  { %3198 = vmatpush3.bf16.msra.mxu1 %v3540_v23  ;;  %3177 = vmatprep.subr.bf16.mxu0 %v3541_v24  ;;  %v21_v9 = vld [vmem:[%s4658_s0 + $0x18] sm:$0xff]  ;;  %v3594_v17 = vld [vmem:[%s4657_s1 + $0x2c8] sm:$0xff]   ;;  %v3597_v20 = vld [vmem:[%s4657_s1 + $0x250] sm:$0xff]  }
  0x1a   :  { %3199 = vmatprep.subr.bf16.mxu1 %v3542_v25  ;;  %v2882_v10 = vcombine.low %v21_v9, %v21_v9  ;;  %v2883_v11 = vcombine.high %v21_v9, %v21_v9  ;;  %v3595_v18 = vld [vmem:[%s4657_s1 + $0x208] sm:$0xff]   ;;  %v3598_v21 = vld [vmem:[%s4657_s1 + $0x2d0] sm:$0xff]   ;;  %v3601_v24 = vld [vmem:[%s4657_s1 + $0x258] sm:$0xff]  }
  0x1b   :  { %v3596_v19 = vld [vmem:[%s4657_s1 + $0x288] sm:$0xff]   ;;  %v3599_v22 = vld [vmem:[%s4657_s1 + $0x210] sm:$0xff]   ;;  %v3602_v25 = vld [vmem:[%s4657_s1 + $0x2d8] sm:$0xff]  }
  0x1c   :  { %3178 = vmatpush3.bf16.msra.mxu0 %v3543_v26  ;;  %v3600_v23 = vld [vmem:[%s4657_s1 + $0x290] sm:$0xff]   ;;  %v3603_v26 = vld [vmem:[%s4657_s1 + $0x218] sm:$0xff]   ;;  %v3609_v32 = vld [vmem:[%s4657_s1 + $0x268] sm:$0xff]  }
  0x1d   :  { %3200 = vmatpush3.bf16.msra.mxu1 %v3544_v27  ;;  %3179 = vmatprep.subr.bf16.mxu0 %v3545_v28  ;;  %v3604_v27 = vld [vmem:[%s4657_s1 + $0x298] sm:$0xff]   ;;  %v3605_v28 = vld [vmem:[%s4657_s1 + $0x260] sm:$0xff]   ;;  %v3610_v33 = vld [vmem:[%s4657_s1 + $0x2e8] sm:$0xff]  }
  0x1e   :  { %3201 = vmatprep.subr.bf16.mxu1 %v3546_v29  ;;  %v3606_v29 = vld [vmem:[%s4657_s1 + $0x2e0] sm:$0xff]   ;;  %v3612_v35 = vld [vmem:[%s4657_s1 + $0x2a8] sm:$0xff]   ;;  %v3614_v37 = vld [vmem:[%s4657_s1 + $0x2f0] sm:$0xff]  }
  0x1f   :  { %v3645_v6 = vld [vmem:[%s4657_s1 + $0x368] sm:$0xff]  }
  0x20   :  { %3180 = vmatpush3.bf16.msra.mxu0 %v3547_v30  ;;  %v3607_v30 = vld [vmem:[%s4657_s1 + $0x220] sm:$0xff]   ;;  %v3648_v9 = vld [vmem:[%s4657_s1 + $0x3a8] sm:$0xff]  }
  0x21   :  { %3202 = vmatpush3.bf16.msra.mxu1 %v3548_v31  ;;  %3209 = vmatprep.subr.bf16.mxu0 %v3553_v38  ;;  %v3608_v31 = vld [vmem:[%s4657_s1 + $0x2a0] sm:$0xff]   ;;  %v3615_v38 = vld [vmem:[%s4657_s1 + $0x230] sm:$0xff]  }
  0x22   :  { %3231 = vmatprep.subr.bf16.mxu1 %v3554_v39  ;;  %v3616_v39 = vld [vmem:[%s4657_s1 + $0x2b0] sm:$0xff]  }
  0x23   :  { %2227 = vmatmul.mubr.bf16.vlgmr.msra.gmra.mrb[0].mxu0 %v2876_v34  ;;  %v3611_v34 = vld [vmem:[%s4657_s1 + $0x228] sm:$0xff]  }
  0x24   :  { %2267 = vmatmul.mubr.bf16.vlgmr.msra.gmra.mrb[0].mxu1 %v2878_v36  ;;  %3210 = vmatpush3.bf16.msra.mxu0 %v3555_v40  ;;  %v3613_v36 = vld [vmem:[%s4657_s1 + $0x270] sm:$0xff]   ;;  %v3617_v40 = vld [vmem:[%s4657_s1 + $0x278] sm:$0xff]  }
  0x25   :  { %3232 = vmatpush3.bf16.msra.mxu1 %v3556_v41  ;;  %3211 = vmatprep.subr.bf16.mxu0 %v3557_v42  ;;  %v3618_v41 = vld [vmem:[%s4657_s1 + $0x2f8] sm:$0xff]  }
  0x26   :  { %3233 = vmatprep.subr.bf16.mxu1 %v3558_v43  ;;  %2306 = vmatprep.mubr.bf16.mxu0 %v2881_v8  ;;  %v3619_v42 = vld [vmem:[%s4657_s1 + $0x238] sm:$0xff]   ;;  %v3647_v8 = vld [vmem:[%s4657_s1 + $0x328] sm:$0xff]  }
  0x27   :  { %2346 = vmatprep.mubr.bf16.mxu1 %v2883_v11  ;;  %v3620_v43 = vld [vmem:[%s4657_s1 + $0x2b8] sm:$0xff]   ;;  %v3650_v11 = vld [vmem:[%s4657_s1 + $0x3f0] sm:$0xff]  }
  0x28   :  { %3212 = vmatpush3.bf16.msra.mxu0 %v3559_v44  ;;  %v22_v44 = vld [vmem:[%s4658_s0 + $0x20] sm:$0xff] }
  0x29   :  { %3234 = vmatpush3.bf16.msra.mxu1 %v3560_v45  ;;  %3213 = vmatprep.subr.bf16.mxu0 %v3561_v46  ;;  %v23_v45 = vld [vmem:[%s4658_s0 + $0x28] sm:$0xff]  ;;  %v2884_v46 = vcombine.low %v22_v44, %v22_v44 }
  0x2a   :  { %3235 = vmatprep.subr.bf16.mxu1 %v3562_v47  ;;  %v2885_v47 = vcombine.high %v22_v44, %v22_v44  ;;  %v3681_v44 = vld [vmem:[%s4657_s1 + $0x468] sm:$0xff]  }
  0x2c   :  { %3214 = vmatpush3.bf16.msra.mxu0 %v3563_v48  ;;  %v2886_v48 = vcombine.low %v23_v45, %v23_v45 }
  0x2d   :  { %3236 = vmatpush3.bf16.msra.mxu1 %v3564_v49  ;;  %3215 = vmatprep.subr.bf16.mxu0 %v3565_v50  ;;  %v2887_v49 = vcombine.high %v23_v45, %v23_v45  ;;  %v3625_v50 = vld [vmem:[%s4657_s1 + $0x340] sm:$0xff]   ;;  %v3682_v45 = vld [vmem:[%s4657_s1 + $0x4e8] sm:$0xff]  }
  0x2e   :  { %3237 = vmatprep.subr.bf16.mxu1 %v3566_v51  ;;  %v3626_v51 = vld [vmem:[%s4657_s1 + $0x3c0] sm:$0xff]  }
  0x30   :  { %3216 = vmatpush3.bf16.msra.mxu0 %v3567_v52  ;;  %v3627_v52 = vld [vmem:[%s4657_s1 + $0x300] sm:$0xff]  }
  0x31   :  { %3238 = vmatpush3.bf16.msra.mxu1 %v3568_v53  ;;  %3217 = vmatprep.subr.bf16.mxu0 %v3569_v54  ;;  %v3628_v53 = vld [vmem:[%s4657_s1 + $0x380] sm:$0xff]   ;;  %v3629_v54 = vld [vmem:[%s4657_s1 + $0x348] sm:$0xff]  }
  0x32   :  { %3239 = vmatprep.subr.bf16.mxu1 %v3570_v55  ;;  %v3630_v55 = vld [vmem:[%s4657_s1 + $0x3c8] sm:$0xff]  }
  0x34   :  { %3218 = vmatpush3.bf16.msra.mxu0 %v3571_v56  ;;  %v3631_v56 = vld [vmem:[%s4657_s1 + $0x308] sm:$0xff]  }
  0x35   :  { %3240 = vmatpush3.bf16.msra.mxu1 %v3572_v57  ;;  %3219 = vmatprep.subr.bf16.mxu0 %v3573_v58  ;;  %v3632_v57 = vld [vmem:[%s4657_s1 + $0x388] sm:$0xff]   ;;  %v3633_v58 = vld [vmem:[%s4657_s1 + $0x350] sm:$0xff]  }
  0x36   :  { %3241 = vmatprep.subr.bf16.mxu1 %v3574_v59  ;;  %v3634_v59 = vld [vmem:[%s4657_s1 + $0x3d0] sm:$0xff]  }
  0x38   :  { %3220 = vmatpush3.bf16.msra.mxu0 %v3575_v60  ;;  %v3635_v60 = vld [vmem:[%s4657_s1 + $0x310] sm:$0xff]  }
  0x39   :  { %3242 = vmatpush3.bf16.msra.mxu1 %v3576_v61  ;;  %3221 = vmatprep.subr.bf16.mxu0 %v3577_v62  ;;  %v3636_v61 = vld [vmem:[%s4657_s1 + $0x390] sm:$0xff]   ;;  %v3637_v62 = vld [vmem:[%s4657_s1 + $0x358] sm:$0xff]  }
  0x3a   :  { %3243 = vmatprep.subr.bf16.mxu1 %v3578_v63  ;;  %v3638_v63 = vld [vmem:[%s4657_s1 + $0x3d8] sm:$0xff]  }
  0x3c   :  { %3222 = vmatpush3.bf16.msra.mxu0 %v3579_v0  ;;  %v3639_v0 = vld [vmem:[%s4657_s1 + $0x318] sm:$0xff]  }
  0x3d   :  { %3244 = vmatpush3.bf16.msra.mxu1 %v3580_v1  ;;  %3223 = vmatprep.subr.bf16.mxu0 %v3581_v2  ;;  %v3640_v1 = vld [vmem:[%s4657_s1 + $0x398] sm:$0xff]   ;;  %v3641_v2 = vld [vmem:[%s4657_s1 + $0x360] sm:$0xff]  }
  0x3e   :  { %3245 = vmatprep.subr.bf16.mxu1 %v3582_v3  ;;  %v3642_v3 = vld [vmem:[%s4657_s1 + $0x3e0] sm:$0xff]  }
  0x40   :  { %3224 = vmatpush3.bf16.msra.mxu0 %v3583_v4  ;;  %v3643_v4 = vld [vmem:[%s4657_s1 + $0x320] sm:$0xff]  }
  0x41   :  { %3246 = vmatpush3.bf16.msra.mxu1 %v3584_v5  ;;  %3253 = vmatprep.subr.bf16.mxu0 %v3589_v12  ;;  %v3644_v5 = vld [vmem:[%s4657_s1 + $0x3a0] sm:$0xff]   ;;  %v3651_v12 = vld [vmem:[%s4657_s1 + $0x330] sm:$0xff]  }
  0x42   :  { %3275 = vmatprep.subr.bf16.mxu1 %v3590_v13  ;;  %v3652_v13 = vld [vmem:[%s4657_s1 + $0x3b0] sm:$0xff]  }
  0x43   :  { %2307 = vmatmul.mubr.bf16.vlgmr.msra.gmra.mrb[4].mxu0 %v2880_v7  ;;  %v3646_v7 = vld [vmem:[%s4657_s1 + $0x3e8] sm:$0xff]  }
  0x44   :  { %2347 = vmatmul.mubr.bf16.vlgmr.msra.gmra.mrb[4].mxu1 %v2882_v10  ;;  %3254 = vmatpush3.bf16.msra.mxu0 %v3591_v14  ;;  %v3649_v10 = vld [vmem:[%s4657_s1 + $0x370] sm:$0xff]   ;;  %v3653_v14 = vld [vmem:[%s4657_s1 + $0x378] sm:$0xff]  }
  0x45   :  { %3276 = vmatpush3.bf16.msra.mxu1 %v3592_v15  ;;  %3255 = vmatprep.subr.bf16.mxu0 %v3593_v16  ;;  %v3654_v15 = vld [vmem:[%s4657_s1 + $0x3f8] sm:$0xff]  }
  0x46   :  { %3277 = vmatprep.subr.bf16.mxu1 %v3594_v17  ;;  %2386 = vmatprep.mubr.bf16.mxu0 %v2885_v47  ;;  %v3655_v16 = vld [vmem:[%s4657_s1 + $0x338] sm:$0xff]   ;;  %v3684_v47 = vld [vmem:[%s4657_s1 + $0x4a8] sm:$0xff]  }
  0x47   :  { %2426 = vmatprep.mubr.bf16.mxu1 %v2887_v49  ;;  %v3656_v17 = vld [vmem:[%s4657_s1 + $0x3b8] sm:$0xff]   ;;  %v3686_v49 = vld [vmem:[%s4657_s1 + $0x4f0] sm:$0xff]  }
  0x48   :  { %3256 = vmatpush3.bf16.msra.mxu0 %v3595_v18  ;;  %v24_v18 = vld [vmem:[%s4658_s0 + $0x30] sm:$0xff] }
  0x49   :  { %3278 = vmatpush3.bf16.msra.mxu1 %v3596_v19  ;;  %3257 = vmatprep.subr.bf16.mxu0 %v3597_v20  ;;  %v25_v19 = vld [vmem:[%s4658_s0 + $0x38] sm:$0xff]  ;;  %v2888_v20 = vcombine.low %v24_v18, %v24_v18 }
  0x4a   :  { %3279 = vmatprep.subr.bf16.mxu1 %v3598_v21  ;;  %v2889_v21 = vcombine.high %v24_v18, %v24_v18  ;;  %v3717_v18 = vld [vmem:[%s4657_s1 + $0x568] sm:$0xff]  }
  0x4c   :  { %3258 = vmatpush3.bf16.msra.mxu0 %v3599_v22  ;;  %v2890_v22 = vcombine.low %v25_v19, %v25_v19 }
  0x4d   :  { %3280 = vmatpush3.bf16.msra.mxu1 %v3600_v23  ;;  %3259 = vmatprep.subr.bf16.mxu0 %v3601_v24  ;;  %v3661_v23 = vld [vmem:[%s4657_s1 + $0x440] sm:$0xff]   ;;  %v2891_v24 = vcombine.high %v25_v19, %v25_v19  ;;  %v3718_v19 = vld [vmem:[%s4657_s1 + $0x5e8] sm:$0xff]  }
  0x4e   :  { %3281 = vmatprep.subr.bf16.mxu1 %v3602_v25  ;;  %v3662_v25 = vld [vmem:[%s4657_s1 + $0x4c0] sm:$0xff]  }
  0x50   :  { %3260 = vmatpush3.bf16.msra.mxu0 %v3603_v26  ;;  %v3663_v26 = vld [vmem:[%s4657_s1 + $0x400] sm:$0xff]  }
  0x51   :  { %3282 = vmatpush3.bf16.msra.mxu1 %v3604_v27  ;;  %3261 = vmatprep.subr.bf16.mxu0 %v3605_v28  ;;  %v3664_v27 = vld [vmem:[%s4657_s1 + $0x480] sm:$0xff]   ;;  %v3665_v28 = vld [vmem:[%s4657_s1 + $0x448] sm:$0xff]  }
  0x52   :  { %3283 = vmatprep.subr.bf16.mxu1 %v3606_v29  ;;  %v3666_v29 = vld [vmem:[%s4657_s1 + $0x4c8] sm:$0xff]  }
  0x54   :  { %3262 = vmatpush3.bf16.msra.mxu0 %v3607_v30  ;;  %v3667_v30 = vld [vmem:[%s4657_s1 + $0x408] sm:$0xff]  }
  0x55   :  { %3284 = vmatpush3.bf16.msra.mxu1 %v3608_v31  ;;  %3263 = vmatprep.subr.bf16.mxu0 %v3609_v32  ;;  %v3668_v31 = vld [vmem:[%s4657_s1 + $0x488] sm:$0xff]   ;;  %v3669_v32 = vld [vmem:[%s4657_s1 + $0x450] sm:$0xff]  }
  0x56   :  { %3285 = vmatprep.subr.bf16.mxu1 %v3610_v33  ;;  %v3670_v33 = vld [vmem:[%s4657_s1 + $0x4d0] sm:$0xff]  }
  0x58   :  { %3264 = vmatpush3.bf16.msra.mxu0 %v3611_v34  ;;  %v3671_v34 = vld [vmem:[%s4657_s1 + $0x410] sm:$0xff]  }
  0x59   :  { %3286 = vmatpush3.bf16.msra.mxu1 %v3612_v35  ;;  %3265 = vmatprep.subr.bf16.mxu0 %v3613_v36  ;;  %v3672_v35 = vld [vmem:[%s4657_s1 + $0x490] sm:$0xff]   ;;  %v3673_v36 = vld [vmem:[%s4657_s1 + $0x458] sm:$0xff]  }
  0x5a   :  { %3287 = vmatprep.subr.bf16.mxu1 %v3614_v37  ;;  %v3674_v37 = vld [vmem:[%s4657_s1 + $0x4d8] sm:$0xff]  }
  0x5c   :  { %3266 = vmatpush3.bf16.msra.mxu0 %v3615_v38  ;;  %v3675_v38 = vld [vmem:[%s4657_s1 + $0x418] sm:$0xff]  }
  0x5d   :  { %3288 = vmatpush3.bf16.msra.mxu1 %v3616_v39  ;;  %3267 = vmatprep.subr.bf16.mxu0 %v3617_v40  ;;  %v3676_v39 = vld [vmem:[%s4657_s1 + $0x498] sm:$0xff]   ;;  %v3677_v40 = vld [vmem:[%s4657_s1 + $0x460] sm:$0xff]  }
  0x5e   :  { %3289 = vmatprep.subr.bf16.mxu1 %v3618_v41  ;;  %v3678_v41 = vld [vmem:[%s4657_s1 + $0x4e0] sm:$0xff]  }
  0x60   :  { %3268 = vmatpush3.bf16.msra.mxu0 %v3619_v42  ;;  %v3679_v42 = vld [vmem:[%s4657_s1 + $0x420] sm:$0xff]  }
  0x61   :  { %3290 = vmatpush3.bf16.msra.mxu1 %v3620_v43  ;;  %3297 = vmatprep.subr.bf16.mxu0 %v3625_v50  ;;  %v3680_v43 = vld [vmem:[%s4657_s1 + $0x4a0] sm:$0xff]   ;;  %v3687_v50 = vld [vmem:[%s4657_s1 + $0x430] sm:$0xff]  }
  0x62   :  { %3319 = vmatprep.subr.bf16.mxu1 %v3626_v51  ;;  %v3688_v51 = vld [vmem:[%s4657_s1 + $0x4b0] sm:$0xff]  }
  0x63   :  { %2387 = vmatmul.mubr.bf16.vlgmr.msra.gmra.mrb[8].mxu0 %v2884_v46  ;;  %v3683_v46 = vld [vmem:[%s4657_s1 + $0x428] sm:$0xff]  }
  0x64   :  { %2427 = vmatmul.mubr.bf16.vlgmr.msra.gmra.mrb[8].mxu1 %v2886_v48  ;;  %3298 = vmatpush3.bf16.msra.mxu0 %v3627_v52  ;;  %v3685_v48 = vld [vmem:[%s4657_s1 + $0x470] sm:$0xff]   ;;  %v3689_v52 = vld [vmem:[%s4657_s1 + $0x478] sm:$0xff]  }
  0x65   :  { %3320 = vmatpush3.bf16.msra.mxu1 %v3628_v53  ;;  %3299 = vmatprep.subr.bf16.mxu0 %v3629_v54  ;;  %v3690_v53 = vld [vmem:[%s4657_s1 + $0x4f8] sm:$0xff]  }
  0x66   :  { %3321 = vmatprep.subr.bf16.mxu1 %v3630_v55  ;;  %2466 = vmatprep.mubr.bf16.mxu0 %v2889_v21  ;;  %v3691_v54 = vld [vmem:[%s4657_s1 + $0x438] sm:$0xff]   ;;  %v3720_v21 = vld [vmem:[%s4657_s1 + $0x5a8] sm:$0xff]  }
  0x67   :  { %2506 = vmatprep.mubr.bf16.mxu1 %v2891_v24  ;;  %v3692_v55 = vld [vmem:[%s4657_s1 + $0x4b8] sm:$0xff]   ;;  %v3723_v24 = vld [vmem:[%s4657_s1 + $0x530] sm:$0xff]  }
  0x68   :  { %3300 = vmatpush3.bf16.msra.mxu0 %v3631_v56  ;;  %v26_v56 = vld [vmem:[%s4658_s0 + $0x40] sm:$0xff] }
  0x69   :  { %3322 = vmatpush3.bf16.msra.mxu1 %v3632_v57  ;;  %3301 = vmatprep.subr.bf16.mxu0 %v3633_v58  ;;  %v2892_v57 = vcombine.low %v26_v56, %v26_v56  ;;  %v2893_v58 = vcombine.high %v26_v56, %v26_v56  ;;  %v3753_v56 = vld [vmem:[%s4657_s1 + $0x668] sm:$0xff]  }
  0x6a   :  { %3323 = vmatprep.subr.bf16.mxu1 %v3634_v59  ;;  %v27_v59 = vld [vmem:[%s4658_s0 + $0x48] sm:$0xff] }
  0x6c   :  { %3302 = vmatpush3.bf16.msra.mxu0 %v3635_v60  ;;  %v2894_v60 = vcombine.low %v27_v59, %v27_v59 }
  0x6d   :  { %3324 = vmatpush3.bf16.msra.mxu1 %v3636_v61  ;;  %3303 = vmatprep.subr.bf16.mxu0 %v3637_v62  ;;  %v2895_v61 = vcombine.high %v27_v59, %v27_v59  ;;  %v3697_v62 = vld [vmem:[%s4657_s1 + $0x540] sm:$0xff]   ;;  %v3756_v59 = vld [vmem:[%s4657_s1 + $0x6a8] sm:$0xff]  }
  0x6e   :  { %3325 = vmatprep.subr.bf16.mxu1 %v3638_v63  ;;  %v3698_v63 = vld [vmem:[%s4657_s1 + $0x5c0] sm:$0xff]  }
  0x70   :  { %3304 = vmatpush3.bf16.msra.mxu0 %v3639_v0  ;;  %v3699_v0 = vld [vmem:[%s4657_s1 + $0x500] sm:$0xff]  }
  0x71   :  { %3326 = vmatpush3.bf16.msra.mxu1 %v3640_v1  ;;  %3305 = vmatprep.subr.bf16.mxu0 %v3641_v2  ;;  %v3700_v1 = vld [vmem:[%s4657_s1 + $0x580] sm:$0xff]   ;;  %v3701_v2 = vld [vmem:[%s4657_s1 + $0x548] sm:$0xff]  }
  0x72   :  { %3327 = vmatprep.subr.bf16.mxu1 %v3642_v3  ;;  %v3702_v3 = vld [vmem:[%s4657_s1 + $0x5c8] sm:$0xff]  }
  0x74   :  { %3306 = vmatpush3.bf16.msra.mxu0 %v3643_v4  ;;  %v3703_v4 = vld [vmem:[%s4657_s1 + $0x508] sm:$0xff]  }
  0x75   :  { %3328 = vmatpush3.bf16.msra.mxu1 %v3644_v5  ;;  %3307 = vmatprep.subr.bf16.mxu0 %v3645_v6  ;;  %v3704_v5 = vld [vmem:[%s4657_s1 + $0x588] sm:$0xff]   ;;  %v3705_v6 = vld [vmem:[%s4657_s1 + $0x550] sm:$0xff]  }
  0x76   :  { %3329 = vmatprep.subr.bf16.mxu1 %v3646_v7  ;;  %v3706_v7 = vld [vmem:[%s4657_s1 + $0x5d0] sm:$0xff]  }
  0x78   :  { %3308 = vmatpush3.bf16.msra.mxu0 %v3647_v8  ;;  %v3707_v8 = vld [vmem:[%s4657_s1 + $0x510] sm:$0xff]  }
  0x79   :  { %3330 = vmatpush3.bf16.msra.mxu1 %v3648_v9  ;;  %3309 = vmatprep.subr.bf16.mxu0 %v3649_v10  ;;  %v3708_v9 = vld [vmem:[%s4657_s1 + $0x590] sm:$0xff]   ;;  %v3709_v10 = vld [vmem:[%s4657_s1 + $0x558] sm:$0xff]  }
  0x7a   :  { %3331 = vmatprep.subr.bf16.mxu1 %v3650_v11  ;;  %v3710_v11 = vld [vmem:[%s4657_s1 + $0x5d8] sm:$0xff]  }
  0x7c   :  { %3310 = vmatpush3.bf16.msra.mxu0 %v3651_v12  ;;  %v3711_v12 = vld [vmem:[%s4657_s1 + $0x518] sm:$0xff]  }
  0x7d   :  { %3332 = vmatpush3.bf16.msra.mxu1 %v3652_v13  ;;  %3311 = vmatprep.subr.bf16.mxu0 %v3653_v14  ;;  %v3712_v13 = vld [vmem:[%s4657_s1 + $0x598] sm:$0xff]   ;;  %v3713_v14 = vld [vmem:[%s4657_s1 + $0x560] sm:$0xff]  }
  0x7e   :  { %3333 = vmatprep.subr.bf16.mxu1 %v3654_v15  ;;  %v3714_v15 = vld [vmem:[%s4657_s1 + $0x5e0] sm:$0xff]  }
  0x80   :  { %3312 = vmatpush3.bf16.msra.mxu0 %v3655_v16  ;;  %v3715_v16 = vld [vmem:[%s4657_s1 + $0x520] sm:$0xff]  }
  0x81   :  { %3334 = vmatpush3.bf16.msra.mxu1 %v3656_v17  ;;  %3341 = vmatprep.subr.bf16.mxu0 %v3661_v23  ;;  %v3716_v17 = vld [vmem:[%s4657_s1 + $0x5a0] sm:$0xff]   ;;  %v3722_v23 = vld [vmem:[%s4657_s1 + $0x5f0] sm:$0xff]  }
  0x82   :  { %3363 = vmatprep.subr.bf16.mxu1 %v3662_v25  ;;  %v3724_v25 = vld [vmem:[%s4657_s1 + $0x5b0] sm:$0xff]  }
  0x83   :  { %2467 = vmatmul.mubr.bf16.vlgmr.msra.gmra.mrb[12].mxu0 %v2888_v20  ;;  %v3719_v20 = vld [vmem:[%s4657_s1 + $0x528] sm:$0xff]  }
  0x84   :  { %2507 = vmatmul.mubr.bf16.vlgmr.msra.gmra.mrb[12].mxu1 %v2890_v22  ;;  %3342 = vmatpush3.bf16.msra.mxu0 %v3663_v26  ;;  %v3721_v22 = vld [vmem:[%s4657_s1 + $0x570] sm:$0xff]   ;;  %v3725_v26 = vld [vmem:[%s4657_s1 + $0x578] sm:$0xff]  }
  0x85   :  { %3364 = vmatpush3.bf16.msra.mxu1 %v3664_v27  ;;  %3343 = vmatprep.subr.bf16.mxu0 %v3665_v28  ;;  %v3726_v27 = vld [vmem:[%s4657_s1 + $0x5f8] sm:$0xff]  }
  0x86   :  { %3365 = vmatprep.subr.bf16.mxu1 %v3666_v29  ;;  %2546 = vmatprep.mubr.bf16.mxu0 %v2893_v58  ;;  %v3727_v28 = vld [vmem:[%s4657_s1 + $0x538] sm:$0xff]   ;;  %v3755_v58 = vld [vmem:[%s4657_s1 + $0x628] sm:$0xff]  }
  0x87   :  { %2586 = vmatprep.mubr.bf16.mxu1 %v2895_v61  ;;  %v3728_v29 = vld [vmem:[%s4657_s1 + $0x5b8] sm:$0xff]   ;;  %v3758_v61 = vld [vmem:[%s4657_s1 + $0x6f0] sm:$0xff]  }
  0x88   :  { %3344 = vmatpush3.bf16.msra.mxu0 %v3667_v30  ;;  %v28_v30 = vld [vmem:[%s4658_s0 + $0x50] sm:$0xff] }
  0x89   :  { %3366 = vmatpush3.bf16.msra.mxu1 %v3668_v31  ;;  %3345 = vmatprep.subr.bf16.mxu0 %v3669_v32  ;;  %v29_v31 = vld [vmem:[%s4658_s0 + $0x58] sm:$0xff]  ;;  %v2896_v32 = vcombine.low %v28_v30, %v28_v30 }
  0x8a   :  { %3367 = vmatprep.subr.bf16.mxu1 %v3670_v33  ;;  %v2897_v33 = vcombine.high %v28_v30, %v28_v30  ;;  %v3788_v30 = vld [vmem:[%s4657_s1 + $0x7a0] sm:$0xff]  }
  0x8c   :  { %3346 = vmatpush3.bf16.msra.mxu0 %v3671_v34  ;;  %v2898_v34 = vcombine.low %v29_v31, %v29_v31 }
  0x8d   :  { %3368 = vmatpush3.bf16.msra.mxu1 %v3672_v35  ;;  %3347 = vmatprep.subr.bf16.mxu0 %v3673_v36  ;;  %v2899_v35 = vcombine.high %v29_v31, %v29_v31  ;;  %v3733_v36 = vld [vmem:[%s4657_s1 + $0x640] sm:$0xff]  }
  0x8e   :  { %3369 = vmatprep.subr.bf16.mxu1 %v3674_v37  ;;  %v3734_v37 = vld [vmem:[%s4657_s1 + $0x6c0] sm:$0xff]  }
  0x90   :  { %3348 = vmatpush3.bf16.msra.mxu0 %v3675_v38  ;;  %v3735_v38 = vld [vmem:[%s4657_s1 + $0x600] sm:$0xff]  }
  0x91   :  { %3370 = vmatpush3.bf16.msra.mxu1 %v3676_v39  ;;  %3349 = vmatprep.subr.bf16.mxu0 %v3677_v40  ;;  %v3736_v39 = vld [vmem:[%s4657_s1 + $0x680] sm:$0xff]   ;;  %v3737_v40 = vld [vmem:[%s4657_s1 + $0x648] sm:$0xff]  }
  0x92   :  { %3371 = vmatprep.subr.bf16.mxu1 %v3678_v41  ;;  %v3738_v41 = vld [vmem:[%s4657_s1 + $0x6c8] sm:$0xff]  }
  0x94   :  { %3350 = vmatpush3.bf16.msra.mxu0 %v3679_v42  ;;  %v3739_v42 = vld [vmem:[%s4657_s1 + $0x608] sm:$0xff]  }
  0x95   :  { %3372 = vmatpush3.bf16.msra.mxu1 %v3680_v43  ;;  %3351 = vmatprep.subr.bf16.mxu0 %v3681_v44  ;;  %v3740_v43 = vld [vmem:[%s4657_s1 + $0x688] sm:$0xff]   ;;  %v3741_v44 = vld [vmem:[%s4657_s1 + $0x650] sm:$0xff]  }
  0x96   :  { %3373 = vmatprep.subr.bf16.mxu1 %v3682_v45  ;;  %v3742_v45 = vld [vmem:[%s4657_s1 + $0x6d0] sm:$0xff]  }
  0x98   :  { %3352 = vmatpush3.bf16.msra.mxu0 %v3683_v46  ;;  %v3743_v46 = vld [vmem:[%s4657_s1 + $0x610] sm:$0xff]  }
  0x99   :  { %3374 = vmatpush3.bf16.msra.mxu1 %v3684_v47  ;;  %3353 = vmatprep.subr.bf16.mxu0 %v3685_v48  ;;  %v3744_v47 = vld [vmem:[%s4657_s1 + $0x690] sm:$0xff]   ;;  %v3745_v48 = vld [vmem:[%s4657_s1 + $0x658] sm:$0xff]  }
  0x9a   :  { %3375 = vmatprep.subr.bf16.mxu1 %v3686_v49  ;;  %v3746_v49 = vld [vmem:[%s4657_s1 + $0x6d8] sm:$0xff]  }
  0x9c   :  { %3354 = vmatpush3.bf16.msra.mxu0 %v3687_v50  ;;  %v3747_v50 = vld [vmem:[%s4657_s1 + $0x618] sm:$0xff]  }
  0x9d   :  { %3376 = vmatpush3.bf16.msra.mxu1 %v3688_v51  ;;  %3355 = vmatprep.subr.bf16.mxu0 %v3689_v52  ;;  %v3748_v51 = vld [vmem:[%s4657_s1 + $0x698] sm:$0xff]   ;;  %v3749_v52 = vld [vmem:[%s4657_s1 + $0x660] sm:$0xff]  }
  0x9e   :  { %3377 = vmatprep.subr.bf16.mxu1 %v3690_v53  ;;  %v3750_v53 = vld [vmem:[%s4657_s1 + $0x6e0] sm:$0xff]  }
  0xa0   :  { %3356 = vmatpush3.bf16.msra.mxu0 %v3691_v54  ;;  %v3751_v54 = vld [vmem:[%s4657_s1 + $0x620] sm:$0xff]  }
  0xa1   :  { %3378 = vmatpush3.bf16.msra.mxu1 %v3692_v55  ;;  %3385 = vmatprep.subr.bf16.mxu0 %v3697_v62  ;;  %v3752_v55 = vld [vmem:[%s4657_s1 + $0x6a0] sm:$0xff]   ;;  %v3759_v62 = vld [vmem:[%s4657_s1 + $0x630] sm:$0xff]  }
  0xa2   :  { %3407 = vmatprep.subr.bf16.mxu1 %v3698_v63  ;;  %v3760_v63 = vld [vmem:[%s4657_s1 + $0x6b0] sm:$0xff]  }
  0xa3   :  { %2547 = vmatmul.mubr.bf16.vlgmr.msra.gmra.mrb[16].mxu0 %v2892_v57  ;;  %v3754_v57 = vld [vmem:[%s4657_s1 + $0x6e8] sm:$0xff]  }
  0xa4   :  { %2587 = vmatmul.mubr.bf16.vlgmr.msra.gmra.mrb[16].mxu1 %v2894_v60  ;;  %3386 = vmatpush3.bf16.msra.mxu0 %v3699_v0  ;;  %v3757_v60 = vld [vmem:[%s4657_s1 + $0x670] sm:$0xff]   ;;  %v3761_v0 = vld [vmem:[%s4657_s1 + $0x678] sm:$0xff]  }
  0xa5   :  { %3408 = vmatpush3.bf16.msra.mxu1 %v3700_v1  ;;  %3387 = vmatprep.subr.bf16.mxu0 %v3701_v2  ;;  %v3762_v1 = vld [vmem:[%s4657_s1 + $0x6f8] sm:$0xff]  }
  0xa6   :  { %3409 = vmatprep.subr.bf16.mxu1 %v3702_v3  ;;  %2626 = vmatprep.mubr.bf16.mxu0 %v2897_v33  ;;  %v3763_v2 = vld [vmem:[%s4657_s1 + $0x638] sm:$0xff]   ;;  %v3789_v33 = vld [vmem:[%s4657_s1 + $0x768] sm:$0xff]  }
  0xa7   :  { %2666 = vmatprep.mubr.bf16.mxu1 %v2899_v35  ;;  %v3764_v3 = vld [vmem:[%s4657_s1 + $0x6b8] sm:$0xff]  }
  0xa8   :  { %3388 = vmatpush3.bf16.msra.mxu0 %v3703_v4  ;;  %v30_v4 = vld [vmem:[%s4658_s0 + $0x60] sm:$0xff] }
  0xa9   :  { %3410 = vmatpush3.bf16.msra.mxu1 %v3704_v5  ;;  %3389 = vmatprep.subr.bf16.mxu0 %v3705_v6  ;;  %v31_v5 = vld [vmem:[%s4658_s0 + $0x68] sm:$0xff]  ;;  %v2900_v6 = vcombine.low %v30_v4, %v30_v4 }
  0xaa   :  { %3411 = vmatprep.subr.bf16.mxu1 %v3706_v7  ;;  %v2901_v7 = vcombine.high %v30_v4, %v30_v4 }
  0xac   :  { %3390 = vmatpush3.bf16.msra.mxu0 %v3707_v8  ;;  %v2902_v8 = vcombine.low %v31_v5, %v31_v5 }
  0xad   :  { %3412 = vmatpush3.bf16.msra.mxu1 %v3708_v9  ;;  %3391 = vmatprep.subr.bf16.mxu0 %v3709_v10  ;;  %v3769_v9 = vld [vmem:[%s4657_s1 + $0x740] sm:$0xff]   ;;  %v2903_v10 = vcombine.high %v31_v5, %v31_v5 }
  0xae   :  { %3413 = vmatprep.subr.bf16.mxu1 %v3710_v11  ;;  %v3770_v11 = vld [vmem:[%s4657_s1 + $0x7c0] sm:$0xff]  }
  0xb0   :  { %3392 = vmatpush3.bf16.msra.mxu0 %v3711_v12  ;;  %v3771_v12 = vld [vmem:[%s4657_s1 + $0x700] sm:$0xff]  }
  0xb1   :  { %3414 = vmatpush3.bf16.msra.mxu1 %v3712_v13  ;;  %3393 = vmatprep.subr.bf16.mxu0 %v3713_v14  ;;  %v3772_v13 = vld [vmem:[%s4657_s1 + $0x780] sm:$0xff]   ;;  %v3773_v14 = vld [vmem:[%s4657_s1 + $0x748] sm:$0xff]  }
  0xb2   :  { %3415 = vmatprep.subr.bf16.mxu1 %v3714_v15  ;;  %v3774_v15 = vld [vmem:[%s4657_s1 + $0x7c8] sm:$0xff]  }
  0xb4   :  { %3394 = vmatpush3.bf16.msra.mxu0 %v3715_v16  ;;  %v3775_v16 = vld [vmem:[%s4657_s1 + $0x708] sm:$0xff]  }
  0xb5   :  { %3416 = vmatpush3.bf16.msra.mxu1 %v3716_v17  ;;  %3395 = vmatprep.subr.bf16.mxu0 %v3717_v18  ;;  %v3776_v17 = vld [vmem:[%s4657_s1 + $0x788] sm:$0xff]   ;;  %v3777_v18 = vld [vmem:[%s4657_s1 + $0x750] sm:$0xff]  }
  0xb6   :  { %3417 = vmatprep.subr.bf16.mxu1 %v3718_v19  ;;  %v3778_v19 = vld [vmem:[%s4657_s1 + $0x7d0] sm:$0xff]  }
  0xb8   :  { %3396 = vmatpush3.bf16.msra.mxu0 %v3719_v20  ;;  %v3779_v20 = vld [vmem:[%s4657_s1 + $0x710] sm:$0xff]  }
  0xb9   :  { %3418 = vmatpush3.bf16.msra.mxu1 %v3720_v21  ;;  %3397 = vmatprep.subr.bf16.mxu0 %v3721_v22  ;;  %v3780_v21 = vld [vmem:[%s4657_s1 + $0x790] sm:$0xff]   ;;  %v3781_v22 = vld [vmem:[%s4657_s1 + $0x758] sm:$0xff]  }
  0xba   :  { %3419 = vmatprep.subr.bf16.mxu1 %v3722_v23  ;;  %v3782_v23 = vld [vmem:[%s4657_s1 + $0x7d8] sm:$0xff]  }
  0xbc   :  { %3398 = vmatpush3.bf16.msra.mxu0 %v3723_v24  ;;  %v3783_v24 = vld [vmem:[%s4657_s1 + $0x718] sm:$0xff]  }
  0xbd   :  { %3420 = vmatpush3.bf16.msra.mxu1 %v3724_v25  ;;  %3399 = vmatprep.subr.bf16.mxu0 %v3725_v26  ;;  %v3784_v25 = vld [vmem:[%s4657_s1 + $0x798] sm:$0xff]   ;;  %v3785_v26 = vld [vmem:[%s4657_s1 + $0x760] sm:$0xff]  }
  0xbe   :  { %3421 = vmatprep.subr.bf16.mxu1 %v3726_v27  ;;  %v3786_v27 = vld [vmem:[%s4657_s1 + $0x7e0] sm:$0xff]  }
  0xc0   :  { %3400 = vmatpush3.bf16.msra.mxu0 %v3727_v28  ;;  %v3787_v28 = vld [vmem:[%s4657_s1 + $0x720] sm:$0xff]  }
  0xc1   :  { %3422 = vmatpush3.bf16.msra.mxu1 %v3728_v29  ;;  %3429 = vmatprep.subr.bf16.mxu0 %v3733_v36  ;;  %v3790_v36 = vld [vmem:[%s4657_s1 + $0x7e8] sm:$0xff]  }
  0xc2   :  { %3451 = vmatprep.subr.bf16.mxu1 %v3734_v37 }
  0xc3   :  { %2627 = vmatmul.mubr.bf16.vlgmr.msra.gmra.mrb[20].mxu0 %v2896_v32 }
  0xc4   :  { %2667 = vmatmul.mubr.bf16.vlgmr.msra.gmra.mrb[20].mxu1 %v2898_v34  ;;  %3430 = vmatpush3.bf16.msra.mxu0 %v3735_v38 }
  0xc5   :  { %3452 = vmatpush3.bf16.msra.mxu1 %v3736_v39  ;;  %3431 = vmatprep.subr.bf16.mxu0 %v3737_v40  ;;  %v3791_v40 = vld [vmem:[%s4657_s1 + $0x728] sm:$0xff]  }
  0xc6   :  { %3453 = vmatprep.subr.bf16.mxu1 %v3738_v41  ;;  %2706 = vmatprep.mubr.bf16.mxu0 %v2901_v7 }
  0xc7   :  { %2746 = vmatprep.mubr.bf16.mxu1 %v2903_v10 }
  0xc8   :  { %3432 = vmatpush3.bf16.msra.mxu0 %v3739_v42 }
  0xc9   :  { %3454 = vmatpush3.bf16.msra.mxu1 %v3740_v43  ;;  %3433 = vmatprep.subr.bf16.mxu0 %v3741_v44  ;;  %v3792_v43 = vld [vmem:[%s4657_s1 + $0x7a8] sm:$0xff]  }
  0xca   :  { %3455 = vmatprep.subr.bf16.mxu1 %v3742_v45  ;;  %v3793_v45 = vld [vmem:[%s4657_s1 + $0x770] sm:$0xff]  }
  0xcc   :  { %3434 = vmatpush3.bf16.msra.mxu0 %v3743_v46  ;;  %v3794_v46 = vld [vmem:[%s4657_s1 + $0x7f0] sm:$0xff]  }
  0xcd   :  { %3456 = vmatpush3.bf16.msra.mxu1 %v3744_v47  ;;  %3435 = vmatprep.subr.bf16.mxu0 %v3745_v48  ;;  %v3795_v47 = vld [vmem:[%s4657_s1 + $0x730] sm:$0xff]  }
  0xce   :  { %3457 = vmatprep.subr.bf16.mxu1 %v3746_v49  ;;  %v3796_v48 = vld [vmem:[%s4657_s1 + $0x7b0] sm:$0xff]   ;;  %v3797_v49 = vld [vmem:[%s4657_s1 + $0x778] sm:$0xff]  }
  0xd0   :  { %3436 = vmatpush3.bf16.msra.mxu0 %v3747_v50  ;;  %v3798_v50 = vld [vmem:[%s4657_s1 + $0x7f8] sm:$0xff]  }
  0xd1   :  { %3458 = vmatpush3.bf16.msra.mxu1 %v3748_v51  ;;  %3437 = vmatprep.subr.bf16.mxu0 %v3749_v52  ;;  %v3799_v51 = vld [vmem:[%s4657_s1 + $0x738] sm:$0xff]  }
  0xd2   :  { %3459 = vmatprep.subr.bf16.mxu1 %v3750_v53  ;;  %v3800_v52 = vld [vmem:[%s4657_s1 + $0x7b8] sm:$0xff]   ;;  %v32_v53 = vld [vmem:[%s4658_s0 + $0x70] sm:$0xff] }
  0xd4   :  { %3438 = vmatpush3.bf16.msra.mxu0 %v3751_v54  ;;  %v33_v54 = vld [vmem:[%s4658_s0 + $0x78] sm:$0xff] }
  0xd5   :  { %3460 = vmatpush3.bf16.msra.mxu1 %v3752_v55  ;;  %3439 = vmatprep.subr.bf16.mxu0 %v3753_v56  ;;  %v2904_v55 = vcombine.low %v32_v53, %v32_v53  ;;  %v2905_v56 = vcombine.high %v32_v53, %v32_v53 }
  0xd6   :  { %3461 = vmatprep.subr.bf16.mxu1 %v3754_v57  ;;  %v2906_v57 = vcombine.low %v33_v54, %v33_v54 }
  0xd8   :  { %3440 = vmatpush3.bf16.msra.mxu0 %v3755_v58  ;;  %v2907_v58 = vcombine.high %v33_v54, %v33_v54 }
  0xd9   :  { %3462 = vmatpush3.bf16.msra.mxu1 %v3756_v59  ;;  %3441 = vmatprep.subr.bf16.mxu0 %v3757_v60 }
  0xda   :  { %3463 = vmatprep.subr.bf16.mxu1 %v3758_v61 }
  0xdc   :  { %3442 = vmatpush3.bf16.msra.mxu0 %v3759_v62 }
  0xdd   :  { %3464 = vmatpush3.bf16.msra.mxu1 %v3760_v63  ;;  %3443 = vmatprep.subr.bf16.mxu0 %v3761_v0 }
  0xde   :  { %3465 = vmatprep.subr.bf16.mxu1 %v3762_v1 }
  0xe0   :  { %3444 = vmatpush3.bf16.msra.mxu0 %v3763_v2 }
  0xe1   :  { %3466 = vmatpush3.bf16.msra.mxu1 %v3764_v3  ;;  %3473 = vmatprep.subr.bf16.mxu0 %v3769_v9 }
  0xe2   :  { %3495 = vmatprep.subr.bf16.mxu1 %v3770_v11 }
  0xe3   :  { %2707 = vmatmul.mubr.bf16.vlgmr.msra.gmra.mrb[24].mxu0 %v2900_v6 }
  0xe4   :  { %2747 = vmatmul.mubr.bf16.vlgmr.msra.gmra.mrb[24].mxu1 %v2902_v8  ;;  %3474 = vmatpush3.bf16.msra.mxu0 %v3771_v12 }
  0xe5   :  { %3496 = vmatpush3.bf16.msra.mxu1 %v3772_v13  ;;  %3475 = vmatprep.subr.bf16.mxu0 %v3773_v14 }
  0xe6   :  { %3497 = vmatprep.subr.bf16.mxu1 %v3774_v15  ;;  %2786 = vmatprep.mubr.bf16.mxu0 %v2905_v56 }
  0xe7   :  { %2826 = vmatprep.mubr.bf16.mxu1 %v2907_v58 }
  0xe8   :  { %3476 = vmatpush3.bf16.msra.mxu0 %v3775_v16 }
  0xe9   :  { %3498 = vmatpush3.bf16.msra.mxu1 %v3776_v17  ;;  %3477 = vmatprep.subr.bf16.mxu0 %v3777_v18 }
  0xea   :  { %3499 = vmatprep.subr.bf16.mxu1 %v3778_v19 }
  0xec   :  { %3478 = vmatpush3.bf16.msra.mxu0 %v3779_v20 }
  0xed   :  { %3500 = vmatpush3.bf16.msra.mxu1 %v3780_v21  ;;  %3479 = vmatprep.subr.bf16.mxu0 %v3781_v22 }
  0xee   :  { %3501 = vmatprep.subr.bf16.mxu1 %v3782_v23 }
  0xf0   :  { %3480 = vmatpush3.bf16.msra.mxu0 %v3783_v24 }
  0xf1   :  { %3502 = vmatpush3.bf16.msra.mxu1 %v3784_v25  ;;  %3481 = vmatprep.subr.bf16.mxu0 %v3785_v26 }
  0xf2   :  { %3503 = vmatprep.subr.bf16.mxu1 %v3786_v27 }
  0xf4   :  { %3482 = vmatpush3.bf16.msra.mxu0 %v3787_v28 }
  0xf5   :  { %3504 = vmatpush3.bf16.msra.mxu1 %v3788_v30  ;;  %3483 = vmatprep.subr.bf16.mxu0 %v3789_v33 }
  0xf6   :  { %v3181_v29 = vpop.f32.mrb[0].mxu0  ;;  %3505 = vmatprep.subr.bf16.mxu1 %v3790_v36 }
  0xf7   :  { %v3203_v31 = vpop.f32.mrb[0].mxu1  ;;  %v3182_v32 = vpop.f32.mrb[1].mxu0 }
  0xf8   :  { %v3183_v34 = vadd.f32 %v3182_v32, %v3181_v29  ;;  %v3204_v35 = vpop.f32.mrb[1].mxu1  ;;  %v3184_v38 = vpop.f32.mrb[2].mxu0  ;;  %3484 = vmatpush3.bf16.msra.mxu0 %v3791_v40 }
  0xf9   :  { %v3205_v37 = vadd.f32 %v3204_v35, %v3203_v31  ;;  %v3206_v39 = vpop.f32.mrb[2].mxu1  ;;  %v3185_v41 = vpop.f32.mrb[3].mxu0  ;;  %3506 = vmatpush3.bf16.msra.mxu1 %v3792_v43  ;;  %3485 = vmatprep.subr.bf16.mxu0 %v3793_v45 }
  0xfa   :  { %v3207_v44 = vpop.f32.mrb[3].mxu1  ;;  %3507 = vmatprep.subr.bf16.mxu1 %v3794_v46 }
  0xfb   :  { %v2269_v42 = vadd.f32 %v3205_v37, %v3183_v34 }
  0xfc   :  { %3486 = vmatpush3.bf16.msra.mxu0 %v3795_v47 }
  0xfd   :  { %3508 = vmatpush3.bf16.msra.mxu1 %v3796_v48  ;;  %3487 = vmatprep.subr.bf16.mxu0 %v3797_v49 }
  0xfe   :  { %3509 = vmatprep.subr.bf16.mxu1 %v3798_v50 }
 0x100   :  { %3488 = vmatpush3.bf16.msra.mxu0 %v3799_v51 }
 0x101   :  { %3510 = vmatpush3.bf16.msra.mxu1 %v3800_v52 }
 0x103   :  { %2787 = vmatmul.mubr.bf16.vlgmr.msra.gmra.mrb[28].mxu0 %v2904_v55 }
 0x104   :  { %2827 = vmatmul.mubr.bf16.vlgmr.msra.gmra.mrb[28].mxu1 %v2906_v57 }
 0x116   :  { %v3225_v59 = vpop.f32.mrb[4].mxu0 }
 0x117   :  { %v3247_v60 = vpop.f32.mrb[4].mxu1  ;;  %v3226_v61 = vpop.f32.mrb[5].mxu0 }
 0x118   :  { %v3248_v62 = vpop.f32.mrb[5].mxu1  ;;  %v3227_v63 = vadd.f32 %v3226_v61, %v3225_v59  ;;  %v3228_v1 = vpop.f32.mrb[6].mxu0 }
 0x119   :  { %v3249_v0 = vadd.f32 %v3248_v62, %v3247_v60  ;;  %v3250_v2 = vpop.f32.mrb[6].mxu1  ;;  %v3229_v3 = vpop.f32.mrb[7].mxu0 }
 0x11a   :  { %v3251_v4 = vpop.f32.mrb[7].mxu1  ;;  %v2309_v5 = vadd.f32 %v3227_v63, %v2269_v42 }
 0x11c   :  { %v2349_v6 = vadd.f32 %v3249_v0, %v2309_v5 }
 0x136   :  { %v3269_v7 = vpop.f32.mrb[8].mxu0 }
 0x137   :  { %v3291_v8 = vpop.f32.mrb[8].mxu1  ;;  %v3270_v9 = vpop.f32.mrb[9].mxu0 }
 0x138   :  { %v3271_v10 = vadd.f32 %v3270_v9, %v3269_v7  ;;  %v3292_v11 = vpop.f32.mrb[9].mxu1  ;;  %v3272_v12 = vpop.f32.mrb[10].mxu0 }
 0x139   :  { %v3293_v13 = vadd.f32 %v3292_v11, %v3291_v8  ;;  %v3294_v14 = vpop.f32.mrb[10].mxu1  ;;  %v3273_v15 = vpop.f32.mrb[11].mxu0 }
 0x13a   :  { %v2389_v16 = vadd.f32 %v3271_v10, %v2349_v6  ;;  %v3295_v17 = vpop.f32.mrb[11].mxu1 }
 0x13c   :  { %v2429_v18 = vadd.f32 %v3293_v13, %v2389_v16 }
 0x156   :  { %v3313_v19 = vpop.f32.mrb[12].mxu0 }
 0x157   :  { %v3335_v20 = vpop.f32.mrb[12].mxu1  ;;  %v3314_v21 = vpop.f32.mrb[13].mxu0 }
 0x158   :  { %v3315_v22 = vadd.f32 %v3314_v21, %v3313_v19  ;;  %v3336_v23 = vpop.f32.mrb[13].mxu1  ;;  %v3316_v24 = vpop.f32.mrb[14].mxu0 }
 0x159   :  { %v3337_v25 = vadd.f32 %v3336_v23, %v3335_v20  ;;  %v3338_v26 = vpop.f32.mrb[14].mxu1  ;;  %v3317_v27 = vpop.f32.mrb[15].mxu0 }
 0x15a   :  { %v2469_v28 = vadd.f32 %v3315_v22, %v2429_v18  ;;  %v3339_v29 = vpop.f32.mrb[15].mxu1 }
 0x15c   :  { %v2509_v30 = vadd.f32 %v3337_v25, %v2469_v28 }
 0x176   :  { %v3357_v31 = vpop.f32.mrb[16].mxu0 }
 0x177   :  { %v3379_v32 = vpop.f32.mrb[16].mxu1  ;;  %v3358_v33 = vpop.f32.mrb[17].mxu0 }
 0x178   :  { %v3380_v34 = vpop.f32.mrb[17].mxu1  ;;  %v3359_v35 = vadd.f32 %v3358_v33, %v3357_v31  ;;  %v3360_v37 = vpop.f32.mrb[18].mxu0 }
 0x179   :  { %v3381_v36 = vadd.f32 %v3380_v34, %v3379_v32  ;;  %v3382_v38 = vpop.f32.mrb[18].mxu1  ;;  %v3361_v39 = vpop.f32.mrb[19].mxu0  ;;  %v2856_v32 = vlaneseq  ;;  %v2851_v34 = vld [vmem:[%s4659_s2] sm:$0x1] }
 0x17a   :  { %v3383_v40 = vpop.f32.mrb[19].mxu1  ;;  %v2549_v41 = vadd.f32 %v3359_v35, %v2509_v30  ;;  %v3164_v39 = vld [vmem:[%s4660_s3] ss:$0 sm:$0xff] }
 0x17b   :  { %v2857_v33 = vshrl.u32 %v2856_v32, 7 }
 0x17c   :  { %v2589_v42 = vadd.f32 %v3381_v36, %v2549_v41 }
 0x17d   :  { %v2858_v35 = vsub.s32 0, %v2857_v33 }
 0x196   :  { %v3401_v43 = vpop.f32.mrb[20].mxu0 }
 0x197   :  { %v3423_v44 = vpop.f32.mrb[20].mxu1  ;;  %v3402_v45 = vpop.f32.mrb[21].mxu0 }
 0x198   :  { %v3403_v46 = vadd.f32 %v3402_v45, %v3401_v43  ;;  %v3424_v47 = vpop.f32.mrb[21].mxu1  ;;  %v3404_v48 = vpop.f32.mrb[22].mxu0 }
 0x199   :  { %v3425_v49 = vadd.f32 %v3424_v47, %v3423_v44  ;;  %v3426_v50 = vpop.f32.mrb[22].mxu1  ;;  %v3405_v51 = vpop.f32.mrb[23].mxu0 }
 0x19a   :  { %v2629_v52 = vadd.f32 %v3403_v46, %v2589_v42  ;;  %v3427_v53 = vpop.f32.mrb[23].mxu1 }
 0x19c   :  { %v2669_v54 = vadd.f32 %v3425_v49, %v2629_v52 }
 0x1b6   :  { %v3445_v55 = vpop.f32.mrb[24].mxu0 }
 0x1b7   :  { %v3467_v56 = vpop.f32.mrb[24].mxu1  ;;  %v3446_v57 = vpop.f32.mrb[25].mxu0 }
 0x1b8   :  { %v3447_v58 = vadd.f32 %v3446_v57, %v3445_v55  ;;  %v3468_v59 = vpop.f32.mrb[25].mxu1  ;;  %v3448_v60 = vpop.f32.mrb[26].mxu0 }
 0x1b9   :  { %v3469_v61 = vadd.f32 %v3468_v59, %v3467_v56  ;;  %v3470_v62 = vpop.f32.mrb[26].mxu1  ;;  %v3449_v63 = vpop.f32.mrb[27].mxu0 }
 0x1ba   :  { %v2709_v0 = vadd.f32 %v3447_v58, %v2669_v54  ;;  %v3471_v1 = vpop.f32.mrb[27].mxu1 }
 0x1bc   :  { %v2749_v2 = vadd.f32 %v3469_v61, %v2709_v0 }
 0x1d6   :  { %v3489_v3 = vpop.f32.mrb[28].mxu0 }
 0x1d7   :  { %v3511_v4 = vpop.f32.mrb[28].mxu1  ;;  %v3490_v5 = vpop.f32.mrb[29].mxu0 }
 0x1d8   :  { %v3491_v6 = vadd.f32 %v3490_v5, %v3489_v3  ;;  %v3512_v7 = vpop.f32.mrb[29].mxu1  ;;  %v3492_v8 = vpop.f32.mrb[30].mxu0 }
 0x1d9   :  { %v3513_v9 = vadd.f32 %v3512_v7, %v3511_v4  ;;  %v3514_v10 = vpop.f32.mrb[30].mxu1  ;;  %v3493_v11 = vpop.f32.mrb[31].mxu0 }
 0x1da   :  { %v2789_v12 = vadd.f32 %v3491_v6, %v2749_v2  ;;  %v3515_v13 = vpop.f32.mrb[31].mxu1 }
 0x1dc   :  { %v2829_v14 = vadd.f32 %v3513_v9, %v2789_v12 }
 0x1de   :  { %v2834_v15 = vrot.slane %v2829_v14, 4 }
 0x1e0   :  { %v2835_v16 = vadd.f32 %v2834_v15, %v2829_v14 }
 0x1e2   :  { %v2836_v17 = vrot.slane %v2835_v16, 2 }
 0x1e4   :  { %v2837_v18 = vadd.f32 %v2836_v17, %v2835_v16 }
 0x1e6   :  { %v2838_v19 = vrot.slane %v2837_v18, 1 }
 0x1e8   :  { %v2839_v20 = vadd.f32 %v2838_v19, %v2837_v18 }
 0x1ea   :  { %v2841_v21 = vmul.f32 0.125, %v2839_v20 }
 0x1ec   :  { %v2842_v22 = vsub.f32 %v2829_v14, %v2841_v21 }
 0x1ee   :  { %v2843_v23 = vmul.f32 %v2842_v22, %v2842_v22 }
 0x1f0   :  { %v2844_v24 = vrot.slane %v2843_v23, 4 }
 0x1f2   :  { %v2845_v25 = vadd.f32 %v2844_v24, %v2843_v23 }
 0x1f4   :  { %v2846_v26 = vrot.slane %v2845_v25, 2 }
 0x1f6   :  { %v2847_v27 = vadd.f32 %v2846_v26, %v2845_v25 }
 0x1f8   :  { %v2848_v28 = vrot.slane %v2847_v27, 1 }
 0x1fa   :  { %v2849_v29 = vadd.f32 %v2848_v28, %v2847_v27 }
 0x1fc   :  { %v2850_v30 = vmul.f32 0.125, %v2849_v29 }
 0x1fe   :  { %v2852_v31 = vadd.f32 1e-05, %v2850_v30 }
 0x200   :  { %3805 = vrsqrt.f32 %v2852_v31 }
 0x20a   :  { %v3806_v36 = vpop.eup %3805 }
 0x20b   :  { %v2854_v37 = vmul.f32 %v3806_v36, %v2851_v34 }
 0x20d   :  { %v2859_v38 = vrot.slane %v2854_v37, %v2858_v35 }
 0x20f   :  { %v2861_v40 = vmul.f32 %v2859_v38, %v2842_v22 }
 0x211   :  { %v2869_v41 = vadd.f32 %v3164_v39, %v2861_v40 }
 0x213   :  { %v2870_v42 = vmax.f32 %v2869_v41, 0.0 }
 0x215   :  { %2871 = vst [vmem:[%s4661_s4] sm:$0xff] %v2870_v42 }

// kernel: cvae_forward.17
= control target key start
LH: loop header
LB: loop body
LE: loop exit
PB: predicated region body
PF: predicated region fallthrough
CT: control target
= control target key end

     0   :  { %vm1626_vm0 = vcmask 523264   ;;  %s2751_s1 = inlined_call_operand.vmem [shape: bf16[2048,64], index: 1, kind: input, shape index: {}]   ;;  %s2752_s0 = inlined_call_operand.vmem [shape: bf16[32,2048], index: 0, kind: input, shape index: {}]   ;;  %s2753_s2 = inlined_call_operand.vmem [shape: f32[1,64], index: 2, kind: input, shape index: {}]   ;;  %s2754_s3 = inlined_call_operand.vmem [shape: f32[1,64], index: 3, kind: input, shape index: {}]   ;;  %s2755_s4 = inlined_call_operand.vmem [shape: f32[32,64], index: 4, kind: output, shape index: {}]  }
   0x1   :  { %v2086_v0 = vld [vmem:[%s2751_s1 + $0x40] sm:$0xff]   ;;  %v2090_v4 = vld [vmem:[%s2751_s1 + $0x48] sm:$0xff]   ;;  %v2094_v8 = vld [vmem:[%s2751_s1 + $0x50] sm:$0xff]  }
   0x2   :  { %v2087_v1 = vld [vmem:[%s2751_s1 + $0xc0] sm:$0xff]   ;;  %1862 = vmatprep.subr.bf16.mxu0 %v2086_v0  ;;  %v2091_v5 = vld [vmem:[%s2751_s1 + $0xc8] sm:$0xff]   ;;  %v2095_v9 = vld [vmem:[%s2751_s1 + $0xd0] sm:$0xff]  }
   0x3   :  { %v2088_v2 = vld [vmem:[%s2751_s1] sm:$0xff]   ;;  %1890 = vmatprep.subr.bf16.mxu1 %v2087_v1  ;;  %v2092_v6 = vld [vmem:[%s2751_s1 + $0x8] sm:$0xff]   ;;  %v2096_v10 = vld [vmem:[%s2751_s1 + $0x10] sm:$0xff]  }
   0x4   :  { %v2089_v3 = vld [vmem:[%s2751_s1 + $0x80] sm:$0xff]   ;;  %1863 = vmatpush3.bf16.msra.mxu0 %v2088_v2  ;;  %v2093_v7 = vld [vmem:[%s2751_s1 + $0x88] sm:$0xff]   ;;  %v2097_v11 = vld [vmem:[%s2751_s1 + $0x90] sm:$0xff]  }
   0x5   :  { %1891 = vmatpush3.bf16.msra.mxu1 %v2089_v3  ;;  %1864 = vmatprep.subr.bf16.mxu0 %v2090_v4  ;;  %v2098_v12 = vld [vmem:[%s2751_s1 + $0x58] sm:$0xff]   ;;  %v2102_v16 = vld [vmem:[%s2751_s1 + $0x60] sm:$0xff]   ;;  %v2106_v20 = vld [vmem:[%s2751_s1 + $0x68] sm:$0xff]  }
   0x6   :  { %1892 = vmatprep.subr.bf16.mxu1 %v2091_v5  ;;  %v2099_v13 = vld [vmem:[%s2751_s1 + $0xd8] sm:$0xff]   ;;  %v2103_v17 = vld [vmem:[%s2751_s1 + $0xe0] sm:$0xff]   ;;  %v2107_v21 = vld [vmem:[%s2751_s1 + $0xe8] sm:$0xff]  }
   0x7   :  { %v2100_v14 = vld [vmem:[%s2751_s1 + $0x18] sm:$0xff]   ;;  %v2104_v18 = vld [vmem:[%s2751_s1 + $0x20] sm:$0xff]   ;;  %v2108_v22 = vld [vmem:[%s2751_s1 + $0x28] sm:$0xff]  }
   0x8   :  { %1865 = vmatpush3.bf16.msra.mxu0 %v2092_v6  ;;  %v2101_v15 = vld [vmem:[%s2751_s1 + $0x98] sm:$0xff]   ;;  %v2105_v19 = vld [vmem:[%s2751_s1 + $0xa0] sm:$0xff]   ;;  %v2109_v23 = vld [vmem:[%s2751_s1 + $0xa8] sm:$0xff]  }
   0x9   :  { %1893 = vmatpush3.bf16.msra.mxu1 %v2093_v7  ;;  %1866 = vmatprep.subr.bf16.mxu0 %v2094_v8  ;;  %v2110_v24 = vld [vmem:[%s2751_s1 + $0x70] sm:$0xff]   ;;  %v2114_v28 = vld [vmem:[%s2751_s1 + $0x78] sm:$0xff]   ;;  %v18_v32 = vld [vmem:[%s2752_s0] sm:$0xff] }
   0xa   :  { %1894 = vmatprep.subr.bf16.mxu1 %v2095_v9  ;;  %v2111_v25 = vld [vmem:[%s2751_s1 + $0xf0] sm:$0xff]   ;;  %v2115_v29 = vld [vmem:[%s2751_s1 + $0xf8] sm:$0xff]   ;;  %v26_v33 = vld [vmem:[%s2752_s0 + $0x40] sm:$0xff] }
   0xb   :  { %v2112_v26 = vld [vmem:[%s2751_s1 + $0x30] sm:$0xff]   ;;  %v2116_v30 = vld [vmem:[%s2751_s1 + $0x38] sm:$0xff]   ;;  %v19_v34 = vld [vmem:[%s2752_s0 + $0x8] sm:$0xff]  ;;  %v1701_v35 = vcombine.low %v18_v32, %v26_v33  ;;  %v1702_v36 = vcombine.high %v18_v32, %v26_v33 }
   0xc   :  { %1867 = vmatpush3.bf16.msra.mxu0 %v2096_v10  ;;  %v2113_v27 = vld [vmem:[%s2751_s1 + $0xb0] sm:$0xff]   ;;  %v2117_v31 = vld [vmem:[%s2751_s1 + $0xb8] sm:$0xff]   ;;  %v27_v37 = vld [vmem:[%s2752_s0 + $0x48] sm:$0xff] }
   0xd   :  { %1895 = vmatpush3.bf16.msra.mxu1 %v2097_v11  ;;  %1868 = vmatprep.subr.bf16.mxu0 %v2098_v12  ;;  %v1703_v38 = vcombine.low %v19_v34, %v27_v37  ;;  %v1704_v39 = vcombine.high %v19_v34, %v27_v37  ;;  %v2118_v40 = vld [vmem:[%s2751_s1 + $0x140] sm:$0xff]   ;;  %v2122_v44 = vld [vmem:[%s2751_s1 + $0x148] sm:$0xff]   ;;  %v2126_v48 = vld [vmem:[%s2751_s1 + $0x150] sm:$0xff]  }
   0xe   :  { %1896 = vmatprep.subr.bf16.mxu1 %v2099_v13  ;;  %1266 = vmatprep.mubr.bf16.mxu0 %v1702_v36  ;;  %v2119_v41 = vld [vmem:[%s2751_s1 + $0x1c0] sm:$0xff]   ;;  %v2123_v45 = vld [vmem:[%s2751_s1 + $0x1c8] sm:$0xff]   ;;  %v2127_v49 = vld [vmem:[%s2751_s1 + $0x1d0] sm:$0xff]  }
   0xf   :  { %1315 = vmatprep.mubr.bf16.mxu1 %v1704_v39  ;;  %v2120_v42 = vld [vmem:[%s2751_s1 + $0x100] sm:$0xff]   ;;  %v2124_v46 = vld [vmem:[%s2751_s1 + $0x108] sm:$0xff]   ;;  %v2128_v50 = vld [vmem:[%s2751_s1 + $0x110] sm:$0xff]  }
  0x10   :  { %1869 = vmatpush3.bf16.msra.mxu0 %v2100_v14  ;;  %v2121_v43 = vld [vmem:[%s2751_s1 + $0x180] sm:$0xff]   ;;  %v2125_v47 = vld [vmem:[%s2751_s1 + $0x188] sm:$0xff]   ;;  %v2129_v51 = vld [vmem:[%s2751_s1 + $0x190] sm:$0xff]  }
  0x11   :  { %1897 = vmatpush3.bf16.msra.mxu1 %v2101_v15  ;;  %1870 = vmatprep.subr.bf16.mxu0 %v2102_v16  ;;  %v2130_v52 = vld [vmem:[%s2751_s1 + $0x158] sm:$0xff]   ;;  %v2134_v56 = vld [vmem:[%s2751_s1 + $0x160] sm:$0xff]   ;;  %v2138_v60 = vld [vmem:[%s2751_s1 + $0x168] sm:$0xff]  }
  0x12   :  { %1898 = vmatprep.subr.bf16.mxu1 %v2103_v17  ;;  %v2131_v53 = vld [vmem:[%s2751_s1 + $0x1d8] sm:$0xff]   ;;  %v2135_v57 = vld [vmem:[%s2751_s1 + $0x1e0] sm:$0xff]   ;;  %v2139_v61 = vld [vmem:[%s2751_s1 + $0x1e8] sm:$0xff]  }
  0x13   :  { %v2132_v54 = vld [vmem:[%s2751_s1 + $0x118] sm:$0xff]   ;;  %v2136_v58 = vld [vmem:[%s2751_s1 + $0x120] sm:$0xff]   ;;  %v35_v1 = vld [vmem:[%s2752_s0 + $0x88] sm:$0xff] }
  0x14   :  { %1871 = vmatpush3.bf16.msra.mxu0 %v2104_v18  ;;  %v2133_v55 = vld [vmem:[%s2751_s1 + $0x198] sm:$0xff]   ;;  %v2137_v59 = vld [vmem:[%s2751_s1 + $0x1a0] sm:$0xff]   ;;  %v43_v2 = vld [vmem:[%s2752_s0 + $0xc8] sm:$0xff] }
  0x15   :  { %1899 = vmatpush3.bf16.msra.mxu1 %v2105_v19  ;;  %1872 = vmatprep.subr.bf16.mxu0 %v2106_v20  ;;  %v34_v62 = vld [vmem:[%s2752_s0 + $0x80] sm:$0xff]  ;;  %v1720_v4 = vcombine.high %v35_v1, %v43_v2  ;;  %v2140_v5 = vld [vmem:[%s2751_s1 + $0x128] sm:$0xff]   ;;  %v1719_v6 = vcombine.low %v35_v1, %v43_v2  ;;  %v2142_v8 = vld [vmem:[%s2751_s1 + $0x170] sm:$0xff]  }
  0x16   :  { %1900 = vmatprep.subr.bf16.mxu1 %v2107_v21  ;;  %v42_v63 = vld [vmem:[%s2752_s0 + $0xc0] sm:$0xff]  ;;  %v2141_v7 = vld [vmem:[%s2751_s1 + $0x1a8] sm:$0xff]   ;;  %v2143_v9 = vld [vmem:[%s2751_s1 + $0x1f0] sm:$0xff]  }
  0x17   :  { %v1718_v0 = vcombine.high %v34_v62, %v42_v63  ;;  %v1717_v3 = vcombine.low %v34_v62, %v42_v63  ;;  %v2144_v10 = vld [vmem:[%s2751_s1 + $0x130] sm:$0xff]   ;;  %v2146_v12 = vld [vmem:[%s2751_s1 + $0x178] sm:$0xff]   ;;  %v30_v1 = vld [vmem:[%s2752_s0 + $0x60] sm:$0xff] }
  0x18   :  { %1873 = vmatpush3.bf16.msra.mxu0 %v2108_v22  ;;  %v2145_v11 = vld [vmem:[%s2751_s1 + $0x1b0] sm:$0xff]   ;;  %v2147_v13 = vld [vmem:[%s2751_s1 + $0x1f8] sm:$0xff]  }
  0x19   :  { %1901 = vmatpush3.bf16.msra.mxu1 %v2109_v23  ;;  %1874 = vmatprep.subr.bf16.mxu0 %v2110_v24  ;;  %v2148_v14 = vld [vmem:[%s2751_s1 + $0x138] sm:$0xff]   ;;  %v20_v16 = vld [vmem:[%s2752_s0 + $0x10] sm:$0xff]  ;;  %v2150_v24 = vld [vmem:[%s2751_s1 + $0x240] sm:$0xff]  }
  0x1a   :  { %1902 = vmatprep.subr.bf16.mxu1 %v2111_v25  ;;  %v2149_v15 = vld [vmem:[%s2751_s1 + $0x1b8] sm:$0xff]   ;;  %v28_v17 = vld [vmem:[%s2752_s0 + $0x50] sm:$0xff]  ;;  %v2151_v25 = vld [vmem:[%s2751_s1 + $0x2c0] sm:$0xff]  }
  0x1b   :  { %v21_v18 = vld [vmem:[%s2752_s0 + $0x18] sm:$0xff]  ;;  %v1705_v20 = vcombine.low %v20_v16, %v28_v17  ;;  %v1706_v21 = vcombine.high %v20_v16, %v28_v17  ;;  %v36_v32 = vld [vmem:[%s2752_s0 + $0x90] sm:$0xff]  ;;  %v38_v16 = vld [vmem:[%s2752_s0 + $0xa0] sm:$0xff] }
  0x1c   :  { %1875 = vmatpush3.bf16.msra.mxu0 %v2112_v26  ;;  %v29_v19 = vld [vmem:[%s2752_s0 + $0x58] sm:$0xff]  ;;  %v2152_v26 = vld [vmem:[%s2751_s1 + $0x200] sm:$0xff]   ;;  %v44_v33 = vld [vmem:[%s2752_s0 + $0xd0] sm:$0xff] }
  0x1d   :  { %1903 = vmatpush3.bf16.msra.mxu1 %v2113_v27  ;;  %1876 = vmatprep.subr.bf16.mxu0 %v2114_v28  ;;  %v1707_v22 = vcombine.low %v21_v18, %v29_v19  ;;  %v1708_v23 = vcombine.high %v21_v18, %v29_v19  ;;  %v2153_v27 = vld [vmem:[%s2751_s1 + $0x280] sm:$0xff]   ;;  %v2154_v28 = vld [vmem:[%s2751_s1 + $0x248] sm:$0xff]   ;;  %v1722_v34 = vcombine.high %v36_v32, %v44_v33  ;;  %v2158_v36 = vld [vmem:[%s2751_s1 + $0x250] sm:$0xff]  }
  0x1e   :  { %1904 = vmatprep.subr.bf16.mxu1 %v2115_v29  ;;  %v2155_v29 = vld [vmem:[%s2751_s1 + $0x2c8] sm:$0xff]   ;;  %v2159_v37 = vld [vmem:[%s2751_s1 + $0x2d0] sm:$0xff]   ;;  %v45_v39 = vld [vmem:[%s2752_s0 + $0xd8] sm:$0xff] }
  0x1f   :  { %v2180_v62 = vld [vmem:[%s2751_s1 + $0x238] sm:$0xff]   ;;  %v46_v17 = vld [vmem:[%s2752_s0 + $0xe0] sm:$0xff] }
  0x20   :  { %1877 = vmatpush3.bf16.msra.mxu0 %v2116_v30  ;;  %v2156_v30 = vld [vmem:[%s2751_s1 + $0x208] sm:$0xff]   ;;  %v2181_v63 = vld [vmem:[%s2751_s1 + $0x2b8] sm:$0xff]   ;;  %v1726_v18 = vcombine.high %v38_v16, %v46_v17  ;;  %v1725_v19 = vcombine.low %v38_v16, %v46_v17 }
  0x21   :  { %1905 = vmatpush3.bf16.msra.mxu1 %v2117_v31  ;;  %1918 = vmatprep.subr.bf16.mxu0 %v2118_v40  ;;  %v2157_v31 = vld [vmem:[%s2751_s1 + $0x288] sm:$0xff]  }
  0x22   :  { %1946 = vmatprep.subr.bf16.mxu1 %v2119_v41  ;;  %v2160_v41 = vld [vmem:[%s2751_s1 + $0x210] sm:$0xff]  }
  0x23   :  { %1267 = vmatmul.mubr.bf16.vlgmr.msra.gmra.mrb[0].mxu0 %v1701_v35  ;;  %v1721_v35 = vcombine.low %v36_v32, %v44_v33  ;;  %v2198_v32 = vld [vmem:[%s2751_s1 + $0x360] sm:$0xff]  }
  0x24   :  { %1316 = vmatmul.mubr.bf16.vlgmr.msra.gmra.mrb[0].mxu1 %v1703_v38  ;;  %1919 = vmatpush3.bf16.msra.mxu0 %v2120_v42  ;;  %v37_v38 = vld [vmem:[%s2752_s0 + $0x98] sm:$0xff]  ;;  %v2199_v33 = vld [vmem:[%s2751_s1 + $0x3e0] sm:$0xff]  }
  0x25   :  { %1947 = vmatpush3.bf16.msra.mxu1 %v2121_v43  ;;  %1920 = vmatprep.subr.bf16.mxu0 %v2122_v44  ;;  %v1724_v40 = vcombine.high %v37_v38, %v45_v39  ;;  %v1723_v42 = vcombine.low %v37_v38, %v45_v39  ;;  %v2161_v43 = vld [vmem:[%s2751_s1 + $0x290] sm:$0xff]   ;;  %v2162_v44 = vld [vmem:[%s2751_s1 + $0x258] sm:$0xff]   ;;  %v2204_v38 = vld [vmem:[%s2751_s1 + $0x328] sm:$0xff]  }
  0x26   :  { %1948 = vmatprep.subr.bf16.mxu1 %v2123_v45  ;;  %1274 = vmatprep.mubr.bf16.mxu0 %v1718_v0  ;;  %v2163_v45 = vld [vmem:[%s2751_s1 + $0x2d8] sm:$0xff]   ;;  %v22_v0 = vld [vmem:[%s2752_s0 + $0x20] sm:$0xff]  ;;  %v2205_v39 = vld [vmem:[%s2751_s1 + $0x3a8] sm:$0xff]  }
  0x27   :  { %1323 = vmatprep.mubr.bf16.mxu1 %v1720_v4  ;;  %v1709_v2 = vcombine.low %v22_v0, %v30_v1  ;;  %v23_v4 = vld [vmem:[%s2752_s0 + $0x28] sm:$0xff] }
  0x28   :  { %1921 = vmatpush3.bf16.msra.mxu0 %v2124_v46  ;;  %v2164_v46 = vld [vmem:[%s2751_s1 + $0x218] sm:$0xff]  }
  0x29   :  { %1949 = vmatpush3.bf16.msra.mxu1 %v2125_v47  ;;  %1922 = vmatprep.subr.bf16.mxu0 %v2126_v48  ;;  %v2165_v47 = vld [vmem:[%s2751_s1 + $0x298] sm:$0xff]   ;;  %v2166_v48 = vld [vmem:[%s2751_s1 + $0x260] sm:$0xff]  }
  0x2a   :  { %1950 = vmatprep.subr.bf16.mxu1 %v2127_v49  ;;  %v2167_v49 = vld [vmem:[%s2751_s1 + $0x2e0] sm:$0xff]  }
  0x2b   :  { %1275 = vmatmul.mubr.bf16.gmra.mrb[4].mxu0 %v1717_v3  ;;  %v1710_v3 = vcombine.high %v22_v0, %v30_v1 }
  0x2c   :  { %1923 = vmatpush3.bf16.msra.mxu0 %v2128_v50  ;;  %1324 = vmatmul.mubr.bf16.gmra.mrb[4].mxu1 %v1719_v6  ;;  %v2168_v50 = vld [vmem:[%s2751_s1 + $0x220] sm:$0xff]  }
  0x2d   :  { %1951 = vmatpush3.bf16.msra.mxu1 %v2129_v51  ;;  %1924 = vmatprep.subr.bf16.mxu0 %v2130_v52  ;;  %v2169_v51 = vld [vmem:[%s2751_s1 + $0x2a0] sm:$0xff]   ;;  %v2170_v52 = vld [vmem:[%s2751_s1 + $0x268] sm:$0xff]  }
  0x2e   :  { %1952 = vmatprep.subr.bf16.mxu1 %v2131_v53  ;;  %1364 = vmatprep.mubr.bf16.mxu0 %v1706_v21  ;;  %v2171_v53 = vld [vmem:[%s2751_s1 + $0x2e8] sm:$0xff]   ;;  %v2191_v21 = vld [vmem:[%s2751_s1 + $0x3d0] sm:$0xff]  }
  0x2f   :  { %1413 = vmatprep.mubr.bf16.mxu1 %v1708_v23  ;;  %v47_v23 = vld [vmem:[%s2752_s0 + $0xe8] sm:$0xff] }
  0x30   :  { %1925 = vmatpush3.bf16.msra.mxu0 %v2132_v54  ;;  %v2172_v54 = vld [vmem:[%s2751_s1 + $0x228] sm:$0xff]  }
  0x31   :  { %1953 = vmatpush3.bf16.msra.mxu1 %v2133_v55  ;;  %1926 = vmatprep.subr.bf16.mxu0 %v2134_v56  ;;  %v2173_v55 = vld [vmem:[%s2751_s1 + $0x2a8] sm:$0xff]   ;;  %v2174_v56 = vld [vmem:[%s2751_s1 + $0x270] sm:$0xff]  }
  0x32   :  { %1954 = vmatprep.subr.bf16.mxu1 %v2135_v57  ;;  %v2175_v57 = vld [vmem:[%s2751_s1 + $0x2f0] sm:$0xff]  }
  0x34   :  { %1927 = vmatpush3.bf16.msra.mxu0 %v2136_v58  ;;  %v2176_v58 = vld [vmem:[%s2751_s1 + $0x230] sm:$0xff]  }
  0x35   :  { %1955 = vmatpush3.bf16.msra.mxu1 %v2137_v59  ;;  %1928 = vmatprep.subr.bf16.mxu0 %v2138_v60  ;;  %v2177_v59 = vld [vmem:[%s2751_s1 + $0x2b0] sm:$0xff]   ;;  %v2178_v60 = vld [vmem:[%s2751_s1 + $0x278] sm:$0xff]  }
  0x36   :  { %1956 = vmatprep.subr.bf16.mxu1 %v2139_v61  ;;  %v2179_v61 = vld [vmem:[%s2751_s1 + $0x2f8] sm:$0xff]  }
  0x38   :  { %1929 = vmatpush3.bf16.msra.mxu0 %v2140_v5  ;;  %v31_v5 = vld [vmem:[%s2752_s0 + $0x68] sm:$0xff] }
  0x39   :  { %1957 = vmatpush3.bf16.msra.mxu1 %v2141_v7  ;;  %1930 = vmatprep.subr.bf16.mxu0 %v2142_v8  ;;  %v1711_v6 = vcombine.low %v23_v4, %v31_v5  ;;  %v1712_v7 = vcombine.high %v23_v4, %v31_v5  ;;  %v2182_v8 = vld [vmem:[%s2751_s1 + $0x340] sm:$0xff]  }
  0x3a   :  { %1958 = vmatprep.subr.bf16.mxu1 %v2143_v9  ;;  %v2183_v9 = vld [vmem:[%s2751_s1 + $0x3c0] sm:$0xff]  }
  0x3c   :  { %1931 = vmatpush3.bf16.msra.mxu0 %v2144_v10  ;;  %v2184_v10 = vld [vmem:[%s2751_s1 + $0x300] sm:$0xff]  }
  0x3d   :  { %1959 = vmatpush3.bf16.msra.mxu1 %v2145_v11  ;;  %1932 = vmatprep.subr.bf16.mxu0 %v2146_v12  ;;  %v2185_v11 = vld [vmem:[%s2751_s1 + $0x380] sm:$0xff]   ;;  %v2186_v12 = vld [vmem:[%s2751_s1 + $0x348] sm:$0xff]  }
  0x3e   :  { %1960 = vmatprep.subr.bf16.mxu1 %v2147_v13  ;;  %v2187_v13 = vld [vmem:[%s2751_s1 + $0x3c8] sm:$0xff]  }
  0x40   :  { %1933 = vmatpush3.bf16.msra.mxu0 %v2148_v14  ;;  %v2188_v14 = vld [vmem:[%s2751_s1 + $0x308] sm:$0xff]  }
  0x41   :  { %1961 = vmatpush3.bf16.msra.mxu1 %v2149_v15  ;;  %1974 = vmatprep.subr.bf16.mxu0 %v2150_v24  ;;  %v2189_v15 = vld [vmem:[%s2751_s1 + $0x388] sm:$0xff]  }
  0x42   :  { %2002 = vmatprep.subr.bf16.mxu1 %v2151_v25  ;;  %v2192_v25 = vld [vmem:[%s2751_s1 + $0x310] sm:$0xff]  }
  0x43   :  { %1365 = vmatmul.mubr.bf16.vlgmr.msra.gmra.mrb[8].mxu0 %v1705_v20  ;;  %v2190_v20 = vld [vmem:[%s2751_s1 + $0x350] sm:$0xff]  }
  0x44   :  { %1414 = vmatmul.mubr.bf16.vlgmr.msra.gmra.mrb[8].mxu1 %v1707_v22  ;;  %1975 = vmatpush3.bf16.msra.mxu0 %v2152_v26  ;;  %v39_v22 = vld [vmem:[%s2752_s0 + $0xa8] sm:$0xff] }
  0x45   :  { %2003 = vmatpush3.bf16.msra.mxu1 %v2153_v27  ;;  %1976 = vmatprep.subr.bf16.mxu0 %v2154_v28  ;;  %v1728_v24 = vcombine.high %v39_v22, %v47_v23  ;;  %v1727_v26 = vcombine.low %v39_v22, %v47_v23  ;;  %v2193_v27 = vld [vmem:[%s2751_s1 + $0x390] sm:$0xff]   ;;  %v2194_v28 = vld [vmem:[%s2751_s1 + $0x358] sm:$0xff]  }
  0x46   :  { %2004 = vmatprep.subr.bf16.mxu1 %v2155_v29  ;;  %1372 = vmatprep.mubr.bf16.mxu0 %v1722_v34  ;;  %v2195_v29 = vld [vmem:[%s2751_s1 + $0x3d8] sm:$0xff]   ;;  %v2200_v34 = vld [vmem:[%s2751_s1 + $0x320] sm:$0xff]  }
  0x47   :  { %1421 = vmatprep.mubr.bf16.mxu1 %v1724_v40  ;;  %v2206_v40 = vld [vmem:[%s2751_s1 + $0x370] sm:$0xff]  }
  0x48   :  { %1977 = vmatpush3.bf16.msra.mxu0 %v2156_v30  ;;  %v2196_v30 = vld [vmem:[%s2751_s1 + $0x318] sm:$0xff]  }
  0x49   :  { %2005 = vmatpush3.bf16.msra.mxu1 %v2157_v31  ;;  %1978 = vmatprep.subr.bf16.mxu0 %v2158_v36  ;;  %v2197_v31 = vld [vmem:[%s2751_s1 + $0x398] sm:$0xff]   ;;  %v2202_v36 = vld [vmem:[%s2751_s1 + $0x368] sm:$0xff]  }
  0x4a   :  { %2006 = vmatprep.subr.bf16.mxu1 %v2159_v37  ;;  %v2203_v37 = vld [vmem:[%s2751_s1 + $0x3e8] sm:$0xff]  }
  0x4b   :  { %1373 = vmatmul.mubr.bf16.gmra.mrb[12].mxu0 %v1721_v35  ;;  %v2201_v35 = vld [vmem:[%s2751_s1 + $0x3a0] sm:$0xff]  }
  0x4c   :  { %1979 = vmatpush3.bf16.msra.mxu0 %v2160_v41  ;;  %1422 = vmatmul.mubr.bf16.gmra.mrb[12].mxu1 %v1723_v42  ;;  %v2207_v41 = vld [vmem:[%s2751_s1 + $0x3f0] sm:$0xff]  }
  0x4d   :  { %2007 = vmatpush3.bf16.msra.mxu1 %v2161_v43  ;;  %1980 = vmatprep.subr.bf16.mxu0 %v2162_v44  ;;  %v2208_v42 = vld [vmem:[%s2751_s1 + $0x330] sm:$0xff]   ;;  %v2210_v44 = vld [vmem:[%s2751_s1 + $0x378] sm:$0xff]  }
  0x4e   :  { %2008 = vmatprep.subr.bf16.mxu1 %v2163_v45  ;;  %1462 = vmatprep.mubr.bf16.mxu0 %v1710_v3  ;;  %v2209_v43 = vld [vmem:[%s2751_s1 + $0x3b0] sm:$0xff]   ;;  %v2211_v45 = vld [vmem:[%s2751_s1 + $0x3f8] sm:$0xff]  }
  0x4f   :  { %1511 = vmatprep.mubr.bf16.mxu1 %v1712_v7 }
  0x50   :  { %1981 = vmatpush3.bf16.msra.mxu0 %v2164_v46  ;;  %v2212_v46 = vld [vmem:[%s2751_s1 + $0x338] sm:$0xff]  }
  0x51   :  { %2009 = vmatpush3.bf16.msra.mxu1 %v2165_v47  ;;  %1982 = vmatprep.subr.bf16.mxu0 %v2166_v48  ;;  %v2213_v47 = vld [vmem:[%s2751_s1 + $0x3b8] sm:$0xff]   ;;  %v24_v48 = vld [vmem:[%s2752_s0 + $0x30] sm:$0xff] }
  0x52   :  { %2010 = vmatprep.subr.bf16.mxu1 %v2167_v49  ;;  %v32_v49 = vld [vmem:[%s2752_s0 + $0x70] sm:$0xff] }
  0x54   :  { %1983 = vmatpush3.bf16.msra.mxu0 %v2168_v50  ;;  %v25_v50 = vld [vmem:[%s2752_s0 + $0x38] sm:$0xff] }
  0x55   :  { %2011 = vmatpush3.bf16.msra.mxu1 %v2169_v51  ;;  %1984 = vmatprep.subr.bf16.mxu0 %v2170_v52  ;;  %v1713_v51 = vcombine.low %v24_v48, %v32_v49  ;;  %v1714_v52 = vcombine.high %v24_v48, %v32_v49 }
  0x56   :  { %2012 = vmatprep.subr.bf16.mxu1 %v2171_v53  ;;  %v33_v53 = vld [vmem:[%s2752_s0 + $0x78] sm:$0xff] }
  0x58   :  { %1985 = vmatpush3.bf16.msra.mxu0 %v2172_v54  ;;  %v40_v54 = vld [vmem:[%s2752_s0 + $0xb0] sm:$0xff] }
  0x59   :  { %2013 = vmatpush3.bf16.msra.mxu1 %v2173_v55  ;;  %1986 = vmatprep.subr.bf16.mxu0 %v2174_v56  ;;  %v48_v55 = vld [vmem:[%s2752_s0 + $0xf0] sm:$0xff]  ;;  %v1715_v56 = vcombine.low %v25_v50, %v33_v53 }
  0x5a   :  { %2014 = vmatprep.subr.bf16.mxu1 %v2175_v57  ;;  %v1716_v57 = vcombine.high %v25_v50, %v33_v53 }
  0x5c   :  { %1987 = vmatpush3.bf16.msra.mxu0 %v2176_v58  ;;  %v1730_v58 = vcombine.high %v40_v54, %v48_v55 }
  0x5d   :  { %2015 = vmatpush3.bf16.msra.mxu1 %v2177_v59  ;;  %1988 = vmatprep.subr.bf16.mxu0 %v2178_v60  ;;  %v41_v59 = vld [vmem:[%s2752_s0 + $0xb8] sm:$0xff] }
  0x5e   :  { %2016 = vmatprep.subr.bf16.mxu1 %v2179_v61  ;;  %v49_v60 = vld [vmem:[%s2752_s0 + $0xf8] sm:$0xff] }
  0x5f   :  { %v1732_v61 = vcombine.high %v41_v59, %v49_v60 }
  0x60   :  { %1989 = vmatpush3.bf16.msra.mxu0 %v2180_v62  ;;  %v1729_v62 = vcombine.low %v40_v54, %v48_v55 }
  0x61   :  { %2017 = vmatpush3.bf16.msra.mxu1 %v2181_v63  ;;  %2030 = vmatprep.subr.bf16.mxu0 %v2182_v8  ;;  %v1731_v63 = vcombine.low %v41_v59, %v49_v60 }
  0x62   :  { %2058 = vmatprep.subr.bf16.mxu1 %v2183_v9 }
  0x63   :  { %1463 = vmatmul.mubr.bf16.vlgmr.msra.gmra.mrb[16].mxu0 %v1709_v2 }
  0x64   :  { %1512 = vmatmul.mubr.bf16.vlgmr.msra.gmra.mrb[16].mxu1 %v1711_v6  ;;  %2031 = vmatpush3.bf16.msra.mxu0 %v2184_v10 }
  0x65   :  { %2059 = vmatpush3.bf16.msra.mxu1 %v2185_v11  ;;  %2032 = vmatprep.subr.bf16.mxu0 %v2186_v12 }
  0x66   :  { %2060 = vmatprep.subr.bf16.mxu1 %v2187_v13  ;;  %1470 = vmatprep.mubr.bf16.mxu0 %v1726_v18 }
  0x67   :  { %1519 = vmatprep.mubr.bf16.mxu1 %v1728_v24 }
  0x68   :  { %2033 = vmatpush3.bf16.msra.mxu0 %v2188_v14 }
  0x69   :  { %2061 = vmatpush3.bf16.msra.mxu1 %v2189_v15  ;;  %2034 = vmatprep.subr.bf16.mxu0 %v2190_v20 }
  0x6a   :  { %2062 = vmatprep.subr.bf16.mxu1 %v2191_v21 }
  0x6b   :  { %1471 = vmatmul.mubr.bf16.gmra.mrb[20].mxu0 %v1725_v19 }
  0x6c   :  { %2035 = vmatpush3.bf16.msra.mxu0 %v2192_v25  ;;  %1520 = vmatmul.mubr.bf16.gmra.mrb[20].mxu1 %v1727_v26 }
  0x6d   :  { %2063 = vmatpush3.bf16.msra.mxu1 %v2193_v27  ;;  %2036 = vmatprep.subr.bf16.mxu0 %v2194_v28 }
  0x6e   :  { %2064 = vmatprep.subr.bf16.mxu1 %v2195_v29  ;;  %1560 = vmatprep.mubr.bf16.mxu0 %v1714_v52 }
  0x6f   :  { %1609 = vmatprep.mubr.bf16.mxu1 %v1716_v57 }
  0x70   :  { %2037 = vmatpush3.bf16.msra.mxu0 %v2196_v30 }
  0x71   :  { %2065 = vmatpush3.bf16.msra.mxu1 %v2197_v31  ;;  %2038 = vmatprep.subr.bf16.mxu0 %v2198_v32 }
  0x72   :  { %2066 = vmatprep.subr.bf16.mxu1 %v2199_v33 }
  0x74   :  { %2039 = vmatpush3.bf16.msra.mxu0 %v2200_v34 }
  0x75   :  { %2067 = vmatpush3.bf16.msra.mxu1 %v2201_v35  ;;  %2040 = vmatprep.subr.bf16.mxu0 %v2202_v36 }
  0x76   :  { %2068 = vmatprep.subr.bf16.mxu1 %v2203_v37 }
  0x78   :  { %2041 = vmatpush3.bf16.msra.mxu0 %v2204_v38 }
  0x79   :  { %2069 = vmatpush3.bf16.msra.mxu1 %v2205_v39  ;;  %2042 = vmatprep.subr.bf16.mxu0 %v2206_v40 }
  0x7a   :  { %2070 = vmatprep.subr.bf16.mxu1 %v2207_v41 }
  0x7c   :  { %2043 = vmatpush3.bf16.msra.mxu0 %v2208_v42 }
  0x7d   :  { %2071 = vmatpush3.bf16.msra.mxu1 %v2209_v43  ;;  %2044 = vmatprep.subr.bf16.mxu0 %v2210_v44 }
  0x7e   :  { %2072 = vmatprep.subr.bf16.mxu1 %v2211_v45 }
  0x80   :  { %2045 = vmatpush3.bf16.msra.mxu0 %v2212_v46 }
  0x81   :  { %2073 = vmatpush3.bf16.msra.mxu1 %v2213_v47 }
  0x83   :  { %1561 = vmatmul.mubr.bf16.vlgmr.msra.gmra.mrb[24].mxu0 %v1713_v51 }
  0x84   :  { %1610 = vmatmul.mubr.bf16.vlgmr.msra.gmra.mrb[24].mxu1 %v1715_v56  ;;  %1568 = vmatprep.mubr.bf16.mxu0 %v1730_v58 }
  0x85   :  { %1617 = vmatprep.mubr.bf16.mxu1 %v1732_v61 }
  0x8b   :  { %1569 = vmatmul.mubr.bf16.gmra.mrb[28].mxu0 %v1729_v62 }
  0x8c   :  { %1618 = vmatmul.mubr.bf16.gmra.mrb[28].mxu1 %v1731_v63 }
  0xf6   :  { %v1878_v0 = vpop.f32.mrb[0].mxu0 }
  0xf7   :  { %v1906_v1 = vpop.f32.mrb[0].mxu1  ;;  %v1879_v2 = vpop.f32.mrb[1].mxu0 }
  0xf8   :  { %v1880_v3 = vadd.f32 %v1879_v2, %v1878_v0  ;;  %v1907_v4 = vpop.f32.mrb[1].mxu1  ;;  %v1881_v5 = vpop.f32.mrb[2].mxu0 }
  0xf9   :  { %v1908_v6 = vadd.f32 %v1907_v4, %v1906_v1  ;;  %v1909_v7 = vpop.f32.mrb[2].mxu1  ;;  %v1882_v8 = vpop.f32.mrb[3].mxu0 }
  0xfa   :  { %v1883_v9 = vadd.f32 %v1882_v8, %v1881_v5  ;;  %v1910_v10 = vpop.f32.mrb[3].mxu1 }
  0xfb   :  { %v1318_v11 = vadd.f32 %v1908_v6, %v1880_v3  ;;  %v1911_v12 = vadd.f32 %v1910_v10, %v1909_v7 }
  0xfd   :  { %v1321_v13 = vadd.f32 %v1911_v12, %v1883_v9 }
  0xfe   :  { %v1884_v14 = vpop.f32.mrb[4].mxu0 }
  0xff   :  { %v1912_v15 = vpop.f32.mrb[4].mxu1  ;;  %v1885_v16 = vpop.f32.mrb[5].mxu0 }
 0x100   :  { %v1886_v17 = vadd.f32 %v1885_v16, %v1884_v14  ;;  %v1913_v18 = vpop.f32.mrb[5].mxu1  ;;  %v1887_v19 = vpop.f32.mrb[6].mxu0 }
 0x101   :  { %v1914_v20 = vadd.f32 %v1913_v18, %v1912_v15  ;;  %v1915_v21 = vpop.f32.mrb[6].mxu1  ;;  %v1888_v22 = vpop.f32.mrb[7].mxu0 }
 0x102   :  { %v1889_v23 = vadd.f32 %v1888_v22, %v1887_v19  ;;  %v1916_v24 = vpop.f32.mrb[7].mxu1 }
 0x103   :  { %v1326_v25 = vadd.f32 %v1914_v20, %v1886_v17  ;;  %v1917_v26 = vadd.f32 %v1916_v24, %v1915_v21 }
 0x105   :  { %v1329_v27 = vadd.f32 %v1917_v26, %v1889_v23 }
 0x116   :  { %v1934_v28 = vpop.f32.mrb[8].mxu0 }
 0x117   :  { %v1962_v29 = vpop.f32.mrb[8].mxu1  ;;  %v1935_v30 = vpop.f32.mrb[9].mxu0 }
 0x118   :  { %v1963_v31 = vpop.f32.mrb[9].mxu1  ;;  %v1936_v32 = vadd.f32 %v1935_v30, %v1934_v28  ;;  %v1937_v34 = vpop.f32.mrb[10].mxu0 }
 0x119   :  { %v1964_v33 = vadd.f32 %v1963_v31, %v1962_v29  ;;  %v1965_v35 = vpop.f32.mrb[10].mxu1  ;;  %v1938_v36 = vpop.f32.mrb[11].mxu0 }
 0x11a   :  { %v1966_v37 = vpop.f32.mrb[11].mxu1  ;;  %v1367_v38 = vadd.f32 %v1936_v32, %v1318_v11  ;;  %v1939_v39 = vadd.f32 %v1938_v36, %v1937_v34 }
 0x11b   :  { %v1967_v40 = vadd.f32 %v1966_v37, %v1965_v35 }
 0x11c   :  { %v1416_v41 = vadd.f32 %v1964_v33, %v1367_v38  ;;  %v1370_v42 = vadd.f32 %v1939_v39, %v1321_v13 }
 0x11e   :  { %v1419_v43 = vadd.f32 %v1967_v40, %v1370_v42  ;;  %v1940_v44 = vpop.f32.mrb[12].mxu0 }
 0x11f   :  { %v1941_v45 = vpop.f32.mrb[13].mxu0  ;;  %v1968_v50 = vpop.f32.mrb[12].mxu1 }
 0x120   :  { %v1942_v46 = vadd.f32 %v1941_v45, %v1940_v44  ;;  %v1943_v47 = vpop.f32.mrb[14].mxu0  ;;  %v1969_v52 = vpop.f32.mrb[13].mxu1 }
 0x121   :  { %v1944_v48 = vpop.f32.mrb[15].mxu0  ;;  %v1970_v54 = vadd.f32 %v1969_v52, %v1968_v50  ;;  %v1971_v55 = vpop.f32.mrb[14].mxu1 }
 0x122   :  { %v1375_v49 = vadd.f32 %v1942_v46, %v1326_v25  ;;  %v1945_v51 = vadd.f32 %v1944_v48, %v1943_v47  ;;  %v1972_v56 = vpop.f32.mrb[15].mxu1 }
 0x123   :  { %v1973_v58 = vadd.f32 %v1972_v56, %v1971_v55 }
 0x124   :  { %v1378_v53 = vadd.f32 %v1945_v51, %v1329_v27  ;;  %v1424_v57 = vadd.f32 %v1970_v54, %v1375_v49 }
 0x126   :  { %v1427_v59 = vadd.f32 %v1973_v58, %v1378_v53 }
 0x136   :  { %v1990_v60 = vpop.f32.mrb[16].mxu0 }
 0x137   :  { %v2018_v61 = vpop.f32.mrb[16].mxu1  ;;  %v1991_v62 = vpop.f32.mrb[17].mxu0 }
 0x138   :  { %v1992_v63 = vadd.f32 %v1991_v62, %v1990_v60  ;;  %v2019_v0 = vpop.f32.mrb[17].mxu1  ;;  %v1993_v1 = vpop.f32.mrb[18].mxu0 }
 0x139   :  { %v2020_v2 = vadd.f32 %v2019_v0, %v2018_v61  ;;  %v2021_v3 = vpop.f32.mrb[18].mxu1  ;;  %v1994_v4 = vpop.f32.mrb[19].mxu0 }
 0x13a   :  { %v1465_v5 = vadd.f32 %v1992_v63, %v1416_v41  ;;  %v1995_v6 = vadd.f32 %v1994_v4, %v1993_v1  ;;  %v2022_v7 = vpop.f32.mrb[19].mxu1 }
 0x13b   :  { %v2023_v8 = vadd.f32 %v2022_v7, %v2021_v3 }
 0x13c   :  { %v1514_v9 = vadd.f32 %v2020_v2, %v1465_v5  ;;  %v1468_v10 = vadd.f32 %v1995_v6, %v1419_v43 }
 0x13e   :  { %v1517_v11 = vadd.f32 %v2023_v8, %v1468_v10  ;;  %v1996_v12 = vpop.f32.mrb[20].mxu0 }
 0x13f   :  { %v1997_v13 = vpop.f32.mrb[21].mxu0  ;;  %v2024_v16 = vpop.f32.mrb[20].mxu1 }
 0x140   :  { %v1998_v14 = vadd.f32 %v1997_v13, %v1996_v12  ;;  %v1999_v15 = vpop.f32.mrb[22].mxu0  ;;  %v2025_v20 = vpop.f32.mrb[21].mxu1 }
 0x141   :  { %v2000_v17 = vpop.f32.mrb[23].mxu0  ;;  %v2026_v21 = vadd.f32 %v2025_v20, %v2024_v16  ;;  %v2027_v22 = vpop.f32.mrb[22].mxu1 }
 0x142   :  { %v1473_v18 = vadd.f32 %v1998_v14, %v1424_v57  ;;  %v2001_v19 = vadd.f32 %v2000_v17, %v1999_v15  ;;  %v2028_v24 = vpop.f32.mrb[23].mxu1 }
 0x143   :  { %v2029_v26 = vadd.f32 %v2028_v24, %v2027_v22 }
 0x144   :  { %v1476_v23 = vadd.f32 %v2001_v19, %v1427_v59  ;;  %v1522_v25 = vadd.f32 %v2026_v21, %v1473_v18 }
 0x146   :  { %v1525_v27 = vadd.f32 %v2029_v26, %v1476_v23 }
 0x156   :  { %v2046_v28 = vpop.f32.mrb[24].mxu0 }
 0x157   :  { %v2074_v29 = vpop.f32.mrb[24].mxu1  ;;  %v2047_v30 = vpop.f32.mrb[25].mxu0 }
 0x158   :  { %v2048_v31 = vadd.f32 %v2047_v30, %v2046_v28  ;;  %v2075_v32 = vpop.f32.mrb[25].mxu1  ;;  %v2049_v33 = vpop.f32.mrb[26].mxu0 }
 0x159   :  { %v2076_v34 = vadd.f32 %v2075_v32, %v2074_v29  ;;  %v2077_v35 = vpop.f32.mrb[26].mxu1  ;;  %v2050_v36 = vpop.f32.mrb[27].mxu0 }
 0x15a   :  { %v1563_v37 = vadd.f32 %v2048_v31, %v1514_v9  ;;  %v2051_v38 = vadd.f32 %v2050_v36, %v2049_v33  ;;  %v2078_v39 = vpop.f32.mrb[27].mxu1  ;;  %v1669_v33 = vlaneseq }
 0x15b   :  { %v2079_v40 = vadd.f32 %v2078_v39, %v2077_v35  ;;  %v1664_v35 = vld [vmem:[%s2753_s2] sm:$0x1] }
 0x15c   :  { %v1612_v41 = vadd.f32 %v2076_v34, %v1563_v37  ;;  %v1566_v42 = vadd.f32 %v2051_v38, %v1517_v11  ;;  %v1670_v34 = vshrl.u32 %v1669_v33, 7 }
 0x15e   :  { %v1615_v43 = vadd.f32 %v2079_v40, %v1566_v42  ;;  %v2052_v44 = vpop.f32.mrb[28].mxu0  ;;  %v1627_v47 = vsel %vm1626_vm0, %v1612_v41, 0.0  ;;  %v1671_v36 = vsub.s32 0, %v1670_v34  ;;  %v1861_v40 = vld [vmem:[%s2754_s3] ss:$0 sm:$0xff] }
 0x15f   :  { %v2080_v45 = vpop.f32.mrb[28].mxu1  ;;  %v2053_v46 = vpop.f32.mrb[29].mxu0 }
 0x160   :  { %v1628_v48 = vsel %vm1626_vm0, %v1615_v43, 0.0  ;;  %v2054_v49 = vadd.f32 %v2053_v46, %v2052_v44  ;;  %v2081_v50 = vpop.f32.mrb[29].mxu1  ;;  %v2055_v51 = vpop.f32.mrb[30].mxu0 }
 0x161   :  { %v1629_v52 = vadd.f32 %v1628_v48, %v1627_v47  ;;  %v2082_v53 = vadd.f32 %v2081_v50, %v2080_v45  ;;  %v2083_v54 = vpop.f32.mrb[30].mxu1  ;;  %v2056_v55 = vpop.f32.mrb[31].mxu0 }
 0x162   :  { %v1571_v56 = vadd.f32 %v2054_v49, %v1522_v25  ;;  %v2057_v57 = vadd.f32 %v2056_v55, %v2055_v51  ;;  %v2084_v58 = vpop.f32.mrb[31].mxu1 }
 0x163   :  { %v2085_v59 = vadd.f32 %v2084_v58, %v2083_v54 }
 0x164   :  { %v1620_v60 = vadd.f32 %v2082_v53, %v1571_v56  ;;  %v1574_v61 = vadd.f32 %v2057_v57, %v1525_v27 }
 0x166   :  { %v1630_v62 = vsel %vm1626_vm0, %v1620_v60, 0.0  ;;  %v1623_v63 = vadd.f32 %v2085_v59, %v1574_v61 }
 0x167   :  { %v1631_v0 = vadd.f32 %v1630_v62, %v1629_v52 }
 0x168   :  { %v1632_v1 = vsel %vm1626_vm0, %v1623_v63, 0.0 }
 0x169   :  { %v1633_v2 = vadd.f32 %v1632_v1, %v1631_v0 }
 0x16b   :  { %v1634_v3 = vrot.slane %v1633_v2, 4 }
 0x16d   :  { %v1635_v4 = vadd.f32 %v1634_v3, %v1633_v2 }
 0x16f   :  { %v1636_v5 = vrot.slane %v1635_v4, 2 }
 0x171   :  { %v1637_v6 = vadd.f32 %v1636_v5, %v1635_v4 }
 0x173   :  { %v1638_v7 = vrot.slane %v1637_v6, 1 }
 0x175   :  { %v1639_v8 = vadd.f32 %v1638_v7, %v1637_v6 }
 0x177   :  { %v1641_v9 = vmul.f32 0.03125, %v1639_v8 }
 0x179   :  { %v1642_v10 = vsub.f32 %v1612_v41, %v1641_v9  ;;  %v1643_v11 = vsub.f32 %v1615_v43, %v1641_v9  ;;  %v1644_v12 = vsub.f32 %v1620_v60, %v1641_v9  ;;  %v1645_v13 = vsub.f32 %v1623_v63, %v1641_v9 }
 0x17b   :  { %v1646_v14 = vmul.f32 %v1642_v10, %v1642_v10  ;;  %v1647_v15 = vmul.f32 %v1643_v11, %v1643_v11  ;;  %v1648_v16 = vmul.f32 %v1644_v12, %v1644_v12  ;;  %v1649_v17 = vmul.f32 %v1645_v13, %v1645_v13 }
 0x17d   :  { %v1650_v18 = vsel %vm1626_vm0, %v1646_v14, 0.0  ;;  %v1651_v19 = vsel %vm1626_vm0, %v1647_v15, 0.0  ;;  %v1653_v21 = vsel %vm1626_vm0, %v1648_v16, 0.0  ;;  %v1655_v23 = vsel %vm1626_vm0, %v1649_v17, 0.0 }
 0x17e   :  { %v1652_v20 = vadd.f32 %v1651_v19, %v1650_v18 }
 0x180   :  { %v1654_v22 = vadd.f32 %v1653_v21, %v1652_v20 }
 0x182   :  { %v1656_v24 = vadd.f32 %v1655_v23, %v1654_v22 }
 0x184   :  { %v1657_v25 = vrot.slane %v1656_v24, 4 }
 0x186   :  { %v1658_v26 = vadd.f32 %v1657_v25, %v1656_v24 }
 0x188   :  { %v1659_v27 = vrot.slane %v1658_v26, 2 }
 0x18a   :  { %v1660_v28 = vadd.f32 %v1659_v27, %v1658_v26 }
 0x18c   :  { %v1661_v29 = vrot.slane %v1660_v28, 1 }
 0x18e   :  { %v1662_v30 = vadd.f32 %v1661_v29, %v1660_v28 }
 0x190   :  { %v1663_v31 = vmul.f32 0.03125, %v1662_v30 }
 0x192   :  { %v1665_v32 = vadd.f32 1e-05, %v1663_v31 }
 0x194   :  { %2214 = vrsqrt.f32 %v1665_v32 }
 0x19e   :  { %v2215_v37 = vpop.eup %2214 }
 0x19f   :  { %v1667_v38 = vmul.f32 %v2215_v37, %v1664_v35 }
 0x1a1   :  { %v1672_v39 = vrot.slane %v1667_v38, %v1671_v36 }
 0x1a3   :  { %v1674_v41 = vmul.f32 %v1672_v39, %v1642_v10  ;;  %v1675_v42 = vmul.f32 %v1672_v39, %v1643_v11  ;;  %v1676_v43 = vmul.f32 %v1672_v39, %v1644_v12  ;;  %v1677_v44 = vmul.f32 %v1672_v39, %v1645_v13 }
 0x1a5   :  { %v1685_v45 = vadd.f32 %v1861_v40, %v1674_v41  ;;  %v1686_v46 = vadd.f32 %v1861_v40, %v1675_v42  ;;  %v1687_v47 = vadd.f32 %v1861_v40, %v1676_v43  ;;  %v1688_v48 = vadd.f32 %v1861_v40, %v1677_v44 }
 0x1a7   :  { %v1689_v49 = vmax.f32 %v1685_v45, 0.0  ;;  %v1690_v50 = vmax.f32 %v1686_v46, 0.0  ;;  %v1691_v51 = vmax.f32 %v1687_v47, 0.0  ;;  %v1692_v52 = vmax.f32 %v1688_v48, 0.0 }
 0x1a9   :  { %1693 = vst.msk [vmem:[%s2755_s4] sm:$0xff] %vm1626_vm0, %v1689_v49  ;;  %1694 = vst.msk [vmem:[%s2755_s4 + $0x8] sm:$0xff] %vm1626_vm0, %v1690_v50 }
 0x1aa   :  { %1695 = vst.msk [vmem:[%s2755_s4 + $0x10] sm:$0xff] %vm1626_vm0, %v1691_v51  ;;  %1696 = vst.msk [vmem:[%s2755_s4 + $0x18] sm:$0xff] %vm1626_vm0, %v1692_v52 }

// kernel: cvae_forward.18
= control target key start
LH: loop header
LB: loop body
LE: loop exit
PB: predicated region body
PF: predicated region fallthrough
CT: control target
= control target key end

     0   :  { %vm1302_vm0 = vcmask 261120   ;;  %s2631_s1 = inlined_call_operand.vmem [shape: bf16[1024,32], index: 1, kind: input, shape index: {}]   ;;  %s2632_s0 = inlined_call_operand.vmem [shape: bf16[128,1024], index: 0, kind: input, shape index: {}]   ;;  %s2633_s2 = inlined_call_operand.vmem [shape: f32[1,32], index: 2, kind: input, shape index: {}]   ;;  %s2634_s3 = inlined_call_operand.vmem [shape: f32[1,32], index: 3, kind: input, shape index: {}]   ;;  %s2635_s4 = inlined_call_operand.vmem [shape: f32[128,32], index: 4, kind: output, shape index: {}]  }
   0x1   :  { %v1882_v0 = vld [vmem:[%s2631_s1 + $0x40] sm:$0xff]   ;;  %v1886_v4 = vld [vmem:[%s2631_s1 + $0x48] sm:$0xff]   ;;  %v1890_v8 = vld [vmem:[%s2631_s1 + $0x50] sm:$0xff]  }
   0x2   :  { %v1883_v1 = vld [vmem:[%s2631_s1 + $0xc0] sm:$0xff]   ;;  %1626 = vmatprep.subr.bf16.mxu0 %v1882_v0  ;;  %v1887_v5 = vld [vmem:[%s2631_s1 + $0xc8] sm:$0xff]   ;;  %v1891_v9 = vld [vmem:[%s2631_s1 + $0xd0] sm:$0xff]  }
   0x3   :  { %v1884_v2 = vld [vmem:[%s2631_s1] sm:$0xff]   ;;  %1690 = vmatprep.subr.bf16.mxu1 %v1883_v1  ;;  %v1888_v6 = vld [vmem:[%s2631_s1 + $0x8] sm:$0xff]   ;;  %v1892_v10 = vld [vmem:[%s2631_s1 + $0x10] sm:$0xff]  }
   0x4   :  { %v1885_v3 = vld [vmem:[%s2631_s1 + $0x80] sm:$0xff]   ;;  %1627 = vmatpush3.bf16.msra.mxu0 %v1884_v2  ;;  %v1889_v7 = vld [vmem:[%s2631_s1 + $0x88] sm:$0xff]   ;;  %v1893_v11 = vld [vmem:[%s2631_s1 + $0x90] sm:$0xff]  }
   0x5   :  { %1691 = vmatpush3.bf16.msra.mxu1 %v1885_v3  ;;  %1628 = vmatprep.subr.bf16.mxu0 %v1886_v4  ;;  %v1894_v12 = vld [vmem:[%s2631_s1 + $0x58] sm:$0xff]   ;;  %v1898_v16 = vld [vmem:[%s2631_s1 + $0x60] sm:$0xff]   ;;  %v1902_v20 = vld [vmem:[%s2631_s1 + $0x68] sm:$0xff]  }
   0x6   :  { %1692 = vmatprep.subr.bf16.mxu1 %v1887_v5  ;;  %v1895_v13 = vld [vmem:[%s2631_s1 + $0xd8] sm:$0xff]   ;;  %v1899_v17 = vld [vmem:[%s2631_s1 + $0xe0] sm:$0xff]   ;;  %v1903_v21 = vld [vmem:[%s2631_s1 + $0xe8] sm:$0xff]  }
   0x7   :  { %v1896_v14 = vld [vmem:[%s2631_s1 + $0x18] sm:$0xff]   ;;  %v1900_v18 = vld [vmem:[%s2631_s1 + $0x20] sm:$0xff]   ;;  %v1904_v22 = vld [vmem:[%s2631_s1 + $0x28] sm:$0xff]  }
   0x8   :  { %1629 = vmatpush3.bf16.msra.mxu0 %v1888_v6  ;;  %v1897_v15 = vld [vmem:[%s2631_s1 + $0x98] sm:$0xff]   ;;  %v1901_v19 = vld [vmem:[%s2631_s1 + $0xa0] sm:$0xff]   ;;  %v1905_v23 = vld [vmem:[%s2631_s1 + $0xa8] sm:$0xff]  }
   0x9   :  { %1693 = vmatpush3.bf16.msra.mxu1 %v1889_v7  ;;  %1630 = vmatprep.subr.bf16.mxu0 %v1890_v8  ;;  %v1906_v24 = vld [vmem:[%s2631_s1 + $0x70] sm:$0xff]   ;;  %v1910_v28 = vld [vmem:[%s2631_s1 + $0x78] sm:$0xff]   ;;  %v18_v32 = vld [vmem:[%s2632_s0] sm:$0xff] }
   0xa   :  { %1694 = vmatprep.subr.bf16.mxu1 %v1891_v9  ;;  %v1907_v25 = vld [vmem:[%s2631_s1 + $0xf0] sm:$0xff]   ;;  %v1911_v29 = vld [vmem:[%s2631_s1 + $0xf8] sm:$0xff]   ;;  %v22_v33 = vld [vmem:[%s2632_s0 + $0x20] sm:$0xff] }
   0xb   :  { %v1908_v26 = vld [vmem:[%s2631_s1 + $0x30] sm:$0xff]   ;;  %v1912_v30 = vld [vmem:[%s2631_s1 + $0x38] sm:$0xff]   ;;  %v19_v34 = vld [vmem:[%s2632_s0 + $0x8] sm:$0xff]  ;;  %v1497_v35 = vcombine.low %v18_v32, %v22_v33  ;;  %v1498_v36 = vcombine.high %v18_v32, %v22_v33 }
   0xc   :  { %1631 = vmatpush3.bf16.msra.mxu0 %v1892_v10  ;;  %v1909_v27 = vld [vmem:[%s2631_s1 + $0xb0] sm:$0xff]   ;;  %v1913_v31 = vld [vmem:[%s2631_s1 + $0xb8] sm:$0xff]   ;;  %v23_v37 = vld [vmem:[%s2632_s0 + $0x28] sm:$0xff] }
   0xd   :  { %1695 = vmatpush3.bf16.msra.mxu1 %v1893_v11  ;;  %1632 = vmatprep.subr.bf16.mxu0 %v1894_v12  ;;  %v1499_v38 = vcombine.low %v19_v34, %v23_v37  ;;  %v1500_v39 = vcombine.high %v19_v34, %v23_v37  ;;  %v1914_v40 = vld [vmem:[%s2631_s1 + $0x140] sm:$0xff]   ;;  %v27_v47 = vld [vmem:[%s2632_s0 + $0x48] sm:$0xff]  ;;  %v1922_v62 = vld [vmem:[%s2631_s1 + $0x150] sm:$0xff]  }
   0xe   :  { %1696 = vmatprep.subr.bf16.mxu1 %v1895_v13  ;;  %946 = vmatprep.mubr.bf16.mxu0 %v1498_v36  ;;  %v1915_v41 = vld [vmem:[%s2631_s1 + $0x100] sm:$0xff]   ;;  %v31_v48 = vld [vmem:[%s2632_s0 + $0x68] sm:$0xff]  ;;  %v1923_v63 = vld [vmem:[%s2631_s1 + $0x110] sm:$0xff]  }
   0xf   :  { %1043 = vmatprep.mubr.bf16.mxu1 %v1500_v39  ;;  %v1916_v42 = vld [vmem:[%s2631_s1 + $0x1c0] sm:$0xff]   ;;  %v1508_v49 = vcombine.high %v27_v47, %v31_v48  ;;  %v1918_v50 = vld [vmem:[%s2631_s1 + $0x148] sm:$0xff]   ;;  %v1507_v53 = vcombine.low %v27_v47, %v31_v48  ;;  %v1924_v0 = vld [vmem:[%s2631_s1 + $0x1d0] sm:$0xff]  }
  0x10   :  { %1633 = vmatpush3.bf16.msra.mxu0 %v1896_v14  ;;  %v1917_v43 = vld [vmem:[%s2631_s1 + $0x180] sm:$0xff]   ;;  %v1919_v52 = vld [vmem:[%s2631_s1 + $0x108] sm:$0xff]   ;;  %v1925_v1 = vld [vmem:[%s2631_s1 + $0x190] sm:$0xff]  }
  0x11   :  { %1697 = vmatpush3.bf16.msra.mxu1 %v1897_v15  ;;  %1634 = vmatprep.subr.bf16.mxu0 %v1898_v16  ;;  %v26_v44 = vld [vmem:[%s2632_s0 + $0x40] sm:$0xff]  ;;  %v1920_v54 = vld [vmem:[%s2631_s1 + $0x1c8] sm:$0xff]   ;;  %v1926_v10 = vld [vmem:[%s2631_s1 + $0x158] sm:$0xff]  }
  0x12   :  { %1698 = vmatprep.subr.bf16.mxu1 %v1899_v17  ;;  %v30_v45 = vld [vmem:[%s2632_s0 + $0x60] sm:$0xff]  ;;  %v1921_v55 = vld [vmem:[%s2631_s1 + $0x188] sm:$0xff]   ;;  %v1927_v11 = vld [vmem:[%s2631_s1 + $0x118] sm:$0xff]  }
  0x13   :  { %v1506_v46 = vcombine.high %v26_v44, %v30_v45  ;;  %v1505_v51 = vcombine.low %v26_v44, %v30_v45  ;;  %v34_v56 = vld [vmem:[%s2632_s0 + $0x80] sm:$0xff]  ;;  %v35_v58 = vld [vmem:[%s2632_s0 + $0x88] sm:$0xff]  ;;  %v1928_v12 = vld [vmem:[%s2631_s1 + $0x1d8] sm:$0xff]  }
  0x14   :  { %1635 = vmatpush3.bf16.msra.mxu0 %v1900_v18  ;;  %v38_v57 = vld [vmem:[%s2632_s0 + $0xa0] sm:$0xff]  ;;  %v39_v59 = vld [vmem:[%s2632_s0 + $0xa8] sm:$0xff]  ;;  %v1929_v13 = vld [vmem:[%s2631_s1 + $0x198] sm:$0xff]  }
  0x15   :  { %1699 = vmatpush3.bf16.msra.mxu1 %v1901_v19  ;;  %1636 = vmatprep.subr.bf16.mxu0 %v1902_v20  ;;  %v1514_v60 = vcombine.high %v34_v56, %v38_v57  ;;  %v1516_v61 = vcombine.high %v35_v58, %v39_v59  ;;  %v1513_v2 = vcombine.low %v34_v56, %v38_v57  ;;  %v42_v3 = vld [vmem:[%s2632_s0 + $0xc0] sm:$0xff]  ;;  %v43_v5 = vld [vmem:[%s2632_s0 + $0xc8] sm:$0xff]  ;;  %v1939_v39 = vld [vmem:[%s2631_s1 + $0x130] sm:$0xff]  }
  0x16   :  { %1700 = vmatprep.subr.bf16.mxu1 %v1903_v21  ;;  %v46_v4 = vld [vmem:[%s2632_s0 + $0xe0] sm:$0xff]  ;;  %v1515_v6 = vcombine.low %v35_v58, %v39_v59  ;;  %v47_v8 = vld [vmem:[%s2632_s0 + $0xe8] sm:$0xff]  ;;  %v1943_v48 = vld [vmem:[%s2631_s1 + $0x138] sm:$0xff]  }
  0x17   :  { %v1522_v7 = vcombine.high %v42_v3, %v46_v4  ;;  %v1524_v9 = vcombine.high %v43_v5, %v47_v8  ;;  %v50_v14 = vld [vmem:[%s2632_s0 + $0x100] sm:$0xff]  ;;  %v51_v16 = vld [vmem:[%s2632_s0 + $0x108] sm:$0xff]  ;;  %v1521_v19 = vcombine.low %v42_v3, %v46_v4  ;;  %v1523_v21 = vcombine.low %v43_v5, %v47_v8  ;;  %v29_v8 = vld [vmem:[%s2632_s0 + $0x58] sm:$0xff] }
  0x18   :  { %1637 = vmatpush3.bf16.msra.mxu0 %v1904_v22  ;;  %v54_v15 = vld [vmem:[%s2632_s0 + $0x120] sm:$0xff]  ;;  %v55_v17 = vld [vmem:[%s2632_s0 + $0x128] sm:$0xff] }
  0x19   :  { %1701 = vmatpush3.bf16.msra.mxu1 %v1905_v23  ;;  %1638 = vmatprep.subr.bf16.mxu0 %v1906_v24  ;;  %v1930_v18 = vld [vmem:[%s2631_s1 + $0x160] sm:$0xff]   ;;  %v1530_v22 = vcombine.high %v50_v14, %v54_v15  ;;  %v1532_v24 = vcombine.high %v51_v16, %v55_v17  ;;  %v1936_v32 = vld [vmem:[%s2631_s1 + $0x1e8] sm:$0xff]   ;;  %v1529_v34 = vcombine.low %v50_v14, %v54_v15  ;;  %v36_v14 = vld [vmem:[%s2632_s0 + $0x90] sm:$0xff] }
  0x1a   :  { %1702 = vmatprep.subr.bf16.mxu1 %v1907_v25  ;;  %v1931_v20 = vld [vmem:[%s2631_s1 + $0x120] sm:$0xff]   ;;  %v1937_v33 = vld [vmem:[%s2631_s1 + $0x1a8] sm:$0xff]   ;;  %v40_v15 = vld [vmem:[%s2632_s0 + $0xb0] sm:$0xff] }
  0x1b   :  { %v1932_v23 = vld [vmem:[%s2631_s1 + $0x1e0] sm:$0xff]   ;;  %v67_v44 = vld [vmem:[%s2632_s0 + $0x188] sm:$0xff] }
  0x1c   :  { %1639 = vmatpush3.bf16.msra.mxu0 %v1908_v26  ;;  %v1933_v25 = vld [vmem:[%s2631_s1 + $0x1a0] sm:$0xff]   ;;  %v71_v45 = vld [vmem:[%s2632_s0 + $0x1a8] sm:$0xff] }
  0x1d   :  { %1703 = vmatpush3.bf16.msra.mxu1 %v1909_v27  ;;  %1640 = vmatprep.subr.bf16.mxu0 %v1910_v28  ;;  %v58_v26 = vld [vmem:[%s2632_s0 + $0x140] sm:$0xff]  ;;  %v1934_v28 = vld [vmem:[%s2631_s1 + $0x168] sm:$0xff]   ;;  %v1547_v59 = vcombine.low %v67_v44, %v71_v45 }
  0x1e   :  { %1704 = vmatprep.subr.bf16.mxu1 %v1911_v29  ;;  %v62_v27 = vld [vmem:[%s2632_s0 + $0x160] sm:$0xff]  ;;  %v59_v29 = vld [vmem:[%s2632_s0 + $0x148] sm:$0xff] }
  0x1f   :  { %v1538_v36 = vcombine.high %v58_v26, %v62_v27  ;;  %v1537_v47 = vcombine.low %v58_v26, %v62_v27  ;;  %v75_v56 = vld [vmem:[%s2632_s0 + $0x1c8] sm:$0xff]  ;;  %v1517_v26 = vcombine.low %v36_v14, %v40_v15 }
  0x20   :  { %1641 = vmatpush3.bf16.msra.mxu0 %v1912_v30  ;;  %v63_v30 = vld [vmem:[%s2632_s0 + $0x168] sm:$0xff] }
  0x21   :  { %1705 = vmatpush3.bf16.msra.mxu1 %v1913_v31  ;;  %1754 = vmatprep.subr.bf16.mxu0 %v1914_v40  ;;  %v1935_v31 = vld [vmem:[%s2631_s1 + $0x128] sm:$0xff]   ;;  %v1540_v37 = vcombine.high %v59_v29, %v63_v30  ;;  %v1940_v40 = vld [vmem:[%s2631_s1 + $0x1f0] sm:$0xff]  }
  0x22   :  { %1818 = vmatprep.subr.bf16.mxu1 %v1916_v42  ;;  %v70_v42 = vld [vmem:[%s2632_s0 + $0x1a0] sm:$0xff]  ;;  %v79_v57 = vld [vmem:[%s2632_s0 + $0x1e8] sm:$0xff] }
  0x23   :  { %947 = vmatmul.mubr.bf16.vlgmr.msra.gmra.mrb[0].mxu0 %v1497_v35  ;;  %v1531_v35 = vcombine.low %v51_v16, %v55_v17  ;;  %v1555_v3 = vcombine.low %v75_v56, %v79_v57  ;;  %v37_v16 = vld [vmem:[%s2632_s0 + $0x98] sm:$0xff] }
  0x24   :  { %1044 = vmatmul.mubr.bf16.vlgmr.msra.gmra.mrb[0].mxu1 %v1499_v38  ;;  %1755 = vmatpush3.bf16.msra.mxu0 %v1915_v41  ;;  %v1938_v38 = vld [vmem:[%s2631_s1 + $0x170] sm:$0xff]   ;;  %v66_v41 = vld [vmem:[%s2632_s0 + $0x180] sm:$0xff]  ;;  %v41_v17 = vld [vmem:[%s2632_s0 + $0xb8] sm:$0xff] }
  0x25   :  { %1819 = vmatpush3.bf16.msra.mxu1 %v1917_v43  ;;  %954 = vmatprep.mubr.bf16.mxu0 %v1506_v46  ;;  %v1941_v43 = vld [vmem:[%s2631_s1 + $0x1b0] sm:$0xff]   ;;  %v1942_v46 = vld [vmem:[%s2631_s1 + $0x178] sm:$0xff]   ;;  %v1545_v58 = vcombine.low %v66_v41, %v70_v42  ;;  %v1519_v27 = vcombine.low %v37_v16, %v41_v17 }
  0x26   :  { %1051 = vmatprep.mubr.bf16.mxu1 %v1508_v49  ;;  %1756 = vmatprep.subr.bf16.mxu0 %v1918_v50  ;;  %v1539_v49 = vcombine.low %v59_v29, %v63_v30  ;;  %v1546_v50 = vcombine.high %v66_v41, %v70_v42  ;;  %v52_v30 = vld [vmem:[%s2632_s0 + $0x110] sm:$0xff]  ;;  %v65_v41 = vld [vmem:[%s2632_s0 + $0x178] sm:$0xff] }
  0x27   :  { %1820 = vmatprep.subr.bf16.mxu1 %v1920_v54  ;;  %v74_v54 = vld [vmem:[%s2632_s0 + $0x1c0] sm:$0xff] }
  0x28   :  { %1757 = vmatpush3.bf16.msra.mxu0 %v1919_v52  ;;  %v1548_v52 = vcombine.high %v67_v44, %v71_v45 }
  0x29   :  { %1821 = vmatpush3.bf16.msra.mxu1 %v1921_v55  ;;  %1758 = vmatprep.subr.bf16.mxu0 %v1922_v62  ;;  %v78_v55 = vld [vmem:[%s2632_s0 + $0x1e0] sm:$0xff]  ;;  %v20_v62 = vld [vmem:[%s2632_s0 + $0x10] sm:$0xff] }
  0x2a   :  { %1822 = vmatprep.subr.bf16.mxu1 %v1924_v0  ;;  %v21_v0 = vld [vmem:[%s2632_s0 + $0x18] sm:$0xff] }
  0x2b   :  { %955 = vmatmul.mubr.bf16.gmra.mrb[4].mxu0 %v1505_v51  ;;  %v1944_v51 = vld [vmem:[%s2631_s1 + $0x1f8] sm:$0xff]  }
  0x2c   :  { %1052 = vmatmul.mubr.bf16.gmra.mrb[4].mxu1 %v1507_v53  ;;  %962 = vmatprep.mubr.bf16.mxu0 %v1514_v60  ;;  %v1945_v53 = vld [vmem:[%s2631_s1 + $0x1b8] sm:$0xff]   ;;  %v1554_v60 = vcombine.high %v74_v54, %v78_v55 }
  0x2d   :  { %1059 = vmatprep.mubr.bf16.mxu1 %v1516_v61  ;;  %1759 = vmatpush3.bf16.msra.mxu0 %v1923_v63  ;;  %v1556_v61 = vcombine.high %v75_v56, %v79_v57  ;;  %v24_v63 = vld [vmem:[%s2632_s0 + $0x30] sm:$0xff]  ;;  %v77_v56 = vld [vmem:[%s2632_s0 + $0x1d8] sm:$0xff] }
  0x2e   :  { %1823 = vmatpush3.bf16.msra.mxu1 %v1925_v1  ;;  %1760 = vmatprep.subr.bf16.mxu0 %v1926_v10  ;;  %v25_v1 = vld [vmem:[%s2632_s0 + $0x38] sm:$0xff]  ;;  %v1502_v4 = vcombine.high %v20_v62, %v24_v63  ;;  %v1501_v10 = vcombine.low %v20_v62, %v24_v63 }
  0x2f   :  { %1824 = vmatprep.subr.bf16.mxu1 %v1928_v12  ;;  %v1504_v5 = vcombine.high %v21_v0, %v25_v1  ;;  %v81_v57 = vld [vmem:[%s2632_s0 + $0x1f8] sm:$0xff] }
  0x30   :  { %v1559_v63 = vcombine.low %v77_v56, %v81_v57 }
  0x31   :  { %1761 = vmatpush3.bf16.msra.mxu0 %v1927_v11  ;;  %v1503_v11 = vcombine.low %v21_v0, %v25_v1 }
  0x32   :  { %1825 = vmatpush3.bf16.msra.mxu1 %v1929_v13  ;;  %1762 = vmatprep.subr.bf16.mxu0 %v1930_v18 }
  0x33   :  { %963 = vmatmul.mubr.bf16.gmra.mrb[8].mxu0 %v1513_v2  ;;  %1826 = vmatprep.subr.bf16.mxu1 %v1932_v23  ;;  %v1553_v2 = vcombine.low %v74_v54, %v78_v55  ;;  %v48_v23 = vld [vmem:[%s2632_s0 + $0xf0] sm:$0xff] }
  0x34   :  { %1060 = vmatmul.mubr.bf16.gmra.mrb[8].mxu1 %v1515_v6  ;;  %970 = vmatprep.mubr.bf16.mxu0 %v1522_v7  ;;  %v28_v6 = vld [vmem:[%s2632_s0 + $0x50] sm:$0xff] }
  0x35   :  { %1067 = vmatprep.mubr.bf16.mxu1 %v1524_v9  ;;  %1763 = vmatpush3.bf16.msra.mxu0 %v1931_v20  ;;  %v32_v7 = vld [vmem:[%s2632_s0 + $0x70] sm:$0xff]  ;;  %v33_v9 = vld [vmem:[%s2632_s0 + $0x78] sm:$0xff]  ;;  %v1518_v20 = vcombine.high %v36_v14, %v40_v15 }
  0x36   :  { %1827 = vmatpush3.bf16.msra.mxu1 %v1933_v25  ;;  %1764 = vmatprep.subr.bf16.mxu0 %v1934_v28  ;;  %v1510_v12 = vcombine.high %v28_v6, %v32_v7  ;;  %v1512_v13 = vcombine.high %v29_v8, %v33_v9  ;;  %v1509_v18 = vcombine.low %v28_v6, %v32_v7  ;;  %v49_v25 = vld [vmem:[%s2632_s0 + $0xf8] sm:$0xff]  ;;  %v76_v54 = vld [vmem:[%s2632_s0 + $0x1d0] sm:$0xff] }
  0x37   :  { %1828 = vmatprep.subr.bf16.mxu1 %v1936_v32  ;;  %v53_v32 = vld [vmem:[%s2632_s0 + $0x118] sm:$0xff]  ;;  %v80_v55 = vld [vmem:[%s2632_s0 + $0x1f0] sm:$0xff] }
  0x38   :  { %v1557_v62 = vcombine.low %v76_v54, %v80_v55 }
  0x39   :  { %1765 = vmatpush3.bf16.msra.mxu0 %v1935_v31  ;;  %v56_v31 = vld [vmem:[%s2632_s0 + $0x130] sm:$0xff] }
  0x3a   :  { %1829 = vmatpush3.bf16.msra.mxu1 %v1937_v33  ;;  %1766 = vmatprep.subr.bf16.mxu0 %v1938_v38  ;;  %v57_v33 = vld [vmem:[%s2632_s0 + $0x138] sm:$0xff]  ;;  %v60_v38 = vld [vmem:[%s2632_s0 + $0x150] sm:$0xff]  ;;  %v1533_v42 = vcombine.low %v52_v30, %v56_v31 }
  0x3b   :  { %971 = vmatmul.mubr.bf16.gmra.mrb[12].mxu0 %v1521_v19  ;;  %1830 = vmatprep.subr.bf16.mxu1 %v1940_v40  ;;  %v1511_v19 = vcombine.low %v29_v8, %v33_v9  ;;  %v61_v40 = vld [vmem:[%s2632_s0 + $0x158] sm:$0xff] }
  0x3c   :  { %1068 = vmatmul.mubr.bf16.gmra.mrb[12].mxu1 %v1523_v21  ;;  %978 = vmatprep.mubr.bf16.mxu0 %v1530_v22  ;;  %v1520_v21 = vcombine.high %v37_v16, %v41_v17  ;;  %v44_v22 = vld [vmem:[%s2632_s0 + $0xd0] sm:$0xff]  ;;  %v1544_v45 = vcombine.high %v61_v40, %v65_v41 }
  0x3d   :  { %1075 = vmatprep.mubr.bf16.mxu1 %v1532_v24  ;;  %1767 = vmatpush3.bf16.msra.mxu0 %v1939_v39  ;;  %v45_v24 = vld [vmem:[%s2632_s0 + $0xd8] sm:$0xff]  ;;  %v1526_v28 = vcombine.high %v44_v22, %v48_v23  ;;  %v64_v39 = vld [vmem:[%s2632_s0 + $0x170] sm:$0xff] }
  0x3e   :  { %1831 = vmatpush3.bf16.msra.mxu1 %v1941_v43  ;;  %1768 = vmatprep.subr.bf16.mxu0 %v1942_v46  ;;  %v1528_v29 = vcombine.high %v45_v24, %v49_v25  ;;  %v1535_v43 = vcombine.low %v53_v32, %v57_v33  ;;  %v1542_v44 = vcombine.high %v60_v38, %v64_v39  ;;  %v68_v46 = vld [vmem:[%s2632_s0 + $0x190] sm:$0xff] }
  0x3f   :  { %1832 = vmatprep.subr.bf16.mxu1 %v1944_v51  ;;  %v1543_v51 = vcombine.low %v61_v40, %v65_v41 }
  0x41   :  { %1769 = vmatpush3.bf16.msra.mxu0 %v1943_v48  ;;  %v69_v48 = vld [vmem:[%s2632_s0 + $0x198] sm:$0xff] }
  0x42   :  { %1833 = vmatpush3.bf16.msra.mxu1 %v1945_v53 }
  0x43   :  { %979 = vmatmul.mubr.bf16.gmra.mrb[16].mxu0 %v1529_v34  ;;  %v1525_v34 = vcombine.low %v44_v22, %v48_v23 }
  0x44   :  { %1076 = vmatmul.mubr.bf16.gmra.mrb[16].mxu1 %v1531_v35  ;;  %986 = vmatprep.mubr.bf16.mxu0 %v1538_v36  ;;  %v1527_v35 = vcombine.low %v45_v24, %v49_v25  ;;  %v1534_v36 = vcombine.high %v52_v30, %v56_v31 }
  0x45   :  { %1083 = vmatprep.mubr.bf16.mxu1 %v1540_v37  ;;  %v1536_v37 = vcombine.high %v53_v32, %v57_v33 }
  0x4b   :  { %987 = vmatmul.mubr.bf16.gmra.mrb[20].mxu0 %v1537_v47  ;;  %v72_v47 = vld [vmem:[%s2632_s0 + $0x1b0] sm:$0xff] }
  0x4c   :  { %1084 = vmatmul.mubr.bf16.gmra.mrb[20].mxu1 %v1539_v49  ;;  %994 = vmatprep.mubr.bf16.mxu0 %v1546_v50  ;;  %v73_v49 = vld [vmem:[%s2632_s0 + $0x1b8] sm:$0xff]  ;;  %v1541_v50 = vcombine.low %v60_v38, %v64_v39 }
  0x4d   :  { %1091 = vmatprep.mubr.bf16.mxu1 %v1548_v52  ;;  %v1550_v52 = vcombine.high %v68_v46, %v72_v47  ;;  %v1552_v53 = vcombine.high %v69_v48, %v73_v49 }
  0x53   :  { %995 = vmatmul.mubr.bf16.gmra.mrb[24].mxu0 %v1545_v58  ;;  %v1549_v58 = vcombine.low %v68_v46, %v72_v47 }
  0x54   :  { %1092 = vmatmul.mubr.bf16.gmra.mrb[24].mxu1 %v1547_v59  ;;  %1002 = vmatprep.mubr.bf16.mxu0 %v1554_v60  ;;  %v1551_v59 = vcombine.low %v69_v48, %v73_v49  ;;  %v1558_v60 = vcombine.high %v76_v54, %v80_v55 }
  0x55   :  { %1099 = vmatprep.mubr.bf16.mxu1 %v1556_v61  ;;  %v1560_v61 = vcombine.high %v77_v56, %v81_v57 }
  0x5b   :  { %1003 = vmatmul.mubr.bf16.gmra.mrb[28].mxu0 %v1553_v2 }
  0x5c   :  { %1100 = vmatmul.mubr.bf16.gmra.mrb[28].mxu1 %v1555_v3  ;;  %1140 = vmatprep.mubr.bf16.mxu0 %v1502_v4 }
  0x5d   :  { %1237 = vmatprep.mubr.bf16.mxu1 %v1504_v5 }
  0x63   :  { %1141 = vmatmul.mubr.bf16.vlgmr.msra.gmra.mrb[32].mxu0 %v1501_v10 }
  0x64   :  { %1238 = vmatmul.mubr.bf16.vlgmr.msra.gmra.mrb[32].mxu1 %v1503_v11  ;;  %1148 = vmatprep.mubr.bf16.mxu0 %v1510_v12 }
  0x65   :  { %1245 = vmatprep.mubr.bf16.mxu1 %v1512_v13 }
  0x6b   :  { %1149 = vmatmul.mubr.bf16.gmra.mrb[36].mxu0 %v1509_v18 }
  0x6c   :  { %1246 = vmatmul.mubr.bf16.gmra.mrb[36].mxu1 %v1511_v19  ;;  %1156 = vmatprep.mubr.bf16.mxu0 %v1518_v20 }
  0x6d   :  { %1253 = vmatprep.mubr.bf16.mxu1 %v1520_v21 }
  0x73   :  { %1157 = vmatmul.mubr.bf16.gmra.mrb[40].mxu0 %v1517_v26 }
  0x74   :  { %1254 = vmatmul.mubr.bf16.gmra.mrb[40].mxu1 %v1519_v27  ;;  %1164 = vmatprep.mubr.bf16.mxu0 %v1526_v28 }
  0x75   :  { %1261 = vmatprep.mubr.bf16.mxu1 %v1528_v29 }
  0x7b   :  { %1165 = vmatmul.mubr.bf16.gmra.mrb[44].mxu0 %v1525_v34 }
  0x7c   :  { %1262 = vmatmul.mubr.bf16.gmra.mrb[44].mxu1 %v1527_v35  ;;  %1172 = vmatprep.mubr.bf16.mxu0 %v1534_v36 }
  0x7d   :  { %1269 = vmatprep.mubr.bf16.mxu1 %v1536_v37 }
  0x83   :  { %1173 = vmatmul.mubr.bf16.gmra.mrb[48].mxu0 %v1533_v42 }
  0x84   :  { %1270 = vmatmul.mubr.bf16.gmra.mrb[48].mxu1 %v1535_v43  ;;  %1180 = vmatprep.mubr.bf16.mxu0 %v1542_v44 }
  0x85   :  { %1277 = vmatprep.mubr.bf16.mxu1 %v1544_v45 }
  0x8b   :  { %1181 = vmatmul.mubr.bf16.gmra.mrb[52].mxu0 %v1541_v50 }
  0x8c   :  { %1278 = vmatmul.mubr.bf16.gmra.mrb[52].mxu1 %v1543_v51  ;;  %1188 = vmatprep.mubr.bf16.mxu0 %v1550_v52 }
  0x8d   :  { %1285 = vmatprep.mubr.bf16.mxu1 %v1552_v53 }
  0x93   :  { %1189 = vmatmul.mubr.bf16.gmra.mrb[56].mxu0 %v1549_v58 }
  0x94   :  { %1286 = vmatmul.mubr.bf16.gmra.mrb[56].mxu1 %v1551_v59  ;;  %1196 = vmatprep.mubr.bf16.mxu0 %v1558_v60 }
  0x95   :  { %1293 = vmatprep.mubr.bf16.mxu1 %v1560_v61 }
  0x9b   :  { %1197 = vmatmul.mubr.bf16.gmra.mrb[60].mxu0 %v1557_v62 }
  0x9c   :  { %1294 = vmatmul.mubr.bf16.gmra.mrb[60].mxu1 %v1559_v63 }
  0xf6   :  { %v1642_v0 = vpop.f32.mrb[0].mxu0 }
  0xf7   :  { %v1706_v1 = vpop.f32.mrb[0].mxu1  ;;  %v1643_v2 = vpop.f32.mrb[1].mxu0 }
  0xf8   :  { %v1644_v3 = vadd.f32 %v1643_v2, %v1642_v0  ;;  %v1707_v4 = vpop.f32.mrb[1].mxu1  ;;  %v1645_v5 = vpop.f32.mrb[2].mxu0 }
  0xf9   :  { %v1708_v6 = vadd.f32 %v1707_v4, %v1706_v1  ;;  %v1709_v7 = vpop.f32.mrb[2].mxu1  ;;  %v1646_v8 = vpop.f32.mrb[3].mxu0 }
  0xfa   :  { %v1647_v9 = vadd.f32 %v1646_v8, %v1645_v5  ;;  %v1710_v10 = vpop.f32.mrb[3].mxu1 }
  0xfb   :  { %v2357_v11 = vadd.f32 %v1708_v6, %v1644_v3  ;;  %v1711_v12 = vadd.f32 %v1710_v10, %v1709_v7 }
  0xfd   :  { %v2359_v13 = vadd.f32 %v1711_v12, %v1647_v9 }
  0xfe   :  { %v1648_v14 = vpop.f32.mrb[4].mxu0 }
  0xff   :  { %v1712_v15 = vpop.f32.mrb[4].mxu1  ;;  %v1649_v16 = vpop.f32.mrb[5].mxu0 }
 0x100   :  { %v1650_v17 = vadd.f32 %v1649_v16, %v1648_v14  ;;  %v1713_v18 = vpop.f32.mrb[5].mxu1  ;;  %v1651_v19 = vpop.f32.mrb[6].mxu0 }
 0x101   :  { %v1714_v20 = vadd.f32 %v1713_v18, %v1712_v15  ;;  %v1715_v21 = vpop.f32.mrb[6].mxu1  ;;  %v1652_v22 = vpop.f32.mrb[7].mxu0 }
 0x102   :  { %v1653_v23 = vadd.f32 %v1652_v22, %v1651_v19  ;;  %v1716_v24 = vpop.f32.mrb[7].mxu1 }
 0x103   :  { %v2361_v25 = vadd.f32 %v1714_v20, %v1650_v17  ;;  %v1717_v26 = vadd.f32 %v1716_v24, %v1715_v21 }
 0x105   :  { %v2363_v27 = vadd.f32 %v1717_v26, %v1653_v23 }
 0x106   :  { %v1654_v28 = vpop.f32.mrb[8].mxu0 }
 0x107   :  { %v1718_v29 = vpop.f32.mrb[8].mxu1  ;;  %v1655_v30 = vpop.f32.mrb[9].mxu0 }
 0x108   :  { %v1656_v31 = vadd.f32 %v1655_v30, %v1654_v28  ;;  %v1719_v32 = vpop.f32.mrb[9].mxu1  ;;  %v1657_v33 = vpop.f32.mrb[10].mxu0 }
 0x109   :  { %v1720_v34 = vadd.f32 %v1719_v32, %v1718_v29  ;;  %v1721_v35 = vpop.f32.mrb[10].mxu1  ;;  %v1658_v36 = vpop.f32.mrb[11].mxu0 }
 0x10a   :  { %v1659_v37 = vadd.f32 %v1658_v36, %v1657_v33  ;;  %v1722_v38 = vpop.f32.mrb[11].mxu1 }
 0x10b   :  { %v2365_v39 = vadd.f32 %v1720_v34, %v1656_v31  ;;  %v1723_v40 = vadd.f32 %v1722_v38, %v1721_v35 }
 0x10d   :  { %v2367_v41 = vadd.f32 %v1723_v40, %v1659_v37 }
 0x10e   :  { %v1660_v42 = vpop.f32.mrb[12].mxu0 }
 0x10f   :  { %v1724_v43 = vpop.f32.mrb[12].mxu1  ;;  %v1661_v44 = vpop.f32.mrb[13].mxu0 }
 0x110   :  { %v1662_v45 = vadd.f32 %v1661_v44, %v1660_v42  ;;  %v1725_v46 = vpop.f32.mrb[13].mxu1  ;;  %v1663_v47 = vpop.f32.mrb[14].mxu0 }
 0x111   :  { %v1726_v48 = vadd.f32 %v1725_v46, %v1724_v43  ;;  %v1727_v49 = vpop.f32.mrb[14].mxu1  ;;  %v1664_v50 = vpop.f32.mrb[15].mxu0 }
 0x112   :  { %v1665_v51 = vadd.f32 %v1664_v50, %v1663_v47  ;;  %v1728_v52 = vpop.f32.mrb[15].mxu1 }
 0x113   :  { %v2369_v53 = vadd.f32 %v1726_v48, %v1662_v45  ;;  %v1729_v54 = vadd.f32 %v1728_v52, %v1727_v49 }
 0x115   :  { %v2371_v55 = vadd.f32 %v1729_v54, %v1665_v51 }
 0x116   :  { %v1666_v56 = vpop.f32.mrb[16].mxu0 }
 0x117   :  { %v1730_v57 = vpop.f32.mrb[16].mxu1  ;;  %v1667_v58 = vpop.f32.mrb[17].mxu0 }
 0x118   :  { %v1668_v59 = vadd.f32 %v1667_v58, %v1666_v56  ;;  %v1731_v60 = vpop.f32.mrb[17].mxu1  ;;  %v1669_v61 = vpop.f32.mrb[18].mxu0 }
 0x119   :  { %v1732_v62 = vadd.f32 %v1731_v60, %v1730_v57  ;;  %v1733_v63 = vpop.f32.mrb[18].mxu1  ;;  %v1670_v0 = vpop.f32.mrb[19].mxu0 }
 0x11a   :  { %v1671_v1 = vadd.f32 %v1670_v0, %v1669_v61  ;;  %v1734_v2 = vpop.f32.mrb[19].mxu1 }
 0x11b   :  { %v2373_v3 = vadd.f32 %v1732_v62, %v1668_v59  ;;  %v1735_v4 = vadd.f32 %v1734_v2, %v1733_v63 }
 0x11d   :  { %v2375_v5 = vadd.f32 %v1735_v4, %v1671_v1 }
 0x11e   :  { %v1672_v6 = vpop.f32.mrb[20].mxu0 }
 0x11f   :  { %v1736_v7 = vpop.f32.mrb[20].mxu1  ;;  %v1673_v8 = vpop.f32.mrb[21].mxu0 }
 0x120   :  { %v1674_v9 = vadd.f32 %v1673_v8, %v1672_v6  ;;  %v1737_v10 = vpop.f32.mrb[21].mxu1  ;;  %v1675_v12 = vpop.f32.mrb[22].mxu0 }
 0x121   :  { %v1738_v14 = vadd.f32 %v1737_v10, %v1736_v7  ;;  %v1739_v15 = vpop.f32.mrb[22].mxu1  ;;  %v1676_v16 = vpop.f32.mrb[23].mxu0 }
 0x122   :  { %v1677_v17 = vadd.f32 %v1676_v16, %v1675_v12  ;;  %v1740_v18 = vpop.f32.mrb[23].mxu1 }
 0x123   :  { %v2377_v19 = vadd.f32 %v1738_v14, %v1674_v9  ;;  %v1741_v20 = vadd.f32 %v1740_v18, %v1739_v15 }
 0x125   :  { %v2379_v21 = vadd.f32 %v1741_v20, %v1677_v17 }
 0x126   :  { %v1678_v22 = vpop.f32.mrb[24].mxu0 }
 0x127   :  { %v1742_v23 = vpop.f32.mrb[24].mxu1  ;;  %v1679_v24 = vpop.f32.mrb[25].mxu0 }
 0x128   :  { %v1680_v26 = vadd.f32 %v1679_v24, %v1678_v22  ;;  %v1743_v28 = vpop.f32.mrb[25].mxu1  ;;  %v1681_v29 = vpop.f32.mrb[26].mxu0 }
 0x129   :  { %v1744_v30 = vadd.f32 %v1743_v28, %v1742_v23  ;;  %v1745_v31 = vpop.f32.mrb[26].mxu1  ;;  %v1682_v32 = vpop.f32.mrb[27].mxu0 }
 0x12a   :  { %v1683_v33 = vadd.f32 %v1682_v32, %v1681_v29  ;;  %v1746_v34 = vpop.f32.mrb[27].mxu1 }
 0x12b   :  { %v2381_v35 = vadd.f32 %v1744_v30, %v1680_v26  ;;  %v1747_v36 = vadd.f32 %v1746_v34, %v1745_v31 }
 0x12d   :  { %v2383_v37 = vadd.f32 %v1747_v36, %v1683_v33 }
 0x12e   :  { %v1684_v38 = vpop.f32.mrb[28].mxu0 }
 0x12f   :  { %v1748_v40 = vpop.f32.mrb[28].mxu1  ;;  %v1685_v42 = vpop.f32.mrb[29].mxu0 }
 0x130   :  { %v1686_v43 = vadd.f32 %v1685_v42, %v1684_v38  ;;  %v1749_v44 = vpop.f32.mrb[29].mxu1  ;;  %v1687_v45 = vpop.f32.mrb[30].mxu0 }
 0x131   :  { %v1750_v46 = vadd.f32 %v1749_v44, %v1748_v40  ;;  %v1751_v47 = vpop.f32.mrb[30].mxu1  ;;  %v1688_v48 = vpop.f32.mrb[31].mxu0 }
 0x132   :  { %v1689_v49 = vadd.f32 %v1688_v48, %v1687_v45  ;;  %v1752_v50 = vpop.f32.mrb[31].mxu1 }
 0x133   :  { %v2385_v51 = vadd.f32 %v1750_v46, %v1686_v43  ;;  %v1753_v52 = vadd.f32 %v1752_v50, %v1751_v47 }
 0x135   :  { %v2387_v54 = vadd.f32 %v1753_v52, %v1689_v49 }
 0x136   :  { %v1770_v56 = vpop.f32.mrb[32].mxu0 }
 0x137   :  { %v1834_v57 = vpop.f32.mrb[32].mxu1  ;;  %v1771_v58 = vpop.f32.mrb[33].mxu0 }
 0x138   :  { %v1772_v59 = vadd.f32 %v1771_v58, %v1770_v56  ;;  %v1835_v60 = vpop.f32.mrb[33].mxu1  ;;  %v1773_v61 = vpop.f32.mrb[34].mxu0 }
 0x139   :  { %v1836_v62 = vadd.f32 %v1835_v60, %v1834_v57  ;;  %v1837_v63 = vpop.f32.mrb[34].mxu1  ;;  %v1774_v0 = vpop.f32.mrb[35].mxu0 }
 0x13a   :  { %v1143_v1 = vadd.f32 %v1772_v59, %v2357_v11  ;;  %v1775_v2 = vadd.f32 %v1774_v0, %v1773_v61  ;;  %v1838_v4 = vpop.f32.mrb[35].mxu1 }
 0x13b   :  { %v1839_v6 = vadd.f32 %v1838_v4, %v1837_v63 }
 0x13c   :  { %v2390_v7 = vadd.f32 %v1836_v62, %v1143_v1  ;;  %v1146_v8 = vadd.f32 %v1775_v2, %v2359_v13 }
 0x13e   :  { %v2393_v9 = vadd.f32 %v1839_v6, %v1146_v8  ;;  %v1776_v10 = vpop.f32.mrb[36].mxu0  ;;  %v1303_v15 = vsel %vm1302_vm0, %v2390_v7, 0.0 }
 0x13f   :  { %v1840_v12 = vpop.f32.mrb[36].mxu1  ;;  %v1777_v14 = vpop.f32.mrb[37].mxu0 }
 0x140   :  { %v1304_v16 = vsel %vm1302_vm0, %v2393_v9, 0.0  ;;  %v1778_v11 = vadd.f32 %v1777_v14, %v1776_v10  ;;  %v1841_v17 = vpop.f32.mrb[37].mxu1  ;;  %v1779_v18 = vpop.f32.mrb[38].mxu0 }
 0x141   :  { %v1305_v20 = vadd.f32 %v1304_v16, %v1303_v15  ;;  %v1842_v22 = vadd.f32 %v1841_v17, %v1840_v12  ;;  %v1843_v23 = vpop.f32.mrb[38].mxu1  ;;  %v1780_v24 = vpop.f32.mrb[39].mxu0 }
 0x142   :  { %v1151_v13 = vadd.f32 %v1778_v11, %v2361_v25  ;;  %v1781_v26 = vadd.f32 %v1780_v24, %v1779_v18  ;;  %v1844_v28 = vpop.f32.mrb[39].mxu1 }
 0x143   :  { %v1845_v29 = vadd.f32 %v1844_v28, %v1843_v23 }
 0x144   :  { %v2400_v30 = vadd.f32 %v1842_v22, %v1151_v13  ;;  %v1154_v31 = vadd.f32 %v1781_v26, %v2363_v27 }
 0x146   :  { %v1306_v32 = vsel %vm1302_vm0, %v2400_v30, 0.0  ;;  %v2405_v33 = vadd.f32 %v1845_v29, %v1154_v31  ;;  %v1782_v34 = vpop.f32.mrb[40].mxu0 }
 0x147   :  { %v1307_v36 = vadd.f32 %v1306_v32, %v1305_v20  ;;  %v1846_v38 = vpop.f32.mrb[40].mxu1  ;;  %v1783_v40 = vpop.f32.mrb[41].mxu0 }
 0x148   :  { %v1308_v42 = vsel %vm1302_vm0, %v2405_v33, 0.0  ;;  %v1784_v25 = vadd.f32 %v1783_v40, %v1782_v34  ;;  %v1847_v43 = vpop.f32.mrb[41].mxu1  ;;  %v1785_v44 = vpop.f32.mrb[42].mxu0 }
 0x149   :  { %v1309_v45 = vadd.f32 %v1308_v42, %v1307_v36  ;;  %v1848_v46 = vadd.f32 %v1847_v43, %v1846_v38  ;;  %v1849_v47 = vpop.f32.mrb[42].mxu1  ;;  %v1786_v48 = vpop.f32.mrb[43].mxu0 }
 0x14a   :  { %v1159_v27 = vadd.f32 %v1784_v25, %v2365_v39  ;;  %v1787_v49 = vadd.f32 %v1786_v48, %v1785_v44  ;;  %v1850_v50 = vpop.f32.mrb[43].mxu1 }
 0x14b   :  { %v1851_v52 = vadd.f32 %v1850_v50, %v1849_v47 }
 0x14c   :  { %v2410_v56 = vadd.f32 %v1848_v46, %v1159_v27  ;;  %v1162_v57 = vadd.f32 %v1787_v49, %v2367_v41 }
 0x14e   :  { %v1310_v58 = vsel %vm1302_vm0, %v2410_v56, 0.0  ;;  %v2415_v59 = vadd.f32 %v1851_v52, %v1162_v57  ;;  %v1788_v60 = vpop.f32.mrb[44].mxu0 }
 0x14f   :  { %v1311_v61 = vadd.f32 %v1310_v58, %v1309_v45  ;;  %v1852_v62 = vpop.f32.mrb[44].mxu1  ;;  %v1789_v63 = vpop.f32.mrb[45].mxu0 }
 0x150   :  { %v1312_v0 = vsel %vm1302_vm0, %v2415_v59, 0.0  ;;  %v1790_v39 = vadd.f32 %v1789_v63, %v1788_v60  ;;  %v1853_v1 = vpop.f32.mrb[45].mxu1  ;;  %v1791_v2 = vpop.f32.mrb[46].mxu0 }
 0x151   :  { %v1313_v4 = vadd.f32 %v1312_v0, %v1311_v61  ;;  %v1854_v6 = vadd.f32 %v1853_v1, %v1852_v62  ;;  %v1855_v8 = vpop.f32.mrb[46].mxu1  ;;  %v1792_v10 = vpop.f32.mrb[47].mxu0 }
 0x152   :  { %v1167_v41 = vadd.f32 %v1790_v39, %v2369_v53  ;;  %v1793_v12 = vadd.f32 %v1792_v10, %v1791_v2  ;;  %v1856_v14 = vpop.f32.mrb[47].mxu1 }
 0x153   :  { %v1857_v15 = vadd.f32 %v1856_v14, %v1855_v8 }
 0x154   :  { %v2420_v16 = vadd.f32 %v1854_v6, %v1167_v41  ;;  %v1170_v11 = vadd.f32 %v1793_v12, %v2371_v55 }
 0x156   :  { %v1314_v17 = vsel %vm1302_vm0, %v2420_v16, 0.0  ;;  %v2425_v18 = vadd.f32 %v1857_v15, %v1170_v11  ;;  %v1794_v20 = vpop.f32.mrb[48].mxu0 }
 0x157   :  { %v1315_v22 = vadd.f32 %v1314_v17, %v1313_v4  ;;  %v1858_v23 = vpop.f32.mrb[48].mxu1  ;;  %v1795_v24 = vpop.f32.mrb[49].mxu0 }
 0x158   :  { %v1316_v13 = vsel %vm1302_vm0, %v2425_v18, 0.0  ;;  %v1796_v53 = vadd.f32 %v1795_v24, %v1794_v20  ;;  %v1859_v26 = vpop.f32.mrb[49].mxu1  ;;  %v1797_v28 = vpop.f32.mrb[50].mxu0 }
 0x159   :  { %v1317_v29 = vadd.f32 %v1316_v13, %v1315_v22  ;;  %v1860_v31 = vadd.f32 %v1859_v26, %v1858_v23  ;;  %v1861_v32 = vpop.f32.mrb[50].mxu1  ;;  %v1798_v34 = vpop.f32.mrb[51].mxu0 }
 0x15a   :  { %v1175_v55 = vadd.f32 %v1796_v53, %v2373_v3  ;;  %v1799_v36 = vadd.f32 %v1798_v34, %v1797_v28  ;;  %v1862_v38 = vpop.f32.mrb[51].mxu1 }
 0x15b   :  { %v1863_v40 = vadd.f32 %v1862_v38, %v1861_v32 }
 0x15c   :  { %v2430_v42 = vadd.f32 %v1860_v31, %v1175_v55  ;;  %v1178_v25 = vadd.f32 %v1799_v36, %v2375_v5 }
 0x15e   :  { %v1318_v43 = vsel %vm1302_vm0, %v2430_v42, 0.0  ;;  %v2435_v44 = vadd.f32 %v1863_v40, %v1178_v25  ;;  %v1800_v45 = vpop.f32.mrb[52].mxu0 }
 0x15f   :  { %v1319_v46 = vadd.f32 %v1318_v43, %v1317_v29  ;;  %v1864_v47 = vpop.f32.mrb[52].mxu1  ;;  %v1801_v48 = vpop.f32.mrb[53].mxu0 }
 0x160   :  { %v1320_v27 = vsel %vm1302_vm0, %v2435_v44, 0.0  ;;  %v1802_v3 = vadd.f32 %v1801_v48, %v1800_v45  ;;  %v1865_v49 = vpop.f32.mrb[53].mxu1  ;;  %v1803_v50 = vpop.f32.mrb[54].mxu0 }
 0x161   :  { %v1321_v52 = vadd.f32 %v1320_v27, %v1319_v46  ;;  %v1866_v57 = vadd.f32 %v1865_v49, %v1864_v47  ;;  %v1867_v58 = vpop.f32.mrb[54].mxu1  ;;  %v1804_v60 = vpop.f32.mrb[55].mxu0 }
 0x162   :  { %v1183_v5 = vadd.f32 %v1802_v3, %v2377_v19  ;;  %v1805_v61 = vadd.f32 %v1804_v60, %v1803_v50  ;;  %v1868_v62 = vpop.f32.mrb[55].mxu1 }
 0x163   :  { %v1869_v63 = vadd.f32 %v1868_v62, %v1867_v58 }
 0x164   :  { %v2440_v0 = vadd.f32 %v1866_v57, %v1183_v5  ;;  %v1186_v39 = vadd.f32 %v1805_v61, %v2379_v21 }
 0x166   :  { %v1322_v1 = vsel %vm1302_vm0, %v2440_v0, 0.0  ;;  %v1283_v2 = vadd.f32 %v1869_v63, %v1186_v39  ;;  %v1806_v4 = vpop.f32.mrb[56].mxu0 }
 0x167   :  { %v1323_v6 = vadd.f32 %v1322_v1, %v1321_v52  ;;  %v1870_v8 = vpop.f32.mrb[56].mxu1  ;;  %v1807_v10 = vpop.f32.mrb[57].mxu0 }
 0x168   :  { %v1324_v41 = vsel %vm1302_vm0, %v1283_v2, 0.0  ;;  %v1808_v12 = vadd.f32 %v1807_v10, %v1806_v4  ;;  %v1871_v14 = vpop.f32.mrb[57].mxu1  ;;  %v1809_v19 = vpop.f32.mrb[58].mxu0 }
 0x169   :  { %v1325_v15 = vadd.f32 %v1324_v41, %v1323_v6  ;;  %v1872_v11 = vadd.f32 %v1871_v14, %v1870_v8  ;;  %v1873_v17 = vpop.f32.mrb[58].mxu1  ;;  %v1810_v20 = vpop.f32.mrb[59].mxu0 }
 0x16a   :  { %v1191_v22 = vadd.f32 %v1808_v12, %v2381_v35  ;;  %v1811_v21 = vadd.f32 %v1810_v20, %v1809_v19  ;;  %v1874_v23 = vpop.f32.mrb[59].mxu1 }
 0x16b   :  { %v1875_v24 = vadd.f32 %v1874_v23, %v1873_v17 }
 0x16c   :  { %v1288_v13 = vadd.f32 %v1872_v11, %v1191_v22  ;;  %v1194_v53 = vadd.f32 %v1811_v21, %v2383_v37 }
 0x16e   :  { %v1326_v26 = vsel %vm1302_vm0, %v1288_v13, 0.0  ;;  %v1291_v28 = vadd.f32 %v1875_v24, %v1194_v53  ;;  %v1812_v29 = vpop.f32.mrb[60].mxu0 }
 0x16f   :  { %v1327_v31 = vadd.f32 %v1326_v26, %v1325_v15  ;;  %v1876_v32 = vpop.f32.mrb[60].mxu1  ;;  %v1813_v34 = vpop.f32.mrb[61].mxu0 }
 0x170   :  { %v1328_v55 = vsel %vm1302_vm0, %v1291_v28, 0.0  ;;  %v1814_v36 = vadd.f32 %v1813_v34, %v1812_v29  ;;  %v1877_v38 = vpop.f32.mrb[61].mxu1  ;;  %v1815_v40 = vpop.f32.mrb[62].mxu0 }
 0x171   :  { %v1329_v25 = vadd.f32 %v1328_v55, %v1327_v31  ;;  %v1878_v35 = vadd.f32 %v1877_v38, %v1876_v32  ;;  %v1879_v43 = vpop.f32.mrb[62].mxu1  ;;  %v1816_v45 = vpop.f32.mrb[63].mxu0 }
 0x172   :  { %v1199_v46 = vadd.f32 %v1814_v36, %v2385_v51  ;;  %v1817_v47 = vadd.f32 %v1816_v45, %v1815_v40  ;;  %v1880_v37 = vpop.f32.mrb[63].mxu1 }
 0x173   :  { %v1881_v48 = vadd.f32 %v1880_v37, %v1879_v43 }
 0x174   :  { %v1296_v27 = vadd.f32 %v1878_v35, %v1199_v46  ;;  %v1202_v3 = vadd.f32 %v1817_v47, %v2387_v54 }
 0x176   :  { %v1330_v49 = vsel %vm1302_vm0, %v1296_v27, 0.0  ;;  %v1299_v50 = vadd.f32 %v1881_v48, %v1202_v3 }
 0x177   :  { %v1331_v52 = vadd.f32 %v1330_v49, %v1329_v25 }
 0x178   :  { %v1332_v57 = vsel %vm1302_vm0, %v1299_v50, 0.0 }
 0x179   :  { %v1333_v58 = vadd.f32 %v1332_v57, %v1331_v52 }
 0x17b   :  { %v1334_v60 = vrot.slane %v1333_v58, 4 }
 0x17d   :  { %v1335_v5 = vadd.f32 %v1334_v60, %v1333_v58 }
 0x17f   :  { %v1336_v61 = vrot.slane %v1335_v5, 2 }
 0x181   :  { %v1337_v62 = vadd.f32 %v1336_v61, %v1335_v5 }
 0x183   :  { %v1338_v63 = vrot.slane %v1337_v62, 1 }
 0x185   :  { %v1339_v39 = vadd.f32 %v1338_v63, %v1337_v62 }
 0x187   :  { %v1341_v51 = vmul.f32 0.0078125, %v1339_v39 }
 0x189   :  { %v2455_v1 = vsub.f32 %v2390_v7, %v1341_v51  ;;  %v2458_v4 = vsub.f32 %v2393_v9, %v1341_v51  ;;  %v2461_v54 = vsub.f32 %v2400_v30, %v1341_v51  ;;  %v2464_v6 = vsub.f32 %v2405_v33, %v1341_v51 }
 0x18a   :  { %v2467_v8 = vsub.f32 %v2410_v56, %v1341_v51  ;;  %v2470_v10 = vsub.f32 %v2415_v59, %v1341_v51  ;;  %v2473_v41 = vsub.f32 %v2420_v16, %v1341_v51  ;;  %v2476_v7 = vsub.f32 %v2425_v18, %v1341_v51 }
 0x18b   :  { %v2479_v9 = vsub.f32 %v2430_v42, %v1341_v51  ;;  %v2482_v30 = vsub.f32 %v2435_v44, %v1341_v51  ;;  %v2485_v33 = vsub.f32 %v2440_v0, %v1341_v51  ;;  %v2487_v56 = vsub.f32 %v1283_v2, %v1341_v51 }
 0x18c   :  { %v2489_v12 = vsub.f32 %v1288_v13, %v1341_v51  ;;  %v2491_v59 = vsub.f32 %v1291_v28, %v1341_v51  ;;  %v2493_v16 = vsub.f32 %v1296_v27, %v1341_v51  ;;  %v2495_v14 = vsub.f32 %v1299_v50, %v1341_v51 }
 0x18d   :  { %v1358_v18 = vmul.f32 %v2455_v1, %v2455_v1  ;;  %v1359_v42 = vmul.f32 %v2458_v4, %v2458_v4  ;;  %v1360_v44 = vmul.f32 %v2461_v54, %v2461_v54  ;;  %v1361_v0 = vmul.f32 %v2464_v6, %v2464_v6 }
 0x18e   :  { %v1362_v11 = vmul.f32 %v2467_v8, %v2467_v8  ;;  %v1363_v22 = vmul.f32 %v2470_v10, %v2470_v10  ;;  %v1364_v24 = vmul.f32 %v2473_v41, %v2473_v41  ;;  %v1365_v26 = vmul.f32 %v2476_v7, %v2476_v7 }
 0x18f   :  { %v1374_v2 = vsel %vm1302_vm0, %v1358_v18, 0.0  ;;  %v1375_v19 = vsel %vm1302_vm0, %v1359_v42, 0.0  ;;  %v1377_v17 = vsel %vm1302_vm0, %v1360_v44, 0.0  ;;  %v1379_v21 = vsel %vm1302_vm0, %v1361_v0, 0.0 }
 0x190   :  { %v1376_v15 = vadd.f32 %v1375_v19, %v1374_v2  ;;  %v1381_v13 = vsel %vm1302_vm0, %v1362_v11, 0.0  ;;  %v1383_v28 = vsel %vm1302_vm0, %v1363_v22, 0.0  ;;  %v1366_v31 = vmul.f32 %v2479_v9, %v2479_v9 }
 0x191   :  { %v1385_v32 = vsel %vm1302_vm0, %v1364_v24, 0.0  ;;  %v1367_v55 = vmul.f32 %v2482_v30, %v2482_v30  ;;  %v1387_v36 = vsel %vm1302_vm0, %v1365_v26, 0.0  ;;  %v1368_v40 = vmul.f32 %v2485_v33, %v2485_v33 }
 0x192   :  { %v1378_v20 = vadd.f32 %v1377_v17, %v1376_v15  ;;  %v1389_v25 = vsel %vm1302_vm0, %v1366_v31, 0.0  ;;  %v1369_v43 = vmul.f32 %v2487_v56, %v2487_v56  ;;  %v1370_v47 = vmul.f32 %v2489_v12, %v2489_v12 }
 0x193   :  { %v1391_v45 = vsel %vm1302_vm0, %v1367_v55, 0.0  ;;  %v1393_v37 = vsel %vm1302_vm0, %v1368_v40, 0.0  ;;  %v1371_v27 = vmul.f32 %v2491_v59, %v2491_v59  ;;  %v1372_v50 = vmul.f32 %v2493_v16, %v2493_v16  ;;  %v1625_v55 = vld [vmem:[%s2634_s3] ss:$0 sm:$0xff] }
 0x194   :  { %v1380_v23 = vadd.f32 %v1379_v21, %v1378_v20  ;;  %v1395_v3 = vsel %vm1302_vm0, %v1369_v43, 0.0  ;;  %v1397_v52 = vsel %vm1302_vm0, %v1370_v47, 0.0  ;;  %v1373_v58 = vmul.f32 %v2495_v14, %v2495_v14  ;;  %v1412_v20 = vld [vmem:[%s2633_s2] sm:$0x1] }
 0x195   :  { %v1399_v60 = vsel %vm1302_vm0, %v1371_v27, 0.0  ;;  %v1401_v61 = vsel %vm1302_vm0, %v1372_v50, 0.0  ;;  %v1417_v11 = vlaneseq }
 0x196   :  { %v1382_v53 = vadd.f32 %v1381_v13, %v1380_v23  ;;  %v1403_v63 = vsel %vm1302_vm0, %v1373_v58, 0.0 }
 0x197   :  { %v1418_v17 = vshrl.u32 %v1417_v11, 7 }
 0x198   :  { %v1384_v29 = vadd.f32 %v1383_v28, %v1382_v53 }
 0x199   :  { %v1419_v22 = vsub.s32 0, %v1418_v17 }
 0x19a   :  { %v1386_v34 = vadd.f32 %v1385_v32, %v1384_v29 }
 0x19c   :  { %v1388_v38 = vadd.f32 %v1387_v36, %v1386_v34 }
 0x19e   :  { %v1390_v35 = vadd.f32 %v1389_v25, %v1388_v38 }
 0x1a0   :  { %v1392_v46 = vadd.f32 %v1391_v45, %v1390_v35 }
 0x1a2   :  { %v1394_v48 = vadd.f32 %v1393_v37, %v1392_v46 }
 0x1a4   :  { %v1396_v49 = vadd.f32 %v1395_v3, %v1394_v48 }
 0x1a6   :  { %v1398_v57 = vadd.f32 %v1397_v52, %v1396_v49 }
 0x1a8   :  { %v1400_v5 = vadd.f32 %v1399_v60, %v1398_v57 }
 0x1aa   :  { %v1402_v62 = vadd.f32 %v1401_v61, %v1400_v5 }
 0x1ac   :  { %v1404_v39 = vadd.f32 %v1403_v63, %v1402_v62 }
 0x1ae   :  { %v1405_v51 = vrot.slane %v1404_v39, 4 }
 0x1b0   :  { %v1406_v18 = vadd.f32 %v1405_v51, %v1404_v39 }
 0x1b2   :  { %v1407_v42 = vrot.slane %v1406_v18, 2 }
 0x1b4   :  { %v1408_v44 = vadd.f32 %v1407_v42, %v1406_v18 }
 0x1b6   :  { %v1409_v0 = vrot.slane %v1408_v44, 1 }
 0x1b8   :  { %v1410_v2 = vadd.f32 %v1409_v0, %v1408_v44 }
 0x1ba   :  { %v1411_v19 = vmul.f32 0.0078125, %v1410_v2 }
 0x1bc   :  { %v1413_v15 = vadd.f32 1e-05, %v1411_v19 }
 0x1be   :  { %1946 = vrsqrt.f32 %v1413_v15 }
 0x1c8   :  { %v1947_v21 = vpop.eup %1946 }
 0x1c9   :  { %v1415_v23 = vmul.f32 %v1947_v21, %v1412_v20 }
 0x1cb   :  { %v1420_v24 = vrot.slane %v1415_v23, %v1419_v22 }
 0x1cd   :  { %v1422_v13 = vmul.f32 %v1420_v24, %v2455_v1  ;;  %v1423_v53 = vmul.f32 %v1420_v24, %v2458_v4  ;;  %v1424_v26 = vmul.f32 %v1420_v24, %v2461_v54  ;;  %v1425_v28 = vmul.f32 %v1420_v24, %v2464_v6 }
 0x1ce   :  { %v1426_v29 = vmul.f32 %v1420_v24, %v2467_v8  ;;  %v1427_v31 = vmul.f32 %v1420_v24, %v2470_v10  ;;  %v1428_v32 = vmul.f32 %v1420_v24, %v2473_v41  ;;  %v1429_v34 = vmul.f32 %v1420_v24, %v2476_v7 }
 0x1cf   :  { %v1430_v1 = vmul.f32 %v1420_v24, %v2479_v9  ;;  %v1431_v4 = vmul.f32 %v1420_v24, %v2482_v30  ;;  %v1432_v54 = vmul.f32 %v1420_v24, %v2485_v33  ;;  %v1433_v6 = vmul.f32 %v1420_v24, %v2487_v56 }
 0x1d0   :  { %v1434_v8 = vmul.f32 %v1420_v24, %v2489_v12  ;;  %v1435_v10 = vmul.f32 %v1420_v24, %v2491_v59  ;;  %v1436_v41 = vmul.f32 %v1420_v24, %v2493_v16  ;;  %v1437_v7 = vmul.f32 %v1420_v24, %v2495_v14 }
 0x1d1   :  { %v1445_v36 = vadd.f32 %v1625_v55, %v1422_v13  ;;  %v1446_v38 = vadd.f32 %v1625_v55, %v1423_v53  ;;  %v1447_v40 = vadd.f32 %v1625_v55, %v1424_v26  ;;  %v1448_v25 = vadd.f32 %v1625_v55, %v1425_v28 }
 0x1d2   :  { %v1449_v35 = vadd.f32 %v1625_v55, %v1426_v29  ;;  %v1450_v9 = vadd.f32 %v1625_v55, %v1427_v31  ;;  %v1451_v43 = vadd.f32 %v1625_v55, %v1428_v32  ;;  %v1452_v30 = vadd.f32 %v1625_v55, %v1429_v34 }
 0x1d3   :  { %v1453_v45 = vadd.f32 %v1625_v55, %v1430_v1  ;;  %v1454_v33 = vadd.f32 %v1625_v55, %v1431_v4  ;;  %v1455_v46 = vadd.f32 %v1625_v55, %v1432_v54  ;;  %v1456_v56 = vadd.f32 %v1625_v55, %v1433_v6 }
 0x1d4   :  { %v1457_v47 = vadd.f32 %v1625_v55, %v1434_v8  ;;  %v1458_v12 = vadd.f32 %v1625_v55, %v1435_v10  ;;  %v1459_v37 = vadd.f32 %v1625_v55, %v1436_v41  ;;  %v1460_v59 = vadd.f32 %v1625_v55, %v1437_v7 }
 0x1d5   :  { %v1461_v48 = vmax.f32 %v1445_v36, 0.0  ;;  %v1462_v16 = vmax.f32 %v1446_v38, 0.0  ;;  %v1463_v27 = vmax.f32 %v1447_v40, 0.0  ;;  %v1464_v14 = vmax.f32 %v1448_v25, 0.0 }
 0x1d6   :  { %v1465_v3 = vmax.f32 %v1449_v35, 0.0  ;;  %v1466_v49 = vmax.f32 %v1450_v9, 0.0  ;;  %v1467_v50 = vmax.f32 %v1451_v43, 0.0  ;;  %v1468_v52 = vmax.f32 %v1452_v30, 0.0 }
 0x1d7   :  { %v1469_v57 = vmax.f32 %v1453_v45, 0.0  ;;  %v1470_v58 = vmax.f32 %v1454_v33, 0.0  ;;  %v1471_v60 = vmax.f32 %v1455_v46, 0.0  ;;  %v1472_v5 = vmax.f32 %v1456_v56, 0.0  ;;  %1477 = vst.msk [vmem:[%s2635_s4] sm:$0xff] %vm1302_vm0, %v1461_v48  ;;  %1478 = vst.msk [vmem:[%s2635_s4 + $0x8] sm:$0xff] %vm1302_vm0, %v1462_v16 }
 0x1d8   :  { %1479 = vst.msk [vmem:[%s2635_s4 + $0x10] sm:$0xff] %vm1302_vm0, %v1463_v27  ;;  %1480 = vst.msk [vmem:[%s2635_s4 + $0x18] sm:$0xff] %vm1302_vm0, %v1464_v14  ;;  %v1473_v61 = vmax.f32 %v1457_v47, 0.0  ;;  %v1474_v62 = vmax.f32 %v1458_v12, 0.0  ;;  %v1475_v63 = vmax.f32 %v1459_v37, 0.0  ;;  %v1476_v39 = vmax.f32 %v1460_v59, 0.0 }
 0x1d9   :  { %1481 = vst.msk [vmem:[%s2635_s4 + $0x20] sm:$0xff] %vm1302_vm0, %v1465_v3  ;;  %1482 = vst.msk [vmem:[%s2635_s4 + $0x28] sm:$0xff] %vm1302_vm0, %v1466_v49 }
 0x1da   :  { %1483 = vst.msk [vmem:[%s2635_s4 + $0x30] sm:$0xff] %vm1302_vm0, %v1467_v50  ;;  %1484 = vst.msk [vmem:[%s2635_s4 + $0x38] sm:$0xff] %vm1302_vm0, %v1468_v52 }
 0x1db   :  { %1485 = vst.msk [vmem:[%s2635_s4 + $0x40] sm:$0xff] %vm1302_vm0, %v1469_v57  ;;  %1486 = vst.msk [vmem:[%s2635_s4 + $0x48] sm:$0xff] %vm1302_vm0, %v1470_v58 }
 0x1dc   :  { %1487 = vst.msk [vmem:[%s2635_s4 + $0x50] sm:$0xff] %vm1302_vm0, %v1471_v60  ;;  %1488 = vst.msk [vmem:[%s2635_s4 + $0x58] sm:$0xff] %vm1302_vm0, %v1472_v5 }
 0x1dd   :  { %1489 = vst.msk [vmem:[%s2635_s4 + $0x60] sm:$0xff] %vm1302_vm0, %v1473_v61  ;;  %1490 = vst.msk [vmem:[%s2635_s4 + $0x68] sm:$0xff] %vm1302_vm0, %v1474_v62 }
 0x1de   :  { %1491 = vst.msk [vmem:[%s2635_s4 + $0x70] sm:$0xff] %vm1302_vm0, %v1475_v63  ;;  %1492 = vst.msk [vmem:[%s2635_s4 + $0x78] sm:$0xff] %vm1302_vm0, %v1476_v39 }

// kernel: cvae_forward.19
= control target key start
LH: loop header
LB: loop body
LE: loop exit
PB: predicated region body
PF: predicated region fallthrough
CT: control target
= control target key end

     0   :  { %v2912_v0 = vmov 0   ;;  %vm2008_vm0 = vcmask 23552   ;;  %s3775_s1 = inlined_call_operand.vmem [shape: bf16[512,3], index: 1, kind: input, shape index: {}]   ;;  %s3776_s0 = inlined_call_operand.vmem [shape: bf16[512,512], index: 0, kind: input, shape index: {}]   ;;  %s3777_s2 = inlined_call_operand.vmem [shape: f32[1,3], index: 2, kind: input, shape index: {}]   ;;  %s3778_s3 = inlined_call_operand.vmem [shape: f32[512,3], index: 3, kind: output, shape index: {}]  }
   0x1   :  { %1046 = vmatprep.subr.bf16.mxu1 %v2912_v0  ;;  %1335 = vmatprep.subr.bf16.mxu0 %v2912_v0  ;;  %v2431_v1 = vld [vmem:[%s3775_s1] sm:$0xff]   ;;  %v2433_v3 = vld [vmem:[%s3775_s1 + $0x8] sm:$0xff]   ;;  %v2435_v5 = vld [vmem:[%s3775_s1 + $0x10] sm:$0xff]  }
   0x2   :  { %v2432_v2 = vld [vmem:[%s3775_s1 + $0x80] sm:$0xff]   ;;  %1047 = vmatpush1.bf16.msra.mxu1 %v2431_v1  ;;  %v2434_v4 = vld [vmem:[%s3775_s1 + $0x88] sm:$0xff]   ;;  %v2436_v6 = vld [vmem:[%s3775_s1 + $0x90] sm:$0xff]  }
   0x3   :  { %1336 = vmatpush1.bf16.msra.mxu0 %v2432_v2  ;;  %1048 = vmatprep.subr.bf16.mxu1 %v2912_v0  ;;  %v2437_v7 = vld [vmem:[%s3775_s1 + $0x18] sm:$0xff]   ;;  %v2439_v9 = vld [vmem:[%s3775_s1 + $0x20] sm:$0xff]   ;;  %v2441_v11 = vld [vmem:[%s3775_s1 + $0x28] sm:$0xff]  }
   0x4   :  { %1337 = vmatprep.subr.bf16.mxu0 %v2912_v0  ;;  %v2438_v8 = vld [vmem:[%s3775_s1 + $0x98] sm:$0xff]   ;;  %v2440_v10 = vld [vmem:[%s3775_s1 + $0xa0] sm:$0xff]   ;;  %v2442_v12 = vld [vmem:[%s3775_s1 + $0xa8] sm:$0xff]  }
   0x5   :  { %v2443_v13 = vld [vmem:[%s3775_s1 + $0x30] sm:$0xff]   ;;  %v2445_v15 = vld [vmem:[%s3775_s1 + $0x38] sm:$0xff]   ;;  %v2447_v17 = vld [vmem:[%s3775_s1 + $0x40] sm:$0xff]  }
   0x6   :  { %1049 = vmatpush1.bf16.msra.mxu1 %v2433_v3  ;;  %v2444_v14 = vld [vmem:[%s3775_s1 + $0xb0] sm:$0xff]   ;;  %v2446_v16 = vld [vmem:[%s3775_s1 + $0xb8] sm:$0xff]   ;;  %v2448_v18 = vld [vmem:[%s3775_s1 + $0xc0] sm:$0xff]  }
   0x7   :  { %1338 = vmatpush1.bf16.msra.mxu0 %v2434_v4  ;;  %1050 = vmatprep.subr.bf16.mxu1 %v2912_v0  ;;  %v2465_v19 = vld [vmem:[%s3776_s0 + $0x4] ss:$16 sps:$4 sm:$0xff]   ;;  %v2449_v20 = vld [vmem:[%s3775_s1 + $0x48] sm:$0xff]   ;;  %v2453_v25 = vld [vmem:[%s3775_s1 + $0x58] sm:$0xff]  }
   0x8   :  { %1339 = vmatprep.subr.bf16.mxu0 %v2912_v0  ;;  %v2468_v21 = vld [vmem:[%s3776_s0 + $0xc] ss:$16 sps:$4 sm:$0xff]   ;;  %1078 = vmatprep.mubr.bf16.mxu1 %v2465_v19  ;;  %v2451_v23 = vld [vmem:[%s3775_s1 + $0x50] sm:$0xff]   ;;  %v2455_v27 = vld [vmem:[%s3775_s1 + $0x60] sm:$0xff]  }
   0x9   :  { %v2450_v22 = vld [vmem:[%s3775_s1 + $0xc8] sm:$0xff]   ;;  %1367 = vmatprep.mubr.bf16.mxu0 %v2468_v21  ;;  %v2452_v24 = vld [vmem:[%s3775_s1 + $0xd0] sm:$0xff]   ;;  %v2454_v26 = vld [vmem:[%s3775_s1 + $0xd8] sm:$0xff]  }
   0xa   :  { %1051 = vmatpush1.bf16.msra.mxu1 %v2435_v5  ;;  %v2456_v28 = vld [vmem:[%s3775_s1 + $0xe0] sm:$0xff]   ;;  %v2457_v29 = vld [vmem:[%s3775_s1 + $0x68] sm:$0xff]   ;;  %v2459_v31 = vld [vmem:[%s3775_s1 + $0x70] sm:$0xff]  }
   0xb   :  { %1340 = vmatpush1.bf16.msra.mxu0 %v2436_v6  ;;  %1052 = vmatprep.subr.bf16.mxu1 %v2912_v0  ;;  %v2458_v30 = vld [vmem:[%s3775_s1 + $0xe8] sm:$0xff]   ;;  %v2460_v32 = vld [vmem:[%s3775_s1 + $0xf0] sm:$0xff]   ;;  %v2461_v33 = vld [vmem:[%s3775_s1 + $0x78] sm:$0xff]  }
   0xc   :  { %1341 = vmatprep.subr.bf16.mxu0 %v2912_v0  ;;  %v2462_v34 = vld [vmem:[%s3775_s1 + $0xf8] sm:$0xff]   ;;  %v2463_v35 = vld [vmem:[%s3776_s0] ss:$16 sps:$4 sm:$0xff]   ;;  %v2469_v37 = vld [vmem:[%s3776_s0 + $0x24] ss:$16 sps:$4 sm:$0xff]  }
   0xd   :  { %v2466_v36 = vld [vmem:[%s3776_s0 + $0x8] ss:$16 sps:$4 sm:$0xff]   ;;  %v2471_v38 = vld [vmem:[%s3776_s0 + $0x2c] ss:$16 sps:$4 sm:$0xff]   ;;  %v2473_v39 = vld [vmem:[%s3776_s0 + $0x20] ss:$16 sps:$4 sm:$0xff]  }
   0xe   :  { %1053 = vmatpush1.bf16.msra.mxu1 %v2437_v7  ;;  %v2474_v40 = vld [vmem:[%s3776_s0 + $0x28] ss:$16 sps:$4 sm:$0xff]   ;;  %v2475_v41 = vld [vmem:[%s3776_s0 + $0x44] ss:$16 sps:$4 sm:$0xff]   ;;  %v2477_v42 = vld [vmem:[%s3776_s0 + $0x4c] ss:$16 sps:$4 sm:$0xff]  }
   0xf   :  { %1342 = vmatpush1.bf16.msra.mxu0 %v2438_v8  ;;  %1054 = vmatprep.subr.bf16.mxu1 %v2912_v0  ;;  %v2479_v43 = vld [vmem:[%s3776_s0 + $0x40] ss:$16 sps:$4 sm:$0xff]   ;;  %v2480_v44 = vld [vmem:[%s3776_s0 + $0x48] ss:$16 sps:$4 sm:$0xff]   ;;  %v2481_v45 = vld [vmem:[%s3776_s0 + $0x64] ss:$16 sps:$4 sm:$0xff]  }
  0x10   :  { %1343 = vmatprep.subr.bf16.mxu0 %v2912_v0  ;;  %v2483_v46 = vld [vmem:[%s3776_s0 + $0x6c] ss:$16 sps:$4 sm:$0xff]   ;;  %v2485_v47 = vld [vmem:[%s3776_s0 + $0x60] ss:$16 sps:$4 sm:$0xff]   ;;  %v2486_v48 = vld [vmem:[%s3776_s0 + $0x68] ss:$16 sps:$4 sm:$0xff]  }
  0x11   :  { %v2487_v49 = vld [vmem:[%s3776_s0 + $0x84] ss:$16 sps:$4 sm:$0xff]   ;;  %v2489_v50 = vld [vmem:[%s3776_s0 + $0x8c] ss:$16 sps:$4 sm:$0xff]   ;;  %v2491_v51 = vld [vmem:[%s3776_s0 + $0x80] ss:$16 sps:$4 sm:$0xff]  }
  0x12   :  { %1055 = vmatpush1.bf16.msra.mxu1 %v2439_v9  ;;  %v2492_v52 = vld [vmem:[%s3776_s0 + $0x88] ss:$16 sps:$4 sm:$0xff]   ;;  %v2493_v53 = vld [vmem:[%s3776_s0 + $0xa4] ss:$16 sps:$4 sm:$0xff]   ;;  %v2495_v54 = vld [vmem:[%s3776_s0 + $0xac] ss:$16 sps:$4 sm:$0xff]  }
  0x13   :  { %1344 = vmatpush1.bf16.msra.mxu0 %v2440_v10  ;;  %1056 = vmatprep.subr.bf16.mxu1 %v2912_v0  ;;  %v2497_v55 = vld [vmem:[%s3776_s0 + $0xa0] ss:$16 sps:$4 sm:$0xff]   ;;  %v2498_v56 = vld [vmem:[%s3776_s0 + $0xa8] ss:$16 sps:$4 sm:$0xff]   ;;  %v2499_v57 = vld [vmem:[%s3776_s0 + $0xc4] ss:$16 sps:$4 sm:$0xff]  }
  0x14   :  { %1345 = vmatprep.subr.bf16.mxu0 %v2912_v0  ;;  %v2501_v58 = vld [vmem:[%s3776_s0 + $0xcc] ss:$16 sps:$4 sm:$0xff]   ;;  %v2503_v59 = vld [vmem:[%s3776_s0 + $0xc0] ss:$16 sps:$4 sm:$0xff]   ;;  %v2504_v60 = vld [vmem:[%s3776_s0 + $0xc8] ss:$16 sps:$4 sm:$0xff]  }
  0x15   :  { %v2505_v61 = vld [vmem:[%s3776_s0 + $0xe4] ss:$16 sps:$4 sm:$0xff]   ;;  %v2507_v62 = vld [vmem:[%s3776_s0 + $0xec] ss:$16 sps:$4 sm:$0xff]   ;;  %v2509_v63 = vld [vmem:[%s3776_s0 + $0xe0] ss:$16 sps:$4 sm:$0xff]  }
  0x16   :  { %1057 = vmatpush1.bf16.msra.mxu1 %v2441_v11  ;;  %v2511_v1 = vld [vmem:[%s3776_s0 + $0x104] ss:$16 sps:$4 sm:$0xff]   ;;  %v2513_v2 = vld [vmem:[%s3776_s0 + $0x10c] ss:$16 sps:$4 sm:$0xff]   ;;  %v2515_v3 = vld [vmem:[%s3776_s0 + $0x100] ss:$16 sps:$4 sm:$0xff]  }
  0x17   :  { %1346 = vmatpush1.bf16.msra.mxu0 %v2442_v12  ;;  %1058 = vmatprep.subr.bf16.mxu1 %v2912_v0  ;;  %v2516_v4 = vld [vmem:[%s3776_s0 + $0x108] ss:$16 sps:$4 sm:$0xff]   ;;  %v2517_v5 = vld [vmem:[%s3776_s0 + $0x124] ss:$16 sps:$4 sm:$0xff]   ;;  %v2519_v6 = vld [vmem:[%s3776_s0 + $0x12c] ss:$16 sps:$4 sm:$0xff]  }
  0x18   :  { %1347 = vmatprep.subr.bf16.mxu0 %v2912_v0  ;;  %v2521_v7 = vld [vmem:[%s3776_s0 + $0x120] ss:$16 sps:$4 sm:$0xff]   ;;  %v2522_v8 = vld [vmem:[%s3776_s0 + $0x128] ss:$16 sps:$4 sm:$0xff]   ;;  %v2523_v9 = vld [vmem:[%s3776_s0 + $0x144] ss:$16 sps:$4 sm:$0xff]  }
  0x19   :  { %v2525_v10 = vld [vmem:[%s3776_s0 + $0x14c] ss:$16 sps:$4 sm:$0xff]   ;;  %v2527_v11 = vld [vmem:[%s3776_s0 + $0x140] ss:$16 sps:$4 sm:$0xff]   ;;  %v2528_v12 = vld [vmem:[%s3776_s0 + $0x148] ss:$16 sps:$4 sm:$0xff]  }
  0x1a   :  { %1059 = vmatpush1.bf16.msra.mxu1 %v2443_v13  ;;  %v2529_v13 = vld [vmem:[%s3776_s0 + $0x164] ss:$16 sps:$4 sm:$0xff]   ;;  %v2539_v19 = vld [vmem:[%s3776_s0 + $0x180] ss:$16 sps:$4 sm:$0xff]  }
  0x1b   :  { %1348 = vmatpush1.bf16.msra.mxu0 %v2444_v14  ;;  %1060 = vmatprep.subr.bf16.mxu1 %v2912_v0  ;;  %v2531_v14 = vld [vmem:[%s3776_s0 + $0x16c] ss:$16 sps:$4 sm:$0xff]   ;;  %v2541_v21 = vld [vmem:[%s3776_s0 + $0x1a4] ss:$16 sps:$4 sm:$0xff]  }
  0x1c   :  { %1349 = vmatprep.subr.bf16.mxu0 %v2912_v0 }
  0x1e   :  { %1061 = vmatpush1.bf16.msra.mxu1 %v2445_v15  ;;  %v2533_v15 = vld [vmem:[%s3776_s0 + $0x160] ss:$16 sps:$4 sm:$0xff]  }
  0x1f   :  { %1350 = vmatpush1.bf16.msra.mxu0 %v2446_v16  ;;  %1062 = vmatprep.subr.bf16.mxu1 %v2912_v0  ;;  %v2534_v16 = vld [vmem:[%s3776_s0 + $0x168] ss:$16 sps:$4 sm:$0xff]  }
  0x20   :  { %1351 = vmatprep.subr.bf16.mxu0 %v2912_v0 }
  0x22   :  { %1063 = vmatpush1.bf16.msra.mxu1 %v2447_v17  ;;  %v2535_v17 = vld [vmem:[%s3776_s0 + $0x184] ss:$16 sps:$4 sm:$0xff]  }
  0x23   :  { %1352 = vmatpush1.bf16.msra.mxu0 %v2448_v18  ;;  %1064 = vmatprep.subr.bf16.mxu1 %v2912_v0  ;;  %v2537_v18 = vld [vmem:[%s3776_s0 + $0x18c] ss:$16 sps:$4 sm:$0xff]  }
  0x24   :  { %1353 = vmatprep.subr.bf16.mxu0 %v2912_v0 }
  0x26   :  { %1065 = vmatpush1.bf16.msra.mxu1 %v2449_v20  ;;  %v2540_v20 = vld [vmem:[%s3776_s0 + $0x188] ss:$16 sps:$4 sm:$0xff]  }
  0x27   :  { %1354 = vmatpush1.bf16.msra.mxu0 %v2450_v22  ;;  %1066 = vmatprep.subr.bf16.mxu1 %v2912_v0  ;;  %v2543_v22 = vld [vmem:[%s3776_s0 + $0x1ac] ss:$16 sps:$4 sm:$0xff]  }
  0x28   :  { %1355 = vmatprep.subr.bf16.mxu0 %v2912_v0 }
  0x2a   :  { %1067 = vmatpush1.bf16.msra.mxu1 %v2451_v23  ;;  %v2545_v23 = vld [vmem:[%s3776_s0 + $0x1a0] ss:$16 sps:$4 sm:$0xff]  }
  0x2b   :  { %1356 = vmatpush1.bf16.msra.mxu0 %v2452_v24  ;;  %1068 = vmatprep.subr.bf16.mxu1 %v2912_v0  ;;  %v2546_v24 = vld [vmem:[%s3776_s0 + $0x1a8] ss:$16 sps:$4 sm:$0xff]  }
  0x2c   :  { %1357 = vmatprep.subr.bf16.mxu0 %v2912_v0 }
  0x2e   :  { %1069 = vmatpush1.bf16.msra.mxu1 %v2453_v25  ;;  %v2547_v25 = vld [vmem:[%s3776_s0 + $0x1c4] ss:$16 sps:$4 sm:$0xff]  }
  0x2f   :  { %1358 = vmatpush1.bf16.msra.mxu0 %v2454_v26  ;;  %1070 = vmatprep.subr.bf16.mxu1 %v2912_v0  ;;  %v2549_v26 = vld [vmem:[%s3776_s0 + $0x1cc] ss:$16 sps:$4 sm:$0xff]  }
  0x30   :  { %1359 = vmatprep.subr.bf16.mxu0 %v2912_v0 }
  0x32   :  { %1071 = vmatpush1.bf16.msra.mxu1 %v2455_v27  ;;  %v2551_v27 = vld [vmem:[%s3776_s0 + $0x1c0] ss:$16 sps:$4 sm:$0xff]  }
  0x33   :  { %1360 = vmatpush1.bf16.msra.mxu0 %v2456_v28  ;;  %1072 = vmatprep.subr.bf16.mxu1 %v2912_v0  ;;  %v2552_v28 = vld [vmem:[%s3776_s0 + $0x1c8] ss:$16 sps:$4 sm:$0xff]  }
  0x34   :  { %1361 = vmatprep.subr.bf16.mxu0 %v2912_v0 }
  0x36   :  { %1073 = vmatpush1.bf16.msra.mxu1 %v2457_v29  ;;  %v2553_v29 = vld [vmem:[%s3776_s0 + $0x1e4] ss:$16 sps:$4 sm:$0xff]  }
  0x37   :  { %1362 = vmatpush1.bf16.msra.mxu0 %v2458_v30  ;;  %1074 = vmatprep.subr.bf16.mxu1 %v2912_v0  ;;  %v2555_v30 = vld [vmem:[%s3776_s0 + $0x1ec] ss:$16 sps:$4 sm:$0xff]  }
  0x38   :  { %1363 = vmatprep.subr.bf16.mxu0 %v2912_v0 }
  0x3a   :  { %1075 = vmatpush1.bf16.msra.mxu1 %v2459_v31  ;;  %v2557_v31 = vld [vmem:[%s3776_s0 + $0x1e0] ss:$16 sps:$4 sm:$0xff]  }
  0x3b   :  { %1364 = vmatpush1.bf16.msra.mxu0 %v2460_v32  ;;  %1076 = vmatprep.subr.bf16.mxu1 %v2912_v0  ;;  %v2558_v32 = vld [vmem:[%s3776_s0 + $0x1e8] ss:$16 sps:$4 sm:$0xff]  }
  0x3c   :  { %1365 = vmatprep.subr.bf16.mxu0 %v2912_v0  ;;  %v2510_v0 = vld [vmem:[%s3776_s0 + $0xe8] ss:$16 sps:$4 sm:$0xff]  }
  0x3e   :  { %1077 = vmatpush1.bf16.msra.mxu1 %v2461_v33  ;;  %v2559_v33 = vld [vmem:[%s3776_s0 + $0x204] ss:$16 sps:$4 sm:$0xff]  }
  0x3f   :  { %1366 = vmatpush1.bf16.msra.mxu0 %v2462_v34  ;;  %v2561_v34 = vld [vmem:[%s3776_s0 + $0x20c] ss:$16 sps:$4 sm:$0xff]  }
  0x41   :  { %1079 = vmatmul.mubr.bf16.vlgmr.msra.gmra.mrb[0].mxu1 %v2463_v35  ;;  %v2563_v35 = vld [vmem:[%s3776_s0 + $0x200] ss:$16 sps:$4 sm:$0xff]  }
  0x42   :  { %1368 = vmatmul.mubr.bf16.vlgmr.msra.gmra.mrb[0].mxu0 %v2466_v36  ;;  %1086 = vmatprep.mubr.bf16.mxu1 %v2469_v37  ;;  %v2564_v36 = vld [vmem:[%s3776_s0 + $0x208] ss:$16 sps:$4 sm:$0xff]   ;;  %v2565_v37 = vld [vmem:[%s3776_s0 + $0x224] ss:$16 sps:$4 sm:$0xff]  }
  0x43   :  { %1375 = vmatprep.mubr.bf16.mxu0 %v2471_v38  ;;  %v2567_v38 = vld [vmem:[%s3776_s0 + $0x22c] ss:$16 sps:$4 sm:$0xff]  }
  0x49   :  { %1087 = vmatmul.mubr.bf16.gmra.mrb[4].mxu1 %v2473_v39  ;;  %v2569_v39 = vld [vmem:[%s3776_s0 + $0x220] ss:$16 sps:$4 sm:$0xff]  }
  0x4a   :  { %1376 = vmatmul.mubr.bf16.gmra.mrb[4].mxu0 %v2474_v40  ;;  %1094 = vmatprep.mubr.bf16.mxu1 %v2475_v41  ;;  %v2570_v40 = vld [vmem:[%s3776_s0 + $0x228] ss:$16 sps:$4 sm:$0xff]   ;;  %v2571_v41 = vld [vmem:[%s3776_s0 + $0x244] ss:$16 sps:$4 sm:$0xff]  }
  0x4b   :  { %1383 = vmatprep.mubr.bf16.mxu0 %v2477_v42  ;;  %v2573_v42 = vld [vmem:[%s3776_s0 + $0x24c] ss:$16 sps:$4 sm:$0xff]  }
  0x51   :  { %1095 = vmatmul.mubr.bf16.gmra.mrb[8].mxu1 %v2479_v43  ;;  %v2575_v43 = vld [vmem:[%s3776_s0 + $0x240] ss:$16 sps:$4 sm:$0xff]  }
  0x52   :  { %1384 = vmatmul.mubr.bf16.gmra.mrb[8].mxu0 %v2480_v44  ;;  %1102 = vmatprep.mubr.bf16.mxu1 %v2481_v45  ;;  %v2576_v44 = vld [vmem:[%s3776_s0 + $0x248] ss:$16 sps:$4 sm:$0xff]   ;;  %v2577_v45 = vld [vmem:[%s3776_s0 + $0x264] ss:$16 sps:$4 sm:$0xff]  }
  0x53   :  { %1391 = vmatprep.mubr.bf16.mxu0 %v2483_v46  ;;  %v2579_v46 = vld [vmem:[%s3776_s0 + $0x26c] ss:$16 sps:$4 sm:$0xff]  }
  0x59   :  { %1103 = vmatmul.mubr.bf16.gmra.mrb[12].mxu1 %v2485_v47  ;;  %v2581_v47 = vld [vmem:[%s3776_s0 + $0x260] ss:$16 sps:$4 sm:$0xff]  }
  0x5a   :  { %1392 = vmatmul.mubr.bf16.gmra.mrb[12].mxu0 %v2486_v48  ;;  %1110 = vmatprep.mubr.bf16.mxu1 %v2487_v49  ;;  %v2582_v48 = vld [vmem:[%s3776_s0 + $0x268] ss:$16 sps:$4 sm:$0xff]   ;;  %v2583_v49 = vld [vmem:[%s3776_s0 + $0x284] ss:$16 sps:$4 sm:$0xff]  }
  0x5b   :  { %1399 = vmatprep.mubr.bf16.mxu0 %v2489_v50  ;;  %v2585_v50 = vld [vmem:[%s3776_s0 + $0x28c] ss:$16 sps:$4 sm:$0xff]  }
  0x61   :  { %1111 = vmatmul.mubr.bf16.gmra.mrb[16].mxu1 %v2491_v51  ;;  %v2587_v51 = vld [vmem:[%s3776_s0 + $0x280] ss:$16 sps:$4 sm:$0xff]  }
  0x62   :  { %1400 = vmatmul.mubr.bf16.gmra.mrb[16].mxu0 %v2492_v52  ;;  %1118 = vmatprep.mubr.bf16.mxu1 %v2493_v53  ;;  %v2588_v52 = vld [vmem:[%s3776_s0 + $0x288] ss:$16 sps:$4 sm:$0xff]   ;;  %v2589_v53 = vld [vmem:[%s3776_s0 + $0x2a4] ss:$16 sps:$4 sm:$0xff]  }
  0x63   :  { %1407 = vmatprep.mubr.bf16.mxu0 %v2495_v54  ;;  %v2591_v54 = vld [vmem:[%s3776_s0 + $0x2ac] ss:$16 sps:$4 sm:$0xff]  }
  0x69   :  { %1119 = vmatmul.mubr.bf16.gmra.mrb[20].mxu1 %v2497_v55  ;;  %v2593_v55 = vld [vmem:[%s3776_s0 + $0x2a0] ss:$16 sps:$4 sm:$0xff]  }
  0x6a   :  { %1408 = vmatmul.mubr.bf16.gmra.mrb[20].mxu0 %v2498_v56  ;;  %1126 = vmatprep.mubr.bf16.mxu1 %v2499_v57  ;;  %v2594_v56 = vld [vmem:[%s3776_s0 + $0x2a8] ss:$16 sps:$4 sm:$0xff]   ;;  %v2595_v57 = vld [vmem:[%s3776_s0 + $0x2c4] ss:$16 sps:$4 sm:$0xff]  }
  0x6b   :  { %1415 = vmatprep.mubr.bf16.mxu0 %v2501_v58  ;;  %v2597_v58 = vld [vmem:[%s3776_s0 + $0x2cc] ss:$16 sps:$4 sm:$0xff]  }
  0x71   :  { %1127 = vmatmul.mubr.bf16.gmra.mrb[24].mxu1 %v2503_v59  ;;  %v2599_v59 = vld [vmem:[%s3776_s0 + $0x2c0] ss:$16 sps:$4 sm:$0xff]  }
  0x72   :  { %1416 = vmatmul.mubr.bf16.gmra.mrb[24].mxu0 %v2504_v60  ;;  %1134 = vmatprep.mubr.bf16.mxu1 %v2505_v61  ;;  %v2600_v60 = vld [vmem:[%s3776_s0 + $0x2c8] ss:$16 sps:$4 sm:$0xff]   ;;  %v2601_v61 = vld [vmem:[%s3776_s0 + $0x2e4] ss:$16 sps:$4 sm:$0xff]  }
  0x73   :  { %1423 = vmatprep.mubr.bf16.mxu0 %v2507_v62  ;;  %v2603_v62 = vld [vmem:[%s3776_s0 + $0x2ec] ss:$16 sps:$4 sm:$0xff]  }
  0x79   :  { %1135 = vmatmul.mubr.bf16.gmra.mrb[28].mxu1 %v2509_v63  ;;  %v2605_v63 = vld [vmem:[%s3776_s0 + $0x2e0] ss:$16 sps:$4 sm:$0xff]  }
  0x7a   :  { %1424 = vmatmul.mubr.bf16.gmra.mrb[28].mxu0 %v2510_v0  ;;  %1142 = vmatprep.mubr.bf16.mxu1 %v2511_v1  ;;  %v2606_v0 = vld [vmem:[%s3776_s0 + $0x2e8] ss:$16 sps:$4 sm:$0xff]   ;;  %v2607_v1 = vld [vmem:[%s3776_s0 + $0x304] ss:$16 sps:$4 sm:$0xff]  }
  0x7b   :  { %1431 = vmatprep.mubr.bf16.mxu0 %v2513_v2  ;;  %v2609_v2 = vld [vmem:[%s3776_s0 + $0x30c] ss:$16 sps:$4 sm:$0xff]  }
  0x81   :  { %1143 = vmatmul.mubr.bf16.gmra.mrb[32].mxu1 %v2515_v3  ;;  %v2611_v3 = vld [vmem:[%s3776_s0 + $0x300] ss:$16 sps:$4 sm:$0xff]  }
  0x82   :  { %1432 = vmatmul.mubr.bf16.gmra.mrb[32].mxu0 %v2516_v4  ;;  %1150 = vmatprep.mubr.bf16.mxu1 %v2517_v5  ;;  %v2612_v4 = vld [vmem:[%s3776_s0 + $0x308] ss:$16 sps:$4 sm:$0xff]   ;;  %v2613_v5 = vld [vmem:[%s3776_s0 + $0x324] ss:$16 sps:$4 sm:$0xff]  }
  0x83   :  { %1439 = vmatprep.mubr.bf16.mxu0 %v2519_v6  ;;  %v2615_v6 = vld [vmem:[%s3776_s0 + $0x32c] ss:$16 sps:$4 sm:$0xff]  }
  0x89   :  { %1151 = vmatmul.mubr.bf16.gmra.mrb[36].mxu1 %v2521_v7  ;;  %v2617_v7 = vld [vmem:[%s3776_s0 + $0x320] ss:$16 sps:$4 sm:$0xff]  }
  0x8a   :  { %1440 = vmatmul.mubr.bf16.gmra.mrb[36].mxu0 %v2522_v8  ;;  %1158 = vmatprep.mubr.bf16.mxu1 %v2523_v9  ;;  %v2618_v8 = vld [vmem:[%s3776_s0 + $0x328] ss:$16 sps:$4 sm:$0xff]   ;;  %v2619_v9 = vld [vmem:[%s3776_s0 + $0x344] ss:$16 sps:$4 sm:$0xff]  }
  0x8b   :  { %1447 = vmatprep.mubr.bf16.mxu0 %v2525_v10  ;;  %v2621_v10 = vld [vmem:[%s3776_s0 + $0x34c] ss:$16 sps:$4 sm:$0xff]  }
  0x91   :  { %1159 = vmatmul.mubr.bf16.gmra.mrb[40].mxu1 %v2527_v11  ;;  %v2623_v11 = vld [vmem:[%s3776_s0 + $0x340] ss:$16 sps:$4 sm:$0xff]  }
  0x92   :  { %1448 = vmatmul.mubr.bf16.gmra.mrb[40].mxu0 %v2528_v12  ;;  %1166 = vmatprep.mubr.bf16.mxu1 %v2529_v13  ;;  %v2624_v12 = vld [vmem:[%s3776_s0 + $0x348] ss:$16 sps:$4 sm:$0xff]   ;;  %v2625_v13 = vld [vmem:[%s3776_s0 + $0x364] ss:$16 sps:$4 sm:$0xff]  }
  0x93   :  { %1455 = vmatprep.mubr.bf16.mxu0 %v2531_v14  ;;  %v2627_v14 = vld [vmem:[%s3776_s0 + $0x36c] ss:$16 sps:$4 sm:$0xff]  }
  0x99   :  { %1167 = vmatmul.mubr.bf16.gmra.mrb[44].mxu1 %v2533_v15  ;;  %v3394_v15 = vld [vmem:[%s3777_s2] ss:$0 sm:$0xff] }
  0x9a   :  { %1456 = vmatmul.mubr.bf16.gmra.mrb[44].mxu0 %v2534_v16  ;;  %1174 = vmatprep.mubr.bf16.mxu1 %v2535_v17 }
  0x9b   :  { %1463 = vmatprep.mubr.bf16.mxu0 %v2537_v18 }
  0xa1   :  { %1175 = vmatmul.mubr.bf16.gmra.mrb[48].mxu1 %v2539_v19 }
  0xa2   :  { %1464 = vmatmul.mubr.bf16.gmra.mrb[48].mxu0 %v2540_v20  ;;  %1182 = vmatprep.mubr.bf16.mxu1 %v2541_v21  ;;  %v2629_v20 = vld [vmem:[%s3776_s0 + $0x360] ss:$16 sps:$4 sm:$0xff]  }
  0xa3   :  { %1471 = vmatprep.mubr.bf16.mxu0 %v2543_v22 }
  0xa9   :  { %1183 = vmatmul.mubr.bf16.gmra.mrb[52].mxu1 %v2545_v23  ;;  %v2630_v23 = vld [vmem:[%s3776_s0 + $0x368] ss:$16 sps:$4 sm:$0xff]  }
  0xaa   :  { %1472 = vmatmul.mubr.bf16.gmra.mrb[52].mxu0 %v2546_v24  ;;  %1190 = vmatprep.mubr.bf16.mxu1 %v2547_v25  ;;  %v2631_v24 = vld [vmem:[%s3776_s0 + $0x384] ss:$16 sps:$4 sm:$0xff]  }
  0xab   :  { %1479 = vmatprep.mubr.bf16.mxu0 %v2549_v26 }
  0xb1   :  { %1191 = vmatmul.mubr.bf16.gmra.mrb[56].mxu1 %v2551_v27 }
  0xb2   :  { %1480 = vmatmul.mubr.bf16.gmra.mrb[56].mxu0 %v2552_v28  ;;  %1198 = vmatprep.mubr.bf16.mxu1 %v2553_v29  ;;  %v2633_v29 = vld [vmem:[%s3776_s0 + $0x38c] ss:$16 sps:$4 sm:$0xff]  }
  0xb3   :  { %1487 = vmatprep.mubr.bf16.mxu0 %v2555_v30 }
  0xb9   :  { %1199 = vmatmul.mubr.bf16.gmra.mrb[60].mxu1 %v2557_v31 }
  0xba   :  { %1488 = vmatmul.mubr.bf16.gmra.mrb[60].mxu0 %v2558_v32  ;;  %1206 = vmatprep.mubr.bf16.mxu1 %v2559_v33 }
  0xbb   :  { %1495 = vmatprep.mubr.bf16.mxu0 %v2561_v34 }
  0xc1   :  { %1207 = vmatmul.mubr.bf16.gmra.mrb[64].mxu1 %v2563_v35 }
  0xc2   :  { %1496 = vmatmul.mubr.bf16.gmra.mrb[64].mxu0 %v2564_v36  ;;  %1214 = vmatprep.mubr.bf16.mxu1 %v2565_v37 }
  0xc3   :  { %1503 = vmatprep.mubr.bf16.mxu0 %v2567_v38  ;;  %v2635_v38 = vld [vmem:[%s3776_s0 + $0x380] ss:$16 sps:$4 sm:$0xff]  }
  0xc9   :  { %1215 = vmatmul.mubr.bf16.gmra.mrb[68].mxu1 %v2569_v39 }
  0xca   :  { %1504 = vmatmul.mubr.bf16.gmra.mrb[68].mxu0 %v2570_v40  ;;  %1222 = vmatprep.mubr.bf16.mxu1 %v2571_v41  ;;  %v2636_v41 = vld [vmem:[%s3776_s0 + $0x388] ss:$16 sps:$4 sm:$0xff]  }
  0xcb   :  { %1511 = vmatprep.mubr.bf16.mxu0 %v2573_v42  ;;  %v2637_v42 = vld [vmem:[%s3776_s0 + $0x3a4] ss:$16 sps:$4 sm:$0xff]  }
  0xd1   :  { %1223 = vmatmul.mubr.bf16.gmra.mrb[72].mxu1 %v2575_v43 }
  0xd2   :  { %1512 = vmatmul.mubr.bf16.gmra.mrb[72].mxu0 %v2576_v44  ;;  %1230 = vmatprep.mubr.bf16.mxu1 %v2577_v45 }
  0xd3   :  { %1519 = vmatprep.mubr.bf16.mxu0 %v2579_v46 }
  0xd9   :  { %1231 = vmatmul.mubr.bf16.gmra.mrb[76].mxu1 %v2581_v47  ;;  %v2639_v47 = vld [vmem:[%s3776_s0 + $0x3ac] ss:$16 sps:$4 sm:$0xff]  }
  0xda   :  { %1520 = vmatmul.mubr.bf16.gmra.mrb[76].mxu0 %v2582_v48  ;;  %1238 = vmatprep.mubr.bf16.mxu1 %v2583_v49 }
  0xdb   :  { %1527 = vmatprep.mubr.bf16.mxu0 %v2585_v50 }
  0xe1   :  { %1239 = vmatmul.mubr.bf16.gmra.mrb[80].mxu1 %v2587_v51 }
  0xe2   :  { %1528 = vmatmul.mubr.bf16.gmra.mrb[80].mxu0 %v2588_v52  ;;  %1246 = vmatprep.mubr.bf16.mxu1 %v2589_v53 }
  0xe3   :  { %1535 = vmatprep.mubr.bf16.mxu0 %v2591_v54 }
  0xe9   :  { %1247 = vmatmul.mubr.bf16.gmra.mrb[84].mxu1 %v2593_v55 }
  0xea   :  { %1536 = vmatmul.mubr.bf16.gmra.mrb[84].mxu0 %v2594_v56  ;;  %1254 = vmatprep.mubr.bf16.mxu1 %v2595_v57  ;;  %v2641_v57 = vld [vmem:[%s3776_s0 + $0x3a0] ss:$16 sps:$4 sm:$0xff]  }
  0xeb   :  { %1543 = vmatprep.mubr.bf16.mxu0 %v2597_v58  ;;  %v2642_v58 = vld [vmem:[%s3776_s0 + $0x3a8] ss:$16 sps:$4 sm:$0xff]  }
  0xf1   :  { %1255 = vmatmul.mubr.bf16.gmra.mrb[88].mxu1 %v2599_v59 }
  0xf2   :  { %1544 = vmatmul.mubr.bf16.gmra.mrb[88].mxu0 %v2600_v60  ;;  %1262 = vmatprep.mubr.bf16.mxu1 %v2601_v61 }
  0xf3   :  { %1551 = vmatprep.mubr.bf16.mxu0 %v2603_v62  ;;  %v2643_v62 = vld [vmem:[%s3776_s0 + $0x3c4] ss:$16 sps:$4 sm:$0xff]  }
  0xf9   :  { %1263 = vmatmul.mubr.bf16.gmra.mrb[92].mxu1 %v2605_v63 }
  0xfa   :  { %1552 = vmatmul.mubr.bf16.gmra.mrb[92].mxu0 %v2606_v0  ;;  %1270 = vmatprep.mubr.bf16.mxu1 %v2607_v1 }
  0xfb   :  { %1559 = vmatprep.mubr.bf16.mxu0 %v2609_v2 }
 0x101   :  { %1271 = vmatmul.mubr.bf16.gmra.mrb[96].mxu1 %v2611_v3 }
 0x102   :  { %1560 = vmatmul.mubr.bf16.gmra.mrb[96].mxu0 %v2612_v4  ;;  %1278 = vmatprep.mubr.bf16.mxu1 %v2613_v5  ;;  %v2645_v4 = vld [vmem:[%s3776_s0 + $0x3cc] ss:$16 sps:$4 sm:$0xff]  }
 0x103   :  { %1567 = vmatprep.mubr.bf16.mxu0 %v2615_v6 }
 0x109   :  { %1279 = vmatmul.mubr.bf16.gmra.mrb[100].mxu1 %v2617_v7 }
 0x10a   :  { %1568 = vmatmul.mubr.bf16.gmra.mrb[100].mxu0 %v2618_v8  ;;  %1286 = vmatprep.mubr.bf16.mxu1 %v2619_v9 }
 0x10b   :  { %1575 = vmatprep.mubr.bf16.mxu0 %v2621_v10 }
 0x111   :  { %1287 = vmatmul.mubr.bf16.gmra.mrb[104].mxu1 %v2623_v11 }
 0x112   :  { %1576 = vmatmul.mubr.bf16.gmra.mrb[104].mxu0 %v2624_v12  ;;  %1294 = vmatprep.mubr.bf16.mxu1 %v2625_v13 }
 0x113   :  { %1583 = vmatprep.mubr.bf16.mxu0 %v2627_v14 }
 0x114   :  { %v1080_v16 = vpop.f32.mrb[0].mxu1 }
 0x115   :  { %v1081_v17 = vadd.f32 %v3394_v15, %v1080_v16  ;;  %v1369_v18 = vpop.f32.mrb[0].mxu0  ;;  %v1082_v19 = vpop.f32.mrb[1].mxu1  ;;  %v2647_v16 = vld [vmem:[%s3776_s0 + $0x3c0] ss:$16 sps:$4 sm:$0xff]  }
 0x116   :  { %v1371_v21 = vpop.f32.mrb[1].mxu0  ;;  %v1083_v22 = vpop.f32.mrb[2].mxu1 }
 0x117   :  { %v1370_v25 = vadd.f32 %v1369_v18, %v1081_v17  ;;  %v1084_v26 = vadd.f32 %v3394_v15, %v1083_v22  ;;  %v1372_v27 = vpop.f32.mrb[2].mxu0  ;;  %v1085_v28 = vpop.f32.mrb[3].mxu1  ;;  %v2648_v17 = vld [vmem:[%s3776_s0 + $0x3c8] ss:$16 sps:$4 sm:$0xff]   ;;  %v2649_v21 = vld [vmem:[%s3776_s0 + $0x3e4] ss:$16 sps:$4 sm:$0xff]  }
 0x118   :  { %v1374_v30 = vpop.f32.mrb[3].mxu0 }
 0x119   :  { %v2238_v31 = vmul.f32 -1.442695, %v1370_v25  ;;  %v1373_v32 = vadd.f32 %v1372_v27, %v1084_v26  ;;  %1295 = vmatmul.mubr.bf16.gmra.mrb[108].mxu1 %v2629_v20  ;;  %v2651_v27 = vld [vmem:[%s3776_s0 + $0x3ec] ss:$16 sps:$4 sm:$0xff]  }
 0x11a   :  { %1584 = vmatmul.mubr.bf16.gmra.mrb[108].mxu0 %v2630_v23  ;;  %1302 = vmatprep.mubr.bf16.mxu1 %v2631_v24 }
 0x11b   :  { %2655 = vpow2.f32 %v2238_v31  ;;  %v2239_v33 = vmul.f32 -1.442695, %v1373_v32  ;;  %1591 = vmatprep.mubr.bf16.mxu0 %v2633_v29 }
 0x11c   :  { %v1088_v34 = vpop.f32.mrb[4].mxu1 }
 0x11d   :  { %2657 = vpow2.f32 %v2239_v33  ;;  %v1089_v35 = vadd.f32 %v3394_v15, %v1088_v34  ;;  %v1377_v36 = vpop.f32.mrb[4].mxu0  ;;  %v1090_v37 = vpop.f32.mrb[5].mxu1 }
 0x11e   :  { %v1379_v39 = vpop.f32.mrb[5].mxu0  ;;  %v1091_v40 = vpop.f32.mrb[6].mxu1 }
 0x11f   :  { %v1378_v43 = vadd.f32 %v1377_v36, %v1089_v35  ;;  %v1092_v44 = vadd.f32 %v3394_v15, %v1091_v40  ;;  %v1380_v45 = vpop.f32.mrb[6].mxu0  ;;  %v1093_v46 = vpop.f32.mrb[7].mxu1  ;;  %v2653_v40 = vld [vmem:[%s3776_s0 + $0x3e0] ss:$16 sps:$4 sm:$0xff]  }
 0x120   :  { %v1382_v48 = vpop.f32.mrb[7].mxu0 }
 0x121   :  { %v2240_v49 = vmul.f32 -1.442695, %v1378_v43  ;;  %v1381_v50 = vadd.f32 %v1380_v45, %v1092_v44  ;;  %1303 = vmatmul.mubr.bf16.gmra.mrb[112].mxu1 %v2635_v38  ;;  %v2654_v44 = vld [vmem:[%s3776_s0 + $0x3e8] ss:$16 sps:$4 sm:$0xff]  }
 0x122   :  { %1592 = vmatmul.mubr.bf16.gmra.mrb[112].mxu0 %v2636_v41  ;;  %1310 = vmatprep.mubr.bf16.mxu1 %v2637_v42 }
 0x123   :  { %2659 = vpow2.f32 %v2240_v49  ;;  %v2241_v51 = vmul.f32 -1.442695, %v1381_v50  ;;  %1599 = vmatprep.mubr.bf16.mxu0 %v2639_v47 }
 0x124   :  { %v1096_v52 = vpop.f32.mrb[8].mxu1 }
 0x125   :  { %v2656_v53 = vpop.eup %2655  ;;  %2661 = vpow2.f32 %v2241_v51  ;;  %v1097_v54 = vadd.f32 %v3394_v15, %v1096_v52  ;;  %v1385_v55 = vpop.f32.mrb[8].mxu0 }
 0x126   :  { %v1098_v56 = vpop.f32.mrb[9].mxu1  ;;  %v1816_v59 = vadd.f32 1.0, %v2656_v53  ;;  %v1387_v60 = vpop.f32.mrb[9].mxu0 }
 0x127   :  { %v1099_v61 = vpop.f32.mrb[10].mxu1  ;;  %v2658_v63 = vpop.eup %2657  ;;  %v1386_v0 = vadd.f32 %v1385_v55, %v1097_v54 }
 0x128   :  { %v1100_v1 = vadd.f32 %v3394_v15, %v1099_v61  ;;  %v1388_v2 = vpop.f32.mrb[10].mxu0  ;;  %v1101_v3 = vpop.f32.mrb[11].mxu1  ;;  %2663 = vrcp.f32 %v1816_v59  ;;  %v1817_v5 = vadd.f32 1.0, %v2658_v63 }
 0x129   :  { %v1390_v6 = vpop.f32.mrb[11].mxu0  ;;  %v2242_v7 = vmul.f32 -1.442695, %v1386_v0  ;;  %1311 = vmatmul.mubr.bf16.gmra.mrb[116].mxu1 %v2641_v57 }
 0x12a   :  { %v1389_v8 = vadd.f32 %v1388_v2, %v1100_v1  ;;  %2665 = vrcp.f32 %v1817_v5  ;;  %1600 = vmatmul.mubr.bf16.gmra.mrb[116].mxu0 %v2642_v58  ;;  %1318 = vmatprep.mubr.bf16.mxu1 %v2643_v62 }
 0x12b   :  { %2667 = vpow2.f32 %v2242_v7  ;;  %1607 = vmatprep.mubr.bf16.mxu0 %v2645_v4 }
 0x12c   :  { %v2243_v9 = vmul.f32 -1.442695, %v1389_v8  ;;  %v1104_v10 = vpop.f32.mrb[12].mxu1 }
 0x12d   :  { %v2660_v11 = vpop.eup %2659  ;;  %v1105_v12 = vadd.f32 %v3394_v15, %v1104_v10  ;;  %v1393_v13 = vpop.f32.mrb[12].mxu0 }
 0x12e   :  { %2669 = vpow2.f32 %v2243_v9  ;;  %v1106_v14 = vpop.f32.mrb[13].mxu1  ;;  %v1818_v18 = vadd.f32 1.0, %v2660_v11  ;;  %v1395_v19 = vpop.f32.mrb[13].mxu0 }
 0x12f   :  { %v1107_v20 = vpop.f32.mrb[14].mxu1  ;;  %v2662_v22 = vpop.eup %2661  ;;  %v1394_v23 = vadd.f32 %v1393_v13, %v1105_v12 }
 0x130   :  { %v1108_v24 = vadd.f32 %v3394_v15, %v1107_v20  ;;  %v1396_v25 = vpop.f32.mrb[14].mxu0  ;;  %v1109_v26 = vpop.f32.mrb[15].mxu1  ;;  %2671 = vrcp.f32 %v1818_v18  ;;  %v1819_v28 = vadd.f32 1.0, %v2662_v22 }
 0x131   :  { %v1398_v29 = vpop.f32.mrb[15].mxu0  ;;  %v2244_v30 = vmul.f32 -1.442695, %v1394_v23  ;;  %1319 = vmatmul.mubr.bf16.gmra.mrb[120].mxu1 %v2647_v16 }
 0x132   :  { %v1397_v31 = vadd.f32 %v1396_v25, %v1108_v24  ;;  %v2664_v32 = vpop.eup %2663  ;;  %2673 = vrcp.f32 %v1819_v28  ;;  %1608 = vmatmul.mubr.bf16.gmra.mrb[120].mxu0 %v2648_v17  ;;  %1326 = vmatprep.mubr.bf16.mxu1 %v2649_v21 }
 0x133   :  { %2009 = vst.msk [vmem:[%s3778_s3] sm:$0xff] %vm2008_vm0, %v2664_v32  ;;  %2675 = vpow2.f32 %v2244_v30  ;;  %1615 = vmatprep.mubr.bf16.mxu0 %v2651_v27 }
 0x134   :  { %v2245_v33 = vmul.f32 -1.442695, %v1397_v31  ;;  %v2666_v34 = vpop.eup %2665  ;;  %v1112_v35 = vpop.f32.mrb[16].mxu1 }
 0x135   :  { %v2668_v36 = vpop.eup %2667  ;;  %2010 = vst.msk [vmem:[%s3778_s3 + $0x8] sm:$0xff] %vm2008_vm0, %v2666_v34  ;;  %v1113_v37 = vadd.f32 %v3394_v15, %v1112_v35  ;;  %v1401_v38 = vpop.f32.mrb[16].mxu0 }
 0x136   :  { %2677 = vpow2.f32 %v2245_v33  ;;  %v1114_v39 = vpop.f32.mrb[17].mxu1  ;;  %v1820_v41 = vadd.f32 1.0, %v2668_v36  ;;  %v1403_v42 = vpop.f32.mrb[17].mxu0 }
 0x137   :  { %v1115_v43 = vpop.f32.mrb[18].mxu1  ;;  %v1402_v46 = vadd.f32 %v1401_v38, %v1113_v37  ;;  %v1404_v48 = vpop.f32.mrb[18].mxu0 }
 0x138   :  { %v2670_v45 = vpop.eup %2669  ;;  %v1116_v47 = vadd.f32 %v3394_v15, %v1115_v43  ;;  %v1117_v49 = vpop.f32.mrb[19].mxu1  ;;  %2679 = vrcp.f32 %v1820_v41 }
 0x139   :  { %v1821_v50 = vadd.f32 1.0, %v2670_v45  ;;  %v1406_v51 = vpop.f32.mrb[19].mxu0  ;;  %v2246_v52 = vmul.f32 -1.442695, %v1402_v46  ;;  %1327 = vmatmul.mubr.bf16.gmra.mrb[124].mxu1 %v2653_v40 }
 0x13a   :  { %v1405_v53 = vadd.f32 %v1404_v48, %v1116_v47  ;;  %v2672_v54 = vpop.eup %2671  ;;  %1616 = vmatmul.mubr.bf16.gmra.mrb[124].mxu0 %v2654_v44 }
 0x13b   :  { %2681 = vrcp.f32 %v1821_v50  ;;  %2011 = vst.msk [vmem:[%s3778_s3 + $0x10] sm:$0xff] %vm2008_vm0, %v2672_v54 }
 0x13c   :  { %2683 = vpow2.f32 %v2246_v52  ;;  %v2247_v55 = vmul.f32 -1.442695, %v1405_v53  ;;  %v2674_v56 = vpop.eup %2673  ;;  %v1120_v57 = vpop.f32.mrb[20].mxu1 }
 0x13d   :  { %v2676_v58 = vpop.eup %2675  ;;  %2012 = vst.msk [vmem:[%s3778_s3 + $0x18] sm:$0xff] %vm2008_vm0, %v2674_v56  ;;  %v1121_v59 = vadd.f32 %v3394_v15, %v1120_v57  ;;  %v1409_v60 = vpop.f32.mrb[20].mxu0 }
 0x13e   :  { %2685 = vpow2.f32 %v2247_v55  ;;  %v1122_v61 = vpop.f32.mrb[21].mxu1  ;;  %v1822_v62 = vadd.f32 1.0, %v2676_v58  ;;  %v1411_v63 = vpop.f32.mrb[21].mxu0 }
 0x13f   :  { %v1123_v0 = vpop.f32.mrb[22].mxu1  ;;  %v1410_v2 = vadd.f32 %v1409_v60, %v1121_v59  ;;  %v1412_v4 = vpop.f32.mrb[22].mxu0 }
 0x140   :  { %v2678_v1 = vpop.eup %2677  ;;  %v1124_v3 = vadd.f32 %v3394_v15, %v1123_v0  ;;  %v1125_v5 = vpop.f32.mrb[23].mxu1  ;;  %2687 = vrcp.f32 %v1822_v62 }
 0x141   :  { %v1823_v6 = vadd.f32 1.0, %v2678_v1  ;;  %v1414_v7 = vpop.f32.mrb[23].mxu0  ;;  %v2248_v8 = vmul.f32 -1.442695, %v1410_v2 }
 0x142   :  { %v1413_v9 = vadd.f32 %v1412_v4, %v1124_v3  ;;  %v2680_v10 = vpop.eup %2679 }
 0x143   :  { %2689 = vrcp.f32 %v1823_v6  ;;  %2013 = vst.msk [vmem:[%s3778_s3 + $0x20] sm:$0xff] %vm2008_vm0, %v2680_v10 }
 0x144   :  { %2691 = vpow2.f32 %v2248_v8  ;;  %v2249_v11 = vmul.f32 -1.442695, %v1413_v9  ;;  %v1128_v13 = vpop.f32.mrb[24].mxu1 }
 0x145   :  { %v2682_v12 = vpop.eup %2681  ;;  %v1129_v16 = vadd.f32 %v3394_v15, %v1128_v13  ;;  %v1417_v17 = vpop.f32.mrb[24].mxu0 }
 0x146   :  { %v2684_v14 = vpop.eup %2683  ;;  %2014 = vst.msk [vmem:[%s3778_s3 + $0x28] sm:$0xff] %vm2008_vm0, %v2682_v12  ;;  %2693 = vpow2.f32 %v2249_v11  ;;  %v1130_v18 = vpop.f32.mrb[25].mxu1 }
 0x147   :  { %v1824_v19 = vadd.f32 1.0, %v2684_v14  ;;  %v1419_v20 = vpop.f32.mrb[25].mxu0  ;;  %v1131_v21 = vpop.f32.mrb[26].mxu1  ;;  %v1418_v23 = vadd.f32 %v1417_v17, %v1129_v16 }
 0x148   :  { %v2686_v22 = vpop.eup %2685  ;;  %v1132_v24 = vadd.f32 %v3394_v15, %v1131_v21  ;;  %v1420_v25 = vpop.f32.mrb[26].mxu0 }
 0x149   :  { %v1133_v26 = vpop.f32.mrb[27].mxu1  ;;  %2695 = vrcp.f32 %v1824_v19  ;;  %v1825_v27 = vadd.f32 1.0, %v2686_v22  ;;  %v1422_v28 = vpop.f32.mrb[27].mxu0  ;;  %v2250_v29 = vmul.f32 -1.442695, %v1418_v23 }
 0x14a   :  { %v1421_v30 = vadd.f32 %v1420_v25, %v1132_v24  ;;  %v2688_v31 = vpop.eup %2687 }
 0x14b   :  { %2697 = vrcp.f32 %v1825_v27  ;;  %2015 = vst.msk [vmem:[%s3778_s3 + $0x30] sm:$0xff] %vm2008_vm0, %v2688_v31 }
 0x14c   :  { %2699 = vpow2.f32 %v2250_v29  ;;  %v2251_v32 = vmul.f32 -1.442695, %v1421_v30  ;;  %v1136_v34 = vpop.f32.mrb[28].mxu1 }
 0x14d   :  { %v2690_v33 = vpop.eup %2689  ;;  %v1137_v36 = vadd.f32 %v3394_v15, %v1136_v34  ;;  %v1425_v37 = vpop.f32.mrb[28].mxu0 }
 0x14e   :  { %v2692_v35 = vpop.eup %2691  ;;  %2016 = vst.msk [vmem:[%s3778_s3 + $0x38] sm:$0xff] %vm2008_vm0, %v2690_v33  ;;  %2701 = vpow2.f32 %v2251_v32  ;;  %v1138_v38 = vpop.f32.mrb[29].mxu1 }
 0x14f   :  { %v1826_v39 = vadd.f32 1.0, %v2692_v35  ;;  %v1427_v40 = vpop.f32.mrb[29].mxu0  ;;  %v1139_v41 = vpop.f32.mrb[30].mxu1  ;;  %v1426_v43 = vadd.f32 %v1425_v37, %v1137_v36 }
 0x150   :  { %v2694_v42 = vpop.eup %2693  ;;  %v1140_v44 = vadd.f32 %v3394_v15, %v1139_v41  ;;  %v1428_v45 = vpop.f32.mrb[30].mxu0 }
 0x151   :  { %v1141_v46 = vpop.f32.mrb[31].mxu1  ;;  %2703 = vrcp.f32 %v1826_v39  ;;  %v1827_v47 = vadd.f32 1.0, %v2694_v42  ;;  %v1430_v48 = vpop.f32.mrb[31].mxu0  ;;  %v2252_v49 = vmul.f32 -1.442695, %v1426_v43 }
 0x152   :  { %v1429_v50 = vadd.f32 %v1428_v45, %v1140_v44 }
 0x153   :  { %v2696_v51 = vpop.eup %2695  ;;  %2705 = vrcp.f32 %v1827_v47 }
 0x154   :  { %2017 = vst.msk [vmem:[%s3778_s3 + $0x40] sm:$0xff] %vm2008_vm0, %v2696_v51  ;;  %2707 = vpow2.f32 %v2252_v49  ;;  %v2253_v52 = vmul.f32 -1.442695, %v1429_v50  ;;  %v1144_v54 = vpop.f32.mrb[32].mxu1 }
 0x155   :  { %v2698_v53 = vpop.eup %2697  ;;  %v1145_v56 = vadd.f32 %v3394_v15, %v1144_v54  ;;  %v1433_v57 = vpop.f32.mrb[32].mxu0 }
 0x156   :  { %v2700_v55 = vpop.eup %2699  ;;  %2018 = vst.msk [vmem:[%s3778_s3 + $0x48] sm:$0xff] %vm2008_vm0, %v2698_v53  ;;  %2709 = vpow2.f32 %v2253_v52  ;;  %v1146_v58 = vpop.f32.mrb[33].mxu1 }
 0x157   :  { %v1828_v59 = vadd.f32 1.0, %v2700_v55  ;;  %v1435_v60 = vpop.f32.mrb[33].mxu0  ;;  %v1147_v61 = vpop.f32.mrb[34].mxu1  ;;  %v1434_v63 = vadd.f32 %v1433_v57, %v1145_v56 }
 0x158   :  { %v2702_v62 = vpop.eup %2701  ;;  %v1148_v0 = vadd.f32 %v3394_v15, %v1147_v61  ;;  %v1436_v1 = vpop.f32.mrb[34].mxu0 }
 0x159   :  { %v1149_v2 = vpop.f32.mrb[35].mxu1  ;;  %2711 = vrcp.f32 %v1828_v59  ;;  %v1829_v3 = vadd.f32 1.0, %v2702_v62  ;;  %v1438_v4 = vpop.f32.mrb[35].mxu0  ;;  %v2254_v5 = vmul.f32 -1.442695, %v1434_v63 }
 0x15a   :  { %v1437_v6 = vadd.f32 %v1436_v1, %v1148_v0 }
 0x15b   :  { %v2704_v7 = vpop.eup %2703  ;;  %2713 = vrcp.f32 %v1829_v3 }
 0x15c   :  { %2019 = vst.msk [vmem:[%s3778_s3 + $0x50] sm:$0xff] %vm2008_vm0, %v2704_v7  ;;  %2715 = vpow2.f32 %v2254_v5  ;;  %v2255_v8 = vmul.f32 -1.442695, %v1437_v6  ;;  %v1152_v10 = vpop.f32.mrb[36].mxu1 }
 0x15d   :  { %v2706_v9 = vpop.eup %2705  ;;  %v1153_v12 = vadd.f32 %v3394_v15, %v1152_v10  ;;  %v1441_v13 = vpop.f32.mrb[36].mxu0 }
 0x15e   :  { %v2708_v11 = vpop.eup %2707  ;;  %2020 = vst.msk [vmem:[%s3778_s3 + $0x58] sm:$0xff] %vm2008_vm0, %v2706_v9  ;;  %2717 = vpow2.f32 %v2255_v8  ;;  %v1154_v14 = vpop.f32.mrb[37].mxu1 }
 0x15f   :  { %v1830_v16 = vadd.f32 1.0, %v2708_v11  ;;  %v1443_v17 = vpop.f32.mrb[37].mxu0  ;;  %v1155_v18 = vpop.f32.mrb[38].mxu1  ;;  %v1442_v20 = vadd.f32 %v1441_v13, %v1153_v12 }
 0x160   :  { %v2710_v19 = vpop.eup %2709  ;;  %v1156_v21 = vadd.f32 %v3394_v15, %v1155_v18  ;;  %v1444_v22 = vpop.f32.mrb[38].mxu0 }
 0x161   :  { %v1157_v23 = vpop.f32.mrb[39].mxu1  ;;  %2719 = vrcp.f32 %v1830_v16  ;;  %v1831_v24 = vadd.f32 1.0, %v2710_v19  ;;  %v1446_v25 = vpop.f32.mrb[39].mxu0  ;;  %v2256_v26 = vmul.f32 -1.442695, %v1442_v20 }
 0x162   :  { %v1445_v27 = vadd.f32 %v1444_v22, %v1156_v21 }
 0x163   :  { %v2712_v28 = vpop.eup %2711  ;;  %2721 = vrcp.f32 %v1831_v24 }
 0x164   :  { %2021 = vst.msk [vmem:[%s3778_s3 + $0x60] sm:$0xff] %vm2008_vm0, %v2712_v28  ;;  %2723 = vpow2.f32 %v2256_v26  ;;  %v2257_v29 = vmul.f32 -1.442695, %v1445_v27  ;;  %v1160_v31 = vpop.f32.mrb[40].mxu1 }
 0x165   :  { %v2714_v30 = vpop.eup %2713  ;;  %v1161_v33 = vadd.f32 %v3394_v15, %v1160_v31  ;;  %v1449_v34 = vpop.f32.mrb[40].mxu0 }
 0x166   :  { %v2716_v32 = vpop.eup %2715  ;;  %2022 = vst.msk [vmem:[%s3778_s3 + $0x68] sm:$0xff] %vm2008_vm0, %v2714_v30  ;;  %2725 = vpow2.f32 %v2257_v29  ;;  %v1162_v35 = vpop.f32.mrb[41].mxu1 }
 0x167   :  { %v1832_v36 = vadd.f32 1.0, %v2716_v32  ;;  %v1451_v37 = vpop.f32.mrb[41].mxu0  ;;  %v1163_v38 = vpop.f32.mrb[42].mxu1  ;;  %v1450_v40 = vadd.f32 %v1449_v34, %v1161_v33 }
 0x168   :  { %v2718_v39 = vpop.eup %2717  ;;  %v1164_v41 = vadd.f32 %v3394_v15, %v1163_v38  ;;  %v1452_v42 = vpop.f32.mrb[42].mxu0 }
 0x169   :  { %v1165_v43 = vpop.f32.mrb[43].mxu1  ;;  %2727 = vrcp.f32 %v1832_v36  ;;  %v1833_v44 = vadd.f32 1.0, %v2718_v39  ;;  %v1454_v45 = vpop.f32.mrb[43].mxu0  ;;  %v2258_v46 = vmul.f32 -1.442695, %v1450_v40 }
 0x16a   :  { %v1453_v47 = vadd.f32 %v1452_v42, %v1164_v41 }
 0x16b   :  { %v2720_v48 = vpop.eup %2719  ;;  %2729 = vrcp.f32 %v1833_v44 }
 0x16c   :  { %2023 = vst.msk [vmem:[%s3778_s3 + $0x70] sm:$0xff] %vm2008_vm0, %v2720_v48  ;;  %2731 = vpow2.f32 %v2258_v46  ;;  %v2259_v49 = vmul.f32 -1.442695, %v1453_v47  ;;  %v1168_v51 = vpop.f32.mrb[44].mxu1 }
 0x16d   :  { %v2722_v50 = vpop.eup %2721  ;;  %v1169_v53 = vadd.f32 %v3394_v15, %v1168_v51  ;;  %v1457_v54 = vpop.f32.mrb[44].mxu0 }
 0x16e   :  { %v2724_v52 = vpop.eup %2723  ;;  %2024 = vst.msk [vmem:[%s3778_s3 + $0x78] sm:$0xff] %vm2008_vm0, %v2722_v50  ;;  %2733 = vpow2.f32 %v2259_v49  ;;  %v1170_v55 = vpop.f32.mrb[45].mxu1 }
 0x16f   :  { %v1834_v56 = vadd.f32 1.0, %v2724_v52  ;;  %v1459_v57 = vpop.f32.mrb[45].mxu0  ;;  %v1171_v58 = vpop.f32.mrb[46].mxu1  ;;  %v1458_v60 = vadd.f32 %v1457_v54, %v1169_v53 }
 0x170   :  { %v2726_v59 = vpop.eup %2725  ;;  %v1172_v61 = vadd.f32 %v3394_v15, %v1171_v58  ;;  %v1460_v62 = vpop.f32.mrb[46].mxu0 }
 0x171   :  { %v1173_v63 = vpop.f32.mrb[47].mxu1  ;;  %2735 = vrcp.f32 %v1834_v56  ;;  %v1835_v0 = vadd.f32 1.0, %v2726_v59  ;;  %v1462_v1 = vpop.f32.mrb[47].mxu0  ;;  %v2260_v2 = vmul.f32 -1.442695, %v1458_v60 }
 0x172   :  { %v1461_v3 = vadd.f32 %v1460_v62, %v1172_v61 }
 0x173   :  { %v2728_v4 = vpop.eup %2727  ;;  %2737 = vrcp.f32 %v1835_v0 }
 0x174   :  { %2025 = vst.msk [vmem:[%s3778_s3 + $0x80] sm:$0xff] %vm2008_vm0, %v2728_v4  ;;  %2739 = vpow2.f32 %v2260_v2  ;;  %v2261_v5 = vmul.f32 -1.442695, %v1461_v3  ;;  %v1176_v7 = vpop.f32.mrb[48].mxu1 }
 0x175   :  { %v2730_v6 = vpop.eup %2729  ;;  %v1177_v9 = vadd.f32 %v3394_v15, %v1176_v7  ;;  %v1465_v10 = vpop.f32.mrb[48].mxu0 }
 0x176   :  { %v2732_v8 = vpop.eup %2731  ;;  %2026 = vst.msk [vmem:[%s3778_s3 + $0x88] sm:$0xff] %vm2008_vm0, %v2730_v6  ;;  %2741 = vpow2.f32 %v2261_v5  ;;  %v1178_v11 = vpop.f32.mrb[49].mxu1 }
 0x177   :  { %v1836_v12 = vadd.f32 1.0, %v2732_v8  ;;  %v1467_v13 = vpop.f32.mrb[49].mxu0  ;;  %v1179_v14 = vpop.f32.mrb[50].mxu1  ;;  %v1466_v17 = vadd.f32 %v1465_v10, %v1177_v9 }
 0x178   :  { %v2734_v16 = vpop.eup %2733  ;;  %v1180_v18 = vadd.f32 %v3394_v15, %v1179_v14  ;;  %v1468_v19 = vpop.f32.mrb[50].mxu0 }
 0x179   :  { %v1181_v20 = vpop.f32.mrb[51].mxu1  ;;  %2743 = vrcp.f32 %v1836_v12  ;;  %v1837_v21 = vadd.f32 1.0, %v2734_v16  ;;  %v1470_v22 = vpop.f32.mrb[51].mxu0  ;;  %v2262_v23 = vmul.f32 -1.442695, %v1466_v17 }
 0x17a   :  { %v1469_v24 = vadd.f32 %v1468_v19, %v1180_v18 }
 0x17b   :  { %v2736_v25 = vpop.eup %2735  ;;  %2745 = vrcp.f32 %v1837_v21 }
 0x17c   :  { %2027 = vst.msk [vmem:[%s3778_s3 + $0x90] sm:$0xff] %vm2008_vm0, %v2736_v25  ;;  %2747 = vpow2.f32 %v2262_v23  ;;  %v2263_v26 = vmul.f32 -1.442695, %v1469_v24  ;;  %v1184_v28 = vpop.f32.mrb[52].mxu1 }
 0x17d   :  { %v2738_v27 = vpop.eup %2737  ;;  %v1185_v30 = vadd.f32 %v3394_v15, %v1184_v28  ;;  %v1473_v31 = vpop.f32.mrb[52].mxu0 }
 0x17e   :  { %v2740_v29 = vpop.eup %2739  ;;  %2028 = vst.msk [vmem:[%s3778_s3 + $0x98] sm:$0xff] %vm2008_vm0, %v2738_v27  ;;  %2749 = vpow2.f32 %v2263_v26  ;;  %v1186_v32 = vpop.f32.mrb[53].mxu1 }
 0x17f   :  { %v1838_v33 = vadd.f32 1.0, %v2740_v29  ;;  %v1475_v34 = vpop.f32.mrb[53].mxu0  ;;  %v1187_v35 = vpop.f32.mrb[54].mxu1  ;;  %v1474_v37 = vadd.f32 %v1473_v31, %v1185_v30 }
 0x180   :  { %v2742_v36 = vpop.eup %2741  ;;  %v1188_v38 = vadd.f32 %v3394_v15, %v1187_v35  ;;  %v1476_v39 = vpop.f32.mrb[54].mxu0 }
 0x181   :  { %v1189_v40 = vpop.f32.mrb[55].mxu1  ;;  %2751 = vrcp.f32 %v1838_v33  ;;  %v1839_v41 = vadd.f32 1.0, %v2742_v36  ;;  %v1478_v42 = vpop.f32.mrb[55].mxu0  ;;  %v2264_v43 = vmul.f32 -1.442695, %v1474_v37 }
 0x182   :  { %v1477_v44 = vadd.f32 %v1476_v39, %v1188_v38 }
 0x183   :  { %v2744_v45 = vpop.eup %2743  ;;  %2753 = vrcp.f32 %v1839_v41 }
 0x184   :  { %2029 = vst.msk [vmem:[%s3778_s3 + $0xa0] sm:$0xff] %vm2008_vm0, %v2744_v45  ;;  %2755 = vpow2.f32 %v2264_v43  ;;  %v2265_v46 = vmul.f32 -1.442695, %v1477_v44  ;;  %v1192_v48 = vpop.f32.mrb[56].mxu1 }
 0x185   :  { %v2746_v47 = vpop.eup %2745  ;;  %v1193_v50 = vadd.f32 %v3394_v15, %v1192_v48  ;;  %v1481_v51 = vpop.f32.mrb[56].mxu0 }
 0x186   :  { %v2748_v49 = vpop.eup %2747  ;;  %2030 = vst.msk [vmem:[%s3778_s3 + $0xa8] sm:$0xff] %vm2008_vm0, %v2746_v47  ;;  %2757 = vpow2.f32 %v2265_v46  ;;  %v1194_v52 = vpop.f32.mrb[57].mxu1 }
 0x187   :  { %v1840_v53 = vadd.f32 1.0, %v2748_v49  ;;  %v1483_v54 = vpop.f32.mrb[57].mxu0  ;;  %v1195_v55 = vpop.f32.mrb[58].mxu1  ;;  %v1482_v57 = vadd.f32 %v1481_v51, %v1193_v50 }
 0x188   :  { %v2750_v56 = vpop.eup %2749  ;;  %v1196_v58 = vadd.f32 %v3394_v15, %v1195_v55  ;;  %v1484_v59 = vpop.f32.mrb[58].mxu0 }
 0x189   :  { %v1197_v60 = vpop.f32.mrb[59].mxu1  ;;  %2759 = vrcp.f32 %v1840_v53  ;;  %v1841_v61 = vadd.f32 1.0, %v2750_v56  ;;  %v1486_v62 = vpop.f32.mrb[59].mxu0  ;;  %v2266_v63 = vmul.f32 -1.442695, %v1482_v57 }
 0x18a   :  { %v1485_v0 = vadd.f32 %v1484_v59, %v1196_v58 }
 0x18b   :  { %v2752_v1 = vpop.eup %2751  ;;  %2761 = vrcp.f32 %v1841_v61 }
 0x18c   :  { %2031 = vst.msk [vmem:[%s3778_s3 + $0xb0] sm:$0xff] %vm2008_vm0, %v2752_v1  ;;  %2763 = vpow2.f32 %v2266_v63  ;;  %v2267_v2 = vmul.f32 -1.442695, %v1485_v0  ;;  %v1200_v4 = vpop.f32.mrb[60].mxu1 }
 0x18d   :  { %v2754_v3 = vpop.eup %2753  ;;  %v1201_v6 = vadd.f32 %v3394_v15, %v1200_v4  ;;  %v1489_v7 = vpop.f32.mrb[60].mxu0 }
 0x18e   :  { %v2756_v5 = vpop.eup %2755  ;;  %2032 = vst.msk [vmem:[%s3778_s3 + $0xb8] sm:$0xff] %vm2008_vm0, %v2754_v3  ;;  %2765 = vpow2.f32 %v2267_v2  ;;  %v1202_v8 = vpop.f32.mrb[61].mxu1 }
 0x18f   :  { %v1842_v9 = vadd.f32 1.0, %v2756_v5  ;;  %v1491_v10 = vpop.f32.mrb[61].mxu0  ;;  %v1203_v11 = vpop.f32.mrb[62].mxu1  ;;  %v1490_v13 = vadd.f32 %v1489_v7, %v1201_v6 }
 0x190   :  { %v2758_v12 = vpop.eup %2757  ;;  %v1204_v14 = vadd.f32 %v3394_v15, %v1203_v11  ;;  %v1492_v16 = vpop.f32.mrb[62].mxu0 }
 0x191   :  { %v1205_v17 = vpop.f32.mrb[63].mxu1  ;;  %2767 = vrcp.f32 %v1842_v9  ;;  %v1843_v18 = vadd.f32 1.0, %v2758_v12  ;;  %v1494_v19 = vpop.f32.mrb[63].mxu0  ;;  %v2268_v20 = vmul.f32 -1.442695, %v1490_v13 }
 0x192   :  { %v1493_v21 = vadd.f32 %v1492_v16, %v1204_v14 }
 0x193   :  { %v2760_v22 = vpop.eup %2759  ;;  %2769 = vrcp.f32 %v1843_v18 }
 0x194   :  { %2033 = vst.msk [vmem:[%s3778_s3 + $0xc0] sm:$0xff] %vm2008_vm0, %v2760_v22  ;;  %2771 = vpow2.f32 %v2268_v20  ;;  %v2269_v23 = vmul.f32 -1.442695, %v1493_v21  ;;  %v1208_v25 = vpop.f32.mrb[64].mxu1 }
 0x195   :  { %v2762_v24 = vpop.eup %2761  ;;  %v1209_v27 = vadd.f32 %v3394_v15, %v1208_v25  ;;  %v1497_v28 = vpop.f32.mrb[64].mxu0 }
 0x196   :  { %v2764_v26 = vpop.eup %2763  ;;  %2034 = vst.msk [vmem:[%s3778_s3 + $0xc8] sm:$0xff] %vm2008_vm0, %v2762_v24  ;;  %2773 = vpow2.f32 %v2269_v23  ;;  %v1210_v29 = vpop.f32.mrb[65].mxu1 }
 0x197   :  { %v1844_v30 = vadd.f32 1.0, %v2764_v26  ;;  %v1499_v31 = vpop.f32.mrb[65].mxu0  ;;  %v1211_v32 = vpop.f32.mrb[66].mxu1  ;;  %v1498_v34 = vadd.f32 %v1497_v28, %v1209_v27 }
 0x198   :  { %v2766_v33 = vpop.eup %2765  ;;  %v1212_v35 = vadd.f32 %v3394_v15, %v1211_v32  ;;  %v1500_v36 = vpop.f32.mrb[66].mxu0 }
 0x199   :  { %v1213_v37 = vpop.f32.mrb[67].mxu1  ;;  %2775 = vrcp.f32 %v1844_v30  ;;  %v1845_v38 = vadd.f32 1.0, %v2766_v33  ;;  %v1502_v39 = vpop.f32.mrb[67].mxu0  ;;  %v2270_v40 = vmul.f32 -1.442695, %v1498_v34 }
 0x19a   :  { %v1501_v41 = vadd.f32 %v1500_v36, %v1212_v35 }
 0x19b   :  { %v2768_v42 = vpop.eup %2767  ;;  %2777 = vrcp.f32 %v1845_v38 }
 0x19c   :  { %2035 = vst.msk [vmem:[%s3778_s3 + $0xd0] sm:$0xff] %vm2008_vm0, %v2768_v42  ;;  %2779 = vpow2.f32 %v2270_v40  ;;  %v2271_v43 = vmul.f32 -1.442695, %v1501_v41  ;;  %v1216_v45 = vpop.f32.mrb[68].mxu1 }
 0x19d   :  { %v2770_v44 = vpop.eup %2769  ;;  %v1217_v47 = vadd.f32 %v3394_v15, %v1216_v45  ;;  %v1505_v48 = vpop.f32.mrb[68].mxu0 }
 0x19e   :  { %v2772_v46 = vpop.eup %2771  ;;  %2036 = vst.msk [vmem:[%s3778_s3 + $0xd8] sm:$0xff] %vm2008_vm0, %v2770_v44  ;;  %2781 = vpow2.f32 %v2271_v43  ;;  %v1218_v49 = vpop.f32.mrb[69].mxu1 }
 0x19f   :  { %v1846_v50 = vadd.f32 1.0, %v2772_v46  ;;  %v1507_v51 = vpop.f32.mrb[69].mxu0  ;;  %v1219_v52 = vpop.f32.mrb[70].mxu1  ;;  %v1506_v54 = vadd.f32 %v1505_v48, %v1217_v47 }
 0x1a0   :  { %v2774_v53 = vpop.eup %2773  ;;  %v1220_v55 = vadd.f32 %v3394_v15, %v1219_v52  ;;  %v1508_v56 = vpop.f32.mrb[70].mxu0 }
 0x1a1   :  { %v1221_v57 = vpop.f32.mrb[71].mxu1  ;;  %2783 = vrcp.f32 %v1846_v50  ;;  %v1847_v58 = vadd.f32 1.0, %v2774_v53  ;;  %v1510_v59 = vpop.f32.mrb[71].mxu0  ;;  %v2272_v60 = vmul.f32 -1.442695, %v1506_v54 }
 0x1a2   :  { %v1509_v61 = vadd.f32 %v1508_v56, %v1220_v55 }
 0x1a3   :  { %v2776_v62 = vpop.eup %2775  ;;  %2785 = vrcp.f32 %v1847_v58 }
 0x1a4   :  { %2037 = vst.msk [vmem:[%s3778_s3 + $0xe0] sm:$0xff] %vm2008_vm0, %v2776_v62  ;;  %2787 = vpow2.f32 %v2272_v60  ;;  %v2273_v63 = vmul.f32 -1.442695, %v1509_v61  ;;  %v1224_v1 = vpop.f32.mrb[72].mxu1 }
 0x1a5   :  { %v2778_v0 = vpop.eup %2777  ;;  %v1225_v3 = vadd.f32 %v3394_v15, %v1224_v1  ;;  %v1513_v4 = vpop.f32.mrb[72].mxu0 }
 0x1a6   :  { %v2780_v2 = vpop.eup %2779  ;;  %2038 = vst.msk [vmem:[%s3778_s3 + $0xe8] sm:$0xff] %vm2008_vm0, %v2778_v0  ;;  %2789 = vpow2.f32 %v2273_v63  ;;  %v1226_v5 = vpop.f32.mrb[73].mxu1 }
 0x1a7   :  { %v1848_v6 = vadd.f32 1.0, %v2780_v2  ;;  %v1515_v7 = vpop.f32.mrb[73].mxu0  ;;  %v1227_v8 = vpop.f32.mrb[74].mxu1  ;;  %v1514_v10 = vadd.f32 %v1513_v4, %v1225_v3 }
 0x1a8   :  { %v2782_v9 = vpop.eup %2781  ;;  %v1228_v11 = vadd.f32 %v3394_v15, %v1227_v8  ;;  %v1516_v12 = vpop.f32.mrb[74].mxu0  ;;  %v3619_v15 = vld [vmem:[%s3777_s2] ss:$0 sm:$0xff] }
 0x1a9   :  { %v1229_v13 = vpop.f32.mrb[75].mxu1  ;;  %2791 = vrcp.f32 %v1848_v6  ;;  %v1849_v14 = vadd.f32 1.0, %v2782_v9  ;;  %v1518_v16 = vpop.f32.mrb[75].mxu0  ;;  %v2274_v17 = vmul.f32 -1.442695, %v1514_v10 }
 0x1aa   :  { %v1517_v18 = vadd.f32 %v1516_v12, %v1228_v11 }
 0x1ab   :  { %v2784_v19 = vpop.eup %2783  ;;  %2793 = vrcp.f32 %v1849_v14 }
 0x1ac   :  { %2039 = vst.msk [vmem:[%s3778_s3 + $0xf0] sm:$0xff] %vm2008_vm0, %v2784_v19  ;;  %2795 = vpow2.f32 %v2274_v17  ;;  %v2275_v20 = vmul.f32 -1.442695, %v1517_v18  ;;  %v1232_v22 = vpop.f32.mrb[76].mxu1 }
 0x1ad   :  { %v2786_v21 = vpop.eup %2785  ;;  %v1233_v24 = vadd.f32 %v3619_v15, %v1232_v22  ;;  %v1521_v25 = vpop.f32.mrb[76].mxu0 }
 0x1ae   :  { %v2788_v23 = vpop.eup %2787  ;;  %2040 = vst.msk [vmem:[%s3778_s3 + $0xf8] sm:$0xff] %vm2008_vm0, %v2786_v21  ;;  %2797 = vpow2.f32 %v2275_v20  ;;  %v1234_v26 = vpop.f32.mrb[77].mxu1 }
 0x1af   :  { %v1850_v27 = vadd.f32 1.0, %v2788_v23  ;;  %v1523_v28 = vpop.f32.mrb[77].mxu0  ;;  %v1235_v29 = vpop.f32.mrb[78].mxu1  ;;  %v1522_v31 = vadd.f32 %v1521_v25, %v1233_v24 }
 0x1b0   :  { %v2790_v30 = vpop.eup %2789  ;;  %v1236_v32 = vadd.f32 %v3619_v15, %v1235_v29  ;;  %v1524_v33 = vpop.f32.mrb[78].mxu0 }
 0x1b1   :  { %v1237_v34 = vpop.f32.mrb[79].mxu1  ;;  %2799 = vrcp.f32 %v1850_v27  ;;  %v1851_v35 = vadd.f32 1.0, %v2790_v30  ;;  %v1526_v36 = vpop.f32.mrb[79].mxu0  ;;  %v2276_v37 = vmul.f32 -1.442695, %v1522_v31 }
 0x1b2   :  { %v1525_v38 = vadd.f32 %v1524_v33, %v1236_v32 }
 0x1b3   :  { %v2792_v39 = vpop.eup %2791  ;;  %2801 = vrcp.f32 %v1851_v35 }
 0x1b4   :  { %2041 = vst.msk [vmem:[%s3778_s3 + $0x100] sm:$0xff] %vm2008_vm0, %v2792_v39  ;;  %2803 = vpow2.f32 %v2276_v37  ;;  %v2277_v40 = vmul.f32 -1.442695, %v1525_v38  ;;  %v1240_v42 = vpop.f32.mrb[80].mxu1 }
 0x1b5   :  { %v2794_v41 = vpop.eup %2793  ;;  %v1241_v44 = vadd.f32 %v3619_v15, %v1240_v42  ;;  %v1529_v45 = vpop.f32.mrb[80].mxu0 }
 0x1b6   :  { %v2796_v43 = vpop.eup %2795  ;;  %2042 = vst.msk [vmem:[%s3778_s3 + $0x108] sm:$0xff] %vm2008_vm0, %v2794_v41  ;;  %2805 = vpow2.f32 %v2277_v40  ;;  %v1242_v46 = vpop.f32.mrb[81].mxu1 }
 0x1b7   :  { %v1852_v47 = vadd.f32 1.0, %v2796_v43  ;;  %v1531_v48 = vpop.f32.mrb[81].mxu0  ;;  %v1243_v49 = vpop.f32.mrb[82].mxu1  ;;  %v1530_v51 = vadd.f32 %v1529_v45, %v1241_v44 }
 0x1b8   :  { %v2798_v50 = vpop.eup %2797  ;;  %v1244_v52 = vadd.f32 %v3619_v15, %v1243_v49  ;;  %v1532_v53 = vpop.f32.mrb[82].mxu0 }
 0x1b9   :  { %v1245_v54 = vpop.f32.mrb[83].mxu1  ;;  %2807 = vrcp.f32 %v1852_v47  ;;  %v1853_v55 = vadd.f32 1.0, %v2798_v50  ;;  %v1534_v56 = vpop.f32.mrb[83].mxu0  ;;  %v2278_v57 = vmul.f32 -1.442695, %v1530_v51 }
 0x1ba   :  { %v1533_v58 = vadd.f32 %v1532_v53, %v1244_v52 }
 0x1bb   :  { %v2800_v59 = vpop.eup %2799  ;;  %2809 = vrcp.f32 %v1853_v55 }
 0x1bc   :  { %2043 = vst.msk [vmem:[%s3778_s3 + $0x110] sm:$0xff] %vm2008_vm0, %v2800_v59  ;;  %2811 = vpow2.f32 %v2278_v57  ;;  %v2279_v60 = vmul.f32 -1.442695, %v1533_v58  ;;  %v1248_v62 = vpop.f32.mrb[84].mxu1 }
 0x1bd   :  { %v2802_v61 = vpop.eup %2801  ;;  %v1249_v0 = vadd.f32 %v3619_v15, %v1248_v62  ;;  %v1537_v1 = vpop.f32.mrb[84].mxu0 }
 0x1be   :  { %v2804_v63 = vpop.eup %2803  ;;  %2044 = vst.msk [vmem:[%s3778_s3 + $0x118] sm:$0xff] %vm2008_vm0, %v2802_v61  ;;  %2813 = vpow2.f32 %v2279_v60  ;;  %v1250_v2 = vpop.f32.mrb[85].mxu1 }
 0x1bf   :  { %v1854_v3 = vadd.f32 1.0, %v2804_v63  ;;  %v1539_v4 = vpop.f32.mrb[85].mxu0  ;;  %v1251_v5 = vpop.f32.mrb[86].mxu1  ;;  %v1538_v7 = vadd.f32 %v1537_v1, %v1249_v0 }
 0x1c0   :  { %v2806_v6 = vpop.eup %2805  ;;  %v1252_v8 = vadd.f32 %v3619_v15, %v1251_v5  ;;  %v1540_v9 = vpop.f32.mrb[86].mxu0 }
 0x1c1   :  { %v1253_v10 = vpop.f32.mrb[87].mxu1  ;;  %2815 = vrcp.f32 %v1854_v3  ;;  %v1855_v11 = vadd.f32 1.0, %v2806_v6  ;;  %v1542_v12 = vpop.f32.mrb[87].mxu0  ;;  %v2280_v13 = vmul.f32 -1.442695, %v1538_v7 }
 0x1c2   :  { %v1541_v14 = vadd.f32 %v1540_v9, %v1252_v8 }
 0x1c3   :  { %v2808_v16 = vpop.eup %2807  ;;  %2817 = vrcp.f32 %v1855_v11 }
 0x1c4   :  { %2045 = vst.msk [vmem:[%s3778_s3 + $0x120] sm:$0xff] %vm2008_vm0, %v2808_v16  ;;  %2819 = vpow2.f32 %v2280_v13  ;;  %v2281_v17 = vmul.f32 -1.442695, %v1541_v14  ;;  %v1256_v19 = vpop.f32.mrb[88].mxu1 }
 0x1c5   :  { %v2810_v18 = vpop.eup %2809  ;;  %v1257_v21 = vadd.f32 %v3619_v15, %v1256_v19  ;;  %v1545_v22 = vpop.f32.mrb[88].mxu0 }
 0x1c6   :  { %v2812_v20 = vpop.eup %2811  ;;  %2046 = vst.msk [vmem:[%s3778_s3 + $0x128] sm:$0xff] %vm2008_vm0, %v2810_v18  ;;  %2821 = vpow2.f32 %v2281_v17  ;;  %v1258_v23 = vpop.f32.mrb[89].mxu1 }
 0x1c7   :  { %v1856_v24 = vadd.f32 1.0, %v2812_v20  ;;  %v1547_v25 = vpop.f32.mrb[89].mxu0  ;;  %v1259_v26 = vpop.f32.mrb[90].mxu1  ;;  %v1546_v28 = vadd.f32 %v1545_v22, %v1257_v21 }
 0x1c8   :  { %v2814_v27 = vpop.eup %2813  ;;  %v1260_v29 = vadd.f32 %v3619_v15, %v1259_v26  ;;  %v1548_v30 = vpop.f32.mrb[90].mxu0 }
 0x1c9   :  { %v1261_v31 = vpop.f32.mrb[91].mxu1  ;;  %2823 = vrcp.f32 %v1856_v24  ;;  %v1857_v32 = vadd.f32 1.0, %v2814_v27  ;;  %v1550_v33 = vpop.f32.mrb[91].mxu0  ;;  %v2282_v34 = vmul.f32 -1.442695, %v1546_v28 }
 0x1ca   :  { %v1549_v35 = vadd.f32 %v1548_v30, %v1260_v29 }
 0x1cb   :  { %v2816_v36 = vpop.eup %2815  ;;  %2825 = vrcp.f32 %v1857_v32 }
 0x1cc   :  { %2047 = vst.msk [vmem:[%s3778_s3 + $0x130] sm:$0xff] %vm2008_vm0, %v2816_v36  ;;  %2827 = vpow2.f32 %v2282_v34  ;;  %v2283_v37 = vmul.f32 -1.442695, %v1549_v35  ;;  %v1264_v39 = vpop.f32.mrb[92].mxu1 }
 0x1cd   :  { %v2818_v38 = vpop.eup %2817  ;;  %v1265_v41 = vadd.f32 %v3619_v15, %v1264_v39  ;;  %v1553_v42 = vpop.f32.mrb[92].mxu0 }
 0x1ce   :  { %v2820_v40 = vpop.eup %2819  ;;  %2048 = vst.msk [vmem:[%s3778_s3 + $0x138] sm:$0xff] %vm2008_vm0, %v2818_v38  ;;  %2829 = vpow2.f32 %v2283_v37  ;;  %v1266_v43 = vpop.f32.mrb[93].mxu1 }
 0x1cf   :  { %v1858_v44 = vadd.f32 1.0, %v2820_v40  ;;  %v1555_v45 = vpop.f32.mrb[93].mxu0  ;;  %v1267_v46 = vpop.f32.mrb[94].mxu1  ;;  %v1554_v48 = vadd.f32 %v1553_v42, %v1265_v41 }
 0x1d0   :  { %v2822_v47 = vpop.eup %2821  ;;  %v1268_v49 = vadd.f32 %v3619_v15, %v1267_v46  ;;  %v1556_v50 = vpop.f32.mrb[94].mxu0 }
 0x1d1   :  { %v1269_v51 = vpop.f32.mrb[95].mxu1  ;;  %2831 = vrcp.f32 %v1858_v44  ;;  %v1859_v52 = vadd.f32 1.0, %v2822_v47  ;;  %v1558_v53 = vpop.f32.mrb[95].mxu0  ;;  %v2284_v54 = vmul.f32 -1.442695, %v1554_v48 }
 0x1d2   :  { %v1557_v55 = vadd.f32 %v1556_v50, %v1268_v49 }
 0x1d3   :  { %v2824_v56 = vpop.eup %2823  ;;  %2833 = vrcp.f32 %v1859_v52 }
 0x1d4   :  { %2049 = vst.msk [vmem:[%s3778_s3 + $0x140] sm:$0xff] %vm2008_vm0, %v2824_v56  ;;  %2835 = vpow2.f32 %v2284_v54  ;;  %v2285_v57 = vmul.f32 -1.442695, %v1557_v55  ;;  %v1272_v59 = vpop.f32.mrb[96].mxu1 }
 0x1d5   :  { %v2826_v58 = vpop.eup %2825  ;;  %v1273_v61 = vadd.f32 %v3619_v15, %v1272_v59  ;;  %v1561_v62 = vpop.f32.mrb[96].mxu0 }
 0x1d6   :  { %v2828_v60 = vpop.eup %2827  ;;  %2050 = vst.msk [vmem:[%s3778_s3 + $0x148] sm:$0xff] %vm2008_vm0, %v2826_v58  ;;  %2837 = vpow2.f32 %v2285_v57  ;;  %v1274_v63 = vpop.f32.mrb[97].mxu1 }
 0x1d7   :  { %v1860_v0 = vadd.f32 1.0, %v2828_v60  ;;  %v1563_v1 = vpop.f32.mrb[97].mxu0  ;;  %v1275_v2 = vpop.f32.mrb[98].mxu1  ;;  %v1562_v4 = vadd.f32 %v1561_v62, %v1273_v61 }
 0x1d8   :  { %v2830_v3 = vpop.eup %2829  ;;  %v1276_v5 = vadd.f32 %v3619_v15, %v1275_v2  ;;  %v1564_v6 = vpop.f32.mrb[98].mxu0 }
 0x1d9   :  { %v1277_v7 = vpop.f32.mrb[99].mxu1  ;;  %2839 = vrcp.f32 %v1860_v0  ;;  %v1861_v8 = vadd.f32 1.0, %v2830_v3  ;;  %v1566_v9 = vpop.f32.mrb[99].mxu0  ;;  %v2286_v10 = vmul.f32 -1.442695, %v1562_v4 }
 0x1da   :  { %v1565_v11 = vadd.f32 %v1564_v6, %v1276_v5 }
 0x1db   :  { %v2832_v12 = vpop.eup %2831  ;;  %2841 = vrcp.f32 %v1861_v8 }
 0x1dc   :  { %2051 = vst.msk [vmem:[%s3778_s3 + $0x150] sm:$0xff] %vm2008_vm0, %v2832_v12  ;;  %2843 = vpow2.f32 %v2286_v10  ;;  %v2287_v13 = vmul.f32 -1.442695, %v1565_v11  ;;  %v1280_v16 = vpop.f32.mrb[100].mxu1 }
 0x1dd   :  { %v2834_v14 = vpop.eup %2833  ;;  %v1281_v18 = vadd.f32 %v3619_v15, %v1280_v16  ;;  %v1569_v19 = vpop.f32.mrb[100].mxu0 }
 0x1de   :  { %v2836_v17 = vpop.eup %2835  ;;  %2052 = vst.msk [vmem:[%s3778_s3 + $0x158] sm:$0xff] %vm2008_vm0, %v2834_v14  ;;  %2845 = vpow2.f32 %v2287_v13  ;;  %v1282_v20 = vpop.f32.mrb[101].mxu1 }
 0x1df   :  { %v1862_v21 = vadd.f32 1.0, %v2836_v17  ;;  %v1571_v22 = vpop.f32.mrb[101].mxu0  ;;  %v1283_v23 = vpop.f32.mrb[102].mxu1  ;;  %v1570_v25 = vadd.f32 %v1569_v19, %v1281_v18 }
 0x1e0   :  { %v2838_v24 = vpop.eup %2837  ;;  %v1284_v26 = vadd.f32 %v3619_v15, %v1283_v23  ;;  %v1572_v27 = vpop.f32.mrb[102].mxu0 }
 0x1e1   :  { %v1285_v28 = vpop.f32.mrb[103].mxu1  ;;  %2847 = vrcp.f32 %v1862_v21  ;;  %v1863_v29 = vadd.f32 1.0, %v2838_v24  ;;  %v1574_v30 = vpop.f32.mrb[103].mxu0  ;;  %v2288_v31 = vmul.f32 -1.442695, %v1570_v25 }
 0x1e2   :  { %v1573_v32 = vadd.f32 %v1572_v27, %v1284_v26 }
 0x1e3   :  { %v2840_v33 = vpop.eup %2839  ;;  %2849 = vrcp.f32 %v1863_v29 }
 0x1e4   :  { %2053 = vst.msk [vmem:[%s3778_s3 + $0x160] sm:$0xff] %vm2008_vm0, %v2840_v33  ;;  %2851 = vpow2.f32 %v2288_v31  ;;  %v2289_v34 = vmul.f32 -1.442695, %v1573_v32  ;;  %v1288_v36 = vpop.f32.mrb[104].mxu1 }
 0x1e5   :  { %v2842_v35 = vpop.eup %2841  ;;  %v1289_v38 = vadd.f32 %v3619_v15, %v1288_v36  ;;  %v1577_v39 = vpop.f32.mrb[104].mxu0 }
 0x1e6   :  { %v2844_v37 = vpop.eup %2843  ;;  %2054 = vst.msk [vmem:[%s3778_s3 + $0x168] sm:$0xff] %vm2008_vm0, %v2842_v35  ;;  %2853 = vpow2.f32 %v2289_v34  ;;  %v1290_v40 = vpop.f32.mrb[105].mxu1 }
 0x1e7   :  { %v1864_v41 = vadd.f32 1.0, %v2844_v37  ;;  %v1579_v42 = vpop.f32.mrb[105].mxu0  ;;  %v1291_v43 = vpop.f32.mrb[106].mxu1  ;;  %v1578_v45 = vadd.f32 %v1577_v39, %v1289_v38 }
 0x1e8   :  { %v2846_v44 = vpop.eup %2845  ;;  %v1292_v46 = vadd.f32 %v3619_v15, %v1291_v43  ;;  %v1580_v47 = vpop.f32.mrb[106].mxu0 }
 0x1e9   :  { %v1293_v48 = vpop.f32.mrb[107].mxu1  ;;  %2855 = vrcp.f32 %v1864_v41  ;;  %v1865_v49 = vadd.f32 1.0, %v2846_v44  ;;  %v1582_v50 = vpop.f32.mrb[107].mxu0  ;;  %v2290_v51 = vmul.f32 -1.442695, %v1578_v45 }
 0x1ea   :  { %v1581_v52 = vadd.f32 %v1580_v47, %v1292_v46 }
 0x1eb   :  { %v2848_v53 = vpop.eup %2847  ;;  %2857 = vrcp.f32 %v1865_v49 }
 0x1ec   :  { %2055 = vst.msk [vmem:[%s3778_s3 + $0x170] sm:$0xff] %vm2008_vm0, %v2848_v53  ;;  %2859 = vpow2.f32 %v2290_v51  ;;  %v2291_v54 = vmul.f32 -1.442695, %v1581_v52  ;;  %v1296_v56 = vpop.f32.mrb[108].mxu1 }
 0x1ed   :  { %v2850_v55 = vpop.eup %2849  ;;  %v1297_v58 = vadd.f32 %v3619_v15, %v1296_v56  ;;  %v1585_v59 = vpop.f32.mrb[108].mxu0 }
 0x1ee   :  { %v2852_v57 = vpop.eup %2851  ;;  %2056 = vst.msk [vmem:[%s3778_s3 + $0x178] sm:$0xff] %vm2008_vm0, %v2850_v55  ;;  %2861 = vpow2.f32 %v2291_v54  ;;  %v1298_v60 = vpop.f32.mrb[109].mxu1 }
 0x1ef   :  { %v1866_v61 = vadd.f32 1.0, %v2852_v57  ;;  %v1587_v62 = vpop.f32.mrb[109].mxu0  ;;  %v1299_v63 = vpop.f32.mrb[110].mxu1  ;;  %v1586_v1 = vadd.f32 %v1585_v59, %v1297_v58 }
 0x1f0   :  { %v2854_v0 = vpop.eup %2853  ;;  %v1300_v2 = vadd.f32 %v3619_v15, %v1299_v63  ;;  %v1588_v3 = vpop.f32.mrb[110].mxu0 }
 0x1f1   :  { %v1301_v4 = vpop.f32.mrb[111].mxu1  ;;  %2863 = vrcp.f32 %v1866_v61  ;;  %v1867_v5 = vadd.f32 1.0, %v2854_v0  ;;  %v1590_v6 = vpop.f32.mrb[111].mxu0  ;;  %v2292_v7 = vmul.f32 -1.442695, %v1586_v1 }
 0x1f2   :  { %v1589_v8 = vadd.f32 %v1588_v3, %v1300_v2 }
 0x1f3   :  { %v2856_v9 = vpop.eup %2855  ;;  %2865 = vrcp.f32 %v1867_v5 }
 0x1f4   :  { %2057 = vst.msk [vmem:[%s3778_s3 + $0x180] sm:$0xff] %vm2008_vm0, %v2856_v9  ;;  %2867 = vpow2.f32 %v2292_v7  ;;  %v2293_v10 = vmul.f32 -1.442695, %v1589_v8  ;;  %v1304_v12 = vpop.f32.mrb[112].mxu1 }
 0x1f5   :  { %v2858_v11 = vpop.eup %2857  ;;  %v1305_v14 = vadd.f32 %v3619_v15, %v1304_v12  ;;  %v1593_v16 = vpop.f32.mrb[112].mxu0 }
 0x1f6   :  { %v2860_v13 = vpop.eup %2859  ;;  %2058 = vst.msk [vmem:[%s3778_s3 + $0x188] sm:$0xff] %vm2008_vm0, %v2858_v11  ;;  %2869 = vpow2.f32 %v2293_v10  ;;  %v1306_v17 = vpop.f32.mrb[113].mxu1 }
 0x1f7   :  { %v1868_v18 = vadd.f32 1.0, %v2860_v13  ;;  %v1595_v19 = vpop.f32.mrb[113].mxu0  ;;  %v1307_v20 = vpop.f32.mrb[114].mxu1  ;;  %v1594_v22 = vadd.f32 %v1593_v16, %v1305_v14 }
 0x1f8   :  { %v2862_v21 = vpop.eup %2861  ;;  %v1308_v23 = vadd.f32 %v3619_v15, %v1307_v20  ;;  %v1596_v24 = vpop.f32.mrb[114].mxu0 }
 0x1f9   :  { %v1309_v25 = vpop.f32.mrb[115].mxu1  ;;  %2871 = vrcp.f32 %v1868_v18  ;;  %v1869_v26 = vadd.f32 1.0, %v2862_v21  ;;  %v1598_v27 = vpop.f32.mrb[115].mxu0  ;;  %v2294_v28 = vmul.f32 -1.442695, %v1594_v22 }
 0x1fa   :  { %v1597_v29 = vadd.f32 %v1596_v24, %v1308_v23 }
 0x1fb   :  { %v2864_v30 = vpop.eup %2863  ;;  %2873 = vrcp.f32 %v1869_v26 }
 0x1fc   :  { %2059 = vst.msk [vmem:[%s3778_s3 + $0x190] sm:$0xff] %vm2008_vm0, %v2864_v30  ;;  %2875 = vpow2.f32 %v2294_v28  ;;  %v2295_v31 = vmul.f32 -1.442695, %v1597_v29  ;;  %v1312_v33 = vpop.f32.mrb[116].mxu1 }
 0x1fd   :  { %v2866_v32 = vpop.eup %2865  ;;  %v1313_v35 = vadd.f32 %v3619_v15, %v1312_v33  ;;  %v1601_v36 = vpop.f32.mrb[116].mxu0 }
 0x1fe   :  { %v2868_v34 = vpop.eup %2867  ;;  %2060 = vst.msk [vmem:[%s3778_s3 + $0x198] sm:$0xff] %vm2008_vm0, %v2866_v32  ;;  %2877 = vpow2.f32 %v2295_v31  ;;  %v1314_v37 = vpop.f32.mrb[117].mxu1 }
 0x1ff   :  { %v1870_v38 = vadd.f32 1.0, %v2868_v34  ;;  %v1603_v39 = vpop.f32.mrb[117].mxu0  ;;  %v1315_v40 = vpop.f32.mrb[118].mxu1  ;;  %v1602_v42 = vadd.f32 %v1601_v36, %v1313_v35 }
 0x200   :  { %v2870_v41 = vpop.eup %2869  ;;  %v1316_v43 = vadd.f32 %v3619_v15, %v1315_v40  ;;  %v1604_v44 = vpop.f32.mrb[118].mxu0 }
 0x201   :  { %v1317_v45 = vpop.f32.mrb[119].mxu1  ;;  %2879 = vrcp.f32 %v1870_v38  ;;  %v1871_v46 = vadd.f32 1.0, %v2870_v41  ;;  %v1606_v47 = vpop.f32.mrb[119].mxu0  ;;  %v2296_v48 = vmul.f32 -1.442695, %v1602_v42 }
 0x202   :  { %v1605_v49 = vadd.f32 %v1604_v44, %v1316_v43 }
 0x203   :  { %v2872_v50 = vpop.eup %2871  ;;  %2881 = vrcp.f32 %v1871_v46 }
 0x204   :  { %2061 = vst.msk [vmem:[%s3778_s3 + $0x1a0] sm:$0xff] %vm2008_vm0, %v2872_v50  ;;  %2883 = vpow2.f32 %v2296_v48  ;;  %v2297_v51 = vmul.f32 -1.442695, %v1605_v49  ;;  %v1320_v53 = vpop.f32.mrb[120].mxu1 }
 0x205   :  { %v2874_v52 = vpop.eup %2873  ;;  %v1321_v55 = vadd.f32 %v3619_v15, %v1320_v53  ;;  %v1609_v56 = vpop.f32.mrb[120].mxu0 }
 0x206   :  { %v2876_v54 = vpop.eup %2875  ;;  %2062 = vst.msk [vmem:[%s3778_s3 + $0x1a8] sm:$0xff] %vm2008_vm0, %v2874_v52  ;;  %2885 = vpow2.f32 %v2297_v51  ;;  %v1322_v57 = vpop.f32.mrb[121].mxu1 }
 0x207   :  { %v1872_v58 = vadd.f32 1.0, %v2876_v54  ;;  %v1611_v59 = vpop.f32.mrb[121].mxu0  ;;  %v1323_v60 = vpop.f32.mrb[122].mxu1  ;;  %v1610_v62 = vadd.f32 %v1609_v56, %v1321_v55 }
 0x208   :  { %v2878_v61 = vpop.eup %2877  ;;  %v1324_v63 = vadd.f32 %v3619_v15, %v1323_v60  ;;  %v1612_v0 = vpop.f32.mrb[122].mxu0 }
 0x209   :  { %v1325_v1 = vpop.f32.mrb[123].mxu1  ;;  %2887 = vrcp.f32 %v1872_v58  ;;  %v1873_v2 = vadd.f32 1.0, %v2878_v61  ;;  %v1614_v3 = vpop.f32.mrb[123].mxu0  ;;  %v2298_v4 = vmul.f32 -1.442695, %v1610_v62 }
 0x20a   :  { %v1613_v5 = vadd.f32 %v1612_v0, %v1324_v63 }
 0x20b   :  { %v2880_v6 = vpop.eup %2879  ;;  %2889 = vrcp.f32 %v1873_v2 }
 0x20c   :  { %2063 = vst.msk [vmem:[%s3778_s3 + $0x1b0] sm:$0xff] %vm2008_vm0, %v2880_v6  ;;  %2891 = vpow2.f32 %v2298_v4  ;;  %v2299_v7 = vmul.f32 -1.442695, %v1613_v5  ;;  %v1328_v9 = vpop.f32.mrb[124].mxu1 }
 0x20d   :  { %v2882_v8 = vpop.eup %2881  ;;  %v1329_v11 = vadd.f32 %v3619_v15, %v1328_v9  ;;  %v1617_v12 = vpop.f32.mrb[124].mxu0 }
 0x20e   :  { %v2884_v10 = vpop.eup %2883  ;;  %2064 = vst.msk [vmem:[%s3778_s3 + $0x1b8] sm:$0xff] %vm2008_vm0, %v2882_v8  ;;  %2893 = vpow2.f32 %v2299_v7  ;;  %v1330_v13 = vpop.f32.mrb[125].mxu1 }
 0x20f   :  { %v1874_v14 = vadd.f32 1.0, %v2884_v10  ;;  %v1619_v16 = vpop.f32.mrb[125].mxu0  ;;  %v1331_v17 = vpop.f32.mrb[126].mxu1  ;;  %v1618_v19 = vadd.f32 %v1617_v12, %v1329_v11 }
 0x210   :  { %v2886_v18 = vpop.eup %2885  ;;  %v1332_v20 = vadd.f32 %v3619_v15, %v1331_v17  ;;  %v1620_v21 = vpop.f32.mrb[126].mxu0 }
 0x211   :  { %v1333_v22 = vpop.f32.mrb[127].mxu1  ;;  %2895 = vrcp.f32 %v1874_v14  ;;  %v1875_v23 = vadd.f32 1.0, %v2886_v18  ;;  %v1622_v24 = vpop.f32.mrb[127].mxu0  ;;  %v2300_v25 = vmul.f32 -1.442695, %v1618_v19 }
 0x212   :  { %v1621_v26 = vadd.f32 %v1620_v21, %v1332_v20 }
 0x213   :  { %v2888_v27 = vpop.eup %2887  ;;  %2897 = vrcp.f32 %v1875_v23 }
 0x214   :  { %2065 = vst.msk [vmem:[%s3778_s3 + $0x1c0] sm:$0xff] %vm2008_vm0, %v2888_v27  ;;  %2899 = vpow2.f32 %v2300_v25  ;;  %v2301_v28 = vmul.f32 -1.442695, %v1621_v26 }
 0x215   :  { %v2890_v29 = vpop.eup %2889 }
 0x216   :  { %v2892_v30 = vpop.eup %2891  ;;  %2066 = vst.msk [vmem:[%s3778_s3 + $0x1c8] sm:$0xff] %vm2008_vm0, %v2890_v29  ;;  %2901 = vpow2.f32 %v2301_v28 }
 0x217   :  { %v1876_v15 = vadd.f32 1.0, %v2892_v30 }
 0x218   :  { %v2894_v31 = vpop.eup %2893 }
 0x219   :  { %2903 = vrcp.f32 %v1876_v15  ;;  %v1877_v32 = vadd.f32 1.0, %v2894_v31 }
 0x21b   :  { %v2896_v33 = vpop.eup %2895  ;;  %2905 = vrcp.f32 %v1877_v32 }
 0x21c   :  { %2067 = vst.msk [vmem:[%s3778_s3 + $0x1d0] sm:$0xff] %vm2008_vm0, %v2896_v33 }
 0x21d   :  { %v2898_v34 = vpop.eup %2897 }
 0x21e   :  { %v2900_v35 = vpop.eup %2899  ;;  %2068 = vst.msk [vmem:[%s3778_s3 + $0x1d8] sm:$0xff] %vm2008_vm0, %v2898_v34 }
 0x21f   :  { %v1878_v36 = vadd.f32 1.0, %v2900_v35 }
 0x220   :  { %v2902_v37 = vpop.eup %2901 }
 0x221   :  { %2907 = vrcp.f32 %v1878_v36  ;;  %v1879_v38 = vadd.f32 1.0, %v2902_v37 }
 0x223   :  { %v2904_v39 = vpop.eup %2903  ;;  %2909 = vrcp.f32 %v1879_v38 }
 0x224   :  { %2069 = vst.msk [vmem:[%s3778_s3 + $0x1e0] sm:$0xff] %vm2008_vm0, %v2904_v39 }
 0x225   :  { %v2906_v40 = vpop.eup %2905 }
 0x226   :  { %2070 = vst.msk [vmem:[%s3778_s3 + $0x1e8] sm:$0xff] %vm2008_vm0, %v2906_v40 }
 0x22b   :  { %v2908_v41 = vpop.eup %2907 }
 0x22c   :  { %2071 = vst.msk [vmem:[%s3778_s3 + $0x1f0] sm:$0xff] %vm2008_vm0, %v2908_v41 }
 0x22d   :  { %v2910_v42 = vpop.eup %2909 }
 0x22e   :  { %2072 = vst.msk [vmem:[%s3778_s3 + $0x1f8] sm:$0xff] %vm2008_vm0, %v2910_v42 }

</bundles_post_ra>
